<compile_context>
chip_gen: v7x
topology: tpu7x:2x2x1
jax: 0.10.0
libtpu: 0.0.40
codegen_flags: <defaults>
</compile_context>

<pallas_src>
import functools

import jax
import jax.numpy as jnp
from jax.experimental import pallas as pl
from jax.experimental.pallas import tpu as pltpu


# --------------------------------------------------------------------------
# network configuration
# --------------------------------------------------------------------------
# TODO(synk): DenseBlock_SelfC / FeatureCalapseBlock definitions are not given
# in the reference; each block is approximated by one 3x3 conv (+LeakyReLU(0.2),
# + input residual when is_res=True) with the module's channel counts.
_MID_C = 24
_BLOCK_CFG = (
    # (Cin, Cout, lrelu, res)
    (4, _MID_C, True, False),
    (_MID_C, _MID_C, True, True),
    (_MID_C, _MID_C, True, True),
    (_MID_C, _MID_C, True, True),
    (_MID_C, _MID_C, True, True),
    (_MID_C, 3, False, False),
)
_N_LAYERS = len(_BLOCK_CFG)
_HALO = _N_LAYERS          # one halo row per fused 3x3 conv
_NEG_SLOPE = 0.2


# --------------------------------------------------------------------------
# Pallas kernels
# --------------------------------------------------------------------------

def _fused_surrogate_kernel(*refs, cfg, tile_rows, w_img, halo):
    """All six 3x3 convs + global skip + 8-bit codec surrogate for one row tile.

    Layout: every activation is (channels, rows * (W+2)), i.e. channels on the
    sublane axis and a row-major flattening of (rows, W+2) on the lane axis,
    with the two conv-padding columns stored as explicit zero lanes.  Rows
    outside the image (halo) are kept exactly zero so they act as the next
    conv's zero padding; both are enforced by one precomputed per-tile mask.
    """
    n_layers = len(cfg)
    x4h_ref, x3_ref, mask_ref = refs[0], refs[1], refs[2]
    w_refs = refs[3:3 + n_layers]
    ynet_ref, h265_ref = refs[3 + n_layers], refs[4 + n_layers]

    wp = w_img + 2                              # padded row width

    a = x4h_ref[...]                            # (4, (tile_rows + 2*halo) * wp)
    mask_full = mask_ref[...]                   # (1, (tile_rows + 2*(halo-1)) * wp)

    rows = tile_rows + 2 * (halo - 1)           # rows produced by layer 0
    for l, (cin, cout, lrelu, res) in enumerate(cfg):
        w_flat = w_refs[l][...]                 # (cout, 1 + 9*cin), col 0 = bias
        n = rows * wp

        # one-element zero guards so all nine shifted slices stay in bounds.
        zero = jnp.zeros((cin, 1), jnp.float32)
        a_ext = jnp.concatenate([zero, a, zero], axis=1)

        # in-VMEM im2col: nine shifted contiguous slices -> nine small matmuls.
        acc = None
        for dy in range(3):
            for dx in range(3):
                k = dy * 3 + dx
                wk = w_flat[:, 1 + k * cin: 1 + (k + 1) * cin]     # (cout, cin)
                slab = a_ext[:, dy * wp + dx: dy * wp + dx + n]    # (cin, n)
                part = jnp.dot(wk, slab.astype(wk.dtype),
                               preferred_element_type=jnp.float32)
                acc = part if acc is None else acc + part
        out = acc + w_flat[:, 0:1].astype(jnp.float32)             # bias

        if lrelu:
            out = jnp.where(out >= 0.0, out, _NEG_SLOPE * out)
        if res:
            assert cin == cout, "residual blocks require Cin == Cout"
            out = out + a[:, wp: wp + n]                           # centre rows

        # Re-zero the two padding columns and any halo rows outside the image:
        # layer-l output lane q maps to layer-0 mask lane q + l*wp (same column,
        # row shifted by l), so a single host-precomputed mask covers all layers.
        out = out * mask_full[:, l * wp: l * wp + n]

        a = out
        rows -= 2

    # global skip connection folded into the last layer's epilogue.
    x3 = x3_ref[...]                            # (3, tile_rows * wp), pad cols 0
    ynet_ref[...] = a + x3

    # TODO(synk): the real libx265 encode/decode round trip (H265_xxx) has no
    # Pallas equivalent; it is modeled as the deterministic 8-bit quantization
    # clamp -> round(x*255)/255 of its pre/post-processing.
    xq = jnp.clip(x3, 0.0, 1.0)
    h265_ref[...] = jnp.round(xq * 255.0) * (1.0 / 255.0)


def _loss_kernel(x_ref, y_ref, mim_ref, corr_ref, *, inv_total, inv_positions):
    """mimick MSE + per-position batch correlation, accumulated over the grid."""
    j = pl.program_id(0)

    @pl.when(j == 0)
    def _init():
        mim_ref[...] = jnp.zeros_like(mim_ref)
        corr_ref[...] = jnp.zeros_like(corr_ref)

    x = x_ref[...]                              # (bt, tile_positions)
    y = y_ref[...]
    d = x - y
    mim_ref[...] += jnp.sum(d * d, keepdims=True)

    mx = jnp.mean(x, axis=0, keepdims=True)
    my = jnp.mean(y, axis=0, keepdims=True)
    vx = x - mx
    vy = y - my
    num = jnp.sum(vx * vy, axis=0, keepdims=True)
    den = (jnp.sqrt(jnp.sum(vx * vx, axis=0, keepdims=True)) *
           jnp.sqrt(jnp.sum(vy * vy, axis=0, keepdims=True)) + 1e-8)
    corr_ref[...] += jnp.sum(num / den, keepdims=True)

    @pl.when(j == pl.num_programs(0) - 1)
    def _finalize():
        mim_ref[...] = mim_ref[...] * inv_total
        corr_ref[...] = corr_ref[...] * inv_positions


# --------------------------------------------------------------------------
# wrappers around pallas_call
# --------------------------------------------------------------------------

def _pick_tile_rows(h, w, lane_cap=16384):
    """Largest row tile that divides H while keeping the lane extent (and hence
    the fused kernel's VMEM working set) bounded on every TPU generation."""
    wp = w + 2
    for th in range(h, 0, -1):
        if h % th == 0 and th * wp <= lane_cap:
            return th
    return 1


def suggrogate_net_and_codec(x, params, *, t, tile_rows=None,
                             conv_dtype=jnp.float32):
    """Fused surrogate net (+ global skip) and codec surrogate.

    x: (bt, 3, h, w) float32 NCHW.  Returns two (bt, n_tiles, 3, tile_rows*(w+2))
    arrays (network output and codec round trip) in the tiled, column-padded
    layout; padding lanes are exactly zero.
    """
    bt, c, h, w = x.shape
    assert c == 3 and bt % t == 0
    b = bt // t
    wp = w + 2

    # temporal indicator channel (q is an int in this configuration).
    temporal = jnp.linspace(0.0, 1.0, t, dtype=jnp.float32)
    ind = jnp.broadcast_to(temporal.reshape(1, t, 1, 1, 1), (b, t, 1, h, w))
    x4 = jnp.concatenate([x.reshape(b, t, c, h, w), ind], axis=2)
    x4 = x4.reshape(bt, c + 1, h, w)

    th = _pick_tile_rows(h, w) if tile_rows is None else tile_rows
    assert h % th == 0, "tile_rows must divide H"
    n_tiles = h // th

    # Per-tile input slabs: two zero padding columns baked in and a +/- HALO row
    # halo (zeros outside the image) so all six convs run fused in VMEM.
    x4p = jnp.pad(x4, ((0, 0), (0, 0), (_HALO, _HALO), (1, 1)))
    x4_halo = jnp.stack(
        [x4p[:, :, i * th: i * th + th + 2 * _HALO, :] for i in range(n_tiles)],
        axis=1).reshape(bt, n_tiles, c + 1, (th + 2 * _HALO) * wp)

    # Original frames in the same tiled layout (global skip + codec surrogate).
    x3p = jnp.pad(x, ((0, 0), (0, 0), (0, 0), (1, 1)))
    x3_tiles = jnp.stack(
        [x3p[:, :, i * th:(i + 1) * th, :] for i in range(n_tiles)],
        axis=1).reshape(bt, n_tiles, c, th * wp)

    # Host-precomputed per-tile boundary mask at the widest (layer-0 output)
    # extent: zero at the two padding columns and at halo rows outside [0, h).
    rows0 = th + 2 * (_HALO - 1)
    col = jnp.pad(jnp.ones((w,), jnp.float32), (1, 1))                  # (wp,)
    grow = (jnp.arange(n_tiles)[:, None] * th - (_HALO - 1)
            + jnp.arange(rows0)[None, :])                               # (n_tiles, rows0)
    rowv = ((grow >= 0) & (grow < h)).astype(jnp.float32)
    mask = (rowv[:, :, None] * col[None, None, :]).reshape(
        n_tiles, 1, rows0 * wp)

    weights = [params[f"w{l}"].astype(conv_dtype) for l in range(_N_LAYERS)]

    kernel = functools.partial(_fused_surrogate_kernel, cfg=_BLOCK_CFG,
                               tile_rows=th, w_img=w, halo=_HALO)

    out_sds = jax.ShapeDtypeStruct((bt, n_tiles, c, th * wp), jnp.float32)
    tile_spec = pl.BlockSpec((None, None, c, th * wp),
                             lambda bi, ti: (bi, ti, 0, 0))
    y_net, h265 = pl.pallas_call(
        kernel,
        out_shape=(out_sds, out_sds),
        grid_spec=pltpu.PrefetchScalarGridSpec(
            num_scalar_prefetch=0,
            grid=(bt, n_tiles),
            in_specs=[
                pl.BlockSpec((None, None, c + 1, (th + 2 * _HALO) * wp),
                             lambda bi, ti: (bi, ti, 0, 0)),
                tile_spec,
                pl.BlockSpec((None, 1, rows0 * wp), lambda bi, ti: (ti, 0, 0)),
            ] + [
                pl.BlockSpec(wt.shape, lambda bi, ti: (0, 0)) for wt in weights
            ],
            out_specs=[tile_spec, tile_spec],
        ),
        compiler_params=pltpu.CompilerParams(
            dimension_semantics=("parallel", "parallel")),
    )(x4_halo, x3_tiles, mask, *weights)
    return y_net, h265


def _loss_tile(p, lane_cap=8192):
    """Pick a lane-aligned feature tile; if no multiple of 128 divides p, pad."""
    cap = min(p, lane_cap)
    k = cap - cap % 128
    while k >= 128:
        if p % k == 0:
            return k, p
        k -= 128
    k = min(lane_cap, ((p + 127) // 128) * 128)
    p_pad = ((p + k - 1) // k) * k
    return k, p_pad


def mimick_and_correlation(x2, y2, *, n_true_positions):
    """Feature-tiled reduction; zero pad-lanes in x2/y2 contribute nothing."""
    bt, p = x2.shape
    tp, p_pad = _loss_tile(p)
    if p_pad != p:
        x2 = jnp.pad(x2, ((0, 0), (0, p_pad - p)))
        y2 = jnp.pad(y2, ((0, 0), (0, p_pad - p)))

    kernel = functools.partial(_loss_kernel,
                               inv_total=1.0 / (bt * n_true_positions),
                               inv_positions=1.0 / n_true_positions)
    mim, corr = pl.pallas_call(
        kernel,
        out_shape=(jax.ShapeDtypeStruct((1, 1), jnp.float32),
                   jax.ShapeDtypeStruct((1, 1), jnp.float32)),
        grid_spec=pltpu.PrefetchScalarGridSpec(
            num_scalar_prefetch=0,
            grid=(p_pad // tp,),
            in_specs=[pl.BlockSpec((bt, tp), lambda j: (0, j)),
                      pl.BlockSpec((bt, tp), lambda j: (0, j))],
            out_specs=[pl.BlockSpec((1, 1), lambda j: (0, 0)),
                       pl.BlockSpec((1, 1), lambda j: (0, 0))],
        ),
        compiler_params=pltpu.CompilerParams(
            dimension_semantics=("arbitrary",)),
    )(x2, y2)
    return mim[0, 0], corr[0, 0]


def _strip_to_nchw(tiles, h, w):
    """(bt, n_tiles, c, th*(w+2)) tiled/padded layout -> (bt, c, h, w)."""
    bt, n_tiles, c, _ = tiles.shape
    th, wp = h // n_tiles, w + 2
    t5 = tiles.reshape(bt, n_tiles, c, th, wp)[:, :, :, :, 1:1 + w]
    return t5.transpose(0, 2, 1, 3, 4).reshape(bt, c, h, w)


# --------------------------------------------------------------------------
# full forward pass
# --------------------------------------------------------------------------

def quantization_h265_suggrogate_forward(x, params, *, lambda_corr, t=5,
                                         tile_rows=None,
                                         conv_dtype=jnp.float32,
                                         return_aux=False):
    """x: NCHW float32 (bt, c, h, w) with bt = b * t (t = 5).

    Returns (codec_out, total_loss).  As in PyTorch, sug_out.data is replaced by
    the codec output, so the returned tensor's values are the codec round trip.
    """
    bt, c, h, w = x.shape
    y_net_t, h265_t = suggrogate_net_and_codec(
        x, params, t=t, tile_rows=tile_rows, conv_dtype=conv_dtype)

    mim, corr = mimick_and_correlation(
        h265_t.reshape(bt, -1), y_net_t.reshape(bt, -1),
        n_true_positions=c * h * w)
    total = mim - lambda_corr * corr

    h265_out = _strip_to_nchw(h265_t, h, w)
    if return_aux:
        return h265_out, total, (_strip_to_nchw(y_net_t, h, w), mim, corr)
    return h265_out, total


def init_params(key):
    """Per block: a flat (Cout, 1 + 9*Cin) matrix; column 0 is the bias and
    column 1 + (dy*3+dx)*Cin + ci is the OIHW weight [:, ci, dy, dx]."""
    params = {}
    for l, (cin, cout, _, _) in enumerate(_BLOCK_CFG):
        key, sub = jax.random.split(key)
        scale = 0.1 / (9.0 * cin) ** 0.5
        wk = jax.random.normal(sub, (cout, 9 * cin), jnp.float32) * scale
        bias = jnp.zeros((cout, 1), jnp.float32)
        params[f"w{l}"] = jnp.concatenate([bias, wk], axis=1)
    return params


# --------------------------------------------------------------------------
# pure-JAX reference (for a correctness check only)
# --------------------------------------------------------------------------

def _reference_forward(x, params, *, lambda_corr, t):
    bt, c, h, w = x.shape
    b = bt // t
    temporal = jnp.linspace(0.0, 1.0, t, dtype=jnp.float32)
    ind = jnp.broadcast_to(temporal.reshape(1, t, 1, 1, 1), (b, t, 1, h, w))
    a = jnp.concatenate([x.reshape(b, t, c, h, w), ind],
                        axis=2).reshape(bt, c + 1, h, w)
    for l, (cin, cout, lrelu, res) in enumerate(_BLOCK_CFG):
        wf = params[f"w{l}"]
        bias = wf[:, 0]
        wconv = wf[:, 1:].reshape(cout, 3, 3, cin).transpose(0, 3, 1, 2)
        out = jax.lax.conv_general_dilated(
            a, wconv, window_strides=(1, 1), padding=((1, 1), (1, 1)),
            dimension_numbers=("NCHW", "OIHW", "NCHW"),
            precision=jax.lax.Precision.HIGHEST)
        out = out + bias.reshape(1, cout, 1, 1)
        if lrelu:
            out = jnp.where(out >= 0.0, out, _NEG_SLOPE * out)
        if res:
            out = out + a
        a = out
    y = a + x
    xq = jnp.round(jnp.clip(x, 0.0, 1.0) * 255.0) / 255.0
    mim = jnp.mean((xq - y) ** 2)
    vx = xq - jnp.mean(xq, axis=0, keepdims=True)
    vy = y - jnp.mean(y, axis=0, keepdims=True)
    corr = jnp.sum(vx * vy, axis=0, keepdims=True) / (
        jnp.sqrt(jnp.sum(vx * vx, axis=0, keepdims=True)) *
        jnp.sqrt(jnp.sum(vy * vy, axis=0, keepdims=True)) + 1e-8)
    corr = jnp.mean(corr)
    return xq, mim - lambda_corr * corr, (y, mim, corr)


# --------------------------------------------------------------------------

if __name__ == "__main__":
    key = jax.random.PRNGKey(0)
    kx, kp = jax.random.split(key)

    b, t, c, h, w = 2, 5, 3, 16, 16
    bt = b * t
    x = jax.random.uniform(kx, (bt, c, h, w), dtype=jnp.float32)
    params = init_params(kp)

    # multi-tile path (tile_rows=8 -> 2 row tiles per image, exercises halos).
    fwd = jax.jit(functools.partial(
        quantization_h265_suggrogate_forward,
        lambda_corr=0.1, t=t, tile_rows=8, return_aux=True))
    codec_out, loss, (y_net, mim, corr) = fwd(x, params)
    jax.block_until_ready((codec_out, loss, y_net))

    assert codec_out.shape == (bt, c, h, w)
    assert loss.shape == ()

    ref_codec, ref_loss, (ref_y, ref_mim, ref_corr) = jax.jit(
        functools.partial(_reference_forward, lambda_corr=0.1, t=t))(x, params)
    assert jnp.allclose(codec_out, ref_codec, atol=1e-5, rtol=1e-5)
    assert jnp.allclose(y_net, ref_y, atol=1e-4, rtol=1e-4)
    assert jnp.allclose(mim, ref_mim, atol=1e-4, rtol=1e-4)
    assert jnp.allclose(corr, ref_corr, atol=1e-4, rtol=1e-4)
    assert jnp.allclose(loss, ref_loss, atol=1e-4, rtol=1e-4)

    # single-tile path (auto-picked tile_rows = full image height).
    fwd_auto = jax.jit(functools.partial(
        quantization_h265_suggrogate_forward, lambda_corr=0.1, t=t))
    codec2, loss2 = fwd_auto(x, params)
    jax.block_until_ready((codec2, loss2))
    assert jnp.allclose(codec2, ref_codec, atol=1e-5, rtol=1e-5)
    assert jnp.allclose(loss2, ref_loss, atol=1e-4, rtol=1e-4)

    print("KERNEL_OK")
</pallas_src>

<mosaic_0001>
module attributes {stable_mosaic.version = 11 : i64} {
  func.func @_loss_kernel(%arg0: i32, %arg1: memref<10x896xf32, #tpu.memory_space<vmem>>, %arg2: memref<10x896xf32, #tpu.memory_space<vmem>>, %arg3: memref<1x1xf32, #tpu.memory_space<vmem>>, %arg4: memref<1x1xf32, #tpu.memory_space<vmem>>) attributes {dimension_semantics = [#tpu.dimension_semantics<arbitrary>], iteration_bounds = array<i64: 1>, scalar_prefetch = 0 : i64, scratch_operands = 0 : i64, tpu.core_type = #tpu.core_type<tc>, window_params = [{transform_indices = @transform_0, window_bounds = array<i64: 10, 896>}, {transform_indices = @transform_1, window_bounds = array<i64: 10, 896>}, {pipeline_mode = #tpu.pipeline_mode<synchronous>, transform_indices = @transform_2, window_bounds = array<i64: 1, 1>}, {pipeline_mode = #tpu.pipeline_mode<synchronous>, transform_indices = @transform_3, window_bounds = array<i64: 1, 1>}]} {
    %c0_i32 = arith.constant 0 : i32
    %0 = arith.cmpi eq, %arg0, %c0_i32 : i32
    %1 = arith.extui %0 : i1 to i32
    %c0_i32_0 = arith.constant 0 : i32
    %2 = arith.cmpi ne, %1, %c0_i32_0 : i32
    scf.if %2 {
      %cst_23 = arith.constant 0.000000e+00 : f32
      %53 = vector.broadcast %cst_23 : f32 to vector<1x1xf32>
      %c0_24 = arith.constant 0 : index
      %c0_25 = arith.constant 0 : index
      %54 = vector.load %arg3[%c0_24, %c0_25] : memref<1x1xf32, #tpu.memory_space<vmem>>, vector<1x1xf32>
      tpu.vector_store %arg3[%c0_24, %c0_25], %53 {strides = array<i32>} : memref<1x1xf32, #tpu.memory_space<vmem>>, vector<1x1xf32>,
      %cst_26 = arith.constant 0.000000e+00 : f32
      %55 = vector.broadcast %cst_26 : f32 to vector<1x1xf32>
      %c0_27 = arith.constant 0 : index
      %c0_28 = arith.constant 0 : index
      %56 = vector.load %arg4[%c0_27, %c0_28] : memref<1x1xf32, #tpu.memory_space<vmem>>, vector<1x1xf32>
      tpu.vector_store %arg4[%c0_27, %c0_28], %55 {strides = array<i32>} : memref<1x1xf32, #tpu.memory_space<vmem>>, vector<1x1xf32>,
    } else {
    }
    %c0 = arith.constant 0 : index
    %c0_1 = arith.constant 0 : index
    %3 = vector.load %arg1[%c0, %c0_1] : memref<10x896xf32, #tpu.memory_space<vmem>>, vector<10x896xf32>
    %c0_2 = arith.constant 0 : index
    %c0_3 = arith.constant 0 : index
    %4 = vector.load %arg2[%c0_2, %c0_3] : memref<10x896xf32, #tpu.memory_space<vmem>>, vector<10x896xf32>
    %5 = arith.subf %3, %4 : vector<10x896xf32>
    %c0_4 = arith.constant 0 : index
    %c0_5 = arith.constant 0 : index
    %6 = vector.load %arg3[%c0_4, %c0_5] : memref<1x1xf32, #tpu.memory_space<vmem>>, vector<1x1xf32>
    %7 = arith.mulf %5, %5 : vector<10x896xf32>
    %8 = vector.shape_cast %7 : vector<10x896xf32> to vector<1x10x896xf32>
    %cst = arith.constant dense<0.000000e+00> : vector<1xf32>
    %9 = vector.multi_reduction <add>, %8, %cst [1, 2] : vector<1x10x896xf32> to vector<1xf32>
    %10 = vector.shape_cast %9 : vector<1xf32> to vector<1x1x1xf32>
    %11 = vector.extract %10[0, 0, 0] : f32 from vector<1x1x1xf32>
    %12 = vector.broadcast %11 : f32 to vector<1x1xf32>
    %13 = arith.addf %6, %12 : vector<1x1xf32>
    %c0_6 = arith.constant 0 : index
    %c0_7 = arith.constant 0 : index
    %14 = vector.load %arg3[%c0_6, %c0_7] : memref<1x1xf32, #tpu.memory_space<vmem>>, vector<1x1xf32>
    tpu.vector_store %arg3[%c0_6, %c0_7], %13 {strides = array<i32>} : memref<1x1xf32, #tpu.memory_space<vmem>>, vector<1x1xf32>,
    %cst_8 = arith.constant dense<0.000000e+00> : vector<896xf32>
    %15 = vector.multi_reduction <add>, %3, %cst_8 [0] : vector<10x896xf32> to vector<896xf32>
    %16 = vector.shape_cast %15 : vector<896xf32> to vector<1x896xf32>
    %cst_9 = arith.constant 1.000000e+01 : f32
    %17 = vector.broadcast %cst_9 : f32 to vector<1x896xf32>
    %18 = arith.divf %16, %17 : vector<1x896xf32>
    %cst_10 = arith.constant dense<0.000000e+00> : vector<896xf32>
    %19 = vector.multi_reduction <add>, %4, %cst_10 [0] : vector<10x896xf32> to vector<896xf32>
    %20 = vector.shape_cast %19 : vector<896xf32> to vector<1x896xf32>
    %cst_11 = arith.constant 1.000000e+01 : f32
    %21 = vector.broadcast %cst_11 : f32 to vector<1x896xf32>
    %22 = arith.divf %20, %21 : vector<1x896xf32>
    %23 = vector.broadcast %18 : vector<1x896xf32> to vector<10x896xf32>
    %24 = arith.subf %3, %23 : vector<10x896xf32>
    %25 = vector.broadcast %22 : vector<1x896xf32> to vector<10x896xf32>
    %26 = arith.subf %4, %25 : vector<10x896xf32>
    %27 = arith.mulf %24, %26 : vector<10x896xf32>
    %cst_12 = arith.constant dense<0.000000e+00> : vector<896xf32>
    %28 = vector.multi_reduction <add>, %27, %cst_12 [0] : vector<10x896xf32> to vector<896xf32>
    %29 = vector.shape_cast %28 : vector<896xf32> to vector<1x896xf32>
    %30 = arith.mulf %24, %24 : vector<10x896xf32>
    %cst_13 = arith.constant dense<0.000000e+00> : vector<896xf32>
    %31 = vector.multi_reduction <add>, %30, %cst_13 [0] : vector<10x896xf32> to vector<896xf32>
    %32 = vector.shape_cast %31 : vector<896xf32> to vector<1x896xf32>
    %33 = math.sqrt %32 : vector<1x896xf32>
    %34 = arith.mulf %26, %26 : vector<10x896xf32>
    %cst_14 = arith.constant dense<0.000000e+00> : vector<896xf32>
    %35 = vector.multi_reduction <add>, %34, %cst_14 [0] : vector<10x896xf32> to vector<896xf32>
    %36 = vector.shape_cast %35 : vector<896xf32> to vector<1x896xf32>
    %37 = math.sqrt %36 : vector<1x896xf32>
    %38 = arith.mulf %33, %37 : vector<1x896xf32>
    %cst_15 = arith.constant 9.99999993E-9 : f32
    %39 = vector.broadcast %cst_15 : f32 to vector<1x896xf32>
    %40 = arith.addf %38, %39 : vector<1x896xf32>
    %c0_16 = arith.constant 0 : index
    %c0_17 = arith.constant 0 : index
    %41 = vector.load %arg4[%c0_16, %c0_17] : memref<1x1xf32, #tpu.memory_space<vmem>>, vector<1x1xf32>
    %42 = arith.divf %29, %40 : vector<1x896xf32>
    %43 = vector.shape_cast %42 : vector<1x896xf32> to vector<1x1x896xf32>
    %cst_18 = arith.constant dense<0.000000e+00> : vector<1xf32>
    %44 = vector.multi_reduction <add>, %43, %cst_18 [1, 2] : vector<1x1x896xf32> to vector<1xf32>
    %45 = vector.shape_cast %44 : vector<1xf32> to vector<1x1x1xf32>
    %46 = vector.extract %45[0, 0, 0] : f32 from vector<1x1x1xf32>
    %47 = vector.broadcast %46 : f32 to vector<1x1xf32>
    %48 = arith.addf %41, %47 : vector<1x1xf32>
    %c0_19 = arith.constant 0 : index
    %c0_20 = arith.constant 0 : index
    %49 = vector.load %arg4[%c0_19, %c0_20] : memref<1x1xf32, #tpu.memory_space<vmem>>, vector<1x1xf32>
    tpu.vector_store %arg4[%c0_19, %c0_20], %48 {strides = array<i32>} : memref<1x1xf32, #tpu.memory_space<vmem>>, vector<1x1xf32>,
    %c0_i32_21 = arith.constant 0 : i32
    %50 = arith.cmpi eq, %arg0, %c0_i32_21 : i32
    %51 = arith.extui %50 : i1 to i32
    %c0_i32_22 = arith.constant 0 : i32
    %52 = arith.cmpi ne, %51, %c0_i32_22 : i32
    scf.if %52 {
      %c0_23 = arith.constant 0 : index
      %c0_24 = arith.constant 0 : index
      %53 = vector.load %arg3[%c0_23, %c0_24] : memref<1x1xf32, #tpu.memory_space<vmem>>, vector<1x1xf32>
      %cst_25 = arith.constant 1.3020834E-4 : f32
      %54 = vector.broadcast %cst_25 : f32 to vector<1x1xf32>
      %55 = arith.mulf %53, %54 : vector<1x1xf32>
      %c0_26 = arith.constant 0 : index
      %c0_27 = arith.constant 0 : index
      %56 = vector.load %arg3[%c0_26, %c0_27] : memref<1x1xf32, #tpu.memory_space<vmem>>, vector<1x1xf32>
      tpu.vector_store %arg3[%c0_26, %c0_27], %55 {strides = array<i32>} : memref<1x1xf32, #tpu.memory_space<vmem>>, vector<1x1xf32>,
      %c0_28 = arith.constant 0 : index
      %c0_29 = arith.constant 0 : index
      %57 = vector.load %arg4[%c0_28, %c0_29] : memref<1x1xf32, #tpu.memory_space<vmem>>, vector<1x1xf32>
      %cst_30 = arith.constant 0.00130208337 : f32
      %58 = vector.broadcast %cst_30 : f32 to vector<1x1xf32>
      %59 = arith.mulf %57, %58 : vector<1x1xf32>
      %c0_31 = arith.constant 0 : index
      %c0_32 = arith.constant 0 : index
      %60 = vector.load %arg4[%c0_31, %c0_32] : memref<1x1xf32, #tpu.memory_space<vmem>>, vector<1x1xf32>
      tpu.vector_store %arg4[%c0_31, %c0_32], %59 {strides = array<i32>} : memref<1x1xf32, #tpu.memory_space<vmem>>, vector<1x1xf32>,
    } else {
    }
    return
  }
  func.func @transform_0(%arg0: i32) -> (i32, i32) {
    %c0_i32 = arith.constant 0 : i32
    %c0_i32_0 = arith.constant 0 : i32
    return %c0_i32, %arg0 : i32, i32
  }
  func.func @transform_1(%arg0: i32) -> (i32, i32) {
    %c0_i32 = arith.constant 0 : i32
    %c0_i32_0 = arith.constant 0 : i32
    return %c0_i32, %arg0 : i32, i32
  }
  func.func @transform_2(%arg0: i32) -> (i32, i32) {
    %c0_i32 = arith.constant 0 : i32
    %c0_i32_0 = arith.constant 0 : i32
    %c0_i32_1 = arith.constant 0 : i32
    return %c0_i32, %c0_i32_0 : i32, i32
  }
  func.func @transform_3(%arg0: i32) -> (i32, i32) {
    %c0_i32 = arith.constant 0 : i32
    %c0_i32_0 = arith.constant 0 : i32
    %c0_i32_1 = arith.constant 0 : i32
    return %c0_i32, %c0_i32_0 : i32, i32
  }
}

module attributes {stable_mosaic.version = 11 : i64} {
  func.func @_fused_surrogate_kernel(%arg0: i32, %arg1: i32, %arg2: memref<1x1x4x360xf32, #tpu.memory_space<vmem>>, %arg3: memref<1x1x3x144xf32, #tpu.memory_space<vmem>>, %arg4: memref<1x1x324xf32, #tpu.memory_space<vmem>>, %arg5: memref<24x37xf32, #tpu.memory_space<vmem>>, %arg6: memref<24x217xf32, #tpu.memory_space<vmem>>, %arg7: memref<24x217xf32, #tpu.memory_space<vmem>>, %arg8: memref<24x217xf32, #tpu.memory_space<vmem>>, %arg9: memref<24x217xf32, #tpu.memory_space<vmem>>, %arg10: memref<3x217xf32, #tpu.memory_space<vmem>>, %arg11: memref<1x1x3x144xf32, #tpu.memory_space<vmem>>, %arg12: memref<1x1x3x144xf32, #tpu.memory_space<vmem>>) attributes {dimension_semantics = [#tpu.dimension_semantics<parallel>, #tpu.dimension_semantics<parallel>], iteration_bounds = array<i64: 10, 2>, scalar_prefetch = 0 : i64, scratch_operands = 0 : i64, tpu.core_type = #tpu.core_type<tc>, window_params = [{transform_indices = @transform_0, window_bounds = array<i64: 1, 1, 4, 360>}, {transform_indices = @transform_1, window_bounds = array<i64: 1, 1, 3, 144>}, {transform_indices = @transform_2, window_bounds = array<i64: 1, 1, 324>}, {pipeline_mode = #tpu.pipeline_mode<synchronous>, transform_indices = @transform_3, window_bounds = array<i64: 24, 37>}, {pipeline_mode = #tpu.pipeline_mode<synchronous>, transform_indices = @transform_4, window_bounds = array<i64: 24, 217>}, {pipeline_mode = #tpu.pipeline_mode<synchronous>, transform_indices = @transform_5, window_bounds = array<i64: 24, 217>}, {pipeline_mode = #tpu.pipeline_mode<synchronous>, transform_indices = @transform_6, window_bounds = array<i64: 24, 217>}, {pipeline_mode = #tpu.pipeline_mode<synchronous>, transform_indices = @transform_7, window_bounds = array<i64: 24, 217>}, {pipeline_mode = #tpu.pipeline_mode<synchronous>, transform_indices = @transform_8, window_bounds = array<i64: 3, 217>}, {transform_indices = @transform_9, window_bounds = array<i64: 1, 1, 3, 144>}, {transform_indices = @transform_10, window_bounds = array<i64: 1, 1, 3, 144>}]} {
    %c0 = arith.constant 0 : index
    %c0_0 = arith.constant 0 : index
    %c0_1 = arith.constant 0 : index
    %c0_2 = arith.constant 0 : index
    %0 = vector.load %arg2[%c0, %c0_0, %c0_1, %c0_2] : memref<1x1x4x360xf32, #tpu.memory_space<vmem>>, vector<1x1x4x360xf32>
    %1 = vector.shape_cast %0 : vector<1x1x4x360xf32> to vector<4x360xf32>
    %c0_3 = arith.constant 0 : index
    %c0_4 = arith.constant 0 : index
    %c0_5 = arith.constant 0 : index
    %2 = vector.load %arg4[%c0_3, %c0_4, %c0_5] : memref<1x1x324xf32, #tpu.memory_space<vmem>>, vector<1x1x324xf32>
    %3 = vector.shape_cast %2 : vector<1x1x324xf32> to vector<1x324xf32>
    %c0_6 = arith.constant 0 : index
    %c0_7 = arith.constant 0 : index
    %4 = vector.load %arg5[%c0_6, %c0_7] : memref<24x37xf32, #tpu.memory_space<vmem>>, vector<24x37xf32>
    %cst = arith.constant 0.000000e+00 : f32
    %5 = vector.broadcast %cst : f32 to vector<4x1xf32>
    %6 = tpu.concatenate %5, %1, %5 in 1 : vector<4x1xf32>, vector<4x360xf32>, vector<4x1xf32> -> vector<4x362xf32>
    %7 = vector.extract_strided_slice %4 {offsets = [0, 1], sizes = [24, 4], strides = [1, 1]} : vector<24x37xf32> to vector<24x4xf32>
    %8 = vector.extract_strided_slice %6 {offsets = [0, 0], sizes = [4, 324], strides = [1, 1]} : vector<4x362xf32> to vector<4x324xf32>
    %cst_8 = arith.constant dense<0.000000e+00> : vector<24x324xf32>
    %9 = tpu.matmul %7, %8, %cst_8 {dimension_numbers = #tpu.dot_dimension_numbers<[1], [0], [0], [1], [0, 0, 1, 1], [], []>} : vector<24x4xf32>, vector<4x324xf32>, vector<24x324xf32> -> vector<24x324xf32>
    %10 = vector.extract_strided_slice %4 {offsets = [0, 5], sizes = [24, 4], strides = [1, 1]} : vector<24x37xf32> to vector<24x4xf32>
    %11 = vector.extract_strided_slice %6 {offsets = [0, 1], sizes = [4, 324], strides = [1, 1]} : vector<4x362xf32> to vector<4x324xf32>
    %cst_9 = arith.constant dense<0.000000e+00> : vector<24x324xf32>
    %12 = tpu.matmul %10, %11, %cst_9 {dimension_numbers = #tpu.dot_dimension_numbers<[1], [0], [0], [1], [0, 0, 1, 1], [], []>} : vector<24x4xf32>, vector<4x324xf32>, vector<24x324xf32> -> vector<24x324xf32>
    %13 = arith.addf %9, %12 : vector<24x324xf32>
    %14 = vector.extract_strided_slice %4 {offsets = [0, 9], sizes = [24, 4], strides = [1, 1]} : vector<24x37xf32> to vector<24x4xf32>
    %15 = vector.extract_strided_slice %6 {offsets = [0, 2], sizes = [4, 324], strides = [1, 1]} : vector<4x362xf32> to vector<4x324xf32>
    %cst_10 = arith.constant dense<0.000000e+00> : vector<24x324xf32>
    %16 = tpu.matmul %14, %15, %cst_10 {dimension_numbers = #tpu.dot_dimension_numbers<[1], [0], [0], [1], [0, 0, 1, 1], [], []>} : vector<24x4xf32>, vector<4x324xf32>, vector<24x324xf32> -> vector<24x324xf32>
    %17 = arith.addf %13, %16 : vector<24x324xf32>
    %18 = vector.extract_strided_slice %4 {offsets = [0, 13], sizes = [24, 4], strides = [1, 1]} : vector<24x37xf32> to vector<24x4xf32>
    %19 = vector.extract_strided_slice %6 {offsets = [0, 18], sizes = [4, 324], strides = [1, 1]} : vector<4x362xf32> to vector<4x324xf32>
    %cst_11 = arith.constant dense<0.000000e+00> : vector<24x324xf32>
    %20 = tpu.matmul %18, %19, %cst_11 {dimension_numbers = #tpu.dot_dimension_numbers<[1], [0], [0], [1], [0, 0, 1, 1], [], []>} : vector<24x4xf32>, vector<4x324xf32>, vector<24x324xf32> -> vector<24x324xf32>
    %21 = arith.addf %17, %20 : vector<24x324xf32>
    %22 = vector.extract_strided_slice %4 {offsets = [0, 17], sizes = [24, 4], strides = [1, 1]} : vector<24x37xf32> to vector<24x4xf32>
    %23 = vector.extract_strided_slice %6 {offsets = [0, 19], sizes = [4, 324], strides = [1, 1]} : vector<4x362xf32> to vector<4x324xf32>
    %cst_12 = arith.constant dense<0.000000e+00> : vector<24x324xf32>
    %24 = tpu.matmul %22, %23, %cst_12 {dimension_numbers = #tpu.dot_dimension_numbers<[1], [0], [0], [1], [0, 0, 1, 1], [], []>} : vector<24x4xf32>, vector<4x324xf32>, vector<24x324xf32> -> vector<24x324xf32>
    %25 = arith.addf %21, %24 : vector<24x324xf32>
    %26 = vector.extract_strided_slice %4 {offsets = [0, 21], sizes = [24, 4], strides = [1, 1]} : vector<24x37xf32> to vector<24x4xf32>
    %27 = vector.extract_strided_slice %6 {offsets = [0, 20], sizes = [4, 324], strides = [1, 1]} : vector<4x362xf32> to vector<4x324xf32>
    %cst_13 = arith.constant dense<0.000000e+00> : vector<24x324xf32>
    %28 = tpu.matmul %26, %27, %cst_13 {dimension_numbers = #tpu.dot_dimension_numbers<[1], [0], [0], [1], [0, 0, 1, 1], [], []>} : vector<24x4xf32>, vector<4x324xf32>, vector<24x324xf32> -> vector<24x324xf32>
    %29 = arith.addf %25, %28 : vector<24x324xf32>
    %30 = vector.extract_strided_slice %4 {offsets = [0, 25], sizes = [24, 4], strides = [1, 1]} : vector<24x37xf32> to vector<24x4xf32>
    %31 = vector.extract_strided_slice %6 {offsets = [0, 36], sizes = [4, 324], strides = [1, 1]} : vector<4x362xf32> to vector<4x324xf32>
    %cst_14 = arith.constant dense<0.000000e+00> : vector<24x324xf32>
    %32 = tpu.matmul %30, %31, %cst_14 {dimension_numbers = #tpu.dot_dimension_numbers<[1], [0], [0], [1], [0, 0, 1, 1], [], []>} : vector<24x4xf32>, vector<4x324xf32>, vector<24x324xf32> -> vector<24x324xf32>
    %33 = arith.addf %29, %32 : vector<24x324xf32>
    %34 = vector.extract_strided_slice %4 {offsets = [0, 29], sizes = [24, 4], strides = [1, 1]} : vector<24x37xf32> to vector<24x4xf32>
    %35 = vector.extract_strided_slice %6 {offsets = [0, 37], sizes = [4, 324], strides = [1, 1]} : vector<4x362xf32> to vector<4x324xf32>
    %cst_15 = arith.constant dense<0.000000e+00> : vector<24x324xf32>
    %36 = tpu.matmul %34, %35, %cst_15 {dimension_numbers = #tpu.dot_dimension_numbers<[1], [0], [0], [1], [0, 0, 1, 1], [], []>} : vector<24x4xf32>, vector<4x324xf32>, vector<24x324xf32> -> vector<24x324xf32>
    %37 = arith.addf %33, %36 : vector<24x324xf32>
    %38 = vector.extract_strided_slice %4 {offsets = [0, 33], sizes = [24, 4], strides = [1, 1]} : vector<24x37xf32> to vector<24x4xf32>
    %39 = vector.extract_strided_slice %6 {offsets = [0, 38], sizes = [4, 324], strides = [1, 1]} : vector<4x362xf32> to vector<4x324xf32>
    %cst_16 = arith.constant dense<0.000000e+00> : vector<24x324xf32>
    %40 = tpu.matmul %38, %39, %cst_16 {dimension_numbers = #tpu.dot_dimension_numbers<[1], [0], [0], [1], [0, 0, 1, 1], [], []>} : vector<24x4xf32>, vector<4x324xf32>, vector<24x324xf32> -> vector<24x324xf32>
    %41 = arith.addf %37, %40 : vector<24x324xf32>
    %42 = vector.extract_strided_slice %4 {offsets = [0, 0], sizes = [24, 1], strides = [1, 1]} : vector<24x37xf32> to vector<24x1xf32>
    %43 = vector.broadcast %42 : vector<24x1xf32> to vector<24x324xf32>
    %44 = arith.addf %41, %43 : vector<24x324xf32>
    %cst_17 = arith.constant 0.000000e+00 : f32
    %45 = vector.broadcast %cst_17 : f32 to vector<24x324xf32>
    %46 = arith.cmpf oge, %44, %45 : vector<24x324xf32>
    %cst_18 = arith.constant 2.000000e-01 : f32
    %47 = vector.broadcast %cst_18 : f32 to vector<24x324xf32>
    %48 = arith.mulf %47, %44 : vector<24x324xf32>
    %49 = arith.select %46, %44, %48 : vector<24x324xi1>, vector<24x324xf32>
    %50 = vector.broadcast %3 : vector<1x324xf32> to vector<24x324xf32>
    %51 = arith.mulf %49, %50 : vector<24x324xf32>
    %c0_19 = arith.constant 0 : index
    %c0_20 = arith.constant 0 : index
    %52 = vector.load %arg6[%c0_19, %c0_20] : memref<24x217xf32, #tpu.memory_space<vmem>>, vector<24x217xf32>
    %cst_21 = arith.constant 0.000000e+00 : f32
    %53 = vector.broadcast %cst_21 : f32 to vector<24x1xf32>
    %54 = tpu.concatenate %53, %51, %53 in 1 : vector<24x1xf32>, vector<24x324xf32>, vector<24x1xf32> -> vector<24x326xf32>
    %55 = vector.extract_strided_slice %52 {offsets = [0, 1], sizes = [24, 24], strides = [1, 1]} : vector<24x217xf32> to vector<24x24xf32>
    %56 = vector.extract_strided_slice %54 {offsets = [0, 0], sizes = [24, 288], strides = [1, 1]} : vector<24x326xf32> to vector<24x288xf32>
    %cst_22 = arith.constant dense<0.000000e+00> : vector<24x288xf32>
    %57 = tpu.matmul %55, %56, %cst_22 {dimension_numbers = #tpu.dot_dimension_numbers<[1], [0], [0], [1], [0, 0, 1, 1], [], []>} : vector<24x24xf32>, vector<24x288xf32>, vector<24x288xf32> -> vector<24x288xf32>
    %58 = vector.extract_strided_slice %52 {offsets = [0, 25], sizes = [24, 24], strides = [1, 1]} : vector<24x217xf32> to vector<24x24xf32>
    %59 = vector.extract_strided_slice %54 {offsets = [0, 1], sizes = [24, 288], strides = [1, 1]} : vector<24x326xf32> to vector<24x288xf32>
    %cst_23 = arith.constant dense<0.000000e+00> : vector<24x288xf32>
    %60 = tpu.matmul %58, %59, %cst_23 {dimension_numbers = #tpu.dot_dimension_numbers<[1], [0], [0], [1], [0, 0, 1, 1], [], []>} : vector<24x24xf32>, vector<24x288xf32>, vector<24x288xf32> -> vector<24x288xf32>
    %61 = arith.addf %57, %60 : vector<24x288xf32>
    %62 = vector.extract_strided_slice %52 {offsets = [0, 49], sizes = [24, 24], strides = [1, 1]} : vector<24x217xf32> to vector<24x24xf32>
    %63 = vector.extract_strided_slice %54 {offsets = [0, 2], sizes = [24, 288], strides = [1, 1]} : vector<24x326xf32> to vector<24x288xf32>
    %cst_24 = arith.constant dense<0.000000e+00> : vector<24x288xf32>
    %64 = tpu.matmul %62, %63, %cst_24 {dimension_numbers = #tpu.dot_dimension_numbers<[1], [0], [0], [1], [0, 0, 1, 1], [], []>} : vector<24x24xf32>, vector<24x288xf32>, vector<24x288xf32> -> vector<24x288xf32>
    %65 = arith.addf %61, %64 : vector<24x288xf32>
    %66 = vector.extract_strided_slice %52 {offsets = [0, 73], sizes = [24, 24], strides = [1, 1]} : vector<24x217xf32> to vector<24x24xf32>
    %67 = vector.extract_strided_slice %54 {offsets = [0, 18], sizes = [24, 288], strides = [1, 1]} : vector<24x326xf32> to vector<24x288xf32>
    %cst_25 = arith.constant dense<0.000000e+00> : vector<24x288xf32>
    %68 = tpu.matmul %66, %67, %cst_25 {dimension_numbers = #tpu.dot_dimension_numbers<[1], [0], [0], [1], [0, 0, 1, 1], [], []>} : vector<24x24xf32>, vector<24x288xf32>, vector<24x288xf32> -> vector<24x288xf32>
    %69 = arith.addf %65, %68 : vector<24x288xf32>
    %70 = vector.extract_strided_slice %52 {offsets = [0, 97], sizes = [24, 24], strides = [1, 1]} : vector<24x217xf32> to vector<24x24xf32>
    %71 = vector.extract_strided_slice %54 {offsets = [0, 19], sizes = [24, 288], strides = [1, 1]} : vector<24x326xf32> to vector<24x288xf32>
    %cst_26 = arith.constant dense<0.000000e+00> : vector<24x288xf32>
    %72 = tpu.matmul %70, %71, %cst_26 {dimension_numbers = #tpu.dot_dimension_numbers<[1], [0], [0], [1], [0, 0, 1, 1], [], []>} : vector<24x24xf32>, vector<24x288xf32>, vector<24x288xf32> -> vector<24x288xf32>
    %73 = arith.addf %69, %72 : vector<24x288xf32>
    %74 = vector.extract_strided_slice %52 {offsets = [0, 121], sizes = [24, 24], strides = [1, 1]} : vector<24x217xf32> to vector<24x24xf32>
    %75 = vector.extract_strided_slice %54 {offsets = [0, 20], sizes = [24, 288], strides = [1, 1]} : vector<24x326xf32> to vector<24x288xf32>
    %cst_27 = arith.constant dense<0.000000e+00> : vector<24x288xf32>
    %76 = tpu.matmul %74, %75, %cst_27 {dimension_numbers = #tpu.dot_dimension_numbers<[1], [0], [0], [1], [0, 0, 1, 1], [], []>} : vector<24x24xf32>, vector<24x288xf32>, vector<24x288xf32> -> vector<24x288xf32>
    %77 = arith.addf %73, %76 : vector<24x288xf32>
    %78 = vector.extract_strided_slice %52 {offsets = [0, 145], sizes = [24, 24], strides = [1, 1]} : vector<24x217xf32> to vector<24x24xf32>
    %79 = vector.extract_strided_slice %54 {offsets = [0, 36], sizes = [24, 288], strides = [1, 1]} : vector<24x326xf32> to vector<24x288xf32>
    %cst_28 = arith.constant dense<0.000000e+00> : vector<24x288xf32>
    %80 = tpu.matmul %78, %79, %cst_28 {dimension_numbers = #tpu.dot_dimension_numbers<[1], [0], [0], [1], [0, 0, 1, 1], [], []>} : vector<24x24xf32>, vector<24x288xf32>, vector<24x288xf32> -> vector<24x288xf32>
    %81 = arith.addf %77, %80 : vector<24x288xf32>
    %82 = vector.extract_strided_slice %52 {offsets = [0, 169], sizes = [24, 24], strides = [1, 1]} : vector<24x217xf32> to vector<24x24xf32>
    %83 = vector.extract_strided_slice %54 {offsets = [0, 37], sizes = [24, 288], strides = [1, 1]} : vector<24x326xf32> to vector<24x288xf32>
    %cst_29 = arith.constant dense<0.000000e+00> : vector<24x288xf32>
    %84 = tpu.matmul %82, %83, %cst_29 {dimension_numbers = #tpu.dot_dimension_numbers<[1], [0], [0], [1], [0, 0, 1, 1], [], []>} : vector<24x24xf32>, vector<24x288xf32>, vector<24x288xf32> -> vector<24x288xf32>
    %85 = arith.addf %81, %84 : vector<24x288xf32>
    %86 = vector.extract_strided_slice %52 {offsets = [0, 193], sizes = [24, 24], strides = [1, 1]} : vector<24x217xf32> to vector<24x24xf32>
    %87 = vector.extract_strided_slice %54 {offsets = [0, 38], sizes = [24, 288], strides = [1, 1]} : vector<24x326xf32> to vector<24x288xf32>
    %cst_30 = arith.constant dense<0.000000e+00> : vector<24x288xf32>
    %88 = tpu.matmul %86, %87, %cst_30 {dimension_numbers = #tpu.dot_dimension_numbers<[1], [0], [0], [1], [0, 0, 1, 1], [], []>} : vector<24x24xf32>, vector<24x288xf32>, vector<24x288xf32> -> vector<24x288xf32>
    %89 = arith.addf %85, %88 : vector<24x288xf32>
    %90 = vector.extract_strided_slice %52 {offsets = [0, 0], sizes = [24, 1], strides = [1, 1]} : vector<24x217xf32> to vector<24x1xf32>
    %91 = vector.broadcast %90 : vector<24x1xf32> to vector<24x288xf32>
    %92 = arith.addf %89, %91 : vector<24x288xf32>
    %cst_31 = arith.constant 0.000000e+00 : f32
    %93 = vector.broadcast %cst_31 : f32 to vector<24x288xf32>
    %94 = arith.cmpf oge, %92, %93 : vector<24x288xf32>
    %cst_32 = arith.constant 2.000000e-01 : f32
    %95 = vector.broadcast %cst_32 : f32 to vector<24x288xf32>
    %96 = arith.mulf %95, %92 : vector<24x288xf32>
    %97 = arith.select %94, %92, %96 : vector<24x288xi1>, vector<24x288xf32>
    %98 = vector.extract_strided_slice %51 {offsets = [0, 18], sizes = [24, 288], strides = [1, 1]} : vector<24x324xf32> to vector<24x288xf32>
    %99 = arith.addf %97, %98 : vector<24x288xf32>
    %100 = vector.extract_strided_slice %3 {offsets = [0, 18], sizes = [1, 288], strides = [1, 1]} : vector<1x324xf32> to vector<1x288xf32>
    %101 = vector.broadcast %100 : vector<1x288xf32> to vector<24x288xf32>
    %102 = arith.mulf %99, %101 : vector<24x288xf32>
    %c0_33 = arith.constant 0 : index
    %c0_34 = arith.constant 0 : index
    %103 = vector.load %arg7[%c0_33, %c0_34] : memref<24x217xf32, #tpu.memory_space<vmem>>, vector<24x217xf32>
    %cst_35 = arith.constant 0.000000e+00 : f32
    %104 = vector.broadcast %cst_35 : f32 to vector<24x1xf32>
    %105 = tpu.concatenate %104, %102, %104 in 1 : vector<24x1xf32>, vector<24x288xf32>, vector<24x1xf32> -> vector<24x290xf32>
    %106 = vector.extract_strided_slice %103 {offsets = [0, 1], sizes = [24, 24], strides = [1, 1]} : vector<24x217xf32> to vector<24x24xf32>
    %107 = vector.extract_strided_slice %105 {offsets = [0, 0], sizes = [24, 252], strides = [1, 1]} : vector<24x290xf32> to vector<24x252xf32>
    %cst_36 = arith.constant dense<0.000000e+00> : vector<24x252xf32>
    %108 = tpu.matmul %106, %107, %cst_36 {dimension_numbers = #tpu.dot_dimension_numbers<[1], [0], [0], [1], [0, 0, 1, 1], [], []>} : vector<24x24xf32>, vector<24x252xf32>, vector<24x252xf32> -> vector<24x252xf32>
    %109 = vector.extract_strided_slice %103 {offsets = [0, 25], sizes = [24, 24], strides = [1, 1]} : vector<24x217xf32> to vector<24x24xf32>
    %110 = vector.extract_strided_slice %105 {offsets = [0, 1], sizes = [24, 252], strides = [1, 1]} : vector<24x290xf32> to vector<24x252xf32>
    %cst_37 = arith.constant dense<0.000000e+00> : vector<24x252xf32>
    %111 = tpu.matmul %109, %110, %cst_37 {dimension_numbers = #tpu.dot_dimension_numbers<[1], [0], [0], [1], [0, 0, 1, 1], [], []>} : vector<24x24xf32>, vector<24x252xf32>, vector<24x252xf32> -> vector<24x252xf32>
    %112 = arith.addf %108, %111 : vector<24x252xf32>
    %113 = vector.extract_strided_slice %103 {offsets = [0, 49], sizes = [24, 24], strides = [1, 1]} : vector<24x217xf32> to vector<24x24xf32>
    %114 = vector.extract_strided_slice %105 {offsets = [0, 2], sizes = [24, 252], strides = [1, 1]} : vector<24x290xf32> to vector<24x252xf32>
    %cst_38 = arith.constant dense<0.000000e+00> : vector<24x252xf32>
    %115 = tpu.matmul %113, %114, %cst_38 {dimension_numbers = #tpu.dot_dimension_numbers<[1], [0], [0], [1], [0, 0, 1, 1], [], []>} : vector<24x24xf32>, vector<24x252xf32>, vector<24x252xf32> -> vector<24x252xf32>
    %116 = arith.addf %112, %115 : vector<24x252xf32>
    %117 = vector.extract_strided_slice %103 {offsets = [0, 73], sizes = [24, 24], strides = [1, 1]} : vector<24x217xf32> to vector<24x24xf32>
    %118 = vector.extract_strided_slice %105 {offsets = [0, 18], sizes = [24, 252], strides = [1, 1]} : vector<24x290xf32> to vector<24x252xf32>
    %cst_39 = arith.constant dense<0.000000e+00> : vector<24x252xf32>
    %119 = tpu.matmul %117, %118, %cst_39 {dimension_numbers = #tpu.dot_dimension_numbers<[1], [0], [0], [1], [0, 0, 1, 1], [], []>} : vector<24x24xf32>, vector<24x252xf32>, vector<24x252xf32> -> vector<24x252xf32>
    %120 = arith.addf %116, %119 : vector<24x252xf32>
    %121 = vector.extract_strided_slice %103 {offsets = [0, 97], sizes = [24, 24], strides = [1, 1]} : vector<24x217xf32> to vector<24x24xf32>
    %122 = vector.extract_strided_slice %105 {offsets = [0, 19], sizes = [24, 252], strides = [1, 1]} : vector<24x290xf32> to vector<24x252xf32>
    %cst_40 = arith.constant dense<0.000000e+00> : vector<24x252xf32>
    %123 = tpu.matmul %121, %122, %cst_40 {dimension_numbers = #tpu.dot_dimension_numbers<[1], [0], [0], [1], [0, 0, 1, 1], [], []>} : vector<24x24xf32>, vector<24x252xf32>, vector<24x252xf32> -> vector<24x252xf32>
    %124 = arith.addf %120, %123 : vector<24x252xf32>
    %125 = vector.extract_strided_slice %103 {offsets = [0, 121], sizes = [24, 24], strides = [1, 1]} : vector<24x217xf32> to vector<24x24xf32>
    %126 = vector.extract_strided_slice %105 {offsets = [0, 20], sizes = [24, 252], strides = [1, 1]} : vector<24x290xf32> to vector<24x252xf32>
    %cst_41 = arith.constant dense<0.000000e+00> : vector<24x252xf32>
    %127 = tpu.matmul %125, %126, %cst_41 {dimension_numbers = #tpu.dot_dimension_numbers<[1], [0], [0], [1], [0, 0, 1, 1], [], []>} : vector<24x24xf32>, vector<24x252xf32>, vector<24x252xf32> -> vector<24x252xf32>
    %128 = arith.addf %124, %127 : vector<24x252xf32>
    %129 = vector.extract_strided_slice %103 {offsets = [0, 145], sizes = [24, 24], strides = [1, 1]} : vector<24x217xf32> to vector<24x24xf32>
    %130 = vector.extract_strided_slice %105 {offsets = [0, 36], sizes = [24, 252], strides = [1, 1]} : vector<24x290xf32> to vector<24x252xf32>
    %cst_42 = arith.constant dense<0.000000e+00> : vector<24x252xf32>
    %131 = tpu.matmul %129, %130, %cst_42 {dimension_numbers = #tpu.dot_dimension_numbers<[1], [0], [0], [1], [0, 0, 1, 1], [], []>} : vector<24x24xf32>, vector<24x252xf32>, vector<24x252xf32> -> vector<24x252xf32>
    %132 = arith.addf %128, %131 : vector<24x252xf32>
    %133 = vector.extract_strided_slice %103 {offsets = [0, 169], sizes = [24, 24], strides = [1, 1]} : vector<24x217xf32> to vector<24x24xf32>
    %134 = vector.extract_strided_slice %105 {offsets = [0, 37], sizes = [24, 252], strides = [1, 1]} : vector<24x290xf32> to vector<24x252xf32>
    %cst_43 = arith.constant dense<0.000000e+00> : vector<24x252xf32>
    %135 = tpu.matmul %133, %134, %cst_43 {dimension_numbers = #tpu.dot_dimension_numbers<[1], [0], [0], [1], [0, 0, 1, 1], [], []>} : vector<24x24xf32>, vector<24x252xf32>, vector<24x252xf32> -> vector<24x252xf32>
    %136 = arith.addf %132, %135 : vector<24x252xf32>
    %137 = vector.extract_strided_slice %103 {offsets = [0, 193], sizes = [24, 24], strides = [1, 1]} : vector<24x217xf32> to vector<24x24xf32>
    %138 = vector.extract_strided_slice %105 {offsets = [0, 38], sizes = [24, 252], strides = [1, 1]} : vector<24x290xf32> to vector<24x252xf32>
    %cst_44 = arith.constant dense<0.000000e+00> : vector<24x252xf32>
    %139 = tpu.matmul %137, %138, %cst_44 {dimension_numbers = #tpu.dot_dimension_numbers<[1], [0], [0], [1], [0, 0, 1, 1], [], []>} : vector<24x24xf32>, vector<24x252xf32>, vector<24x252xf32> -> vector<24x252xf32>
    %140 = arith.addf %136, %139 : vector<24x252xf32>
    %141 = vector.extract_strided_slice %103 {offsets = [0, 0], sizes = [24, 1], strides = [1, 1]} : vector<24x217xf32> to vector<24x1xf32>
    %142 = vector.broadcast %141 : vector<24x1xf32> to vector<24x252xf32>
    %143 = arith.addf %140, %142 : vector<24x252xf32>
    %cst_45 = arith.constant 0.000000e+00 : f32
    %144 = vector.broadcast %cst_45 : f32 to vector<24x252xf32>
    %145 = arith.cmpf oge, %143, %144 : vector<24x252xf32>
    %cst_46 = arith.constant 2.000000e-01 : f32
    %146 = vector.broadcast %cst_46 : f32 to vector<24x252xf32>
    %147 = arith.mulf %146, %143 : vector<24x252xf32>
    %148 = arith.select %145, %143, %147 : vector<24x252xi1>, vector<24x252xf32>
    %149 = vector.extract_strided_slice %102 {offsets = [0, 18], sizes = [24, 252], strides = [1, 1]} : vector<24x288xf32> to vector<24x252xf32>
    %150 = arith.addf %148, %149 : vector<24x252xf32>
    %151 = vector.extract_strided_slice %3 {offsets = [0, 36], sizes = [1, 252], strides = [1, 1]} : vector<1x324xf32> to vector<1x252xf32>
    %152 = vector.broadcast %151 : vector<1x252xf32> to vector<24x252xf32>
    %153 = arith.mulf %150, %152 : vector<24x252xf32>
    %c0_47 = arith.constant 0 : index
    %c0_48 = arith.constant 0 : index
    %154 = vector.load %arg8[%c0_47, %c0_48] : memref<24x217xf32, #tpu.memory_space<vmem>>, vector<24x217xf32>
    %cst_49 = arith.constant 0.000000e+00 : f32
    %155 = vector.broadcast %cst_49 : f32 to vector<24x1xf32>
    %156 = tpu.concatenate %155, %153, %155 in 1 : vector<24x1xf32>, vector<24x252xf32>, vector<24x1xf32> -> vector<24x254xf32>
    %157 = vector.extract_strided_slice %154 {offsets = [0, 1], sizes = [24, 24], strides = [1, 1]} : vector<24x217xf32> to vector<24x24xf32>
    %158 = vector.extract_strided_slice %156 {offsets = [0, 0], sizes = [24, 216], strides = [1, 1]} : vector<24x254xf32> to vector<24x216xf32>
    %cst_50 = arith.constant dense<0.000000e+00> : vector<24x216xf32>
    %159 = tpu.matmul %157, %158, %cst_50 {dimension_numbers = #tpu.dot_dimension_numbers<[1], [0], [0], [1], [0, 0, 1, 1], [], []>} : vector<24x24xf32>, vector<24x216xf32>, vector<24x216xf32> -> vector<24x216xf32>
    %160 = vector.extract_strided_slice %154 {offsets = [0, 25], sizes = [24, 24], strides = [1, 1]} : vector<24x217xf32> to vector<24x24xf32>
    %161 = vector.extract_strided_slice %156 {offsets = [0, 1], sizes = [24, 216], strides = [1, 1]} : vector<24x254xf32> to vector<24x216xf32>
    %cst_51 = arith.constant dense<0.000000e+00> : vector<24x216xf32>
    %162 = tpu.matmul %160, %161, %cst_51 {dimension_numbers = #tpu.dot_dimension_numbers<[1], [0], [0], [1], [0, 0, 1, 1], [], []>} : vector<24x24xf32>, vector<24x216xf32>, vector<24x216xf32> -> vector<24x216xf32>
    %163 = arith.addf %159, %162 : vector<24x216xf32>
    %164 = vector.extract_strided_slice %154 {offsets = [0, 49], sizes = [24, 24], strides = [1, 1]} : vector<24x217xf32> to vector<24x24xf32>
    %165 = vector.extract_strided_slice %156 {offsets = [0, 2], sizes = [24, 216], strides = [1, 1]} : vector<24x254xf32> to vector<24x216xf32>
    %cst_52 = arith.constant dense<0.000000e+00> : vector<24x216xf32>
    %166 = tpu.matmul %164, %165, %cst_52 {dimension_numbers = #tpu.dot_dimension_numbers<[1], [0], [0], [1], [0, 0, 1, 1], [], []>} : vector<24x24xf32>, vector<24x216xf32>, vector<24x216xf32> -> vector<24x216xf32>
    %167 = arith.addf %163, %166 : vector<24x216xf32>
    %168 = vector.extract_strided_slice %154 {offsets = [0, 73], sizes = [24, 24], strides = [1, 1]} : vector<24x217xf32> to vector<24x24xf32>
    %169 = vector.extract_strided_slice %156 {offsets = [0, 18], sizes = [24, 216], strides = [1, 1]} : vector<24x254xf32> to vector<24x216xf32>
    %cst_53 = arith.constant dense<0.000000e+00> : vector<24x216xf32>
    %170 = tpu.matmul %168, %169, %cst_53 {dimension_numbers = #tpu.dot_dimension_numbers<[1], [0], [0], [1], [0, 0, 1, 1], [], []>} : vector<24x24xf32>, vector<24x216xf32>, vector<24x216xf32> -> vector<24x216xf32>
    %171 = arith.addf %167, %170 : vector<24x216xf32>
    %172 = vector.extract_strided_slice %154 {offsets = [0, 97], sizes = [24, 24], strides = [1, 1]} : vector<24x217xf32> to vector<24x24xf32>
    %173 = vector.extract_strided_slice %156 {offsets = [0, 19], sizes = [24, 216], strides = [1, 1]} : vector<24x254xf32> to vector<24x216xf32>
    %cst_54 = arith.constant dense<0.000000e+00> : vector<24x216xf32>
    %174 = tpu.matmul %172, %173, %cst_54 {dimension_numbers = #tpu.dot_dimension_numbers<[1], [0], [0], [1], [0, 0, 1, 1], [], []>} : vector<24x24xf32>, vector<24x216xf32>, vector<24x216xf32> -> vector<24x216xf32>
    %175 = arith.addf %171, %174 : vector<24x216xf32>
    %176 = vector.extract_strided_slice %154 {offsets = [0, 121], sizes = [24, 24], strides = [1, 1]} : vector<24x217xf32> to vector<24x24xf32>
    %177 = vector.extract_strided_slice %156 {offsets = [0, 20], sizes = [24, 216], strides = [1, 1]} : vector<24x254xf32> to vector<24x216xf32>
    %cst_55 = arith.constant dense<0.000000e+00> : vector<24x216xf32>
    %178 = tpu.matmul %176, %177, %cst_55 {dimension_numbers = #tpu.dot_dimension_numbers<[1], [0], [0], [1], [0, 0, 1, 1], [], []>} : vector<24x24xf32>, vector<24x216xf32>, vector<24x216xf32> -> vector<24x216xf32>
    %179 = arith.addf %175, %178 : vector<24x216xf32>
    %180 = vector.extract_strided_slice %154 {offsets = [0, 145], sizes = [24, 24], strides = [1, 1]} : vector<24x217xf32> to vector<24x24xf32>
    %181 = vector.extract_strided_slice %156 {offsets = [0, 36], sizes = [24, 216], strides = [1, 1]} : vector<24x254xf32> to vector<24x216xf32>
    %cst_56 = arith.constant dense<0.000000e+00> : vector<24x216xf32>
    %182 = tpu.matmul %180, %181, %cst_56 {dimension_numbers = #tpu.dot_dimension_numbers<[1], [0], [0], [1], [0, 0, 1, 1], [], []>} : vector<24x24xf32>, vector<24x216xf32>, vector<24x216xf32> -> vector<24x216xf32>
    %183 = arith.addf %179, %182 : vector<24x216xf32>
    %184 = vector.extract_strided_slice %154 {offsets = [0, 169], sizes = [24, 24], strides = [1, 1]} : vector<24x217xf32> to vector<24x24xf32>
    %185 = vector.extract_strided_slice %156 {offsets = [0, 37], sizes = [24, 216], strides = [1, 1]} : vector<24x254xf32> to vector<24x216xf32>
    %cst_57 = arith.constant dense<0.000000e+00> : vector<24x216xf32>
    %186 = tpu.matmul %184, %185, %cst_57 {dimension_numbers = #tpu.dot_dimension_numbers<[1], [0], [0], [1], [0, 0, 1, 1], [], []>} : vector<24x24xf32>, vector<24x216xf32>, vector<24x216xf32> -> vector<24x216xf32>
    %187 = arith.addf %183, %186 : vector<24x216xf32>
    %188 = vector.extract_strided_slice %154 {offsets = [0, 193], sizes = [24, 24], strides = [1, 1]} : vector<24x217xf32> to vector<24x24xf32>
    %189 = vector.extract_strided_slice %156 {offsets = [0, 38], sizes = [24, 216], strides = [1, 1]} : vector<24x254xf32> to vector<24x216xf32>
    %cst_58 = arith.constant dense<0.000000e+00> : vector<24x216xf32>
    %190 = tpu.matmul %188, %189, %cst_58 {dimension_numbers = #tpu.dot_dimension_numbers<[1], [0], [0], [1], [0, 0, 1, 1], [], []>} : vector<24x24xf32>, vector<24x216xf32>, vector<24x216xf32> -> vector<24x216xf32>
    %191 = arith.addf %187, %190 : vector<24x216xf32>
    %192 = vector.extract_strided_slice %154 {offsets = [0, 0], sizes = [24, 1], strides = [1, 1]} : vector<24x217xf32> to vector<24x1xf32>
    %193 = vector.broadcast %192 : vector<24x1xf32> to vector<24x216xf32>
    %194 = arith.addf %191, %193 : vector<24x216xf32>
    %cst_59 = arith.constant 0.000000e+00 : f32
    %195 = vector.broadcast %cst_59 : f32 to vector<24x216xf32>
    %196 = arith.cmpf oge, %194, %195 : vector<24x216xf32>
    %cst_60 = arith.constant 2.000000e-01 : f32
    %197 = vector.broadcast %cst_60 : f32 to vector<24x216xf32>
    %198 = arith.mulf %197, %194 : vector<24x216xf32>
    %199 = arith.select %196, %194, %198 : vector<24x216xi1>, vector<24x216xf32>
    %200 = vector.extract_strided_slice %153 {offsets = [0, 18], sizes = [24, 216], strides = [1, 1]} : vector<24x252xf32> to vector<24x216xf32>
    %201 = arith.addf %199, %200 : vector<24x216xf32>
    %202 = vector.extract_strided_slice %3 {offsets = [0, 54], sizes = [1, 216], strides = [1, 1]} : vector<1x324xf32> to vector<1x216xf32>
    %203 = vector.broadcast %202 : vector<1x216xf32> to vector<24x216xf32>
    %204 = arith.mulf %201, %203 : vector<24x216xf32>
    %c0_61 = arith.constant 0 : index
    %c0_62 = arith.constant 0 : index
    %205 = vector.load %arg9[%c0_61, %c0_62] : memref<24x217xf32, #tpu.memory_space<vmem>>, vector<24x217xf32>
    %cst_63 = arith.constant 0.000000e+00 : f32
    %206 = vector.broadcast %cst_63 : f32 to vector<24x1xf32>
    %207 = tpu.concatenate %206, %204, %206 in 1 : vector<24x1xf32>, vector<24x216xf32>, vector<24x1xf32> -> vector<24x218xf32>
    %208 = vector.extract_strided_slice %205 {offsets = [0, 1], sizes = [24, 24], strides = [1, 1]} : vector<24x217xf32> to vector<24x24xf32>
    %209 = vector.extract_strided_slice %207 {offsets = [0, 0], sizes = [24, 180], strides = [1, 1]} : vector<24x218xf32> to vector<24x180xf32>
    %cst_64 = arith.constant dense<0.000000e+00> : vector<24x180xf32>
    %210 = tpu.matmul %208, %209, %cst_64 {dimension_numbers = #tpu.dot_dimension_numbers<[1], [0], [0], [1], [0, 0, 1, 1], [], []>} : vector<24x24xf32>, vector<24x180xf32>, vector<24x180xf32> -> vector<24x180xf32>
    %211 = vector.extract_strided_slice %205 {offsets = [0, 25], sizes = [24, 24], strides = [1, 1]} : vector<24x217xf32> to vector<24x24xf32>
    %212 = vector.extract_strided_slice %207 {offsets = [0, 1], sizes = [24, 180], strides = [1, 1]} : vector<24x218xf32> to vector<24x180xf32>
    %cst_65 = arith.constant dense<0.000000e+00> : vector<24x180xf32>
    %213 = tpu.matmul %211, %212, %cst_65 {dimension_numbers = #tpu.dot_dimension_numbers<[1], [0], [0], [1], [0, 0, 1, 1], [], []>} : vector<24x24xf32>, vector<24x180xf32>, vector<24x180xf32> -> vector<24x180xf32>
    %214 = arith.addf %210, %213 : vector<24x180xf32>
    %215 = vector.extract_strided_slice %205 {offsets = [0, 49], sizes = [24, 24], strides = [1, 1]} : vector<24x217xf32> to vector<24x24xf32>
    %216 = vector.extract_strided_slice %207 {offsets = [0, 2], sizes = [24, 180], strides = [1, 1]} : vector<24x218xf32> to vector<24x180xf32>
    %cst_66 = arith.constant dense<0.000000e+00> : vector<24x180xf32>
    %217 = tpu.matmul %215, %216, %cst_66 {dimension_numbers = #tpu.dot_dimension_numbers<[1], [0], [0], [1], [0, 0, 1, 1], [], []>} : vector<24x24xf32>, vector<24x180xf32>, vector<24x180xf32> -> vector<24x180xf32>
    %218 = arith.addf %214, %217 : vector<24x180xf32>
    %219 = vector.extract_strided_slice %205 {offsets = [0, 73], sizes = [24, 24], strides = [1, 1]} : vector<24x217xf32> to vector<24x24xf32>
    %220 = vector.extract_strided_slice %207 {offsets = [0, 18], sizes = [24, 180], strides = [1, 1]} : vector<24x218xf32> to vector<24x180xf32>
    %cst_67 = arith.constant dense<0.000000e+00> : vector<24x180xf32>
    %221 = tpu.matmul %219, %220, %cst_67 {dimension_numbers = #tpu.dot_dimension_numbers<[1], [0], [0], [1], [0, 0, 1, 1], [], []>} : vector<24x24xf32>, vector<24x180xf32>, vector<24x180xf32> -> vector<24x180xf32>
    %222 = arith.addf %218, %221 : vector<24x180xf32>
    %223 = vector.extract_strided_slice %205 {offsets = [0, 97], sizes = [24, 24], strides = [1, 1]} : vector<24x217xf32> to vector<24x24xf32>
    %224 = vector.extract_strided_slice %207 {offsets = [0, 19], sizes = [24, 180], strides = [1, 1]} : vector<24x218xf32> to vector<24x180xf32>
    %cst_68 = arith.constant dense<0.000000e+00> : vector<24x180xf32>
    %225 = tpu.matmul %223, %224, %cst_68 {dimension_numbers = #tpu.dot_dimension_numbers<[1], [0], [0], [1], [0, 0, 1, 1], [], []>} : vector<24x24xf32>, vector<24x180xf32>, vector<24x180xf32> -> vector<24x180xf32>
    %226 = arith.addf %222, %225 : vector<24x180xf32>
    %227 = vector.extract_strided_slice %205 {offsets = [0, 121], sizes = [24, 24], strides = [1, 1]} : vector<24x217xf32> to vector<24x24xf32>
    %228 = vector.extract_strided_slice %207 {offsets = [0, 20], sizes = [24, 180], strides = [1, 1]} : vector<24x218xf32> to vector<24x180xf32>
    %cst_69 = arith.constant dense<0.000000e+00> : vector<24x180xf32>
    %229 = tpu.matmul %227, %228, %cst_69 {dimension_numbers = #tpu.dot_dimension_numbers<[1], [0], [0], [1], [0, 0, 1, 1], [], []>} : vector<24x24xf32>, vector<24x180xf32>, vector<24x180xf32> -> vector<24x180xf32>
    %230 = arith.addf %226, %229 : vector<24x180xf32>
    %231 = vector.extract_strided_slice %205 {offsets = [0, 145], sizes = [24, 24], strides = [1, 1]} : vector<24x217xf32> to vector<24x24xf32>
    %232 = vector.extract_strided_slice %207 {offsets = [0, 36], sizes = [24, 180], strides = [1, 1]} : vector<24x218xf32> to vector<24x180xf32>
    %cst_70 = arith.constant dense<0.000000e+00> : vector<24x180xf32>
    %233 = tpu.matmul %231, %232, %cst_70 {dimension_numbers = #tpu.dot_dimension_numbers<[1], [0], [0], [1], [0, 0, 1, 1], [], []>} : vector<24x24xf32>, vector<24x180xf32>, vector<24x180xf32> -> vector<24x180xf32>
    %234 = arith.addf %230, %233 : vector<24x180xf32>
    %235 = vector.extract_strided_slice %205 {offsets = [0, 169], sizes = [24, 24], strides = [1, 1]} : vector<24x217xf32> to vector<24x24xf32>
    %236 = vector.extract_strided_slice %207 {offsets = [0, 37], sizes = [24, 180], strides = [1, 1]} : vector<24x218xf32> to vector<24x180xf32>
    %cst_71 = arith.constant dense<0.000000e+00> : vector<24x180xf32>
    %237 = tpu.matmul %235, %236, %cst_71 {dimension_numbers = #tpu.dot_dimension_numbers<[1], [0], [0], [1], [0, 0, 1, 1], [], []>} : vector<24x24xf32>, vector<24x180xf32>, vector<24x180xf32> -> vector<24x180xf32>
    %238 = arith.addf %234, %237 : vector<24x180xf32>
    %239 = vector.extract_strided_slice %205 {offsets = [0, 193], sizes = [24, 24], strides = [1, 1]} : vector<24x217xf32> to vector<24x24xf32>
    %240 = vector.extract_strided_slice %207 {offsets = [0, 38], sizes = [24, 180], strides = [1, 1]} : vector<24x218xf32> to vector<24x180xf32>
    %cst_72 = arith.constant dense<0.000000e+00> : vector<24x180xf32>
    %241 = tpu.matmul %239, %240, %cst_72 {dimension_numbers = #tpu.dot_dimension_numbers<[1], [0], [0], [1], [0, 0, 1, 1], [], []>} : vector<24x24xf32>, vector<24x180xf32>, vector<24x180xf32> -> vector<24x180xf32>
    %242 = arith.addf %238, %241 : vector<24x180xf32>
    %243 = vector.extract_strided_slice %205 {offsets = [0, 0], sizes = [24, 1], strides = [1, 1]} : vector<24x217xf32> to vector<24x1xf32>
    %244 = vector.broadcast %243 : vector<24x1xf32> to vector<24x180xf32>
    %245 = arith.addf %242, %244 : vector<24x180xf32>
    %cst_73 = arith.constant 0.000000e+00 : f32
    %246 = vector.broadcast %cst_73 : f32 to vector<24x180xf32>
    %247 = arith.cmpf oge, %245, %246 : vector<24x180xf32>
    %cst_74 = arith.constant 2.000000e-01 : f32
    %248 = vector.broadcast %cst_74 : f32 to vector<24x180xf32>
    %249 = arith.mulf %248, %245 : vector<24x180xf32>
    %250 = arith.select %247, %245, %249 : vector<24x180xi1>, vector<24x180xf32>
    %251 = vector.extract_strided_slice %204 {offsets = [0, 18], sizes = [24, 180], strides = [1, 1]} : vector<24x216xf32> to vector<24x180xf32>
    %252 = arith.addf %250, %251 : vector<24x180xf32>
    %253 = vector.extract_strided_slice %3 {offsets = [0, 72], sizes = [1, 180], strides = [1, 1]} : vector<1x324xf32> to vector<1x180xf32>
    %254 = vector.broadcast %253 : vector<1x180xf32> to vector<24x180xf32>
    %255 = arith.mulf %252, %254 : vector<24x180xf32>
    %c0_75 = arith.constant 0 : index
    %c0_76 = arith.constant 0 : index
    %256 = vector.load %arg10[%c0_75, %c0_76] : memref<3x217xf32, #tpu.memory_space<vmem>>, vector<3x217xf32>
    %cst_77 = arith.constant 0.000000e+00 : f32
    %257 = vector.broadcast %cst_77 : f32 to vector<24x1xf32>
    %258 = tpu.concatenate %257, %255, %257 in 1 : vector<24x1xf32>, vector<24x180xf32>, vector<24x1xf32> -> vector<24x182xf32>
    %259 = vector.extract_strided_slice %256 {offsets = [0, 1], sizes = [3, 24], strides = [1, 1]} : vector<3x217xf32> to vector<3x24xf32>
    %260 = vector.extract_strided_slice %258 {offsets = [0, 0], sizes = [24, 144], strides = [1, 1]} : vector<24x182xf32> to vector<24x144xf32>
    %cst_78 = arith.constant dense<0.000000e+00> : vector<3x144xf32>
    %261 = tpu.matmul %259, %260, %cst_78 {dimension_numbers = #tpu.dot_dimension_numbers<[1], [0], [0], [1], [0, 0, 1, 1], [], []>} : vector<3x24xf32>, vector<24x144xf32>, vector<3x144xf32> -> vector<3x144xf32>
    %262 = vector.extract_strided_slice %256 {offsets = [0, 25], sizes = [3, 24], strides = [1, 1]} : vector<3x217xf32> to vector<3x24xf32>
    %263 = vector.extract_strided_slice %258 {offsets = [0, 1], sizes = [24, 144], strides = [1, 1]} : vector<24x182xf32> to vector<24x144xf32>
    %cst_79 = arith.constant dense<0.000000e+00> : vector<3x144xf32>
    %264 = tpu.matmul %262, %263, %cst_79 {dimension_numbers = #tpu.dot_dimension_numbers<[1], [0], [0], [1], [0, 0, 1, 1], [], []>} : vector<3x24xf32>, vector<24x144xf32>, vector<3x144xf32> -> vector<3x144xf32>
    %265 = arith.addf %261, %264 : vector<3x144xf32>
    %266 = vector.extract_strided_slice %256 {offsets = [0, 49], sizes = [3, 24], strides = [1, 1]} : vector<3x217xf32> to vector<3x24xf32>
    %267 = vector.extract_strided_slice %258 {offsets = [0, 2], sizes = [24, 144], strides = [1, 1]} : vector<24x182xf32> to vector<24x144xf32>
    %cst_80 = arith.constant dense<0.000000e+00> : vector<3x144xf32>
    %268 = tpu.matmul %266, %267, %cst_80 {dimension_numbers = #tpu.dot_dimension_numbers<[1], [0], [0], [1], [0, 0, 1, 1], [], []>} : vector<3x24xf32>, vector<24x144xf32>, vector<3x144xf32> -> vector<3x144xf32>
    %269 = arith.addf %265, %268 : vector<3x144xf32>
    %270 = vector.extract_strided_slice %256 {offsets = [0, 73], sizes = [3, 24], strides = [1, 1]} : vector<3x217xf32> to vector<3x24xf32>
    %271 = vector.extract_strided_slice %258 {offsets = [0, 18], sizes = [24, 144], strides = [1, 1]} : vector<24x182xf32> to vector<24x144xf32>
    %cst_81 = arith.constant dense<0.000000e+00> : vector<3x144xf32>
    %272 = tpu.matmul %270, %271, %cst_81 {dimension_numbers = #tpu.dot_dimension_numbers<[1], [0], [0], [1], [0, 0, 1, 1], [], []>} : vector<3x24xf32>, vector<24x144xf32>, vector<3x144xf32> -> vector<3x144xf32>
    %273 = arith.addf %269, %272 : vector<3x144xf32>
    %274 = vector.extract_strided_slice %256 {offsets = [0, 97], sizes = [3, 24], strides = [1, 1]} : vector<3x217xf32> to vector<3x24xf32>
    %275 = vector.extract_strided_slice %258 {offsets = [0, 19], sizes = [24, 144], strides = [1, 1]} : vector<24x182xf32> to vector<24x144xf32>
    %cst_82 = arith.constant dense<0.000000e+00> : vector<3x144xf32>
    %276 = tpu.matmul %274, %275, %cst_82 {dimension_numbers = #tpu.dot_dimension_numbers<[1], [0], [0], [1], [0, 0, 1, 1], [], []>} : vector<3x24xf32>, vector<24x144xf32>, vector<3x144xf32> -> vector<3x144xf32>
    %277 = arith.addf %273, %276 : vector<3x144xf32>
    %278 = vector.extract_strided_slice %256 {offsets = [0, 121], sizes = [3, 24], strides = [1, 1]} : vector<3x217xf32> to vector<3x24xf32>
    %279 = vector.extract_strided_slice %258 {offsets = [0, 20], sizes = [24, 144], strides = [1, 1]} : vector<24x182xf32> to vector<24x144xf32>
    %cst_83 = arith.constant dense<0.000000e+00> : vector<3x144xf32>
    %280 = tpu.matmul %278, %279, %cst_83 {dimension_numbers = #tpu.dot_dimension_numbers<[1], [0], [0], [1], [0, 0, 1, 1], [], []>} : vector<3x24xf32>, vector<24x144xf32>, vector<3x144xf32> -> vector<3x144xf32>
    %281 = arith.addf %277, %280 : vector<3x144xf32>
    %282 = vector.extract_strided_slice %256 {offsets = [0, 145], sizes = [3, 24], strides = [1, 1]} : vector<3x217xf32> to vector<3x24xf32>
    %283 = vector.extract_strided_slice %258 {offsets = [0, 36], sizes = [24, 144], strides = [1, 1]} : vector<24x182xf32> to vector<24x144xf32>
    %cst_84 = arith.constant dense<0.000000e+00> : vector<3x144xf32>
    %284 = tpu.matmul %282, %283, %cst_84 {dimension_numbers = #tpu.dot_dimension_numbers<[1], [0], [0], [1], [0, 0, 1, 1], [], []>} : vector<3x24xf32>, vector<24x144xf32>, vector<3x144xf32> -> vector<3x144xf32>
    %285 = arith.addf %281, %284 : vector<3x144xf32>
    %286 = vector.extract_strided_slice %256 {offsets = [0, 169], sizes = [3, 24], strides = [1, 1]} : vector<3x217xf32> to vector<3x24xf32>
    %287 = vector.extract_strided_slice %258 {offsets = [0, 37], sizes = [24, 144], strides = [1, 1]} : vector<24x182xf32> to vector<24x144xf32>
    %cst_85 = arith.constant dense<0.000000e+00> : vector<3x144xf32>
    %288 = tpu.matmul %286, %287, %cst_85 {dimension_numbers = #tpu.dot_dimension_numbers<[1], [0], [0], [1], [0, 0, 1, 1], [], []>} : vector<3x24xf32>, vector<24x144xf32>, vector<3x144xf32> -> vector<3x144xf32>
    %289 = arith.addf %285, %288 : vector<3x144xf32>
    %290 = vector.extract_strided_slice %256 {offsets = [0, 193], sizes = [3, 24], strides = [1, 1]} : vector<3x217xf32> to vector<3x24xf32>
    %291 = vector.extract_strided_slice %258 {offsets = [0, 38], sizes = [24, 144], strides = [1, 1]} : vector<24x182xf32> to vector<24x144xf32>
    %cst_86 = arith.constant dense<0.000000e+00> : vector<3x144xf32>
    %292 = tpu.matmul %290, %291, %cst_86 {dimension_numbers = #tpu.dot_dimension_numbers<[1], [0], [0], [1], [0, 0, 1, 1], [], []>} : vector<3x24xf32>, vector<24x144xf32>, vector<3x144xf32> -> vector<3x144xf32>
    %293 = arith.addf %289, %292 : vector<3x144xf32>
    %294 = vector.extract_strided_slice %256 {offsets = [0, 0], sizes = [3, 1], strides = [1, 1]} : vector<3x217xf32> to vector<3x1xf32>
    %295 = vector.broadcast %294 : vector<3x1xf32> to vector<3x144xf32>
    %296 = arith.addf %293, %295 : vector<3x144xf32>
    %297 = vector.extract_strided_slice %3 {offsets = [0, 90], sizes = [1, 144], strides = [1, 1]} : vector<1x324xf32> to vector<1x144xf32>
    %298 = vector.broadcast %297 : vector<1x144xf32> to vector<3x144xf32>
    %299 = arith.mulf %296, %298 : vector<3x144xf32>
    %c0_87 = arith.constant 0 : index
    %c0_88 = arith.constant 0 : index
    %c0_89 = arith.constant 0 : index
    %c0_90 = arith.constant 0 : index
    %300 = vector.load %arg3[%c0_87, %c0_88, %c0_89, %c0_90] : memref<1x1x3x144xf32, #tpu.memory_space<vmem>>, vector<1x1x3x144xf32>
    %301 = vector.shape_cast %300 : vector<1x1x3x144xf32> to vector<3x144xf32>
    %302 = arith.addf %299, %301 : vector<3x144xf32>
    %c0_91 = arith.constant 0 : index
    %c0_92 = arith.constant 0 : index
    %c0_93 = arith.constant 0 : index
    %c0_94 = arith.constant 0 : index
    %303 = vector.load %arg11[%c0_91, %c0_92, %c0_93, %c0_94] : memref<1x1x3x144xf32, #tpu.memory_space<vmem>>, vector<1x1x3x144xf32>
    %304 = vector.shape_cast %303 : vector<1x1x3x144xf32> to vector<3x144xf32>
    %305 = vector.shape_cast %302 : vector<3x144xf32> to vector<1x1x3x144xf32>
    tpu.vector_store %arg11[%c0_91, %c0_92, %c0_93, %c0_94], %305 {strides = array<i32>} : memref<1x1x3x144xf32, #tpu.memory_space<vmem>>, vector<1x1x3x144xf32>,
    %cst_95 = arith.constant 0.000000e+00 : f32
    %cst_96 = arith.constant 1.000000e+00 : f32
    %306 = vector.broadcast %cst_95 : f32 to vector<3x144xf32>
    %307 = arith.maximumf %306, %301 : vector<3x144xf32>
    %308 = vector.broadcast %cst_96 : f32 to vector<3x144xf32>
    %309 = arith.minimumf %308, %307 : vector<3x144xf32>
    %cst_97 = arith.constant 2.550000e+02 : f32
    %310 = vector.broadcast %cst_97 : f32 to vector<3x144xf32>
    %311 = arith.mulf %309, %310 : vector<3x144xf32>
    %312 = math.roundeven %311 : vector<3x144xf32>
    %cst_98 = arith.constant 0.00392156886 : f32
    %313 = vector.broadcast %cst_98 : f32 to vector<3x144xf32>
    %314 = arith.mulf %312, %313 : vector<3x144xf32>
    %c0_99 = arith.constant 0 : index
    %c0_100 = arith.constant 0 : index
    %c0_101 = arith.constant 0 : index
    %c0_102 = arith.constant 0 : index
    %315 = vector.load %arg12[%c0_99, %c0_100, %c0_101, %c0_102] : memref<1x1x3x144xf32, #tpu.memory_space<vmem>>, vector<1x1x3x144xf32>
    %316 = vector.shape_cast %315 : vector<1x1x3x144xf32> to vector<3x144xf32>
    %317 = vector.shape_cast %314 : vector<3x144xf32> to vector<1x1x3x144xf32>
    tpu.vector_store %arg12[%c0_99, %c0_100, %c0_101, %c0_102], %317 {strides = array<i32>} : memref<1x1x3x144xf32, #tpu.memory_space<vmem>>, vector<1x1x3x144xf32>,
    return
  }
  func.func @transform_0(%arg0: i32, %arg1: i32) -> (i32, i32, i32, i32) {
    %c0_i32 = arith.constant 0 : i32
    %c0_i32_0 = arith.constant 0 : i32
    %c0_i32_1 = arith.constant 0 : i32
    return %arg0, %arg1, %c0_i32, %c0_i32_0 : i32, i32, i32, i32
  }
  func.func @transform_1(%arg0: i32, %arg1: i32) -> (i32, i32, i32, i32) {
    %c0_i32 = arith.constant 0 : i32
    %c0_i32_0 = arith.constant 0 : i32
    %c0_i32_1 = arith.constant 0 : i32
    return %arg0, %arg1, %c0_i32, %c0_i32_0 : i32, i32, i32, i32
  }
  func.func @transform_2(%arg0: i32, %arg1: i32) -> (i32, i32, i32) {
    %c0_i32 = arith.constant 0 : i32
    %c0_i32_0 = arith.constant 0 : i32
    %c0_i32_1 = arith.constant 0 : i32
    return %arg1, %c0_i32, %c0_i32_0 : i32, i32, i32
  }
  func.func @transform_3(%arg0: i32, %arg1: i32) -> (i32, i32) {
    %c0_i32 = arith.constant 0 : i32
    %c0_i32_0 = arith.constant 0 : i32
    %c0_i32_1 = arith.constant 0 : i32
    return %c0_i32, %c0_i32_0 : i32, i32
  }
  func.func @transform_4(%arg0: i32, %arg1: i32) -> (i32, i32) {
    %c0_i32 = arith.constant 0 : i32
    %c0_i32_0 = arith.constant 0 : i32
    %c0_i32_1 = arith.constant 0 : i32
    return %c0_i32, %c0_i32_0 : i32, i32
  }
  func.func @transform_5(%arg0: i32, %arg1: i32) -> (i32, i32) {
    %c0_i32 = arith.constant 0 : i32
    %c0_i32_0 = arith.constant 0 : i32
    %c0_i32_1 = arith.constant 0 : i32
    return %c0_i32, %c0_i32_0 : i32, i32
  }
  func.func @transform_6(%arg0: i32, %arg1: i32) -> (i32, i32) {
    %c0_i32 = arith.constant 0 : i32
    %c0_i32_0 = arith.constant 0 : i32
    %c0_i32_1 = arith.constant 0 : i32
    return %c0_i32, %c0_i32_0 : i32, i32
  }
  func.func @transform_7(%arg0: i32, %arg1: i32) -> (i32, i32) {
    %c0_i32 = arith.constant 0 : i32
    %c0_i32_0 = arith.constant 0 : i32
    %c0_i32_1 = arith.constant 0 : i32
    return %c0_i32, %c0_i32_0 : i32, i32
  }
  func.func @transform_8(%arg0: i32, %arg1: i32) -> (i32, i32) {
    %c0_i32 = arith.constant 0 : i32
    %c0_i32_0 = arith.constant 0 : i32
    %c0_i32_1 = arith.constant 0 : i32
    return %c0_i32, %c0_i32_0 : i32, i32
  }
  func.func @transform_9(%arg0: i32, %arg1: i32) -> (i32, i32, i32, i32) {
    %c0_i32 = arith.constant 0 : i32
    %c0_i32_0 = arith.constant 0 : i32
    %c0_i32_1 = arith.constant 0 : i32
    return %arg0, %arg1, %c0_i32, %c0_i32_0 : i32, i32, i32, i32
  }
  func.func @transform_10(%arg0: i32, %arg1: i32) -> (i32, i32, i32, i32) {
    %c0_i32 = arith.constant 0 : i32
    %c0_i32_0 = arith.constant 0 : i32
    %c0_i32_1 = arith.constant 0 : i32
    return %arg0, %arg1, %c0_i32, %c0_i32_0 : i32, i32, i32, i32
  }
}

</mosaic_0001>

<bundles_post_ra>
// kernel: quantization_h265_suggrogate_forward.3
= control target key start
LH: loop header
LB: loop body
LE: loop exit
PB: predicated region body
PF: predicated region fallthrough
CT: control target
= control target key end

     0   :  { %9 = vsyncpa [#allocation3], 0  ;;  %vm85_vm0 = vcmask 1041408   ;;  %s1440_s0 = inlined_call_operand.vmem [shape: f32[10,896], index: 0, kind: input, shape index: {}]   ;;  %s1441_s1 = inlined_call_operand.vmem [shape: f32[10,896], index: 1, kind: input, shape index: {}]   ;;  %s1442_s2 = inlined_call_operand.hbm [shape: f32[1,1], index: 2, kind: output, shape index: {0}]   ;;  %s1443_s3 = inlined_call_operand.hbm [shape: f32[1,1], index: 3, kind: output, shape index: {1}]  }
   0x1   :  { %v791_v0 = vld [vmem:[%s1440_s0] sm:$0xff]  ;;  %v796_v1 = vld [vmem:[%s1440_s0 + $0x8] sm:$0xff]  ;;  %v801_v2 = vld [vmem:[%s1440_s0 + $0x38] sm:$0x3] }
   0x2   :  { %v806_v3 = vld [vmem:[%s1440_s0 + $0x40] sm:$0x3]  ;;  %v811_v4 = vld [vmem:[%s1440_s0 + $0x10] sm:$0xff]  ;;  %v816_v5 = vld [vmem:[%s1440_s0 + $0x18] sm:$0xff]  ;;  %v113_v11 = vsel %vm85_vm0, %v801_v2, 0.0 }
   0x3   :  { %1451 = vst [vmem:[#allocation8_spill] sm:$0xff] %v806_v3  ;;  %v821_v6 = vld [vmem:[%s1440_s0 + $0x48] sm:$0x3]  ;;  %v826_v7 = vld [vmem:[%s1440_s0 + $0x20] sm:$0xff]  ;;  %v836_v9 = vld [vmem:[%s1440_s0 + $0x30] sm:$0xff]  ;;  %v114_v16 = vadd.f32 %v113_v11, %v791_v0  ;;  %v121_v17 = vsel %vm85_vm0, %v806_v3, 0.0 }
   0x4   :  { %1452 = vst [vmem:[#allocation9_spill] sm:$0xff] %v821_v6  ;;  %v831_v8 = vld [vmem:[%s1440_s0 + $0x28] sm:$0xff]  ;;  %1453 = vst [vmem:[#allocation10_spill] sm:$0xff] %v836_v9  ;;  %v841_v10 = vld [vmem:[%s1441_s1] sm:$0xff]  ;;  %v129_v27 = vsel %vm85_vm0, %v821_v6, 0.0  ;;  %v122_v34 = vadd.f32 %v121_v17, %v796_v1 }
   0x5   :  { %v848_v12 = vld [vmem:[%s1441_s1 + $0x8] sm:$0xff]  ;;  %v853_v13 = vld [vmem:[%s1441_s1 + $0x10] sm:$0xff]  ;;  %v858_v14 = vld [vmem:[%s1441_s1 + $0x18] sm:$0xff]  ;;  %v50_v15 = vsub.f32 %v791_v0, %v841_v10 }
   0x6   :  { %v868_v18 = vld [vmem:[%s1440_s0 + $0x50] sm:$0x3]  ;;  %v873_v19 = vld [vmem:[%s1440_s0 + $0x58] sm:$0x3]  ;;  %v878_v20 = vld [vmem:[%s1440_s0 + $0x60] sm:$0x3]  ;;  %v51_v24 = vsub.f32 %v796_v1, %v848_v12  ;;  %v52_v25 = vsub.f32 %v811_v4, %v853_v13  ;;  %v53_v26 = vsub.f32 %v816_v5, %v858_v14 }
   0x7   :  { %1454 = vst [vmem:[#allocation11_spill] sm:$0xff] %v868_v18  ;;  %1455 = vst [vmem:[#allocation12_spill] sm:$0xff] %v873_v19  ;;  %v883_v21 = vld [vmem:[%s1441_s1 + $0x20] sm:$0xff]  ;;  %v888_v22 = vld [vmem:[%s1441_s1 + $0x28] sm:$0xff]  ;;  %v65_v41 = vmul.f32 %v50_v15, %v50_v15 }
   0x8   :  { %1456 = vst [vmem:[#allocation13_spill] sm:$0xff] %v878_v20  ;;  %v893_v23 = vld [vmem:[%s1441_s1 + $0x30] sm:$0xff]  ;;  %v906_v28 = vld [vmem:[%s1441_s1 + $0x38] sm:$0x3]  ;;  %v911_v29 = vld [vmem:[%s1441_s1 + $0x40] sm:$0x3]  ;;  %v54_v31 = vsub.f32 %v826_v7, %v883_v21  ;;  %v55_v32 = vsub.f32 %v831_v8, %v888_v22  ;;  %v66_v47 = vmul.f32 %v51_v24, %v51_v24 }
   0x9   :  { %v916_v30 = vld [vmem:[%s1441_s1 + $0x48] sm:$0x3]  ;;  %v56_v33 = vsub.f32 %v836_v9, %v893_v23  ;;  %v928_v35 = vld [vmem:[%s1441_s1 + $0x50] sm:$0x3]  ;;  %v933_v36 = vld [vmem:[%s1441_s1 + $0x58] sm:$0x3]  ;;  %v57_v38 = vsub.f32 %v801_v2, %v906_v28  ;;  %v58_v39 = vsub.f32 %v806_v3, %v911_v29 }
   0xa   :  { %v938_v37 = vld [vmem:[%s1441_s1 + $0x60] sm:$0x3]  ;;  %v59_v40 = vsub.f32 %v821_v6, %v916_v30  ;;  %v949_v42 = vld [vmem:[%s1440_s0 + $0x68] sm:$0x3]  ;;  %v60_v44 = vsub.f32 %v868_v18, %v928_v35  ;;  %v61_v45 = vsub.f32 %v873_v19, %v933_v36 }
   0xb   :  { %1457 = vst [vmem:[#allocation14_spill] sm:$0xff] %v949_v42  ;;  %v954_v43 = vld [vmem:[%s1441_s1 + $0x68] sm:$0x3]  ;;  %v62_v46 = vsub.f32 %v878_v20, %v938_v37 }
   0xc   :  { %10 = vsyncpa [#allocation5], 0  ;;  %v63_v48 = vsub.f32 %v949_v42, %v954_v43  ;;  %v67_v49 = vmul.f32 %v52_v25, %v52_v25  ;;  %v68_v50 = vmul.f32 %v53_v26, %v53_v26  ;;  %v69_v51 = vmul.f32 %v54_v31, %v54_v31  ;;  %s766_s1 = smov [#allocation2]  }
   0xd   :  { %v70_v52 = vmul.f32 %v55_v32, %v55_v32  ;;  %v72_v53 = vmul.f32 %v57_v38, %v57_v38  ;;  %v73_v54 = vmul.f32 %v58_v39, %v58_v39  ;;  %v74_v55 = vmul.f32 %v59_v40, %v59_v40  ;;  %s646_s14 = sshll.u32 %s766_s1, 4  ;;  %s647_s14 = int_to_ptr.vmem [resolvable:$true] %s646_s14 }
   0xe   :  { %v71_v56 = vmul.f32 %v56_v33, %v56_v33  ;;  %v75_v57 = vmul.f32 %v60_v44, %v60_v44  ;;  %v76_v58 = vmul.f32 %v61_v45, %v61_v45  ;;  %v77_v59 = vmul.f32 %v62_v46, %v62_v46  ;;  %s717_s15 = scalar_lea.vmem %s647_s14, 16  ;;  %s721_s16 = scalar_lea.vmem %s647_s14, 32 }
   0xf   :  { %v78_v60 = vmul.f32 %v63_v48, %v63_v48  ;;  %v79_v61 = vadd.f32 %v66_v47, %v65_v41  ;;  %v86_v62 = vsel %vm85_vm0, %v72_v53, 0.0  ;;  %v88_v63 = vsel %vm85_vm0, %v73_v54, 0.0  ;;  %p718_p0 = scmp.ne.s32.totalorder %s647_s14, %s717_s15  ;;  %p722_p1 = scmp.lt.s32.totalorder %s647_s14, %s647_s14 }
  0x10   :  { %v90_v11 = vsel %vm85_vm0, %v74_v55, 0.0  ;;  %v968_v15 = vsel %vm85_vm0, %v75_v57, 0.0  ;;  %v971_v17 = vsel %vm85_vm0, %v76_v58, 0.0  ;;  %v974_v24 = vsel %vm85_vm0, %v77_v59, 0.0  ;;  %p723_p2 = scmp.lt.s32.totalorder %s721_s16, %s717_s15 }
  0x11   :  { %v80_v25 = vadd.f32 %v79_v61, %v67_v49  ;;  %v115_v26 = vrot.slane %v114_v16, 4  ;;  %v123_v31 = vrot.slane %v122_v34, 4  ;;  %v130_v32 = vadd.f32 %v129_v27, %v811_v4 }
  0x12   :  { %v137_v33 = vsel %vm85_vm0, %v868_v18, 0.0  ;;  %v145_v38 = vsel %vm85_vm0, %v873_v19, 0.0  ;;  %v153_v39 = vsel %vm85_vm0, %v878_v20, 0.0  ;;  %v161_v40 = vsel %vm85_vm0, %v949_v42, 0.0  ;;  %p724_p3 = por %p723_p2, %p722_p1 }
  0x13   :  { %v81_v41 = vadd.f32 %v80_v25, %v68_v50  ;;  %v116_v44 = vadd.f32 %v115_v26, %v114_v16  ;;  %v124_v45 = vadd.f32 %v123_v31, %v122_v34  ;;  %v131_v46 = vrot.slane %v130_v32, 4 }
  0x14   :  { %v138_v47 = vadd.f32 %v137_v33, %v816_v5  ;;  %v146_v27 = vadd.f32 %v145_v38, %v826_v7  ;;  %v154_v48 = vadd.f32 %v153_v39, %v831_v8  ;;  %v162_v49 = vadd.f32 %v161_v40, %v836_v9  ;;  %p725_p4 = pnand %p724_p3, %p718_p0 }
  0x15   :  { %v82_v53 = vadd.f32 %v81_v41, %v69_v51  ;;  %v117_v54 = vrot.slane %v116_v44, 2  ;;  %v125_v55 = vrot.slane %v124_v45, 2  ;;  %v132_v57 = vadd.f32 %v131_v46, %v130_v32 }
  0x16   :  { %v139_v58 = vrot.slane %v138_v47, 4  ;;  %v147_v59 = vrot.slane %v146_v27, 4  ;;  %v155_v61 = vrot.slane %v154_v48, 4  ;;  %v163_v42 = vrot.slane %v162_v49, 4 }
  0x17   :  { %v83_v50 = vadd.f32 %v82_v53, %v70_v52  ;;  %v118_v16 = vadd.f32 %v117_v54, %v116_v44  ;;  %v126_v34 = vadd.f32 %v125_v55, %v124_v45  ;;  %v133_v25 = vrot.slane %v132_v57, 2 }
  0x18   :  { %v140_v26 = vadd.f32 %v139_v58, %v138_v47  ;;  %v148_v31 = vadd.f32 %v147_v59, %v146_v27  ;;  %v156_v33 = vadd.f32 %v155_v61, %v154_v48  ;;  %v164_v38 = vadd.f32 %v163_v42, %v162_v49 }
  0x19   :  { %v84_v20 = vadd.f32 %v83_v50, %v71_v56  ;;  %v119_v39 = vrot.slane %v118_v16, 1  ;;  %v127_v19 = vrot.slane %v126_v34, 1  ;;  %v134_v40 = vadd.f32 %v133_v25, %v132_v57 }
  0x1a   :  { %v141_v51 = vrot.slane %v140_v26, 2  ;;  %v149_v41 = vrot.slane %v148_v31, 2  ;;  %v157_v9 = vrot.slane %v156_v33, 2  ;;  %v165_v32 = vrot.slane %v164_v38, 2 }
  0x1b   :  { %v87_v46 = vadd.f32 %v86_v62, %v84_v20  ;;  %v120_v18 = vadd.f32 %v119_v39, %v118_v16  ;;  %v128_v6 = vadd.f32 %v127_v19, %v126_v34  ;;  %v135_v3 = vrot.slane %v134_v40, 1 }
  0x1c   :  { %v142_v52 = vadd.f32 %v141_v51, %v140_v26  ;;  %v150_v44 = vadd.f32 %v149_v41, %v148_v31  ;;  %v158_v45 = vadd.f32 %v157_v9, %v156_v33  ;;  %v166_v53 = vadd.f32 %v165_v32, %v164_v38 }
  0x1d   :  { %v89_v47 = vadd.f32 %v88_v63, %v87_v46  ;;  %v98_v27 = vsel %vm85_vm0, %v78_v60, 0.0  ;;  %v136_v42 = vadd.f32 %v135_v3, %v134_v40  ;;  %v990_v56 = vmul.f32 0.1, %v120_v18 }
  0x1e   :  { %v143_v48 = vrot.slane %v142_v52, 1  ;;  %v151_v49 = vrot.slane %v150_v44, 1  ;;  %v159_v54 = vrot.slane %v158_v45, 1  ;;  %v167_v55 = vrot.slane %v166_v53, 1 }
  0x1f   :  { %v91_v57 = vadd.f32 %v90_v11, %v89_v47  ;;  %v992_v58 = vmul.f32 0.1, %v128_v6  ;;  %v177_v19 = vsel %vm85_vm0, %v906_v28, 0.0  ;;  %v185_v9 = vsel %vm85_vm0, %v911_v29, 0.0 }
  0x20   :  { %v144_v20 = vadd.f32 %v143_v48, %v142_v52  ;;  %v152_v62 = vadd.f32 %v151_v49, %v150_v44  ;;  %v160_v63 = vadd.f32 %v159_v54, %v158_v45  ;;  %v998_v60 = vmul.f32 0.1, %v136_v42 }
  0x21   :  { %v93_v3 = vadd.f32 %v968_v15, %v91_v57  ;;  %v178_v18 = vadd.f32 %v177_v19, %v841_v10  ;;  %v186_v59 = vadd.f32 %v185_v9, %v848_v12  ;;  %v193_v6 = vsel %vm85_vm0, %v916_v30, 0.0 }
  0x22   :  { %v168_v11 = vadd.f32 %v167_v55, %v166_v53  ;;  %v1005_v61 = vmul.f32 0.1, %v144_v20  ;;  %v1007_v50 = vmul.f32 0.1, %v152_v62  ;;  %v194_v16 = vadd.f32 %v193_v6, %v853_v13 }
  0x23   :  { %v95_v34 = vadd.f32 %v971_v17, %v93_v3  ;;  %v1011_v25 = vmul.f32 0.1, %v160_v63  ;;  %v179_v26 = vrot.slane %v178_v18, 4  ;;  %v187_v15 = vrot.slane %v186_v59, 4 }
  0x24   :  { %v195_v31 = vrot.slane %v194_v16, 4  ;;  %v201_v33 = vsel %vm85_vm0, %v928_v35, 0.0  ;;  %v209_v38 = vsel %vm85_vm0, %v933_v36, 0.0  ;;  %v217_v39 = vsel %vm85_vm0, %v938_v37, 0.0 }
  0x25   :  { %v97_v40 = vadd.f32 %v974_v24, %v95_v34  ;;  %v180_v51 = vadd.f32 %v179_v26, %v178_v18  ;;  %v188_v41 = vadd.f32 %v187_v15, %v186_v59  ;;  %v202_v17 = vadd.f32 %v201_v33, %v858_v14 }
  0x26   :  { %v196_v32 = vadd.f32 %v195_v31, %v194_v16  ;;  %v210_v46 = vadd.f32 %v209_v38, %v883_v21  ;;  %v218_v52 = vadd.f32 %v217_v39, %v888_v22  ;;  %v225_v44 = vsel %vm85_vm0, %v954_v43, 0.0 }
  0x27   :  { %v99_v45 = vadd.f32 %v98_v27, %v97_v40  ;;  %v181_v53 = vrot.slane %v180_v51, 2  ;;  %v189_v47 = vrot.slane %v188_v41, 2  ;;  %v203_v42 = vrot.slane %v202_v17, 4 }
  0x28   :  { %v197_v48 = vrot.slane %v196_v32, 2  ;;  %v211_v49 = vrot.slane %v210_v46, 4  ;;  %v219_v54 = vrot.slane %v218_v52, 4  ;;  %v226_v24 = vadd.f32 %v225_v44, %v893_v23 }
  0x29   :  { %v176_v55 = vmul.f32 0.1, %v168_v11  ;;  %v182_v57 = vadd.f32 %v181_v53, %v180_v51  ;;  %v190_v19 = vadd.f32 %v189_v47, %v188_v41  ;;  %v204_v9 = vadd.f32 %v203_v42, %v202_v17  ;;  %100 = vadd.xlane.f32.xlu0 %v99_v45 }
  0x2a   :  { %v198_v20 = vadd.f32 %v197_v48, %v196_v32  ;;  %v212_v62 = vadd.f32 %v211_v49, %v210_v46  ;;  %v220_v63 = vadd.f32 %v219_v54, %v218_v52  ;;  %v227_v3 = vrot.slane %v226_v24, 4 }
  0x2b   :  { %v183_v18 = vrot.slane %v182_v57, 1  ;;  %v191_v59 = vrot.slane %v190_v19, 1  ;;  %v205_v27 = vrot.slane %v204_v9, 2  ;;  %v1028_v6 = vsub.f32 %v791_v0, %v990_v56 }
  0x2c   :  { %v199_v16 = vrot.slane %v198_v20, 1  ;;  %v213_v34 = vrot.slane %v212_v62, 2  ;;  %v221_v26 = vrot.slane %v220_v63, 2  ;;  %v228_v15 = vadd.f32 %v227_v3, %v226_v24 }
  0x2d   :  { %v184_v11 = vadd.f32 %v183_v18, %v182_v57  ;;  %v192_v31 = vadd.f32 %v191_v59, %v190_v19  ;;  %v206_v33 = vadd.f32 %v205_v27, %v204_v9  ;;  %v241_v38 = vsub.f32 %v796_v1, %v992_v58  ;;  %v1458_v19 = vld [vmem:[#allocation8_spill] sm:$0xff]  ;;  %v1462_v27 = vld [vmem:[#allocation10_spill] sm:$0xff] }
  0x2e   :  { %v200_v39 = vadd.f32 %v199_v16, %v198_v20  ;;  %v214_v40 = vadd.f32 %v213_v34, %v212_v62  ;;  %v222_v51 = vadd.f32 %v221_v26, %v220_v63  ;;  %v229_v41 = vrot.slane %v228_v15, 2  ;;  %v1460_v62 = vld [vmem:[#allocation11_spill] sm:$0xff]  ;;  %v1464_v34 = vld [vmem:[#allocation14_spill] sm:$0xff] }
  0x2f   :  { %v207_v17 = vrot.slane %v206_v33, 1  ;;  %v1032_v32 = vmul.f32 0.1, %v184_v11  ;;  %v234_v46 = vmul.f32 0.1, %v192_v31  ;;  %v242_v0 = vsub.f32 %v811_v4, %v998_v60 }
  0x30   :  { %v215_v52 = vrot.slane %v214_v40, 1  ;;  %v223_v44 = vrot.slane %v222_v51, 1  ;;  %v230_v45 = vadd.f32 %v229_v41, %v228_v15  ;;  %v243_v53 = vsub.f32 %v816_v5, %v1005_v61  ;;  %v1459_v5 = vld [vmem:[#allocation9_spill] sm:$0xff] }
  0x31   :  { %v208_v47 = vadd.f32 %v207_v17, %v206_v33  ;;  %v235_v42 = vmul.f32 0.1, %v200_v39  ;;  %v244_v1 = vsub.f32 %v826_v7, %v1007_v50  ;;  %v245_v48 = vsub.f32 %v831_v8, %v1011_v25  ;;  %v1461_v8 = vld [vmem:[#allocation12_spill] sm:$0xff] }
  0x32   :  { %v216_v49 = vadd.f32 %v215_v52, %v214_v40  ;;  %v224_v54 = vadd.f32 %v223_v44, %v222_v51  ;;  %v231_v24 = vrot.slane %v230_v45, 1  ;;  %v247_v4 = vsub.f32 %v801_v2, %v990_v56  ;;  %v1463_v2 = vld [vmem:[#allocation13_spill] sm:$0xff] }
  0x33   :  { %v236_v57 = vmul.f32 0.1, %v208_v47  ;;  %v248_v9 = vsub.f32 %v1458_v19, %v992_v58  ;;  %v249_v20 = vsub.f32 %v1459_v5, %v998_v60  ;;  %v250_v63 = vsub.f32 %v1460_v62, %v1005_v61 }
  0x34   :  { %v232_v7 = vadd.f32 %v231_v24, %v230_v45  ;;  %v237_v3 = vmul.f32 0.1, %v216_v49  ;;  %v238_v18 = vmul.f32 0.1, %v224_v54  ;;  %v251_v59 = vsub.f32 %v1461_v8, %v1007_v50 }
  0x35   :  { %v246_v16 = vsub.f32 %v1462_v27, %v176_v55  ;;  %v252_v56 = vsub.f32 %v1463_v2, %v1011_v25  ;;  %v253_v26 = vsub.f32 %v1464_v34, %v176_v55  ;;  %v1057_v58 = vsub.f32 %v848_v12, %v234_v46 }
  0x36   :  { %v239_v60 = vmul.f32 0.1, %v232_v7  ;;  %v1060_v15 = vsub.f32 %v853_v13, %v235_v42  ;;  %v1063_v61 = vsub.f32 %v858_v14, %v236_v57  ;;  %v1066_v11 = vsub.f32 %v883_v21, %v237_v3 }
  0x37   :  { %v1069_v50 = vsub.f32 %v888_v22, %v238_v18  ;;  %v1073_v25 = vsub.f32 %v906_v28, %v1032_v32  ;;  %v1076_v12 = vsub.f32 %v911_v29, %v234_v46  ;;  %v1079_v55 = vsub.f32 %v916_v30, %v235_v42 }
  0x38   :  { %v1082_v13 = vsub.f32 %v893_v23, %v239_v60  ;;  %v1085_v14 = vsub.f32 %v928_v35, %v236_v57  ;;  %v1088_v21 = vsub.f32 %v933_v36, %v237_v3  ;;  %v1091_v22 = vsub.f32 %v938_v37, %v238_v18 }
  0x39   :  { %v1094_v28 = vsub.f32 %v954_v43, %v239_v60  ;;  %v1097_v29 = vmul.f32 %v1057_v58, %v241_v38  ;;  %v1100_v30 = vmul.f32 %v1060_v15, %v242_v0  ;;  %v1103_v23 = vmul.f32 %v1063_v61, %v243_v53 }
  0x3a   :  { %v1106_v35 = vmul.f32 %v1066_v11, %v244_v1  ;;  %v1109_v36 = vmul.f32 %v1069_v50, %v245_v48  ;;  %v1112_v37 = vmul.f32 %v1082_v13, %v246_v16  ;;  %v1115_v43 = vmul.f32 %v1073_v25, %v247_v4 }
  0x3b   :  { %v276_v31 = vmul.f32 %v1076_v12, %v248_v9  ;;  %v277_v33 = vmul.f32 %v1079_v55, %v249_v20  ;;  %v1120_v39 = vmul.f32 %v1085_v14, %v250_v63  ;;  %v1123_v40 = vmul.f32 %v1088_v21, %v251_v59 }
  0x3c   :  { %v1126_v51 = vmul.f32 %v1091_v22, %v252_v56  ;;  %v1129_v41 = vmul.f32 %v1094_v28, %v253_v26  ;;  %v338_v17 = vmul.f32 %v1028_v6, %v1028_v6  ;;  %v339_v46 = vmul.f32 %v241_v38, %v241_v38 }
  0x3d   :  { %v340_v52 = vmul.f32 %v242_v0, %v242_v0  ;;  %v341_v44 = vmul.f32 %v243_v53, %v243_v53  ;;  %v342_v45 = vmul.f32 %v244_v1, %v244_v1  ;;  %v343_v47 = vmul.f32 %v245_v48, %v245_v48 }
  0x3e   :  { %v345_v42 = vmul.f32 %v247_v4, %v247_v4  ;;  %v346_v49 = vmul.f32 %v248_v9, %v248_v9  ;;  %v347_v54 = vmul.f32 %v249_v20, %v249_v20  ;;  %v348_v24 = vmul.f32 %v250_v63, %v250_v63 }
  0x3f   :  { %v349_v57 = vmul.f32 %v251_v59, %v251_v59  ;;  %v344_v19 = vmul.f32 %v246_v16, %v246_v16  ;;  %v350_v5 = vmul.f32 %v252_v56, %v252_v56  ;;  %v351_v62 = vmul.f32 %v253_v26, %v253_v26 }
  0x40   :  { %v352_v7 = vsel %vm85_vm0, %v345_v42, 0.0  ;;  %v360_v18 = vsel %vm85_vm0, %v346_v49, 0.0  ;;  %v368_v8 = vsel %vm85_vm0, %v347_v54, 0.0  ;;  %v376_v38 = vsel %vm85_vm0, %v348_v24, 0.0 }
  0x41   :  { %v353_v3 = vadd.f32 %v352_v7, %v338_v17  ;;  %v361_v0 = vadd.f32 %v360_v18, %v339_v46  ;;  %v369_v53 = vadd.f32 %v368_v8, %v340_v52  ;;  %v377_v1 = vadd.f32 %v376_v38, %v341_v44 }
  0x42   :  { %v384_v48 = vsel %vm85_vm0, %v349_v57, 0.0  ;;  %v392_v9 = vsel %vm85_vm0, %v350_v5, 0.0  ;;  %v400_v20 = vsel %vm85_vm0, %v351_v62, 0.0  ;;  %v254_v34 = vsub.f32 %v841_v10, %v1032_v32 }
  0x43   :  { %v385_v4 = vadd.f32 %v384_v48, %v342_v45  ;;  %v393_v63 = vadd.f32 %v392_v9, %v343_v47  ;;  %v354_v59 = vrot.slane %v353_v3, 4  ;;  %v401_v27 = vadd.f32 %v400_v20, %v344_v19 }
  0x44   :  { %v362_v16 = vrot.slane %v361_v0, 4  ;;  %v370_v2 = vrot.slane %v369_v53, 4  ;;  %v378_v56 = vrot.slane %v377_v1, 4  ;;  %v1143_v45 = vsel %vm85_vm0, %v276_v31, 0.0 }
  0x45   :  { %v355_v26 = vadd.f32 %v354_v59, %v353_v3  ;;  %v386_v60 = vrot.slane %v385_v4, 4  ;;  %v394_v44 = vrot.slane %v393_v63, 4  ;;  %v1146_v42 = vsel %vm85_vm0, %v277_v33, 0.0 }
  0x46   :  { %v363_v17 = vadd.f32 %v362_v16, %v361_v0  ;;  %v371_v46 = vadd.f32 %v370_v2, %v369_v53  ;;  %v379_v52 = vadd.f32 %v378_v56, %v377_v1  ;;  %v457_v47 = vmul.f32 %v254_v34, %v254_v34 }
  0x47   :  { %v356_v49 = vrot.slane %v355_v26, 2  ;;  %v387_v54 = vadd.f32 %v386_v60, %v385_v4  ;;  %v402_v24 = vrot.slane %v401_v27, 4  ;;  %v458_v57 = vmul.f32 %v1057_v58, %v1057_v58 }
  0x48   :  { %v364_v10 = vrot.slane %v363_v17, 2  ;;  %v372_v32 = vrot.slane %v371_v46, 2  ;;  %v380_v19 = vrot.slane %v379_v52, 2  ;;  %v459_v5 = vmul.f32 %v1060_v15, %v1060_v15 }
  0x49   :  { %v395_v62 = vadd.f32 %v394_v44, %v393_v63  ;;  %v460_v31 = vmul.f32 %v1063_v61, %v1063_v61  ;;  %v461_v33 = vmul.f32 %v1066_v11, %v1066_v11  ;;  %v464_v7 = vmul.f32 %v1073_v25, %v1073_v25 }
  0x4a   :  { %v462_v3 = vmul.f32 %v1069_v50, %v1069_v50  ;;  %v465_v58 = vmul.f32 %v1076_v12, %v1076_v12  ;;  %v466_v18 = vmul.f32 %v1079_v55, %v1079_v55  ;;  %v467_v15 = vmul.f32 %v1085_v14, %v1085_v14 }
  0x4b   :  { %v463_v61 = vmul.f32 %v1082_v13, %v1082_v13  ;;  %v468_v11 = vmul.f32 %v1088_v21, %v1088_v21  ;;  %v469_v25 = vmul.f32 %v1091_v22, %v1091_v22  ;;  %v470_v50 = vmul.f32 %v1094_v28, %v1094_v28 }
  0x4c   :  { %v471_v12 = vsel %vm85_vm0, %v464_v7, 0.0  ;;  %v479_v8 = vsel %vm85_vm0, %v465_v58, 0.0  ;;  %v487_v55 = vsel %vm85_vm0, %v466_v18, 0.0  ;;  %v495_v14 = vsel %vm85_vm0, %v467_v15, 0.0 }
  0x4d   :  { %v472_v38 = vadd.f32 %v471_v12, %v457_v47  ;;  %v480_v0 = vadd.f32 %v479_v8, %v458_v57  ;;  %v488_v13 = vadd.f32 %v487_v55, %v459_v5  ;;  %v496_v53 = vadd.f32 %v495_v14, %v460_v31 }
  0x4e   :  { %v503_v21 = vsel %vm85_vm0, %v468_v11, 0.0  ;;  %v511_v1 = vsel %vm85_vm0, %v469_v25, 0.0  ;;  %v519_v22 = vsel %vm85_vm0, %v470_v50, 0.0  ;;  %v268_v28 = vmul.f32 %v254_v34, %v1028_v6 }
  0x4f   :  { %v357_v48 = vadd.f32 %v356_v49, %v355_v26  ;;  %v365_v4 = vadd.f32 %v364_v10, %v363_v17  ;;  %v388_v9 = vrot.slane %v387_v54, 2  ;;  %v403_v20 = vadd.f32 %v402_v24, %v401_v27 }
  0x50   :  { %v504_v63 = vadd.f32 %v503_v21, %v461_v33  ;;  %v512_v59 = vadd.f32 %v511_v1, %v462_v3  ;;  %v520_v16 = vadd.f32 %v519_v22, %v463_v61  ;;  %v282_v2 = vsel %vm85_vm0, %v1115_v43, 0.0 }
  0x51   :  { %v373_v56 = vadd.f32 %v372_v32, %v371_v46  ;;  %v473_v60 = vrot.slane %v472_v38, 4  ;;  %v481_v44 = vrot.slane %v480_v0, 4  ;;  %v489_v47 = vrot.slane %v488_v13, 4 }
  0x52   :  { %v381_v57 = vadd.f32 %v380_v19, %v379_v52  ;;  %v396_v5 = vrot.slane %v395_v62, 2  ;;  %v497_v31 = vrot.slane %v496_v53, 4  ;;  %v283_v7 = vadd.f32 %v282_v2, %v268_v28 }
  0x53   :  { %v306_v6 = vsel %vm85_vm0, %v1120_v39, 0.0  ;;  %v314_v27 = vsel %vm85_vm0, %v1123_v40, 0.0  ;;  %v358_v34 = vrot.slane %v357_v48, 1  ;;  %v389_v26 = vadd.f32 %v388_v9, %v387_v54 }
  0x54   :  { %v404_v17 = vrot.slane %v403_v20, 2  ;;  %v505_v49 = vrot.slane %v504_v63, 4  ;;  %v513_v24 = vrot.slane %v512_v59, 4  ;;  %v521_v43 = vrot.slane %v520_v16, 4 }
  0x55   :  { %v366_v46 = vrot.slane %v365_v4, 1  ;;  %v474_v10 = vadd.f32 %v473_v60, %v472_v38  ;;  %v482_v32 = vadd.f32 %v481_v44, %v480_v0  ;;  %v490_v33 = vadd.f32 %v489_v47, %v488_v13 }
  0x56   :  { %v374_v52 = vrot.slane %v373_v56, 1  ;;  %v382_v19 = vrot.slane %v381_v57, 1  ;;  %v397_v3 = vadd.f32 %v396_v5, %v395_v62  ;;  %v498_v58 = vadd.f32 %v497_v31, %v496_v53 }
  0x57   :  { %v322_v39 = vsel %vm85_vm0, %v1126_v51, 0.0  ;;  %v330_v40 = vsel %vm85_vm0, %v1129_v41, 0.0  ;;  %v1192_v18 = vadd.f32 %v358_v34, %v357_v48  ;;  %v390_v54 = vrot.slane %v389_v26, 1 }
  0x58   :  { %v405_v15 = vadd.f32 %v404_v17, %v403_v20  ;;  %v506_v61 = vadd.f32 %v505_v49, %v504_v63  ;;  %v514_v11 = vadd.f32 %v513_v24, %v512_v59  ;;  %v522_v25 = vadd.f32 %v521_v43, %v520_v16 }
  0x59   :  { %v1194_v50 = vadd.f32 %v366_v46, %v365_v4  ;;  %v475_v12 = vrot.slane %v474_v10, 2  ;;  %v483_v8 = vrot.slane %v482_v32, 2  ;;  %v491_v55 = vrot.slane %v490_v33, 2 }
  0x5a   :  { %v1196_v62 = vadd.f32 %v374_v52, %v373_v56  ;;  %v1198_v14 = vadd.f32 %v382_v19, %v381_v57  ;;  %v398_v51 = vrot.slane %v397_v3, 1  ;;  %v499_v38 = vrot.slane %v498_v58, 2 }
  0x5b   :  { %v291_v41 = vadd.f32 %v1143_v45, %v1097_v29  ;;  %v299_v0 = vadd.f32 %v1146_v42, %v1100_v30  ;;  %v307_v13 = vadd.f32 %v306_v6, %v1103_v23  ;;  %v315_v53 = vadd.f32 %v314_v27, %v1106_v35 }
  0x5c   :  { %v507_v21 = vrot.slane %v506_v61, 2  ;;  %v515_v1 = vrot.slane %v514_v11, 2  ;;  %v523_v22 = vrot.slane %v522_v25, 2  ;;  %v284_v28 = vrot.slane %v283_v7, 4 }
  0x5d   :  { %v476_v48 = vadd.f32 %v475_v12, %v474_v10  ;;  %v484_v4 = vadd.f32 %v483_v8, %v482_v32  ;;  %v492_v9 = vadd.f32 %v491_v55, %v490_v33  ;;  %v292_v20 = vrot.slane %v291_v41, 4 }
  0x5e   :  { %v300_v63 = vrot.slane %v299_v0, 4  ;;  %v323_v59 = vadd.f32 %v322_v39, %v1109_v36  ;;  %v331_v29 = vadd.f32 %v330_v40, %v1112_v37  ;;  %675 = vrsqrt.f32 %v1192_v18 }
  0x5f   :  { %v1209_v30 = vadd.f32 %v390_v54, %v389_v26  ;;  %v406_v23 = vrot.slane %v405_v15, 1  ;;  %v500_v45 = vadd.f32 %v499_v38, %v498_v58  ;;  %v308_v35 = vrot.slane %v307_v13, 4 }
  0x60   :  { %v508_v42 = vadd.f32 %v507_v21, %v506_v61  ;;  %v516_v16 = vadd.f32 %v515_v1, %v514_v11  ;;  %v524_v2 = vadd.f32 %v523_v22, %v522_v25  ;;  %v285_v56 = vadd.f32 %v284_v28, %v283_v7 }
  0x61   :  { %v1211_v60 = vadd.f32 %v398_v51, %v397_v3  ;;  %v477_v44 = vrot.slane %v476_v48, 1  ;;  %v485_v47 = vrot.slane %v484_v4, 1  ;;  %v493_v57 = vrot.slane %v492_v9, 1 }
  0x62   :  { %v293_v5 = vadd.f32 %v292_v20, %v291_v41  ;;  %v301_v36 = vadd.f32 %v300_v63, %v299_v0  ;;  %v316_v31 = vrot.slane %v315_v53, 4  ;;  %677 = vrsqrt.f32 %v1194_v50 }
  0x63   :  { %v501_v37 = vrot.slane %v500_v45, 1  ;;  %v309_v6 = vadd.f32 %v308_v35, %v307_v13  ;;  %v324_v27 = vrot.slane %v323_v59, 4  ;;  %v332_v34 = vrot.slane %v331_v29, 4 }
  0x64   :  { %v509_v26 = vrot.slane %v508_v42, 1  ;;  %v517_v17 = vrot.slane %v516_v16, 1  ;;  %v525_v49 = vrot.slane %v524_v2, 1  ;;  %v286_v24 = vrot.slane %v285_v56, 2 }
  0x65   :  { %v1214_v43 = vadd.f32 %v406_v23, %v405_v15  ;;  %v1216_v7 = vadd.f32 %v477_v44, %v476_v48  ;;  %v1218_v46 = vadd.f32 %v485_v47, %v484_v4  ;;  %v1220_v10 = vadd.f32 %v493_v57, %v492_v9 }
  0x66   :  { %v294_v32 = vrot.slane %v293_v5, 2  ;;  %v302_v33 = vrot.slane %v301_v36, 2  ;;  %v1222_v52 = vadd.f32 %v316_v31, %v315_v53  ;;  %679 = vrsqrt.f32 %v1196_v62 }
  0x67   :  { %v1225_v19 = vadd.f32 %v501_v37, %v500_v45  ;;  %v310_v3 = vrot.slane %v309_v6, 2  ;;  %v1227_v58 = vadd.f32 %v324_v27, %v323_v59  ;;  %v1229_v39 = vadd.f32 %v332_v34, %v331_v29 }
  0x68   :  { %v676_v40 = vpop.eup %675  ;;  %v1231_v54 = vadd.f32 %v509_v26, %v508_v42  ;;  %v1233_v15 = vadd.f32 %v517_v17, %v516_v16  ;;  %v1235_v61 = vadd.f32 %v525_v49, %v524_v2  ;;  %v1237_v11 = vadd.f32 %v286_v24, %v285_v56 }
  0x69   :  { %v409_v25 = vmul.f32 %v676_v40, %v1192_v18  ;;  %vm410_vm1 = vcmp.eq.f32.partialorder %v1192_v18, inf  ;;  %vm412_vm2 = vcmp.eq.f32.partialorder %v1192_v18, 0.0  ;;  %681 = vrsqrt.f32 %v1198_v14 }
  0x6a   :  { %v1243_v12 = vadd.f32 %v294_v32, %v293_v5  ;;  %v1245_v8 = vadd.f32 %v302_v33, %v301_v36  ;;  %v318_v55 = vrot.slane %v1222_v52, 2  ;;  %v413_v51 = vand.u32 2147483648, %v1192_v18 }
  0x6b   :  { %v1249_v38 = vadd.f32 %v310_v3, %v309_v6  ;;  %v326_v41 = vrot.slane %v1227_v58, 2  ;;  %v334_v0 = vrot.slane %v1229_v39, 2  ;;  %683 = vrsqrt.f32 %v1209_v30 }
  0x6c   :  { %v678_v13 = vpop.eup %677  ;;  %v411_v53 = vsel %vm410_vm1, %v1192_v18, %v409_v25  ;;  %vm417_vm3 = vcmp.eq.f32.partialorder %v1194_v50, inf  ;;  %vm419_vm4 = vcmp.eq.f32.partialorder %v1194_v50, 0.0  ;;  %685 = vrsqrt.f32 %v1211_v60 }
  0x6d   :  { %v416_v21 = vmul.f32 %v678_v13, %v1194_v50  ;;  %v420_v1 = vand.u32 2147483648, %v1194_v50  ;;  %vm424_vm5 = vcmp.eq.f32.partialorder %v1196_v62, inf  ;;  %687 = vrsqrt.f32 %v1214_v43 }
  0x6e   :  { %vm426_vm6 = vcmp.eq.f32.partialorder %v1196_v62, 0.0  ;;  %v427_v22 = vand.u32 2147483648, %v1196_v62  ;;  %vm431_vm7 = vcmp.eq.f32.partialorder %v1198_v14, inf  ;;  %689 = vrsqrt.f32 %v1216_v7 }
  0x6f   :  { %v1268_v28 = vsel %vm412_vm2, %v413_v51, %v411_v53  ;;  %vm433_vm8 = vcmp.eq.f32.partialorder %v1198_v14, 0.0  ;;  %v434_v48 = vand.u32 2147483648, %v1198_v14  ;;  %vm438_vm9 = vcmp.eq.f32.partialorder %v1209_v30, inf }
  0x70   :  { %v680_v4 = vpop.eup %679  ;;  %v418_v9 = vsel %vm417_vm3, %v1194_v50, %v416_v21  ;;  %v441_v20 = vand.u32 2147483648, %v1209_v30  ;;  %vm445_vm10 = vcmp.eq.f32.partialorder %v1211_v60, inf  ;;  %691 = vrsqrt.f32 %v1218_v46 }
  0x71   :  { %v423_v18 = vmul.f32 %v680_v4, %v1196_v62  ;;  %vm440_vm11 = vcmp.eq.f32.partialorder %v1209_v30, 0.0  ;;  %v448_v63 = vand.u32 2147483648, %v1211_v60  ;;  %vm452_vm12 = vcmp.eq.f32.partialorder %v1214_v43, inf }
  0x72   :  { %693 = vrsqrt.f32 %v1220_v10  ;;  %vm447_vm13 = vcmp.eq.f32.partialorder %v1211_v60, 0.0  ;;  %v455_v59 = vand.u32 2147483648, %v1214_v43  ;;  %vm529_vm14 = vcmp.eq.f32.partialorder %v1216_v7, inf }
  0x73   :  { %vm531_vm15 = vcmp.eq.f32.partialorder %v1216_v7, 0.0  ;;  %695 = vrsqrt.f32 %v1225_v19  ;;  %v682_v29 = vpop.eup %681  ;;  %v421_v23 = vsel %vm419_vm4, %v420_v1, %v418_v9  ;;  %v532_v45 = vand.u32 2147483648, %v1216_v7 }
  0x74   :  { %vm536_vm1 = vcmp.eq.f32.partialorder %v1218_v46, inf  ;;  %697 = vrsqrt.f32 %v1231_v54  ;;  %v425_v35 = vsel %vm424_vm5, %v1196_v62, %v423_v18  ;;  %v430_v42 = vmul.f32 %v682_v29, %v1198_v14 }
  0x75   :  { %vm538_vm2 = vcmp.eq.f32.partialorder %v1218_v46, 0.0  ;;  %v539_v16 = vand.u32 2147483648, %v1218_v46  ;;  %v684_v50 = vpop.eup %683  ;;  %vm543_vm3 = vcmp.eq.f32.partialorder %v1220_v10, inf  ;;  %vm545_vm4 = vcmp.eq.f32.partialorder %v1220_v10, 0.0 }
  0x76   :  { %v546_v2 = vand.u32 2147483648, %v1220_v10  ;;  %699 = vrsqrt.f32 %v1233_v15  ;;  %v686_v56 = vpop.eup %685  ;;  %v437_v44 = vmul.f32 %v684_v50, %v1209_v30  ;;  %v428_v57 = vsel %vm426_vm6, %v427_v22, %v425_v35 }
  0x77   :  { %701 = vrsqrt.f32 %v1235_v61  ;;  %v688_v47 = vpop.eup %687  ;;  %v432_v5 = vsel %vm431_vm7, %v1198_v14, %v430_v42  ;;  %v444_v36 = vmul.f32 %v686_v56, %v1211_v60  ;;  %v553_v31 = vand.u32 2147483648, %v1225_v19 }
  0x78   :  { %v690_v37 = vpop.eup %689  ;;  %v451_v6 = vmul.f32 %v688_v47, %v1214_v43  ;;  %vm557_vm5 = vcmp.eq.f32.partialorder %v1231_v54, inf  ;;  %v560_v27 = vand.u32 2147483648, %v1231_v54  ;;  %v439_v62 = vsel %vm438_vm9, %v1209_v30, %v437_v44 }
  0x79   :  { %v528_v34 = vmul.f32 %v690_v37, %v1216_v7  ;;  %vm564_vm6 = vcmp.eq.f32.partialorder %v1233_v15, inf  ;;  %vm566_vm7 = vcmp.eq.f32.partialorder %v1233_v15, 0.0  ;;  %v435_v17 = vsel %vm433_vm8, %v434_v48, %v432_v5 }
  0x7a   :  { %v692_v26 = vpop.eup %691  ;;  %v446_v49 = vsel %vm445_vm10, %v1211_v60, %v444_v36  ;;  %v567_v24 = vand.u32 2147483648, %v1233_v15  ;;  %vm571_vm0 = vcmp.eq.f32.partialorder %v1235_v61, inf  ;;  %v453_v33 = vsel %vm452_vm12, %v1214_v43, %v451_v6 }
  0x7b   :  { %v530_v3 = vsel %vm529_vm14, %v1216_v7, %v528_v34  ;;  %v535_v14 = vmul.f32 %v692_v26, %v1218_v46  ;;  %vm573_vm8 = vcmp.eq.f32.partialorder %v1235_v61, 0.0  ;;  %v442_v25 = vsel %vm440_vm11, %v441_v20, %v439_v62 }
  0x7c   :  { %v694_v32 = vpop.eup %693  ;;  %v533_v51 = vsel %vm531_vm15, %v532_v45, %v530_v3  ;;  %v574_v53 = vand.u32 2147483648, %v1235_v61  ;;  %v449_v1 = vsel %vm447_vm13, %v448_v63, %v446_v49  ;;  %vm1465_vm9 = vcmp.eq.f32.partialorder %v1214_v43, 0.0 }
  0x7d   :  { %v696_v40 = vpop.eup %695  ;;  %v542_v13 = vmul.f32 %v694_v32, %v1220_v10  ;;  %v537_v22 = vsel %vm536_vm1, %v1218_v46, %v535_v14  ;;  %v576_v30 = vmul.f32 %v533_v51, %v1268_v28  ;;  %v456_v7 = vsel %vm1465_vm9, %v455_v59, %v453_v33 }
  0x7e   :  { %v698_v21 = vpop.eup %697  ;;  %v549_v48 = vmul.f32 %v696_v40, %v1225_v19  ;;  %v540_v4 = vsel %vm538_vm2, %v539_v16, %v537_v22  ;;  %vm1466_vm10 = vcmp.eq.f32.partialorder %v1225_v19, inf  ;;  %vm1467_vm11 = vcmp.eq.f32.partialorder %v1225_v19, 0.0 }
  0x7f   :  { %v544_v9 = vsel %vm543_vm3, %v1220_v10, %v542_v13  ;;  %v556_v60 = vmul.f32 %v698_v21, %v1231_v54  ;;  %v577_v63 = vmul.f32 %v540_v4, %v421_v23  ;;  %v583_v43 = vadd.f32 1e-08, %v576_v30 }
  0x80   :  { %v700_v20 = vpop.eup %699  ;;  %v547_v18 = vsel %vm545_vm4, %v546_v2, %v544_v9  ;;  %v551_v28 = vsel %vm1466_vm10, %v1225_v19, %v549_v48  ;;  %vm1468_vm12 = vcmp.eq.f32.partialorder %v1231_v54, 0.0  ;;  %v288_v36 = vrot.slane %v1237_v11, 1 }
  0x81   :  { %v702_v59 = vpop.eup %701  ;;  %v554_v46 = vsel %vm1467_vm11, %v553_v31, %v551_v28  ;;  %v558_v29 = vsel %vm557_vm5, %v1231_v54, %v556_v60  ;;  %v563_v45 = vmul.f32 %v700_v20, %v1233_v15  ;;  %v578_v35 = vmul.f32 %v547_v18, %v428_v57 }
  0x82   :  { %v561_v10 = vsel %vm1468_vm12, %v560_v27, %v558_v29  ;;  %v570_v42 = vmul.f32 %v702_v59, %v1235_v61  ;;  %v579_v16 = vmul.f32 %v554_v46, %v435_v17  ;;  %v584_v50 = vadd.f32 1e-08, %v577_v63 }
  0x83   :  { %v565_v23 = vsel %vm564_vm6, %v1233_v15, %v563_v45  ;;  %v580_v19 = vmul.f32 %v561_v10, %v442_v25  ;;  %v585_v2 = vadd.f32 1e-08, %v578_v35  ;;  %703 = vrcp.f32 %v583_v43 }
  0x84   :  { %v568_v56 = vsel %vm566_vm7, %v567_v24, %v565_v23  ;;  %v572_v44 = vsel %vm571_vm0, %v1235_v61, %v570_v42  ;;  %v586_v54 = vadd.f32 1e-08, %v579_v16  ;;  %705 = vrcp.f32 %v584_v50 }
  0x85   :  { %v575_v47 = vsel %vm573_vm8, %v574_v53, %v572_v44  ;;  %v581_v57 = vmul.f32 %v568_v56, %v449_v1  ;;  %v587_v5 = vadd.f32 1e-08, %v580_v19  ;;  %707 = vrcp.f32 %v585_v2 }
  0x86   :  { %v319_v31 = vadd.f32 %v318_v55, %v1222_v52  ;;  %v582_v15 = vmul.f32 %v575_v47, %v456_v7  ;;  %709 = vrcp.f32 %v586_v54  ;;  %v296_v37 = vrot.slane %v1243_v12, 1 }
  0x87   :  { %v588_v6 = vadd.f32 1e-08, %v581_v57  ;;  %711 = vrcp.f32 %v587_v5  ;;  %v304_v27 = vrot.slane %v1245_v8, 1  ;;  %v327_v61 = vadd.f32 %v326_v41, %v1227_v58 }
  0x88   :  { %v589_v62 = vadd.f32 1e-08, %v582_v15  ;;  %v312_v34 = vrot.slane %v1249_v38, 1  ;;  %v335_v26 = vadd.f32 %v334_v0, %v1229_v39  ;;  %v289_v52 = vadd.f32 %v288_v36, %v1237_v11 }
  0x89   :  { %713 = vrcp.f32 %v588_v6  ;;  %v320_v55 = vrot.slane %v319_v31, 1  ;;  %v297_v17 = vadd.f32 %v296_v37, %v1243_v12  ;;  %v305_v49 = vadd.f32 %v304_v27, %v1245_v8 }
  0x8a   :  { %715 = vrcp.f32 %v589_v62  ;;  %v328_v24 = vrot.slane %v327_v61, 1  ;;  %v313_v58 = vadd.f32 %v312_v34, %v1249_v38  ;;  %v336_v41 = vrot.slane %v335_v26, 1 }
  0x8b   :  { %vm605_vm13 = vcmask 1040384   ;;  %v321_v3 = vadd.f32 %v320_v55, %v319_v31  ;;  %vm19_vm14 = vcmask 0   ;;  %v765_v16 = vmov 0.0  }
  0x8c   :  { %v329_v25 = vadd.f32 %v328_v24, %v327_v61  ;;  %v337_v12 = vadd.f32 %v336_v41, %v335_v26  ;;  %20 = vst.msk [vmem:[#allocation2] sm:$0x1] %vm19_vm14, %v765_v16  ;;  %21 = vst.msk [vmem:[#allocation4] sm:$0x1] %vm19_vm14, %v765_v16 }
  0x8d   :  { %v704_v32 = vpop.eup %703 }
  0x8e   :  { %v706_v33 = vpop.eup %705  ;;  %v592_v14 = vmul.f32 %v704_v32, %v289_v52 }
  0x8f   :  { %v708_v40 = vpop.eup %707  ;;  %v594_v39 = vmul.f32 %v706_v33, %v297_v17 }
  0x90   :  { %v710_v0 = vpop.eup %709  ;;  %v596_v11 = vmul.f32 %v708_v40, %v305_v49  ;;  %v606_v51 = vsel %vm605_vm13, %v592_v14, 0.0 }
  0x91   :  { %v712_v13 = vpop.eup %711  ;;  %v598_v53 = vmul.f32 %v710_v0, %v313_v58  ;;  %v607_v8 = vsel %vm605_vm13, %v594_v39, 0.0 }
  0x92   :  { %v600_v21 = vmul.f32 %v712_v13, %v321_v3  ;;  %v608_v1 = vadd.f32 %v607_v8, %v606_v51  ;;  %v609_v38 = vsel %vm605_vm13, %v596_v11, 0.0 }
  0x93   :  { %v714_v22 = vpop.eup %713  ;;  %v611_v48 = vsel %vm605_vm13, %v598_v53, 0.0  ;;  %v64_v23 = vld [vmem:[#allocation2] sm:$0x1] }
  0x94   :  { %v716_v30 = vpop.eup %715  ;;  %v602_v7 = vmul.f32 %v714_v22, %v329_v25  ;;  %v610_v4 = vadd.f32 %v609_v38, %v608_v1  ;;  %v613_v60 = vsel %vm605_vm13, %v600_v21, 0.0 }
  0x95   :  { %v604_v9 = vmul.f32 %v716_v30, %v337_v12 }
  0x96   :  { %v612_v20 = vadd.f32 %v611_v48, %v610_v4  ;;  %v615_v18 = vsel %vm605_vm13, %v602_v7, 0.0 }
  0x97   :  { %v617_v63 = vsel %vm605_vm13, %v604_v9, 0.0 }
  0x98   :  { %v614_v28 = vadd.f32 %v613_v60, %v612_v20 }
  0x9a   :  { %v616_v43 = vadd.f32 %v615_v18, %v614_v28 }
  0x9c   :  { %v618_v59 = vadd.f32 %v617_v63, %v616_v43 }
  0x9e   :  { %619 = vadd.xlane.f32.xlu0 %v618_v59 }
  0xb6   :  { %v101_v46 = vpop.xlane.xlu0 %100 }
  0xb7   :  { %v102_v29 = vrot.slane %v101_v46, 4 }
  0xb9   :  { %v103_v45 = vadd.f32 %v102_v29, %v101_v46 }
  0xbb   :  { %v104_v35 = vrot.slane %v103_v45, 2 }
  0xbd   :  { %v105_v10 = vadd.f32 %v104_v35, %v103_v45 }
  0xbf   :  { %v106_v42 = vrot.slane %v105_v10, 1 }
  0xc1   :  { %v107_v50 = vadd.f32 %v106_v42, %v105_v10 }
  0xc3   :  { %668 = vpush %v107_v50 }
  0xf4   :  { %s669_s0 = spop %668 }
  0xf5   :  { %v109_v19 = vstv %s669_s0 }
  0xf6   :  { %v110_v2 = vadd.f32 %v109_v19, %v64_v23 }
  0xf8   :  { %112 = vst.msk [vmem:[#allocation2] sm:$0x1] %vm19_vm14, %v110_v2 }
  0xff   :  { %v634_v56 = vld [vmem:[#allocation2] sm:$0x1] }
 0x100   :  { %v635_v44 = vmul.f32 0.00013020834, %v634_v56 }
 0x102   :  { %636 = vst.msk [vmem:[#allocation2] sm:$0x1] %vm19_vm14, %v635_v44 }
 0x103   :  { %728 = shalt.err (!%p725_p4)
}
 0x104   :  { %s729_s19 = scalar_lea.hbm %s1442_s2, 16 }
 0x105   :  { %p730_p5 = scmp.ne.s32.totalorder %s1442_s2, %s729_s19  ;;  %p733_p6 = scmp.lt.u32.totalorder %s729_s19, %s1442_s2 }
 0x107   :  { %p735_p7 = pnand %p733_p6, %p730_p5 }
 0x109   :  { %738 = shalt.err (!%p735_p7)
}
 0x10a   :  { %649 = dma.vmem_to_hbm [thread:$0]  %s647_s14, 16, %s1442_s2, [#allocation3]   ;;  %v590_v37 = vld [vmem:[#allocation4] sm:$0x1] }
 0x10b   :  { %s767_s27 = smov [#allocation4]  }
 0x10c   :  { %s656_s28 = sshll.u32 %s767_s27, 4  ;;  %s657_s28 = int_to_ptr.vmem [resolvable:$true] %s656_s28 }
 0x10d   :  { %s739_s2 = scalar_lea.vmem %s657_s28, 16  ;;  %s743_s29 = scalar_lea.vmem %s657_s28, 32 }
 0x10e   :  { %p740_p8 = scmp.ne.s32.totalorder %s657_s28, %s739_s2  ;;  %p744_p9 = scmp.lt.s32.totalorder %s657_s28, %s657_s28 }
 0x10f   :  { %p745_p10 = scmp.lt.s32.totalorder %s743_s29, %s739_s2 }
 0x111   :  { %p746_p11 = por %p745_p10, %p744_p9 }
 0x113   :  { %p747_p12 = pnand %p746_p11, %p740_p8 }
 0x12b   :  { %v620_v54 = vpop.xlane.xlu0 %619 }
 0x12c   :  { %v621_v47 = vrot.slane %v620_v54, 4 }
 0x12e   :  { %v622_v57 = vadd.f32 %v621_v47, %v620_v54 }
 0x130   :  { %v623_v5 = vrot.slane %v622_v57, 2 }
 0x132   :  { %v624_v36 = vadd.f32 %v623_v5, %v622_v57 }
 0x134   :  { %v625_v31 = vrot.slane %v624_v36, 1 }
 0x136   :  { %v626_v15 = vadd.f32 %v625_v31, %v624_v36 }
 0x138   :  { %670 = vpush %v626_v15 }
 0x169   :  { %s671_s26 = spop %670 }
 0x16a   :  { %v628_v6 = vstv %s671_s26 }
 0x16b   :  { %v629_v27 = vadd.f32 %v628_v6, %v590_v37 }
 0x16d   :  { %630 = vst.msk [vmem:[#allocation4] sm:$0x1] %vm19_vm14, %v629_v27 }
 0x174   :  { %v637_v61 = vld [vmem:[#allocation4] sm:$0x1] }
 0x175   :  { %v638_v62 = vmul.f32 0.0013020834, %v637_v61 }
 0x177   :  { %639 = vst.msk [vmem:[#allocation4] sm:$0x1] %vm19_vm14, %v638_v62 }
 0x178   :  { %750 = shalt.err (!%p747_p12)
}
 0x179   :  { %s751_s5 = scalar_lea.hbm %s1443_s3, 16 }
 0x17a   :  { %p752_p13 = scmp.ne.s32.totalorder %s1443_s3, %s751_s5  ;;  %p755_p0 = scmp.lt.u32.totalorder %s751_s5, %s1443_s3 }
 0x17c   :  { %p757_p1 = pnand %p755_p0, %p752_p13 }
 0x17e   :  { %760 = shalt.err (!%p757_p1)
}
 0x17f   :  { %659 = dma.vmem_to_hbm [thread:$0]  %s657_s28, 16, %s1443_s3, [#allocation5]  }
 0x180   :  { %761 = dma.done.wait [#allocation3], 16  }
 0x181   :  { %762 = vsyncadd [#allocation3], 4294967280 }
 0x182   :  { %763 = dma.done.wait [#allocation5], 16  }
 0x183   :  { %764 = vsyncadd [#allocation5], 4294967280 }
 0x184   :  { %666 = vsyncpa [#allocation3], 1 }
 0x185   :  { %667 = vsyncpa [#allocation5], 1 }

// kernel: quantization_h265_suggrogate_forward.2
= control target key start
LH: loop header
LB: loop body
LE: loop exit
PB: predicated region body
PF: predicated region fallthrough
CT: control target
= control target key end

     0   :  { %s11066_s13 = smov 0   ;;  %s11068_s14 = smov 0   ;;  %s13486_s0 = inlined_call_operand.vmem [shape: f32[10,2,4,360], index: 0, kind: input, shape index: {}]   ;;  %s13487_s1 = inlined_call_operand.vmem [shape: f32[10,2,3,144], index: 1, kind: input, shape index: {}]   ;;  %s13488_s2 = inlined_call_operand.vmem [shape: f32[2,1,324], index: 2, kind: input, shape index: {}]   ;;  %s13489_s3 = inlined_call_operand.vmem [shape: f32[24,37], index: 3, kind: input, shape index: {}]   ;;  %s13490_s4 = inlined_call_operand.vmem [shape: f32[24,217], index: 4, kind: input, shape index: {}]   ;;  %s13491_s5 = inlined_call_operand.vmem [shape: f32[24,217], index: 5, kind: input, shape index: {}]   ;;  %s13492_s6 = inlined_call_operand.vmem [shape: f32[24,217], index: 6, kind: input, shape index: {}]   ;;  %s13493_s7 = inlined_call_operand.vmem [shape: f32[24,217], index: 7, kind: input, shape index: {}]   ;;  %s13494_s8 = inlined_call_operand.vmem [shape: f32[3,217], index: 8, kind: input, shape index: {}]   ;;  %s13495_s9 = inlined_call_operand.vmem [shape: f32[10,2,3,144], index: 9, kind: output, shape index: {0}]   ;;  %s13496_s10 = inlined_call_operand.vmem [shape: f32[10,2,3,144], index: 10, kind: output, shape index: {1}]  }
   0x1   :  { %13534 = sst [smem:[#allocation5_spill]] %s13486_s0  ;;  %s11070_s15 = smov 0  }
   0x2   :  { %13535 = sst [smem:[#allocation6_spill]] %s13488_s2  ;;  %s11072_s16 = smov 0  }
   0x3   :  { %13536 = sst [smem:[#allocation7_spill]] %s13489_s3  ;;  %s11074_s17 = smov 0  }
   0x4   :  { %13537 = sst [smem:[#allocation8_spill]] %s13490_s4 }
   0x5   :  { %13538 = sst [smem:[#allocation9_spill]] %s13491_s5 }
   0x6   :  { %13539 = sst [smem:[#allocation10_spill]] %s13492_s6 }
   0x7 LB: > { %13540 = sst [smem:[#allocation2_spill]] %s10974_s16  ;;  %s30_s18 = sadd.s32 1, %s10970_s15  ;;  %s10978_s17 = sphi %s11074_s17, %s21_s17   ;;  %s10974_s16 = sphi %s11072_s16, %s13596_s16   ;;  %s10970_s15 = sphi %s11070_s15, %s13598_s15   ;;  %s10966_s14 = sphi %s11068_s14, %s13594_s14   ;;  %s10962_s13 = sphi %s11066_s13, %s13597_s13  }
   0x8   : > { %s33_s19 = sadd.s32 1, %s10974_s16  ;;  %p31_p0 = scmp.ge.s32.totalorder %s30_s18, 2 }
   0x9   : > { %p9253_p1 = scmp.ge.s32.totalorder %s10978_s17, 1  ;;  %p362_p2 = scmp.lt.s32.totalorder %s10978_s17, 21 }
   0xa   : > { %s13600_s18 = smov (%p31_p0, %s30_s18), 0  ;;  %s13602_s19 = smov (!%p31_p0, %s33_s19), %s10974_s16 }
   0xb   : > { %13541 = sst [smem:[#allocation3_spill]] %s13600_s18  ;;  %p363_p3 = pnand %p9253_p1, %p362_p2 }
   0xc   : > { %p35_p4 = scmp.ge.s32.totalorder %s13602_s19, 10  ;;  %p430_p5 = scmp.lt.s32.totalorder (!%p363_p3), %s10966_s14, 9  ;;  %v10981_v3 = vmov (!%p363_p3), 0.0   ;;  %vm485_vm0 = vcmask (!%p363_p3), 7168   ;;  %vm491_vm1 = vcmask (!%p363_p3), 859136   ;;  %vm510_vm2 = vcmask (!%p363_p3), 1039360  }
   0xd   : > { %366 = sbr.rel (%p363_p3) target bundleno = 3483 (0xd9b), region = 56  ;;  %p432_p6 = scmp.lt.s32.totalorder (!%p363_p3), %s10962_s13, 1  ;;  %591 = vmatprep.mubr.f32.mxu1 (!%p363_p3), %v10981_v3  ;;  %962 = vmatprep.mubr.f32.mxu0 (!%p363_p3), %v10981_v3  ;;  %vm520_vm3 = vcmask (!%p363_p3), 1043456   ;;  %vm513_vm4 = vcmask (!%p363_p3), 31744   ;;  %v10998_v23 = vmov (!%p363_p3), 0   ;;  %vm10999_vm5 = vmmov (!%p363_p3), 0  }
   0xe   : > { %s13604_s19 = smov (%p35_p4, %s13602_s19), 0  ;;  %s13543_s0 = sld [smem:[#allocation5_spill]] (!%p363_p3)  ;;  %10405 = vset.pattern.permute.xlu0 (!%p363_p3), %v10998_v23  ;;  %10406 = vset.pattern.permute.xlu1 (!%p363_p3), %v10998_v23  ;;  %vm883_vm6 = vcmask (!%p363_p3), 1031168   ;;  %vm1082_vm7 = vcmask (!%p363_p3), 900096   ;;  %vm1281_vm8 = vcmask (!%p363_p3), 891904   ;;  %vm1480_vm9 = vcmask (!%p363_p3), 883712  }
   0xf   : > { %13542 = sst [smem:[#allocation4_spill]] %s13604_s19  ;;  %s13530_s30 = smov (!%p363_p3), 1   ;;  %vm1679_vm10 = vcmask (!%p363_p3), 752640   ;;  %vm13532_vm11 = vcmask (!%p363_p3), 744448   ;;  %vm13509_vm12 = vcmask (!%p363_p3), 736256  }
  0x10   : > { %s13526_s11 = smov (!%p363_p3), 127   ;;  %s13544_s3 = sld [smem:[#allocation7_spill]] (!%p363_p3) }
  0x11   : > { %s13505_s27 = smov (!%p363_p3), 126   ;;  %s10985_s28 = smov (!%p363_p3), 119  }
  0x12   : > { %s10987_s12 = smov (!%p363_p3), 115   ;;  %s13545_s2 = sld [smem:[#allocation6_spill]] (!%p363_p3) }
  0x13   : > { %s13546_s4 = sld [smem:[#allocation8_spill]] (!%p363_p3)  ;;  %s13555_s5 = sld [smem:[#allocation9_spill]] (!%p363_p3) }
  0x14   : > { %s13606_s14 = smov (!%p430_p5, %s10966_s14), 9  ;;  %s13608_s13 = smov (!%p432_p6, %s10962_s13), 1 }
  0x15   : > { %s10332_s20 = smul.u32 6, %s13606_s14  ;;  %s9256_s21 = sshll.u32 %s13606_s14, 2 }
  0x16   : > { %s10331_s22 = smul.u32 3, %s13608_s13  ;;  %s9255_s23 = sshll.u32 %s13608_s13, 1  ;;  %v11130_v11 = vld [vmem:[%s13544_s3 + $0x8] sm:$0xff]  ;;  %v11135_v12 = vld [vmem:[%s13544_s3] sm:$0xff]  ;;  %v11142_v13 = vld [vmem:[%s13544_s3 + $0x10] sm:$0xff] }
  0x17   : > { %s11100_s24 = sadd.s32 %s9256_s21, %s9255_s23  ;;  %s10983_s23 = smov 123  }
  0x18   : > { %s436_s25 = sadd.s32 %s10332_s20, %s10331_s22  ;;  %s13520_s14 = smov 109  }
  0x19   : > { %s9254_s26 = sshll.u32 %s436_s25, 2  ;;  %s13497_s20 = smov 111  }
  0x1a   : > { %s438_s29 = scalar_lea.vmem %s13543_s0, %s9254_s26  ;;  %s13516_s21 = smov 108  }
  0x1b   : > { %v470_v0 = vld [vmem:[%s438_s29] sm:$0xff]  ;;  %v471_v2 = vld [vmem:[%s438_s29 + $0x8] sm:$0xf]  ;;  %s13518_s29 = smov 110   ;;  %s13507_s25 = smov 92  }
  0x1c   : > { %479 = vrot.lane.b32.xlu1 %v470_v0, %s13530_s30  ;;  %v478_v1 = vcombine.high %v470_v0, %v470_v0  ;;  %s13528_s26 = smov 103   ;;  %s13524_s13 = smov 79  }
  0x1d   : > { %s13572_s6 = sld [smem:[#allocation10_spill]]  ;;  %s13574_s0 = smov 127  }
  0x1e   : > { %481 = vrot.lane.b32.xlu0 %v478_v1, %s13530_s30  ;;  %s13575_s3 = smov 79   ;;  %s11007_s18 = smov 74  }
  0x22   : > { %483 = vrot.lane.b32.xlu0 %v471_v2, %s13530_s30 }
  0x8e   : > { %v480_v4 = vpop.permute.xlu1 %479 }
  0x8f   : > { %v11118_v7 = vsel %vm485_vm0, 0.0, %v480_v4 }
  0x90   : > { %v482_v5 = vpop.permute.xlu0 %481 }
  0x91   : > { %v11113_v6 = vsel %vm485_vm0, %v480_v4, %v482_v5 }
  0x92   : > { %506 = vrot.lane.b32.xlu1 %v11113_v6, %s13526_s11 }
  0x94   : > { %v484_v8 = vpop.permute.xlu0 %483 }
  0x95   : > { %v487_v9 = vsel %vm485_vm0, %v482_v5, %v484_v8 }
  0x96   : > { %v11121_v10 = vsel %vm491_vm1, %v487_v9, 0.0  ;;  %504 = vrot.lane.b32.xlu1 %v11118_v7, %s13526_s11 }
  0x97   : > { %508 = vrot.lane.b32.xlu0 %v11121_v10, %s13526_s11 }
  0x9a   : > { %498 = vrot.lane.b32.xlu1 %v11130_v11, %s10983_s23 }
  0x9b   : > { %496 = vrot.lane.b32.xlu0 %v11135_v12, %s10983_s23 }
  0x9e   : > { %690 = vrot.lane.b32.xlu1 %v11135_v12, %s13526_s11 }
  0x9f   : > { %500 = vrot.lane.b32.xlu0 %v11142_v13, %s10983_s23  ;;  %s10991_s23 = smov 107  }
  0xa2   : > { %694 = vrot.lane.b32.xlu1 %v11142_v13, %s13526_s11 }
  0xa3   : > { %692 = vrot.lane.b32.xlu0 %v11130_v11, %s13526_s11 }
  0xa6   : > { %881 = vrot.lane.b32.xlu1 %v11121_v10, %s13505_s27 }
  0xa7   : > { %879 = vrot.lane.b32.xlu0 %v11113_v6, %s13505_s27 }
  0xaa   : > { %875 = vrot.lane.b32.xlu1 %v11142_v13, %s10985_s28 }
  0xab   : > { %877 = vrot.lane.b32.xlu0 %v11118_v7, %s13505_s27 }
  0xae   : > { %873 = vrot.lane.b32.xlu1 %v11130_v11, %s10985_s28 }
  0xaf   : > { %871 = vrot.lane.b32.xlu0 %v11135_v12, %s10985_s28  ;;  %s13501_s28 = smov 91  }
  0xb2   : > { %1080 = vrot.lane.b32.xlu1 %v11121_v10, %s13518_s29 }
  0xb3   : > { %1078 = vrot.lane.b32.xlu0 %v11113_v6, %s13518_s29 }
  0xb6   : > { %1070 = vrot.lane.b32.xlu1 %v11135_v12, %s10987_s12 }
  0xb7   : > { %1076 = vrot.lane.b32.xlu0 %v11118_v7, %s13518_s29 }
  0xba   : > { %1074 = vrot.lane.b32.xlu1 %v11142_v13, %s10987_s12 }
  0xbb   : > { %1072 = vrot.lane.b32.xlu0 %v11130_v11, %s10987_s12  ;;  %s10995_s12 = smov 99  }
  0xbe   : > { %1279 = vrot.lane.b32.xlu1 %v11121_v10, %s13520_s14 }
  0xbf   : > { %1277 = vrot.lane.b32.xlu0 %v11113_v6, %s13520_s14 }
  0xc2   : > { %1269 = vrot.lane.b32.xlu1 %v11135_v12, %s13497_s20 }
  0xc3   : > { %1275 = vrot.lane.b32.xlu0 %v11118_v7, %s13520_s14 }
  0xc6   : > { %1273 = vrot.lane.b32.xlu1 %v11142_v13, %s13497_s20 }
  0xc7   : > { %1271 = vrot.lane.b32.xlu0 %v11130_v11, %s13497_s20  ;;  %s10997_s20 = smov 95  }
  0xca   : > { %1478 = vrot.lane.b32.xlu1 %v11121_v10, %s13516_s21 }
  0xcb   : > { %1476 = vrot.lane.b32.xlu0 %v11113_v6, %s13516_s21 }
  0xce   : > { %1468 = vrot.lane.b32.xlu1 %v11135_v12, %s10991_s23 }
  0xcf   : > { %1474 = vrot.lane.b32.xlu0 %v11118_v7, %s13516_s21 }
  0xd2   : > { %1472 = vrot.lane.b32.xlu1 %v11142_v13, %s10991_s23 }
  0xd3   : > { %1470 = vrot.lane.b32.xlu0 %v11130_v11, %s10991_s23  ;;  %s13499_s23 = smov 90  }
  0xd6   : > { %1677 = vrot.lane.b32.xlu1 %v11121_v10, %s13507_s25 }
  0xd7   : > { %1675 = vrot.lane.b32.xlu0 %v11113_v6, %s13507_s25 }
  0xda   : > { %1667 = vrot.lane.b32.xlu1 %v11135_v12, %s13528_s26 }
  0xdb   : > { %1673 = vrot.lane.b32.xlu0 %v11118_v7, %s13507_s25 }
  0xde   : > { %1671 = vrot.lane.b32.xlu1 %v11142_v13, %s13528_s26 }
  0xdf   : > { %1669 = vrot.lane.b32.xlu0 %v11130_v11, %s13528_s26 }
  0xe2   : > { %1876 = vrot.lane.b32.xlu1 %v11121_v10, %s13501_s28 }
  0xe3   : > { %1874 = vrot.lane.b32.xlu0 %v11113_v6, %s13501_s28 }
  0xe6   : > { %1866 = vrot.lane.b32.xlu1 %v11135_v12, %s10995_s12 }
  0xe7   : > { %1872 = vrot.lane.b32.xlu0 %v11118_v7, %s13501_s28  ;;  %s13522_s28 = smov 55  }
  0xea   : > { %1870 = vrot.lane.b32.xlu1 %v11142_v13, %s10995_s12 }
  0xeb   : > { %1868 = vrot.lane.b32.xlu0 %v11130_v11, %s10995_s12  ;;  %s13548_s12 = smov 91  }
  0xee   : > { %2075 = vrot.lane.b32.xlu1 %v11121_v10, %s13499_s23 }
  0xef   : > { %2073 = vrot.lane.b32.xlu0 %v11113_v6, %s13499_s23 }
  0xf2   : > { %2065 = vrot.lane.b32.xlu1 %v11135_v12, %s10997_s20 }
  0xf3   : > { %2071 = vrot.lane.b32.xlu0 %v11118_v7, %s13499_s23  ;;  %s451_s23 = scalar_lea.vmem %s13545_s2, %s10331_s22  ;;  %s13503_s22 = smov 31  }
  0xf4   : > { %s13573_s2 = smov 103  }
  0xf6   : > { %2069 = vrot.lane.b32.xlu1 %v11142_v13, %s10997_s20 }
  0xf7   : > { %2067 = vrot.lane.b32.xlu0 %v11130_v11, %s10997_s20  ;;  %s13512_s20 = smov 87  }
  0xfa   : > { %2269 = vperm.xlu1 %10406, %v11130_v11  }
  0xfb   : > { %2265 = vperm.xlu0 %10405, %v11135_v12  }
  0xfe   : > { %2273 = vperm.xlu1 %10406, %v11142_v13  }
 0x104   : > { %v507_v14 = vpop.permute.xlu1 %506 }
 0x108   : > { %v505_v15 = vpop.permute.xlu1 %504 }
 0x109   : > { %v509_v16 = vpop.permute.xlu0 %508  ;;  %v511_v18 = vsel %vm510_vm2, %v505_v15, %v507_v14 }
 0x10a   : > { %v512_v17 = vsel %vm510_vm2, %v507_v14, %v509_v16 }
 0x10b   : > { %9264 = vmatprep.subr.msk.mxu1 %vm520_vm3, %v512_v17 }
 0x10c   : > { %v499_v19 = vpop.permute.xlu1 %498  ;;  %9265 = vmatpush1.msk.msra.mxu1 %vm520_vm3, %v511_v18 }
 0x10d   : > { %9623 = vmatprep.subr.mxu1 %v10981_v3  ;;  %v497_v20 = vpop.permute.xlu0 %496 }
 0x10e   : > { %9266 = vmatmul.mubr.msk.f32.vlgmr.msra.gmra.mrb[0].mxu1 %vm513_vm4, %v497_v20 }
 0x10f   : > { %9624 = vmatpush3.msk.msra.mxu1 %vm520_vm3, %v509_v16  ;;  %597 = vmatprep.mubr.f32.mxu1 %v10981_v3 }
 0x110   : > { %9273 = vmatprep.subr.msk.mxu1 %vm520_vm3, %v11113_v6  ;;  %v11230_v21 = vpop.permute.xlu1 %690 }
 0x111   : > { %v501_v22 = vpop.permute.xlu0 %500 }
 0x112   : > { %9267 = vmatmul.mubr.msk.f32.gmra.mrb[2].mxu1 %vm513_vm4, %v499_v19 }
 0x113   : > { %603 = vmatprep.mubr.f32.mxu1 %v10981_v3 }
 0x114   : > { %v11234_v24 = vpop.permute.xlu1 %694 }
 0x115   : > { %v11237_v25 = vpop.permute.xlu0 %692 }
 0x116   : > { %9268 = vmatmul.mubr.msk.f32.gmra.mrb[4].mxu1 %vm513_vm4, %v501_v22 }
 0x117   : > { %9625 = vmatprep.mubr.msk.f32.mxu1 %vm10999_vm5, %v10981_v3 }
 0x118   : > { %v11243_v26 = vpop.permute.xlu1 %881 }
 0x119   : > { %v880_v27 = vpop.permute.xlu0 %879 }
 0x11a   : > { %9626 = vmatmul.mubr.msk.f32.vlgmr.msra.gmra.mrb[6].mxu1 %vm513_vm4, %v497_v20  ;;  %v885_v28 = vsel %vm883_vm6, %v880_v27, %v11243_v26 }
 0x11b   : > { %9274 = vmatpush1.msk.msra.mxu1 %vm520_vm3, %v11118_v7  ;;  %9282 = vmatprep.subr.msk.mxu0 %vm520_vm3, %v885_v28 }
 0x11c   : > { %v11252_v29 = vpop.permute.xlu1 %875  ;;  %9628 = vmatprep.mubr.msk.f32.mxu1 %vm10999_vm5, %v10981_v3  ;;  %9634 = vmatprep.subr.mxu1 %v10981_v3 }
 0x11d   : > { %v878_v30 = vpop.permute.xlu0 %877 }
 0x11e   : > { %9629 = vmatmul.mubr.msk.f32.gmra.mrb[8].mxu1 %vm513_vm4, %v499_v19  ;;  %v884_v31 = vsel %vm883_vm6, %v878_v30, %v880_v27 }
 0x11f   : > { %9283 = vmatpush1.msk.msra.mxu0 %vm520_vm3, %v884_v31  ;;  %9631 = vmatprep.mubr.msk.f32.mxu1 %vm10999_vm5, %v10981_v3 }
 0x120   : > { %v11262_v32 = vpop.permute.xlu1 %873 }
 0x121   : > { %v11264_v33 = vpop.permute.xlu0 %871 }
 0x122   : > { %9632 = vmatmul.mubr.msk.f32.gmra.mrb[10].mxu1 %vm513_vm4, %v501_v22  ;;  %9284 = vmatmul.mubr.msk.f32.vlgmr.msra.gmra.mrb[0].mxu0 %vm513_vm4, %v11264_v33 }
 0x123   : > { %772 = vmatprep.mubr.f32.mxu1 %v10981_v3  ;;  %968 = vmatprep.mubr.f32.mxu0 %v10981_v3 }
 0x124   : > { %v11271_v34 = vpop.permute.xlu1 %1080 }
 0x125   : > { %v1079_v35 = vpop.permute.xlu0 %1078 }
 0x126   : > { %9275 = vmatmul.mubr.msk.f32.vlgmr.msra.gmra.mrb[0].mxu1 %vm513_vm4, %v11230_v21  ;;  %v1084_v36 = vsel %vm1082_vm7, %v1079_v35, %v11271_v34  ;;  %9285 = vmatmul.mubr.msk.f32.gmra.mrb[2].mxu0 %vm513_vm4, %v11262_v32 }
 0x127   : > { %9635 = vmatpush3.msk.msra.mxu1 %vm520_vm3, %v11121_v10  ;;  %9291 = vmatprep.subr.msk.mxu0 %vm520_vm3, %v1084_v36 }
 0x128   : > { %10073 = vmatprep.subr.msk.mxu1 %vm520_vm3, %v885_v28  ;;  %v11283_v37 = vpop.permute.xlu1 %1070  ;;  %778 = vmatprep.mubr.f32.mxu1 %v10981_v3 }
 0x129   : > { %v1077_v38 = vpop.permute.xlu0 %1076  ;;  %1161 = vmatprep.mubr.f32.mxu0 %v10981_v3 }
 0x12a   : > { %v1083_v39 = vsel %vm1082_vm7, %v1077_v38, %v1079_v35  ;;  %9276 = vmatmul.mubr.msk.f32.gmra.mrb[2].mxu1 %vm513_vm4, %v11237_v25 }
 0x12b   : > { %9292 = vmatpush1.msk.msra.mxu0 %vm520_vm3, %v1083_v39  ;;  %784 = vmatprep.mubr.f32.mxu1 %v10981_v3 }
 0x12c   : > { %v11292_v40 = vpop.permute.xlu1 %1074  ;;  %9293 = vmatmul.mubr.msk.f32.vlgmr.msra.gmra.mrb[0].mxu0 %vm513_vm4, %v11283_v37 }
 0x12d   : > { %v11296_v41 = vpop.permute.xlu0 %1072  ;;  %1167 = vmatprep.mubr.f32.mxu0 %v10981_v3 }
 0x12e   : > { %9277 = vmatmul.mubr.msk.f32.gmra.mrb[4].mxu1 %vm513_vm4, %v11234_v24 }
 0x12f   : > { %9636 = vmatprep.mubr.msk.f32.mxu1 %vm10999_vm5, %v10981_v3 }
 0x130   : > { %v11303_v42 = vpop.permute.xlu1 %1279  ;;  %9294 = vmatmul.mubr.msk.f32.gmra.mrb[2].mxu0 %vm513_vm4, %v11296_v41 }
 0x131   : > { %v1278_v43 = vpop.permute.xlu0 %1277  ;;  %1173 = vmatprep.mubr.f32.mxu0 %v10981_v3 }
 0x132   : > { %9637 = vmatmul.mubr.msk.f32.vlgmr.msra.gmra.mrb[12].mxu1 %vm513_vm4, %v11230_v21  ;;  %v1283_v44 = vsel %vm1281_vm8, %v1278_v43, %v11303_v42 }
 0x133   : > { %10074 = vmatpush1.msk.msra.mxu1 %vm520_vm3, %v884_v31  ;;  %9300 = vmatprep.subr.msk.mxu0 %vm520_vm3, %v1283_v44 }
 0x134   : > { %v11314_v45 = vpop.permute.xlu1 %1269  ;;  %9295 = vmatmul.mubr.msk.f32.gmra.mrb[4].mxu0 %vm513_vm4, %v11292_v40  ;;  %9639 = vmatprep.mubr.msk.f32.mxu1 %vm10999_vm5, %v10981_v3 }
 0x135   : > { %v1276_v46 = vpop.permute.xlu0 %1275  ;;  %1360 = vmatprep.mubr.f32.mxu0 %v10981_v3  ;;  %9645 = vmatprep.subr.mxu1 %v10981_v3 }
 0x136   : > { %v1282_v47 = vsel %vm1281_vm8, %v1276_v46, %v1278_v43  ;;  %9640 = vmatmul.mubr.msk.f32.gmra.mrb[14].mxu1 %vm513_vm4, %v11237_v25 }
 0x137   : > { %9301 = vmatpush1.msk.msra.mxu0 %vm520_vm3, %v1282_v47  ;;  %9642 = vmatprep.mubr.msk.f32.mxu1 %vm10999_vm5, %v10981_v3 }
 0x138   : > { %v11328_v48 = vpop.permute.xlu1 %1273  ;;  %9302 = vmatmul.mubr.msk.f32.vlgmr.msra.gmra.mrb[0].mxu0 %vm513_vm4, %v11314_v45 }
 0x139   : > { %v11332_v49 = vpop.permute.xlu0 %1271  ;;  %1366 = vmatprep.mubr.f32.mxu0 %v10981_v3 }
 0x13a   : > { %9643 = vmatmul.mubr.msk.f32.gmra.mrb[16].mxu1 %vm513_vm4, %v11234_v24 }
 0x13b   : > { %974 = vmatprep.mubr.f32.mxu1 %v10981_v3 }
 0x13c   : > { %v11338_v50 = vpop.permute.xlu1 %1478  ;;  %9303 = vmatmul.mubr.msk.f32.gmra.mrb[2].mxu0 %vm513_vm4, %v11332_v49 }
 0x13d   : > { %v1477_v51 = vpop.permute.xlu0 %1476  ;;  %1372 = vmatprep.mubr.f32.mxu0 %v10981_v3 }
 0x13e   : > { %9286 = vmatmul.mubr.msk.f32.vlgmr.msra.gmra.mrb[4].mxu1 %vm513_vm4, %v11252_v29  ;;  %v1482_v52 = vsel %vm1480_vm9, %v1477_v51, %v11338_v50 }
 0x13f   : > { %9646 = vmatpush3.msk.msra.mxu1 %vm520_vm3, %v11243_v26  ;;  %9309 = vmatprep.subr.msk.mxu0 %vm520_vm3, %v1482_v52 }
 0x140   : > { %v11350_v53 = vpop.permute.xlu1 %1468  ;;  %9304 = vmatmul.mubr.msk.f32.gmra.mrb[4].mxu0 %vm513_vm4, %v11328_v48  ;;  %9647 = vmatprep.mubr.msk.f32.mxu1 %vm10999_vm5, %v10981_v3 }
 0x141   : > { %9656 = vmatprep.subr.mxu1 %v10981_v3  ;;  %v1475_v54 = vpop.permute.xlu0 %1474  ;;  %1559 = vmatprep.mubr.f32.mxu0 %v10981_v3 }
 0x142   : > { %v1481_v55 = vsel %vm1480_vm9, %v1475_v54, %v1477_v51  ;;  %9648 = vmatmul.mubr.msk.f32.vlgmr.msra.gmra.mrb[18].mxu1 %vm513_vm4, %v11264_v33 }
 0x143   : > { %9657 = vmatpush3.msk.msra.mxu1 %vm520_vm3, %v11271_v34  ;;  %9310 = vmatpush1.msk.msra.mxu0 %vm520_vm3, %v1481_v55 }
 0x144   : > { %v11364_v56 = vpop.permute.xlu1 %1472  ;;  %9311 = vmatmul.mubr.msk.f32.vlgmr.msra.gmra.mrb[0].mxu0 %vm513_vm4, %v11350_v53  ;;  %9650 = vmatprep.mubr.msk.f32.mxu1 %vm10999_vm5, %v10981_v3 }
 0x145   : > { %v11370_v57 = vpop.permute.xlu0 %1470  ;;  %1565 = vmatprep.mubr.f32.mxu0 %v10981_v3  ;;  %9667 = vmatprep.subr.mxu1 %v10981_v3 }
 0x146   : > { %9651 = vmatmul.mubr.msk.f32.gmra.mrb[20].mxu1 %vm513_vm4, %v11262_v32 }
 0x147   : > { %9653 = vmatprep.mubr.msk.f32.mxu1 %vm10999_vm5, %v10981_v3 }
 0x148   : > { %v11378_v58 = vpop.permute.xlu1 %1677  ;;  %9312 = vmatmul.mubr.msk.f32.gmra.mrb[2].mxu0 %vm513_vm4, %v11370_v57 }
 0x149   : > { %v1676_v59 = vpop.permute.xlu0 %1675  ;;  %1571 = vmatprep.mubr.f32.mxu0 %v10981_v3 }
 0x14a   : > { %9654 = vmatmul.mubr.msk.f32.gmra.mrb[22].mxu1 %vm513_vm4, %v11252_v29  ;;  %v1681_v60 = vsel %vm1679_vm10, %v1676_v59, %v11378_v58 }
 0x14b   : > { %9318 = vmatprep.subr.msk.mxu0 %vm520_vm3, %v1681_v60  ;;  %9658 = vmatprep.mubr.msk.f32.mxu1 %vm10999_vm5, %v10981_v3 }
 0x14c   : > { %v11390_v61 = vpop.permute.xlu1 %1667  ;;  %9313 = vmatmul.mubr.msk.f32.gmra.mrb[4].mxu0 %vm513_vm4, %v11364_v56 }
 0x14d   : > { %v1674_v62 = vpop.permute.xlu0 %1673  ;;  %1758 = vmatprep.mubr.f32.mxu0 %v10981_v3 }
 0x14e   : > { %v1680_v63 = vsel %vm1679_vm10, %v1674_v62, %v1676_v59  ;;  %9659 = vmatmul.mubr.msk.f32.vlgmr.msra.gmra.mrb[24].mxu1 %vm513_vm4, %v11283_v37 }
 0x14f   : > { %9668 = vmatpush3.msk.msra.mxu1 %vm520_vm3, %v11303_v42  ;;  %9319 = vmatpush1.msk.msra.mxu0 %vm520_vm3, %v1680_v63 }
 0x150   : > { %v11401_v0 = vpop.permute.xlu1 %1671  ;;  %9320 = vmatmul.mubr.msk.f32.vlgmr.msra.gmra.mrb[0].mxu0 %vm513_vm4, %v11390_v61  ;;  %9661 = vmatprep.mubr.msk.f32.mxu1 %vm10999_vm5, %v10981_v3 }
 0x151   : > { %v11407_v1 = vpop.permute.xlu0 %1669  ;;  %1764 = vmatprep.mubr.f32.mxu0 %v10981_v3  ;;  %9678 = vmatprep.subr.mxu1 %v10981_v3 }
 0x152   : > { %9662 = vmatmul.mubr.msk.f32.gmra.mrb[26].mxu1 %vm513_vm4, %v11296_v41 }
 0x153   : > { %9664 = vmatprep.mubr.msk.f32.mxu1 %vm10999_vm5, %v10981_v3 }
 0x154   : > { %v1877_v2 = vpop.permute.xlu1 %1876  ;;  %9321 = vmatmul.mubr.msk.f32.gmra.mrb[2].mxu0 %vm513_vm4, %v11407_v1 }
 0x155   : > { %v1875_v4 = vpop.permute.xlu0 %1874  ;;  %1770 = vmatprep.mubr.f32.mxu0 %v10981_v3 }
 0x156   : > { %9665 = vmatmul.mubr.msk.f32.gmra.mrb[28].mxu1 %vm513_vm4, %v11292_v40  ;;  %v1880_v5 = vsel %vm13532_vm11, %v1875_v4, %v1877_v2 }
 0x157   : > { %9327 = vmatprep.subr.msk.mxu0 %vm520_vm3, %v1880_v5  ;;  %9669 = vmatprep.mubr.msk.f32.mxu1 %vm10999_vm5, %v10981_v3 }
 0x158   : > { %v1867_v6 = vpop.permute.xlu1 %1866  ;;  %9322 = vmatmul.mubr.msk.f32.gmra.mrb[4].mxu0 %vm513_vm4, %v11401_v0 }
 0x159   : > { %v1873_v7 = vpop.permute.xlu0 %1872  ;;  %1957 = vmatprep.mubr.f32.mxu0 %v10981_v3 }
 0x15a   : > { %v1879_v8 = vsel %vm13532_vm11, %v1873_v7, %v1875_v4  ;;  %9670 = vmatmul.mubr.msk.f32.vlgmr.msra.gmra.mrb[30].mxu1 %vm513_vm4, %v11314_v45 }
 0x15b   : > { %9679 = vmatpush3.msk.msra.mxu1 %vm520_vm3, %v11338_v50  ;;  %9328 = vmatpush1.msk.msra.mxu0 %vm520_vm3, %v1879_v8 }
 0x15c   : > { %v1871_v9 = vpop.permute.xlu1 %1870  ;;  %9329 = vmatmul.mubr.msk.f32.vlgmr.msra.gmra.mrb[0].mxu0 %vm513_vm4, %v1867_v6  ;;  %9672 = vmatprep.mubr.msk.f32.mxu1 %vm10999_vm5, %v10981_v3 }
 0x15d   : > { %v1869_v10 = vpop.permute.xlu0 %1868  ;;  %1963 = vmatprep.mubr.f32.mxu0 %v10981_v3  ;;  %9689 = vmatprep.subr.mxu1 %v10981_v3 }
 0x15e   : > { %9673 = vmatmul.mubr.msk.f32.gmra.mrb[32].mxu1 %vm513_vm4, %v11332_v49 }
 0x15f   : > { %9675 = vmatprep.mubr.msk.f32.mxu1 %vm10999_vm5, %v10981_v3 }
 0x160   : > { %v2076_v11 = vpop.permute.xlu1 %2075  ;;  %9330 = vmatmul.mubr.msk.f32.gmra.mrb[2].mxu0 %vm513_vm4, %v1869_v10 }
 0x161   : > { %v2074_v12 = vpop.permute.xlu0 %2073  ;;  %1969 = vmatprep.mubr.f32.mxu0 %v10981_v3 }
 0x162   : > { %9676 = vmatmul.mubr.msk.f32.gmra.mrb[34].mxu1 %vm513_vm4, %v11328_v48  ;;  %v2079_v13 = vsel %vm13509_vm12, %v2074_v12, %v2076_v11 }
 0x163   : > { %9336 = vmatprep.subr.msk.mxu0 %vm520_vm3, %v2079_v13  ;;  %9680 = vmatprep.mubr.msk.f32.mxu1 %vm10999_vm5, %v10981_v3 }
 0x164   : > { %9331 = vmatmul.mubr.msk.f32.gmra.mrb[4].mxu0 %vm513_vm4, %v1871_v9  ;;  %v2066_v15 = vpop.permute.xlu1 %2065 }
 0x165   : > { %v2072_v14 = vpop.permute.xlu0 %2071  ;;  %2156 = vmatprep.mubr.f32.mxu0 %v10981_v3 }
 0x166   : > { %v2078_v16 = vsel %vm13509_vm12, %v2072_v14, %v2074_v12  ;;  %9681 = vmatmul.mubr.msk.f32.vlgmr.msra.gmra.mrb[36].mxu1 %vm513_vm4, %v11350_v53 }
 0x167   : > { %9690 = vmatpush3.msk.msra.mxu1 %vm520_vm3, %v11378_v58  ;;  %9337 = vmatpush1.msk.msra.mxu0 %vm520_vm3, %v2078_v16 }
 0x168   : > { %9338 = vmatmul.mubr.msk.f32.vlgmr.msra.gmra.mrb[0].mxu0 %vm513_vm4, %v2066_v15  ;;  %9683 = vmatprep.mubr.msk.f32.mxu1 %vm10999_vm5, %v10981_v3  ;;  %v2070_v18 = vpop.permute.xlu1 %2069 }
 0x169   : > { %2162 = vmatprep.mubr.f32.mxu0 %v10981_v3  ;;  %v2068_v17 = vpop.permute.xlu0 %2067  ;;  %9700 = vmatprep.subr.mxu1 %v10981_v3 }
 0x16a   : > { %9684 = vmatmul.mubr.msk.f32.gmra.mrb[38].mxu1 %vm513_vm4, %v11370_v57 }
 0x16b   : > { %9686 = vmatprep.mubr.msk.f32.mxu1 %vm10999_vm5, %v10981_v3 }
 0x16c   : > { %9339 = vmatmul.mubr.msk.f32.gmra.mrb[2].mxu0 %vm513_vm4, %v2068_v17 }
 0x16d   : > { %2168 = vmatprep.mubr.f32.mxu0 %v10981_v3 }
 0x16e   : > { %9687 = vmatmul.mubr.msk.f32.gmra.mrb[40].mxu1 %vm513_vm4, %v11364_v56 }
 0x16f   : > { %9691 = vmatprep.mubr.msk.f32.mxu1 %vm10999_vm5, %v10981_v3 }
 0x170   : > { %9340 = vmatmul.mubr.msk.f32.gmra.mrb[4].mxu0 %vm513_vm4, %v2070_v18 }
 0x171   : > { %2511 = vmatprep.mubr.f32.mxu0 %v10981_v3 }
 0x172   : > { %9692 = vmatmul.mubr.msk.f32.vlgmr.msra.gmra.mrb[42].mxu1 %vm513_vm4, %v11390_v61 }
 0x173   : > { %9701 = vmatpush3.msk.msra.mxu1 %vm520_vm3, %v1877_v2  ;;  %9694 = vmatprep.mubr.msk.f32.mxu1 %vm10999_vm5, %v10981_v3 }
 0x174   : > { %9711 = vmatprep.subr.mxu1 %v10981_v3 }
 0x176   : > { %9695 = vmatmul.mubr.msk.f32.gmra.mrb[44].mxu1 %vm513_vm4, %v11407_v1 }
 0x177   : > { %9697 = vmatprep.mubr.msk.f32.mxu1 %vm10999_vm5, %v10981_v3 }
 0x17a   : > { %9698 = vmatmul.mubr.msk.f32.gmra.mrb[46].mxu1 %vm513_vm4, %v11401_v0 }
 0x17b   : > { %9702 = vmatprep.mubr.msk.f32.mxu1 %vm10999_vm5, %v10981_v3 }
 0x17e   : > { %9703 = vmatmul.mubr.msk.f32.vlgmr.msra.gmra.mrb[48].mxu1 %vm513_vm4, %v1867_v6 }
 0x17f   : > { %9712 = vmatpush3.msk.msra.mxu1 %vm520_vm3, %v2076_v11  ;;  %9705 = vmatprep.mubr.msk.f32.mxu1 %vm10999_vm5, %v10981_v3 }
 0x182   : > { %9706 = vmatmul.mubr.msk.f32.gmra.mrb[50].mxu1 %vm513_vm4, %v1869_v10 }
 0x183   : > { %9708 = vmatprep.mubr.msk.f32.mxu1 %vm10999_vm5, %v10981_v3 }
 0x186   : > { %9709 = vmatmul.mubr.msk.f32.gmra.mrb[52].mxu1 %vm513_vm4, %v1871_v9 }
 0x187   : > { %9713 = vmatprep.mubr.msk.f32.mxu1 %vm10999_vm5, %v10981_v3 }
 0x18a   : > { %9714 = vmatmul.mubr.msk.f32.vlgmr.msra.gmra.mrb[54].mxu1 %vm513_vm4, %v2066_v15 }
 0x18b   : > { %9716 = vmatprep.mubr.msk.f32.mxu1 %vm10999_vm5, %v10981_v3 }
 0x18e   : > { %9717 = vmatmul.mubr.msk.f32.gmra.mrb[56].mxu1 %vm513_vm4, %v2068_v17 }
 0x18f   : > { %9719 = vmatprep.mubr.msk.f32.mxu1 %vm10999_vm5, %v10981_v3 }
 0x192   : > { %9720 = vmatmul.mubr.msk.f32.gmra.mrb[58].mxu1 %vm513_vm4, %v2070_v18 }
 0x193   : > { %9728 = vmatprep.mubr.msk.f32.mxu1 %vm10999_vm5, %v10981_v3 }
 0x1ed   : > { %v676_v19 = vpop.f32.mrb[6].mxu1 }
 0x1ee   : > { %v9627_v20 = vpop.f32.mrb[7].mxu1 }
 0x1f1   : > { %v681_v21 = vpop.f32.mrb[8].mxu1 }
 0x1f2   : > { %v9630_v22 = vpop.f32.mrb[9].mxu1 }
 0x1f5   : > { %v686_v23 = vpop.f32.mrb[10].mxu1 }
 0x1f6   : > { %v9633_v24 = vpop.f32.mrb[11].mxu1 }
 0x1f9   : > { %v774_v25 = vpop.f32.mrb[0].mxu1 }
 0x1fa   : > { %v776_v26 = vpop.f32.mrb[1].mxu1 }
 0x1fd   : > { %v780_v27 = vpop.f32.mrb[2].mxu1 }
 0x1fe   : > { %v782_v28 = vpop.f32.mrb[3].mxu1 }
 0x205   : > { %v857_v29 = vpop.f32.mrb[12].mxu1 }
 0x206   : > { %v858_v30 = vadd.f32 %v857_v29, %v676_v19  ;;  %v9638_v31 = vpop.f32.mrb[13].mxu1 }
 0x209   : > { %v862_v32 = vpop.f32.mrb[14].mxu1 }
 0x20a   : > { %v863_v33 = vadd.f32 %v862_v32, %v681_v21  ;;  %v9641_v34 = vpop.f32.mrb[15].mxu1 }
 0x20d   : > { %v867_v35 = vpop.f32.mrb[16].mxu1 }
 0x20e   : > { %v868_v36 = vadd.f32 %v867_v35, %v686_v23  ;;  %v9644_v37 = vpop.f32.mrb[17].mxu1 }
 0x20f   : > { %v2313_v37 = vlaneseq }
 0x211   : > { %v976_v38 = vpop.f32.mrb[4].mxu1 }
 0x212   : > { %v978_v39 = vpop.f32.mrb[5].mxu1 }
 0x215   : > { %v1047_v40 = vpop.f32.mrb[18].mxu1 }
 0x216   : > { %v1063_v41 = vadd.f32 %v1047_v40, %v858_v30  ;;  %v9649_v42 = vpop.f32.mrb[19].mxu1 }
 0x219   : > { %v1052_v43 = vpop.f32.mrb[20].mxu1 }
 0x21a   : > { %v1066_v44 = vadd.f32 %v1052_v43, %v863_v33  ;;  %v9652_v45 = vpop.f32.mrb[21].mxu1  ;;  %v11510_v43 = vshrl.u32 %v2313_v37, 7 }
 0x21d   : > { %v1057_v46 = vpop.f32.mrb[22].mxu1 }
 0x21e   : > { %v1069_v47 = vadd.f32 %v1057_v46, %v868_v36  ;;  %v9655_v48 = vpop.f32.mrb[23].mxu1 }
 0x21f   : > { %v2319_v48 = vsub.s32 1, %v11510_v43 }
 0x221   : > { %v1246_v49 = vpop.f32.mrb[24].mxu1 }
 0x222   : > { %v1262_v50 = vadd.f32 %v1246_v49, %v1063_v41  ;;  %v9660_v51 = vpop.f32.mrb[25].mxu1  ;;  %v2266_v41 = vpop.permute.xlu0 %2265  ;;  %v2323_v49 = vsub.s32 2, %v11510_v43 }
 0x223   : > { %v472_v51 = vld [vmem:[%s451_s23] sm:$0x7]  ;;  %s13514_s23 = smov 7  }
 0x225   : > { %v1251_v52 = vpop.f32.mrb[26].mxu1 }
 0x226   : > { %v1265_v53 = vadd.f32 %v1251_v52, %v1066_v44  ;;  %v9663_v54 = vpop.f32.mrb[27].mxu1  ;;  %v2270_v44 = vpop.permute.xlu1 %2269 }
 0x229   : > { %v1256_v55 = vpop.f32.mrb[28].mxu1 }
 0x22a   : > { %v1268_v56 = vadd.f32 %v1256_v55, %v1069_v47  ;;  %v9666_v57 = vpop.f32.mrb[29].mxu1 }
 0x22d   : > { %v1445_v58 = vpop.f32.mrb[30].mxu1 }
 0x22e   : > { %v1461_v59 = vadd.f32 %v1445_v58, %v1262_v50  ;;  %v9671_v60 = vpop.f32.mrb[31].mxu1  ;;  %v2315_v58 = vsub.s32 0, %v11510_v43 }
 0x22f   : > { %v11522_v60 = vrot.slane %v472_v51, %v2323_v49 }
 0x231   : > { %v1450_v61 = vpop.f32.mrb[32].mxu1 }
 0x232   : > { %v1464_v62 = vadd.f32 %v1450_v61, %v1265_v53  ;;  %v9674_v63 = vpop.f32.mrb[33].mxu1 }
 0x235   : > { %v1455_v0 = vpop.f32.mrb[34].mxu1 }
 0x236   : > { %v1467_v1 = vadd.f32 %v1455_v0, %v1268_v56  ;;  %v9677_v2 = vpop.f32.mrb[35].mxu1  ;;  %v2274_v0 = vpop.permute.xlu1 %2273 }
 0x239   : > { %v1644_v4 = vpop.f32.mrb[36].mxu1 }
 0x23a   : > { %v1660_v5 = vadd.f32 %v1644_v4, %v1461_v59  ;;  %v9682_v6 = vpop.f32.mrb[37].mxu1  ;;  %v11520_v59 = vrot.slane %v472_v51, %v2319_v48 }
 0x23b   : > { %v2158_v7 = vpop.f32.mrb[0].mxu0 }
 0x23c   : > { %v10075_v8 = vadd.f32 %v2158_v7, %v774_v25  ;;  %v2160_v9 = vpop.f32.mrb[1].mxu0 }
 0x23d   : > { %v10076_v10 = vadd.f32 %v2160_v9, %v776_v26  ;;  %v1649_v11 = vpop.f32.mrb[38].mxu1 }
 0x23e   : > { %v1663_v12 = vadd.f32 %v1649_v11, %v1464_v62  ;;  %v9685_v13 = vpop.f32.mrb[39].mxu1  ;;  %v2276_v52 = vadd.f32 %v10075_v8, %v2266_v41 }
 0x23f   : > { %v2164_v14 = vpop.f32.mrb[2].mxu0 }
 0x240   : > { %v10077_v15 = vadd.f32 %v2164_v14, %v780_v27  ;;  %v2166_v16 = vpop.f32.mrb[3].mxu0  ;;  %v2294_v63 = vmul.f32 0.2, %v2276_v52  ;;  %vm2285_vm14 = vcmp.ge.f32.partialorder %v2276_v52, 0.0 }
 0x241   : > { %v10078_v17 = vadd.f32 %v2166_v16, %v782_v28  ;;  %v1654_v18 = vpop.f32.mrb[40].mxu1 }
 0x242   : > { %v1666_v19 = vadd.f32 %v1654_v18, %v1467_v1  ;;  %v9688_v20 = vpop.f32.mrb[41].mxu1  ;;  %v2279_v50 = vadd.f32 %v10077_v15, %v2270_v44  ;;  %v2303_v16 = vsel %vm2285_vm14, %v2276_v52, %v2294_v63 }
 0x243   : > { %v2170_v21 = vpop.f32.mrb[4].mxu0  ;;  %v2280_v55 = vadd.f32 %v10078_v17, %v2270_v44 }
 0x244   : > { %v11508_v22 = vadd.f32 %v2170_v21, %v976_v38  ;;  %v2172_v23 = vpop.f32.mrb[5].mxu0  ;;  %v2297_v61 = vmul.f32 0.2, %v2279_v50  ;;  %vm2288_vm15 = vcmp.ge.f32.partialorder %v2279_v50, 0.0 }
 0x245   : > { %v10080_v24 = vadd.f32 %v2172_v23, %v978_v39  ;;  %v1843_v29 = vpop.f32.mrb[42].mxu1  ;;  %v2277_v39 = vadd.f32 %v10076_v10, %v2266_v41  ;;  %v2298_v4 = vmul.f32 0.2, %v2280_v55  ;;  %vm2289_vm3 = vcmp.ge.f32.partialorder %v2280_v55, 0.0 }
 0x246   : > { %v1859_v30 = vadd.f32 %v1843_v29, %v1660_v5  ;;  %v9693_v25 = vpop.f32.mrb[43].mxu1  ;;  %v2306_v11 = vsel %vm2288_vm15, %v2279_v50, %v2297_v61 }
 0x247   : > { %v2295_v53 = vmul.f32 0.2, %v2277_v39  ;;  %vm2286_vm13 = vcmp.ge.f32.partialorder %v2277_v39, 0.0  ;;  %v2283_v8 = vadd.f32 %v10080_v24, %v2274_v0  ;;  %v2307_v20 = vsel %vm2289_vm3, %v2280_v55, %v2298_v4 }
 0x248   : > { %v2282_v24 = vadd.f32 %v11508_v22, %v2274_v0  ;;  %vm2440_vm3 = vcmask 195584  }
 0x249   : > { %v1848_v31 = vpop.f32.mrb[44].mxu1  ;;  %v2304_v2 = vsel %vm2286_vm13, %v2277_v39, %v2295_v53  ;;  %v2301_v25 = vmul.f32 0.2, %v2283_v8  ;;  %vm2292_vm13 = vcmp.ge.f32.partialorder %v2283_v8, 0.0  ;;  %v11585_v39 = vld [vmem:[%s13546_s4 + $0x20] sm:$0xff] }
 0x24a   : > { %v1862_v26 = vadd.f32 %v1848_v31, %v1663_v12  ;;  %v9696_v32 = vpop.f32.mrb[45].mxu1  ;;  %v11524_v12 = vrot.slane %v472_v51, %v2315_v58  ;;  %v11527_v14 = vmul.f32 %v11520_v59, %v2304_v2  ;;  %v11541_v31 = vmul.f32 %v11520_v59, %v2307_v20 }
 0x24b   : > { %vm2291_vm15 = vcmp.ge.f32.partialorder %v2282_v24, 0.0 }
 0x24c   : > { %v11536_v23 = vmul.f32 %v11524_v12, %v2306_v11  ;;  %v11547_v32 = vmul.f32 %v11524_v12, %v2303_v16 }
 0x24d   : > { %v1853_v33 = vpop.f32.mrb[46].mxu1 }
 0x24e   : > { %v1865_v34 = vadd.f32 %v1853_v33, %v1666_v19  ;;  %v9699_v27 = vpop.f32.mrb[47].mxu1 }
 0x24f   : > { %v2310_v27 = vsel %vm2292_vm13, %v2283_v8, %v2301_v25 }
 0x251   : > { %v2042_v35 = vpop.f32.mrb[48].mxu1 }
 0x252   : > { %v2058_v28 = vadd.f32 %v2042_v35, %v1859_v30  ;;  %v9704_v36 = vpop.f32.mrb[49].mxu1 }
 0x253   : > { %v11556_v36 = vmul.f32 %v11520_v59, %v2310_v27 }
 0x255   : > { %v2047_v40 = vpop.f32.mrb[50].mxu1 }
 0x256   : > { %v2061_v38 = vadd.f32 %v2047_v40, %v1862_v26  ;;  %v9707_v42 = vpop.f32.mrb[51].mxu1 }
 0x257   : > { %v11580_v42 = vld [vmem:[%s13546_s4 + $0x10] sm:$0xff] }
 0x259   : > { %v2052_v45 = vpop.f32.mrb[52].mxu1 }
 0x25a   : > { %v2064_v46 = vadd.f32 %v2052_v45, %v1865_v34  ;;  %v9710_v47 = vpop.f32.mrb[53].mxu1  ;;  %v10412_v34 = vpack.i.bf16 %v11536_v23, %v11547_v32 }
 0x25d   : > { %v2241_v54 = vpop.f32.mrb[54].mxu1 }
 0x25e   : > { %v2257_v56 = vadd.f32 %v2241_v54, %v2058_v28  ;;  %v9715_v57 = vpop.f32.mrb[55].mxu1  ;;  %v2300_v28 = vmul.f32 0.2, %v2282_v24 }
 0x260   : > { %v2278_v62 = vadd.f32 %v2266_v41, %v2257_v56  ;;  %v2309_v40 = vsel %vm2291_vm15, %v2282_v24, %v2300_v28  ;;  %v11568_v41 = vld [vmem:[%s13546_s4] sm:$0xff]  ;;  %vm3451_vm15 = vcmask 56320  }
 0x261   : > { %v2246_v1 = vpop.f32.mrb[56].mxu1 }
 0x262   : > { %vm2287_vm1 = vcmp.ge.f32.partialorder %v2278_v62, 0.0  ;;  %v2296_v5 = vmul.f32 0.2, %v2278_v62  ;;  %v2260_v6 = vadd.f32 %v2246_v1, %v2061_v38  ;;  %v9718_v7 = vpop.f32.mrb[57].mxu1  ;;  %v11571_v38 = vmul.f32 %v11524_v12, %v2309_v40 }
 0x264   : > { %v2281_v9 = vadd.f32 %v2270_v44, %v2260_v6  ;;  %v2305_v10 = vsel %vm2287_vm1, %v2278_v62, %v2296_v5  ;;  %vm2388_vm1 = vcmask 564224  }
 0x265   : > { %v2251_v13 = vpop.f32.mrb[58].mxu1  ;;  %v11530_v15 = vmul.f32 %v11522_v60, %v2305_v10  ;;  %v11001_v10 = vmov 0.0|0.0   ;;  %vm9871_vm13 = vmpackc.low %vm2388_vm1, %vm2388_vm1 }
 0x266   : > { %vm2290_vm4 = vcmp.ge.f32.partialorder %v2281_v9, 0.0  ;;  %v2299_v17 = vmul.f32 0.2, %v2281_v9  ;;  %v2263_v18 = vadd.f32 %v2251_v13, %v2064_v46  ;;  %v9721_v19 = vpop.f32.mrb[59].mxu1  ;;  %9861 = vmatprep.subr.bf16.mxu1 %v11001_v10 }
 0x267   : > { %v10407_v21 = vpack.i.bf16 %v11530_v15, %v11527_v14  ;;  %v2342_v19 = vld [vmem:[%s13546_s4 + $0x28] sm:$0xff] }
 0x268   : > { %v2284_v29 = vadd.f32 %v2274_v0, %v2263_v18  ;;  %v2308_v30 = vsel %vm2290_vm4, %v2281_v9, %v2299_v17  ;;  %v2338_v17 = vld [vmem:[%s13546_s4 + $0x8] sm:$0xff]  ;;  %v2340_v18 = vld [vmem:[%s13546_s4 + $0x18] sm:$0xff]  ;;  %vm11850_vm4 = vmneg %vm485_vm0  ;;  %s13576_s4 = smov 55  }
 0x269   : > { %10408 = vrot.lane.b32.xlu0 %v10407_v21, %s13530_s30  ;;  %v11544_v26 = vmul.f32 %v11522_v60, %v2308_v30 }
 0x26a   : > { %vm2293_vm14 = vcmp.ge.f32.partialorder %v2284_v29, 0.0  ;;  %v2302_v33 = vmul.f32 0.2, %v2284_v29 }
 0x26b   : > { %v10417_v22 = vpack.i.bf16 %v11544_v26, %v11541_v31 }
 0x26c   : > { %v2311_v35 = vsel %vm2293_vm14, %v2284_v29, %v2302_v33  ;;  %vm11867_vm14 = vmpackc.low %vm11850_vm4, %vm11850_vm4 }
 0x26d   : > { %10418 = vrot.lane.b32.xlu1 %v10417_v22, %s13530_s30  ;;  %10413 = vrot.lane.b32.xlu0 %v10412_v34, %s13530_s30  ;;  %v11559_v37 = vmul.f32 %v11522_v60, %v2311_v35 }
 0x271   : > { %2366 = vrot.lane.b32.xlu1 %v11556_v36, %s13530_s30  ;;  %2368 = vrot.lane.b32.xlu0 %v11559_v37, %s13530_s30 }
 0x275   : > { %2364 = vrot.lane.b32.xlu1 %v11571_v38, %s13530_s30  ;;  %2395 = vrot.lane.b32.xlu0 %v11568_v41, %s13528_s26 }
 0x279   : > { %2397 = vrot.lane.b32.xlu1 %v11580_v42, %s13528_s26  ;;  %2399 = vrot.lane.b32.xlu0 %v11585_v39, %s13528_s26 }
 0x27d   : > { %2610 = vrot.lane.b32.xlu1 %v11568_v41, %s13526_s11  ;;  %2612 = vrot.lane.b32.xlu0 %v11580_v42, %s13526_s11 }
 0x281   : > { %2787 = vrot.lane.b32.xlu1 %v11580_v42, %s13524_s13  ;;  %2614 = vrot.lane.b32.xlu0 %v11585_v39, %s13526_s11 }
 0x285   : > { %2789 = vrot.lane.b32.xlu1 %v11585_v39, %s13524_s13  ;;  %2785 = vrot.lane.b32.xlu0 %v11568_v41, %s13524_s13 }
 0x2db   : > { %v10409_v44 = vpop.permute.xlu0 %10408 }
 0x2dc   : > { %v10411_v45 = vunpack.i.h.bf16 %v10409_v44  ;;  %v10410_v46 = vunpack.i.l.bf16 %v10409_v44 }
 0x2de   : > { %v11608_v53 = vsel %vm485_vm0, %v10410_v46, %v10411_v45 }
 0x2df   : > { %v10419_v47 = vpop.permute.xlu1 %10418  ;;  %v10414_v48 = vpop.permute.xlu0 %10413  ;;  %v2389_v5 = vsel %vm2388_vm1, %v11608_v53, 0.0 }
 0x2e0   : > { %v10421_v49 = vunpack.i.h.bf16 %v10419_v47  ;;  %v10420_v50 = vunpack.i.l.bf16 %v10419_v47  ;;  %v11603_v51 = vunpack.i.h.bf16 %v10414_v48  ;;  %v11605_v52 = vunpack.i.l.bf16 %v10414_v48 }
 0x2e2   : > { %v11611_v54 = vsel %vm485_vm0, %v10420_v50, %v10421_v49  ;;  %v2386_v55 = vsel %vm485_vm0, 0.0, %v11603_v51  ;;  %v2385_v57 = vsel %vm485_vm0, 0.0, %v11605_v52  ;;  %v11627_v0 = vsel %vm485_vm0, %v11603_v51, %v10420_v50 }
 0x2e3   : > { %v9870_v56 = vpack.c.bf16 %v11611_v54, %v11608_v53  ;;  %v2367_v61 = vpop.permute.xlu1 %2366  ;;  %v11621_v62 = vpack.i.bf16 %v2386_v55, %v2385_v57  ;;  %v2390_v63 = vsel %vm2388_vm1, %v11611_v54, 0.0  ;;  %v11635_v1 = vsel %vm485_vm0, %v11605_v52, %v10410_v46  ;;  %v2369_v11 = vpop.permute.xlu0 %2368 }
 0x2e4   : > { %v11646_v6 = vpack.i.bf16 %v2390_v63, %v11627_v0  ;;  %v11653_v7 = vpack.i.bf16 %v2389_v5, %v11635_v1  ;;  %v9864_v8 = vpack.c.bf16 %v11627_v0, %v11635_v1  ;;  %v11679_v13 = vsel %vm485_vm0, %v2367_v61, %v2369_v11 }
 0x2e5   : > { %10428 = vrot.lane.b32.xlu1 %v11621_v62, %s13505_s27  ;;  %10423 = vrot.lane.b32.xlu0 %v11621_v62, %s13526_s11  ;;  %v11687_v16 = vsel %vm2388_vm1, %v11679_v13, 0.0  ;;  %v13554_v53 = vpack.c.bf16 %v11603_v51, %v11605_v52 }
 0x2e7   : > { %v11637_v2 = vpop.permute.xlu1 %2364  ;;  %v11755_v20 = vpop.permute.xlu0 %2395 }
 0x2e8   : > { %v11641_v4 = vsel %vm485_vm0, 0.0, %v11637_v2  ;;  %v11663_v9 = vsel %vm485_vm0, %v11637_v2, %v2367_v61 }
 0x2e9   : > { %2419 = vrot.lane.b32.xlu1 %v11641_v4, %s13526_s11  ;;  %10433 = vrot.lane.b32.xlu0 %v11621_v62, %s13518_s29 }
 0x2eb   : > { %v11760_v21 = vpop.permute.xlu1 %2397  ;;  %v11762_v24 = vpop.permute.xlu0 %2399 }
 0x2ed   : > { %2803 = vrot.lane.b32.xlu1 %v11641_v4, %s13505_s27  ;;  %3020 = vrot.lane.b32.xlu0 %v11641_v4, %s13518_s29 }
 0x2ef   : > { %v11772_v29 = vpop.permute.xlu1 %2610  ;;  %v11774_v30 = vpop.permute.xlu0 %2612 }
 0x2f1   : > { %2421 = vrot.lane.b32.xlu1 %v11663_v9, %s13526_s11  ;;  %3022 = vrot.lane.b32.xlu0 %v11663_v9, %s13518_s29 }
 0x2f3   : > { %v11779_v25 = vpop.permute.xlu1 %2787  ;;  %v11781_v33 = vpop.permute.xlu0 %2614 }
 0x2f5   : > { %2805 = vrot.lane.b32.xlu1 %v11663_v9, %s13505_s27  ;;  %10438 = vrot.lane.b32.xlu0 %v11653_v7, %s13526_s11 }
 0x2f7   : > { %v11789_v22 = vpop.permute.xlu1 %2789  ;;  %v11791_v34 = vpop.permute.xlu0 %2785 }
 0x2f9   : > { %10448 = vrot.lane.b32.xlu1 %v11653_v7, %s13518_s29  ;;  %10443 = vrot.lane.b32.xlu0 %v11653_v7, %s13505_s27 }
 0x2fd   : > { %10453 = vrot.lane.b32.xlu1 %v11646_v6, %s13526_s11  ;;  %10463 = vrot.lane.b32.xlu0 %v11646_v6, %s13518_s29 }
 0x301   : > { %3002 = vrot.lane.b32.xlu1 %v11568_v41, %s13522_s28  ;;  %2423 = vrot.lane.b32.xlu0 %v11687_v16, %s13526_s11 }
 0x305   : > { %10458 = vrot.lane.b32.xlu1 %v11646_v6, %s13505_s27  ;;  %10468 = vrot.lane.b32.xlu0 %v11653_v7, %s13520_s14 }
 0x309   : > { %10473 = vrot.lane.b32.xlu1 %v11646_v6, %s13520_s14  ;;  %3004 = vrot.lane.b32.xlu0 %v11580_v42, %s13522_s28 }
 0x30d   : > { %10478 = vrot.lane.b32.xlu1 %v11621_v62, %s13520_s14  ;;  %3006 = vrot.lane.b32.xlu0 %v11585_v39, %s13522_s28 }
 0x311   : > { %3239 = vrot.lane.b32.xlu1 %v11663_v9, %s13520_s14  ;;  %3219 = vrot.lane.b32.xlu0 %v11568_v41, %s13503_s22 }
 0x315   : > { %3237 = vrot.lane.b32.xlu1 %v11641_v4, %s13520_s14  ;;  %10488 = vrot.lane.b32.xlu0 %v11646_v6, %s13516_s21 }
 0x319   : > { %10483 = vrot.lane.b32.xlu1 %v11653_v7, %s13516_s21  ;;  %2807 = vrot.lane.b32.xlu0 %v11687_v16, %s13505_s27  ;;  %s13549_s27 = smov 90  }
 0x31d   : > { %3221 = vrot.lane.b32.xlu1 %v11580_v42, %s13503_s22  ;;  %10493 = vrot.lane.b32.xlu0 %v11621_v62, %s13516_s21 }
 0x321   : > { %3223 = vrot.lane.b32.xlu1 %v11585_v39, %s13503_s22  ;;  %3469 = vrot.lane.b32.xlu0 %v11663_v9, %s13516_s21  ;;  %s13547_s22 = smov 111  }
 0x325   : > { %3439 = vrot.lane.b32.xlu1 %v11568_v41, %s13514_s23  ;;  %3467 = vrot.lane.b32.xlu0 %v11641_v4, %s13516_s21 }
 0x329   : > { %3024 = vrot.lane.b32.xlu1 %v11687_v16, %s13518_s29  ;;  %3441 = vrot.lane.b32.xlu0 %v2338_v17, %s13514_s23 }
 0x32d   : > { %3443 = vrot.lane.b32.xlu1 %v11580_v42, %s13514_s23  ;;  %3445 = vrot.lane.b32.xlu0 %v2340_v18, %s13514_s23 }
 0x331   : > { %10498 = vrot.lane.b32.xlu1 %v11653_v7, %s13507_s25  ;;  %3241 = vrot.lane.b32.xlu0 %v11687_v16, %s13520_s14  ;;  %s13557_s14 = smov 109  }
 0x335   : > { %10508 = vrot.lane.b32.xlu1 %v11621_v62, %s13507_s25  ;;  %10503 = vrot.lane.b32.xlu0 %v11646_v6, %s13507_s25 }
 0x339   : > { %3449 = vrot.lane.b32.xlu1 %v2342_v19, %s13514_s23  ;;  %3447 = vrot.lane.b32.xlu0 %v11585_v39, %s13514_s23  ;;  %s13560_s23 = smov 31  }
 0x33d   : > { %3666 = vrot.lane.b32.xlu1 %v2338_v17, %s13547_s22  ;;  %3686 = vrot.lane.b32.xlu0 %v11663_v9, %s13507_s25 }
 0x341   : > { %3471 = vrot.lane.b32.xlu1 %v11687_v16, %s13516_s21  ;;  %3684 = vrot.lane.b32.xlu0 %v11641_v4, %s13507_s25  ;;  %s13558_s21 = smov 110  }
 0x345   : > { %10518 = vrot.lane.b32.xlu1 %v11646_v6, %s13548_s12  ;;  %10513 = vrot.lane.b32.xlu0 %v11653_v7, %s13548_s12 }
 0x349   : > { %10523 = vrot.lane.b32.xlu1 %v11621_v62, %s13548_s12  ;;  %3668 = vrot.lane.b32.xlu0 %v2340_v18, %s13547_s22 }
 0x34d   : > { %3688 = vrot.lane.b32.xlu1 %v11687_v16, %s13507_s25  ;;  %3670 = vrot.lane.b32.xlu0 %v2342_v19, %s13547_s22  ;;  %s13510_s25 = smov 63  }
 0x351   : > { %3903 = vrot.lane.b32.xlu1 %v11663_v9, %s13548_s12  ;;  %3883 = vrot.lane.b32.xlu0 %v2338_v17, %s13512_s20 }
 0x355   : > { %3901 = vrot.lane.b32.xlu1 %v11641_v4, %s13548_s12  ;;  %3905 = vrot.lane.b32.xlu0 %v11687_v16, %s13548_s12 }
 0x357   : > { %v11797_v27 = vpop.permute.xlu1 %10428  ;;  %v10424_v35 = vpop.permute.xlu0 %10423 }
 0x358   : > { %v10425_v5 = vunpack.i.l.bf16 %v10424_v35  ;;  %v10431_v1 = vunpack.i.h.bf16 %v11797_v27 }
 0x359   : > { %10528 = vrot.lane.b32.xlu1 %v11653_v7, %s13549_s27  ;;  %10533 = vrot.lane.b32.xlu0 %v11646_v6, %s13549_s27 }
 0x35b   : > { %v2420_v28 = vpop.permute.xlu1 %2419  ;;  %v11803_v40 = vpop.permute.xlu0 %10433 }
 0x35d   : > { %3885 = vrot.lane.b32.xlu1 %v2340_v18, %s13512_s20  ;;  %10538 = vrot.lane.b32.xlu0 %v11621_v62, %s13549_s27 }
 0x35f   : > { %v11808_v44 = vpop.permute.xlu1 %2803  ;;  %v11810_v45 = vpop.permute.xlu0 %3020 }
 0x361   : > { %3887 = vrot.lane.b32.xlu1 %v2342_v19, %s13512_s20  ;;  %4120 = vrot.lane.b32.xlu0 %v11663_v9, %s13549_s27  ;;  %s13561_s20 = smov 7  }
 0x363   : > { %v2422_v46 = vpop.permute.xlu1 %2421  ;;  %v11815_v47 = vpop.permute.xlu0 %3022 }
 0x365   : > { %4122 = vrot.lane.b32.xlu1 %v11687_v16, %s13549_s27  ;;  %4118 = vrot.lane.b32.xlu0 %v11641_v4, %s13549_s27  ;;  %v10426_v4 = vunpack.i.h.bf16 %v10424_v35 }
 0x367   : > { %v11821_v48 = vpop.permute.xlu1 %2805  ;;  %v10439_v49 = vpop.permute.xlu0 %10438 }
 0x368   : > { %v10440_v57 = vunpack.i.l.bf16 %v10439_v49  ;;  %v10441_v61 = vunpack.i.h.bf16 %v10439_v49 }
 0x369   : > { %4100 = vrot.lane.b32.xlu1 %v2338_v17, %s13510_s25  ;;  %4102 = vrot.lane.b32.xlu0 %v2340_v18, %s13510_s25 }
 0x36a   : > { %v2425_v11 = vsel %vm510_vm2, %v10425_v5, %v10440_v57 }
 0x36b   : > { %v11825_v50 = vpop.permute.xlu1 %10448  ;;  %v11827_v55 = vpop.permute.xlu0 %10443 }
 0x36d   : > { %4104 = vrot.lane.b32.xlu1 %v2342_v19, %s13510_s25  ;;  %4318 = vperm.xlu0 %10405, %v11568_v41   ;;  %v2426_v19 = vsel %vm510_vm2, %v10440_v57, %v10441_v61  ;;  %s13559_s25 = smov 108  }
 0x36f   : > { %v10454_v62 = vpop.permute.xlu1 %10453  ;;  %v11831_v63 = vpop.permute.xlu0 %10463 }
 0x370   : > { %v10456_v6 = vunpack.i.h.bf16 %v10454_v62  ;;  %v10455_v7 = vunpack.i.l.bf16 %v10454_v62 }
 0x371   : > { %4322 = vperm.xlu1 %10406, %v11580_v42   ;;  %4326 = vperm.xlu0 %10405, %v11585_v39  }
 0x372   : > { %v2427_v16 = vsel %vm510_vm2, %v10426_v4, %v10455_v7  ;;  %v9862_v17 = vpack.c.bf16 %v10456_v6, %v10441_v61  ;;  %v2428_v49 = vsel %vm510_vm2, %v10455_v7, %v10456_v6  ;;  %v10450_v4 = vunpack.i.l.bf16 %v11825_v50 }
 0x373   : > { %v11837_v18 = vpop.permute.xlu1 %3002  ;;  %v2424_v41 = vpop.permute.xlu0 %2423  ;;  %v9859_v58 = vpack.c.bf16 %v2427_v16, %v2425_v11  ;;  %v9857_v35 = vpack.c.bf16 %v2428_v49, %v2426_v19  ;;  %v10436_v16 = vunpack.i.h.bf16 %v11803_v40 }
 0x374   : > { %9863 = vmatpush3.bf16.msra.mxu1 %v9862_v17  ;;  %v2430_v57 = vsel %vm510_vm2, %v2422_v46, %v2424_v41 }
 0x375   : > { %4365 = vrot.lane.b32.xlu1 %v11547_v32, %s13518_s29  ;;  %4367 = vrot.lane.b32.xlu0 %v11527_v14, %s13518_s29  ;;  %v2429_v14 = vsel %vm510_vm2, %v2420_v28, %v2422_v46  ;;  %v10446_v28 = vunpack.i.h.bf16 %v11827_v55  ;;  %v10445_v46 = vunpack.i.l.bf16 %v11827_v55  ;;  %v10465_v55 = vunpack.i.l.bf16 %v11831_v63 }
 0x376   : > { %9858 = vmatprep.subr.bf16.mxu0 %v9857_v35  ;;  %9726 = vmatprep.subr.mxu1 %v10981_v3 }
 0x377   : > { %9860 = vmatpush1.bf16.msra.mxu0 %v9859_v58  ;;  %v10459_v42 = vpop.permute.xlu1 %10458  ;;  %v11846_v39 = vpop.permute.xlu0 %10468  ;;  %v3028_v17 = vsel %vm1082_vm7, %v10436_v16, %v10465_v55 }
 0x378   : > { %2451 = vmatprep.subr.mxu0 %v2430_v57  ;;  %9727 = vmatpush3.msra.mxu1 %v2424_v41  ;;  %v10461_v58 = vunpack.i.h.bf16 %v10459_v42  ;;  %v10460_v62 = vunpack.i.l.bf16 %v10459_v42  ;;  %v10470_v57 = vunpack.i.l.bf16 %v11846_v39 }
 0x379   : > { %4369 = vrot.lane.b32.xlu1 %v11530_v15, %s13518_s29  ;;  %4371 = vrot.lane.b32.xlu0 %v11536_v23, %s13518_s29 }
 0x37a   : > { %9729 = vmatmul.mubr.msk.f32.vlgmr.msra.gmra.mrb[60].mxu1 %vm2440_vm3, %v11755_v20  ;;  %9869 = vmatprep.subr.bf16.mxu1 %v11001_v10  ;;  %v2812_v51 = vsel %vm883_vm6, %v10460_v62, %v10461_v58 }
 0x37b   : > { %2452 = vmatpush1.msra.mxu0 %v2429_v14  ;;  %9872 = vmatpush3.bf16.msk.msra.mxu1 %vm9871_vm13, %v9870_v56  ;;  %v11874_v15 = vpop.permute.xlu1 %10473  ;;  %v11876_v23 = vpop.permute.xlu0 %3004 }
 0x37c   : > { %9345 = vmatmul.mubr.msk.f32.vlgmr.msra.gmra.mrb[6].mxu0 %vm2440_vm3, %v11755_v20  ;;  %9865 = vmatprep.subr.bf16.mxu0 %v9864_v8  ;;  %v2811_v8 = vsel %vm883_vm6, %v10431_v1, %v10460_v62  ;;  %v10476_v35 = vunpack.i.h.bf16 %v11874_v15  ;;  %v10475_v42 = vunpack.i.l.bf16 %v11874_v15 }
 0x37d   : > { %9731 = vmatprep.mubr.msk.f32.mxu1 %vm10999_vm5, %v10981_v3  ;;  %9868 = vmatpush1.bf16.msk.msra.mxu0 %vm11867_vm14, %v13554_v53 }
 0x37e   : > { %4373 = vrot.lane.b32.xlu1 %v11541_v31, %s13518_s29  ;;  %4375 = vrot.lane.b32.xlu0 %v11544_v26, %s13518_s29  ;;  %v2810_v31 = vsel %vm883_vm6, %v10445_v46, %v10446_v28 }
 0x37f   : > { %9732 = vmatmul.mubr.msk.f32.gmra.mrb[62].mxu1 %vm2440_vm3, %v11760_v21  ;;  %2626 = vmatprep.subr.mxu0 %v11663_v9  ;;  %v11899_v54 = vpop.permute.xlu1 %10478  ;;  %v11901_v56 = vpop.permute.xlu0 %3006  ;;  %v9873_v26 = vpack.c.bf16 %v2812_v51, %v2810_v31  ;;  %v9878_v9 = vpack.c.bf16 %v10461_v58, %v10446_v28 }
 0x380   : > { %9741 = vmatprep.subr.mxu1 %v10981_v3  ;;  %2517 = vmatprep.mubr.f32.mxu0 %v10981_v3  ;;  %v10481_v14 = vunpack.i.h.bf16 %v11899_v54  ;;  %v10480_v58 = vunpack.i.l.bf16 %v11899_v54 }
 0x381   : > { %9742 = vmatpush3.msk.msra.mxu1 %vm2388_vm1, %v11679_v13  ;;  %9346 = vmatmul.mubr.msk.f32.gmra.mrb[8].mxu0 %vm2440_vm3, %v11760_v21 }
 0x382   : > { %9734 = vmatprep.mubr.msk.f32.mxu1 %vm10999_vm5, %v10981_v3  ;;  %9356 = vmatpush1.msk.msra.mxu0 %vm11850_vm4, %v11637_v2  ;;  %v10430_v2 = vunpack.i.l.bf16 %v11797_v27  ;;  %v10466_v27 = vunpack.i.h.bf16 %v11831_v63  ;;  %v3245_v53 = vsel %vm1281_vm8, %v10481_v14, %v10475_v42 }
 0x383   : > { %4407 = vrot.lane.b32.xlu1 %v11524_v12, %s13518_s29  ;;  %4409 = vrot.lane.b32.xlu0 %v11520_v59, %s13518_s29  ;;  %v11920_v52 = vpop.permute.xlu1 %3239  ;;  %v11922_v0 = vpop.permute.xlu0 %3219 }
 0x384   : > { %9735 = vmatmul.mubr.msk.f32.gmra.mrb[64].mxu1 %vm2440_vm3, %v11762_v24  ;;  %9874 = vmatprep.subr.bf16.mxu0 %v9873_v26  ;;  %v2809_v21 = vsel %vm883_vm6, %v10430_v2, %v10445_v46  ;;  %v3243_v46 = vsel %vm1281_vm8, %v10480_v58, %v10470_v57 }
 0x385   : > { %2523 = vmatprep.mubr.f32.mxu0 %v10981_v3  ;;  %9743 = vmatprep.mubr.msk.f32.mxu1 %vm10999_vm5, %v10981_v3 }
 0x386   : > { %9347 = vmatmul.mubr.msk.f32.gmra.mrb[10].mxu0 %vm2440_vm3, %v11762_v24  ;;  %9877 = vmatprep.subr.bf16.mxu1 %v11001_v10  ;;  %v9875_v24 = vpack.c.bf16 %v2811_v8, %v2809_v21  ;;  %v9889_v8 = vpack.c.bf16 %v3245_v53, %v3243_v46 }
 0x387   : > { %4411 = vrot.lane.b32.xlu1 %v11522_v60, %s13518_s29  ;;  %4377 = vrot.lane.b32.xlu0 %v11571_v38, %s13518_s29  ;;  %v11939_v13 = vpop.permute.xlu1 %3237  ;;  %v11941_v20 = vpop.permute.xlu0 %10488  ;;  %v10451_v38 = vunpack.i.h.bf16 %v11825_v50 }
 0x388   : > { %9744 = vmatmul.mubr.msk.f32.vlgmr.msra.gmra.mrb[66].mxu1 %vm2440_vm3, %v11772_v29  ;;  %2686 = vmatprep.mubr.f32.mxu0 %v10981_v3  ;;  %v10490_v2 = vunpack.i.l.bf16 %v11941_v20 }
 0x389   : > { %9879 = vmatpush3.bf16.msra.mxu1 %v9878_v9  ;;  %9746 = vmatprep.mubr.msk.f32.mxu1 %vm10999_vm5, %v10981_v3 }
 0x38a   : > { %9357 = vmatmul.mubr.msk.f32.vlgmr.msra.gmra.mrb[6].mxu0 %vm2440_vm3, %v11772_v29  ;;  %9756 = vmatprep.subr.mxu1 %v10981_v3  ;;  %v3029_v29 = vsel %vm1082_vm7, %v10465_v55, %v10466_v27  ;;  %v3247_v55 = vsel %vm1281_vm8, %v11939_v13, %v11920_v52 }
 0x38b   : > { %9876 = vmatpush1.bf16.msra.mxu0 %v9875_v24  ;;  %4379 = vrot.lane.b32.xlu1 %v11556_v36, %s13518_s29  ;;  %v11958_v63 = vpop.permute.xlu1 %10483  ;;  %v2808_v5 = vpop.permute.xlu0 %2807  ;;  %v3027_v36 = vsel %vm1082_vm7, %v10450_v4, %v10451_v38 }
 0x38c   : > { %4381 = vrot.lane.b32.xlu0 %v11559_v37, %s13518_s29  ;;  %9747 = vmatmul.mubr.msk.f32.gmra.mrb[68].mxu1 %vm2440_vm3, %v11774_v30  ;;  %v2814_v50 = vsel %vm883_vm6, %v11821_v48, %v2808_v5  ;;  %v2813_v37 = vsel %vm883_vm6, %v11808_v44, %v11821_v48  ;;  %v9880_v11 = vpack.c.bf16 %v3029_v29, %v3027_v36  ;;  %v10486_v31 = vunpack.i.h.bf16 %v11958_v63  ;;  %s13556_s29 = smov 126  }
 0x38d   : > { %2692 = vmatprep.mubr.f32.mxu0 %v10981_v3  ;;  %9749 = vmatprep.mubr.msk.f32.mxu1 %vm10999_vm5, %v10981_v3  ;;  %v9885_v44 = vpack.c.bf16 %v10466_v27, %v10451_v38  ;;  %v10485_v26 = vunpack.i.l.bf16 %v11958_v63 }
 0x38e   : > { %9358 = vmatmul.mubr.msk.f32.gmra.mrb[8].mxu0 %vm2440_vm3, %v11774_v30  ;;  %9757 = vmatpush3.msra.mxu1 %v2808_v5  ;;  %v10435_v30 = vunpack.i.l.bf16 %v11803_v40 }
 0x38f   : > { %2834 = vmatprep.subr.mxu0 %v2814_v50  ;;  %2698 = vmatprep.mubr.f32.mxu0 %v10981_v3  ;;  %v11977_v6 = vpop.permute.xlu1 %3221  ;;  %v11979_v7 = vpop.permute.xlu0 %10493  ;;  %v3474_v27 = vsel %vm1480_vm9, %v10485_v26, %v10486_v31 }
 0x390   : > { %9750 = vmatmul.mubr.msk.f32.gmra.mrb[70].mxu1 %vm2440_vm3, %v11781_v33  ;;  %2835 = vmatpush1.msra.mxu0 %v2813_v37  ;;  %v3026_v19 = vsel %vm1082_vm7, %v10435_v30, %v10450_v4  ;;  %v10496_v24 = vunpack.i.h.bf16 %v11979_v7  ;;  %v10495_v38 = vunpack.i.l.bf16 %v11979_v7 }
 0x391   : > { %9881 = vmatprep.subr.bf16.mxu0 %v9880_v11  ;;  %9758 = vmatprep.mubr.msk.f32.mxu1 %vm10999_vm5, %v10981_v3  ;;  %v9882_v40 = vpack.c.bf16 %v3028_v17, %v3026_v19 }
 0x392   : > { %9359 = vmatmul.mubr.msk.f32.gmra.mrb[10].mxu0 %vm2440_vm3, %v11781_v33  ;;  %9884 = vmatprep.subr.bf16.mxu1 %v11001_v10 }
 0x393   : > { %2894 = vmatprep.mubr.f32.mxu0 %v10981_v3  ;;  %v11992_v48 = vpop.permute.xlu1 %3223  ;;  %v11994_v41 = vpop.permute.xlu0 %3469 }
 0x394   : > { %9759 = vmatmul.mubr.msk.f32.vlgmr.msra.gmra.mrb[72].mxu1 %vm2440_vm3, %v11791_v34 }
 0x395   : > { %9886 = vmatpush3.bf16.msra.mxu1 %v9885_v44  ;;  %9761 = vmatprep.mubr.msk.f32.mxu1 %vm10999_vm5, %v10981_v3 }
 0x396   : > { %9366 = vmatmul.mubr.msk.f32.vlgmr.msra.gmra.mrb[6].mxu0 %vm2440_vm3, %v11791_v34  ;;  %9771 = vmatprep.subr.mxu1 %v10981_v3  ;;  %v10471_v34 = vunpack.i.h.bf16 %v11846_v39  ;;  %v3246_v39 = vsel %vm1281_vm8, %v10475_v42, %v10476_v35 }
 0x397   : > { %9883 = vmatpush1.bf16.msra.mxu0 %v9882_v40  ;;  %2900 = vmatprep.mubr.f32.mxu0 %v10981_v3  ;;  %v12005_v33 = vpop.permute.xlu1 %3439  ;;  %v12007_v49 = vpop.permute.xlu0 %3467 }
 0x398   : > { %9762 = vmatmul.mubr.msk.f32.gmra.mrb[74].mxu1 %vm2440_vm3, %v11779_v25  ;;  %v3244_v54 = vsel %vm1281_vm8, %v10470_v57, %v10471_v34  ;;  %v9892_v51 = vpack.c.bf16 %v10476_v35, %v10471_v34  ;;  %v3477_v42 = vsel %vm1480_vm9, %v12007_v49, %v11994_v41 }
 0x399   : > { %9764 = vmatprep.mubr.msk.f32.mxu1 %vm10999_vm5, %v10981_v3 }
 0x39a   : > { %9367 = vmatmul.mubr.msk.f32.gmra.mrb[8].mxu0 %vm2440_vm3, %v11779_v25  ;;  %v3030_v25 = vsel %vm1082_vm7, %v11810_v45, %v11815_v47 }
 0x39b   : > { %2906 = vmatprep.mubr.f32.mxu0 %v10981_v3  ;;  %v3025_v62 = vpop.permute.xlu1 %3024  ;;  %v12022_v15 = vpop.permute.xlu0 %3441 }
 0x39c   : > { %9765 = vmatmul.mubr.msk.f32.gmra.mrb[76].mxu1 %vm2440_vm3, %v11789_v22  ;;  %v3031_v28 = vsel %vm1082_vm7, %v11815_v47, %v3025_v62  ;;  %v9887_v47 = vpack.c.bf16 %v3246_v39, %v3244_v54  ;;  %v3452_v14 = vsel %vm3451_vm15, %v12005_v33, %v12022_v15 }
 0x39d   : > { %9772 = vmatpush3.msra.mxu1 %v3025_v62  ;;  %9773 = vmatprep.mubr.msk.f32.mxu1 %vm10999_vm5, %v10981_v3 }
 0x39e   : > { %9368 = vmatmul.mubr.msk.f32.gmra.mrb[10].mxu0 %vm2440_vm3, %v11789_v22  ;;  %3051 = vmatprep.subr.mxu0 %v3031_v28  ;;  %v10491_v22 = vunpack.i.h.bf16 %v11941_v20 }
 0x39f   : > { %9891 = vmatprep.subr.bf16.mxu1 %v11001_v10  ;;  %3052 = vmatpush1.msra.mxu0 %v3030_v25  ;;  %v12042_v1 = vpop.permute.xlu1 %3443  ;;  %v12044_v45 = vpop.permute.xlu0 %3445 }
 0x3a0   : > { %9774 = vmatmul.mubr.msk.f32.vlgmr.msra.gmra.mrb[78].mxu1 %vm2440_vm3, %v11837_v18  ;;  %3111 = vmatprep.mubr.f32.mxu0 %v10981_v3  ;;  %v9899_v13 = vpack.c.bf16 %v10491_v22, %v10486_v31  ;;  %v3453_v33 = vsel %vm3451_vm15, %v12042_v1, %v12044_v45 }
 0x3a1   : > { %9893 = vmatpush3.bf16.msra.mxu1 %v9892_v51  ;;  %9888 = vmatprep.subr.bf16.mxu0 %v9887_v47 }
 0x3a2   : > { %9372 = vmatmul.mubr.msk.f32.vlgmr.msra.gmra.mrb[6].mxu0 %vm2440_vm3, %v11837_v18  ;;  %9776 = vmatprep.mubr.msk.f32.mxu1 %vm10999_vm5, %v10981_v3  ;;  %v3476_v18 = vsel %vm1480_vm9, %v10490_v2, %v10491_v22 }
 0x3a3   : > { %9890 = vmatpush1.bf16.msra.mxu0 %v9889_v8  ;;  %3117 = vmatprep.mubr.f32.mxu0 %v10981_v3  ;;  %v12056_v9 = vpop.permute.xlu1 %10498  ;;  %v3242_v21 = vpop.permute.xlu0 %3241  ;;  %v9894_v4 = vpack.c.bf16 %v3476_v18, %v3474_v27 }
 0x3a4   : > { %9777 = vmatmul.mubr.msk.f32.gmra.mrb[80].mxu1 %vm2440_vm3, %v11876_v23  ;;  %9786 = vmatprep.subr.mxu1 %v10981_v3  ;;  %v3248_v20 = vsel %vm1281_vm8, %v11920_v52, %v3242_v21  ;;  %v3473_v52 = vsel %vm1480_vm9, %v10495_v38, %v10485_v26  ;;  %v10501_v16 = vunpack.i.h.bf16 %v12056_v9 }
 0x3a5   : > { %9779 = vmatprep.mubr.msk.f32.mxu1 %vm10999_vm5, %v10981_v3  ;;  %9787 = vmatpush3.msra.mxu1 %v3242_v21 }
 0x3a6   : > { %9373 = vmatmul.mubr.msk.f32.gmra.mrb[8].mxu0 %vm2440_vm3, %v11876_v23  ;;  %3268 = vmatprep.subr.mxu0 %v3248_v20  ;;  %v3475_v23 = vsel %vm1480_vm9, %v10496_v24, %v10490_v2 }
 0x3a7   : > { %3123 = vmatprep.mubr.f32.mxu0 %v10981_v3  ;;  %3269 = vmatpush1.msra.mxu0 %v3247_v55  ;;  %v10509_v63 = vpop.permute.xlu1 %10508  ;;  %v10504_v5 = vpop.permute.xlu0 %10503  ;;  %v9896_v36 = vpack.c.bf16 %v3475_v23, %v3473_v52 }
 0x3a8   : > { %9780 = vmatmul.mubr.msk.f32.gmra.mrb[82].mxu1 %vm2440_vm3, %v11901_v56  ;;  %9895 = vmatprep.subr.bf16.mxu0 %v9894_v4  ;;  %v10506_v7 = vunpack.i.h.bf16 %v10504_v5  ;;  %v10505_v11 = vunpack.i.l.bf16 %v10504_v5  ;;  %v10511_v30 = vunpack.i.h.bf16 %v10509_v63  ;;  %v10510_v17 = vunpack.i.l.bf16 %v10509_v63 }
 0x3a9   : > { %9788 = vmatprep.mubr.msk.f32.mxu1 %vm10999_vm5, %v10981_v3  ;;  %9898 = vmatprep.subr.bf16.mxu1 %v11001_v10 }
 0x3aa   : > { %9374 = vmatmul.mubr.msk.f32.gmra.mrb[10].mxu0 %vm2440_vm3, %v11901_v56  ;;  %v3693_v35 = vsel %vm1679_vm10, %v10505_v11, %v10506_v7  ;;  %v3692_v34 = vsel %vm1679_vm10, %v10511_v30, %v10505_v11  ;;  %v9906_v58 = vpack.c.bf16 %v10506_v7, %v10501_v16 }
 0x3ab   : > { %3328 = vmatprep.mubr.f32.mxu0 %v10981_v3  ;;  %v12085_v50 = vpop.permute.xlu1 %3449  ;;  %v12087_v29 = vpop.permute.xlu0 %3447 }
 0x3ac   : > { %9789 = vmatmul.mubr.msk.f32.vlgmr.msra.gmra.mrb[84].mxu1 %vm2440_vm3, %v11922_v0  ;;  %v3454_v31 = vsel %vm3451_vm15, %v12087_v29, %v12085_v50 }
 0x3ad   : > { %9900 = vmatpush3.bf16.msra.mxu1 %v9899_v13  ;;  %9791 = vmatprep.mubr.msk.f32.mxu1 %vm10999_vm5, %v10981_v3 }
 0x3ae   : > { %9378 = vmatmul.mubr.msk.f32.vlgmr.msra.gmra.mrb[6].mxu0 %vm2440_vm3, %v11922_v0  ;;  %9801 = vmatprep.subr.mxu1 %v10981_v3  ;;  %v10500_v0 = vunpack.i.l.bf16 %v12056_v9 }
 0x3af   : > { %9897 = vmatpush1.bf16.msra.mxu0 %v9896_v36  ;;  %3334 = vmatprep.mubr.f32.mxu0 %v10981_v3  ;;  %v12097_v56 = vpop.permute.xlu1 %3666  ;;  %v12099_v37 = vpop.permute.xlu0 %3686 }
 0x3b0   : > { %9792 = vmatmul.mubr.msk.f32.gmra.mrb[86].mxu1 %vm2440_vm3, %v11977_v6  ;;  %v3691_v57 = vsel %vm1679_vm10, %v10500_v0, %v10501_v16 }
 0x3b1   : > { %9794 = vmatprep.mubr.msk.f32.mxu1 %vm10999_vm5, %v10981_v3  ;;  %v9901_v62 = vpack.c.bf16 %v3693_v35, %v3691_v57 }
 0x3b2   : > { %9379 = vmatmul.mubr.msk.f32.gmra.mrb[8].mxu0 %vm2440_vm3, %v11977_v6  ;;  %v3690_v6 = vsel %vm1679_vm10, %v10510_v17, %v10500_v0 }
 0x3b3   : > { %3340 = vmatprep.mubr.f32.mxu0 %v10981_v3  ;;  %v3472_v44 = vpop.permute.xlu1 %3471  ;;  %v3685_v19 = vpop.permute.xlu0 %3684 }
 0x3b4   : > { %9795 = vmatmul.mubr.msk.f32.gmra.mrb[88].mxu1 %vm2440_vm3, %v11992_v48  ;;  %v3478_v40 = vsel %vm1480_vm9, %v11994_v41, %v3472_v44  ;;  %v3694_v2 = vsel %vm1679_vm10, %v3685_v19, %v12099_v37 }
 0x3b5   : > { %9802 = vmatpush3.msra.mxu1 %v3472_v44  ;;  %9803 = vmatprep.mubr.msk.f32.mxu1 %vm10999_vm5, %v10981_v3 }
 0x3b6   : > { %9380 = vmatmul.mubr.msk.f32.gmra.mrb[10].mxu0 %vm2440_vm3, %v11992_v48  ;;  %3498 = vmatprep.subr.mxu0 %v3478_v40  ;;  %v9903_v48 = vpack.c.bf16 %v3692_v34, %v3690_v6 }
 0x3b7   : > { %9905 = vmatprep.subr.bf16.mxu1 %v11001_v10  ;;  %3499 = vmatpush1.msra.mxu0 %v3477_v42  ;;  %v10519_v41 = vpop.permute.xlu1 %10518  ;;  %v10514_v49 = vpop.permute.xlu0 %10513 }
 0x3b8   : > { %9804 = vmatmul.mubr.msk.f32.vlgmr.msra.gmra.mrb[90].mxu1 %vm2440_vm3, %v3452_v14  ;;  %3558 = vmatprep.mubr.f32.mxu0 %v10981_v3  ;;  %v10521_v39 = vunpack.i.h.bf16 %v10519_v41  ;;  %v10520_v25 = vunpack.i.l.bf16 %v10519_v41  ;;  %v10516_v46 = vunpack.i.h.bf16 %v10514_v49  ;;  %v10515_v53 = vunpack.i.l.bf16 %v10514_v49 }
 0x3b9   : > { %9907 = vmatpush3.bf16.msra.mxu1 %v9906_v58  ;;  %9902 = vmatprep.subr.bf16.mxu0 %v9901_v62 }
 0x3ba   : > { %9384 = vmatmul.mubr.msk.f32.vlgmr.msra.gmra.mrb[6].mxu0 %vm2440_vm3, %v3452_v14  ;;  %9806 = vmatprep.mubr.msk.f32.mxu1 %vm10999_vm5, %v10981_v3  ;;  %v3908_v47 = vsel %vm13532_vm11, %v10515_v53, %v10516_v46  ;;  %v3910_v22 = vsel %vm13532_vm11, %v10520_v25, %v10521_v39  ;;  %v9913_v21 = vpack.c.bf16 %v10521_v39, %v10516_v46 }
 0x3bb   : > { %9904 = vmatpush1.bf16.msra.mxu0 %v9903_v48  ;;  %3564 = vmatprep.mubr.f32.mxu0 %v10981_v3  ;;  %v10524_v15 = vpop.permute.xlu1 %10523  ;;  %v3669_v28 = vpop.permute.xlu0 %3668  ;;  %v9908_v18 = vpack.c.bf16 %v3910_v22, %v3908_v47 }
 0x3bc   : > { %9807 = vmatmul.mubr.msk.f32.gmra.mrb[92].mxu1 %vm2440_vm3, %v3453_v33  ;;  %9816 = vmatprep.subr.mxu1 %v10981_v3  ;;  %v10526_v54 = vunpack.i.h.bf16 %v10524_v15  ;;  %v10525_v51 = vunpack.i.l.bf16 %v10524_v15 }
 0x3bd   : > { %9809 = vmatprep.mubr.msk.f32.mxu1 %vm10999_vm5, %v10981_v3 }
 0x3be   : > { %9385 = vmatmul.mubr.msk.f32.gmra.mrb[8].mxu0 %vm2440_vm3, %v3453_v33  ;;  %v3907_v8 = vsel %vm13532_vm11, %v10525_v51, %v10515_v53  ;;  %v3909_v9 = vsel %vm13532_vm11, %v10526_v54, %v10520_v25 }
 0x3bf   : > { %3570 = vmatprep.mubr.f32.mxu0 %v10981_v3  ;;  %v3689_v26 = vpop.permute.xlu1 %3688  ;;  %v3671_v1 = vpop.permute.xlu0 %3670  ;;  %v9910_v55 = vpack.c.bf16 %v3909_v9, %v3907_v8 }
 0x3c0   : > { %9810 = vmatmul.mubr.msk.f32.gmra.mrb[94].mxu1 %vm2440_vm3, %v3454_v31  ;;  %v3695_v45 = vsel %vm1679_vm10, %v12099_v37, %v3689_v26 }
 0x3c1   : > { %9817 = vmatpush3.msra.mxu1 %v3689_v26  ;;  %9818 = vmatprep.mubr.msk.f32.mxu1 %vm10999_vm5, %v10981_v3 }
 0x3c2   : > { %9386 = vmatmul.mubr.msk.f32.gmra.mrb[10].mxu0 %vm2440_vm3, %v3454_v31  ;;  %3715 = vmatprep.subr.mxu0 %v3695_v45 }
 0x3c3   : > { %9912 = vmatprep.subr.bf16.mxu1 %v11001_v10  ;;  %3716 = vmatpush1.msra.mxu0 %v3694_v2  ;;  %v3904_v27 = vpop.permute.xlu1 %3903  ;;  %v3884_v20 = vpop.permute.xlu0 %3883 }
 0x3c4   : > { %9819 = vmatmul.mubr.msk.f32.vlgmr.msra.gmra.mrb[96].mxu1 %vm2440_vm3, %v12097_v56  ;;  %3775 = vmatprep.mubr.f32.mxu0 %v10981_v3 }
 0x3c5   : > { %9914 = vmatpush3.bf16.msra.mxu1 %v9913_v21  ;;  %9909 = vmatprep.subr.bf16.mxu0 %v9908_v18 }
 0x3c6   : > { %9390 = vmatmul.mubr.msk.f32.vlgmr.msra.gmra.mrb[6].mxu0 %vm2440_vm3, %v12097_v56  ;;  %9821 = vmatprep.mubr.msk.f32.mxu1 %vm10999_vm5, %v10981_v3 }
 0x3c7   : > { %9911 = vmatpush1.bf16.msra.mxu0 %v9910_v55  ;;  %3781 = vmatprep.mubr.f32.mxu0 %v10981_v3  ;;  %v3902_v24 = vpop.permute.xlu1 %3901  ;;  %v3906_v38 = vpop.permute.xlu0 %3905 }
 0x3c8   : > { %9822 = vmatmul.mubr.msk.f32.gmra.mrb[98].mxu1 %vm2440_vm3, %v3669_v28  ;;  %v3911_v4 = vsel %vm13532_vm11, %v3902_v24, %v3904_v27  ;;  %9831 = vmatprep.subr.mxu1 %v10981_v3  ;;  %v3912_v63 = vsel %vm13532_vm11, %v3904_v27, %v3906_v38 }
 0x3c9   : > { %9824 = vmatprep.mubr.msk.f32.mxu1 %vm10999_vm5, %v10981_v3  ;;  %9832 = vmatpush3.msra.mxu1 %v3906_v38 }
 0x3ca   : > { %9391 = vmatmul.mubr.msk.f32.gmra.mrb[8].mxu0 %vm2440_vm3, %v3669_v28  ;;  %3932 = vmatprep.subr.mxu0 %v3912_v63 }
 0x3cb   : > { %3787 = vmatprep.mubr.f32.mxu0 %v10981_v3  ;;  %3933 = vmatpush1.msra.mxu0 %v3911_v4  ;;  %v10529_v5 = vpop.permute.xlu1 %10528  ;;  %v10534_v52 = vpop.permute.xlu0 %10533 }
 0x3cc   : > { %9825 = vmatmul.mubr.msk.f32.gmra.mrb[100].mxu1 %vm2440_vm3, %v3671_v1  ;;  %v10531_v23 = vunpack.i.h.bf16 %v10529_v5  ;;  %v10530_v13 = vunpack.i.l.bf16 %v10529_v5  ;;  %v10536_v50 = vunpack.i.h.bf16 %v10534_v52  ;;  %v10535_v29 = vunpack.i.l.bf16 %v10534_v52  ;;  %9919 = vmatprep.subr.bf16.mxu1 %v11001_v10 }
 0x3cd   : > { %9833 = vmatprep.mubr.msk.f32.mxu1 %vm10999_vm5, %v10981_v3 }
 0x3ce   : > { %v9920_v36 = vpack.c.bf16 %v10536_v50, %v10531_v23  ;;  %9392 = vmatmul.mubr.msk.f32.gmra.mrb[10].mxu0 %vm2440_vm3, %v3671_v1  ;;  %v4125_v56 = vsel %vm13509_vm12, %v10530_v13, %v10531_v23  ;;  %v4127_v37 = vsel %vm13509_vm12, %v10535_v29, %v10536_v50 }
 0x3cf   : > { %3992 = vmatprep.mubr.f32.mxu0 %v10981_v3  ;;  %v3886_v7 = vpop.permute.xlu1 %3885  ;;  %v10539_v11 = vpop.permute.xlu0 %10538  ;;  %v9915_v16 = vpack.c.bf16 %v4127_v37, %v4125_v56 }
 0x3d0   : > { %9834 = vmatmul.mubr.msk.f32.vlgmr.msra.gmra.mrb[102].mxu1 %vm2440_vm3, %v3884_v20  ;;  %v10541_v0 = vunpack.i.h.bf16 %v10539_v11  ;;  %v10540_v30 = vunpack.i.l.bf16 %v10539_v11 }
 0x3d1   : > { %9836 = vmatprep.mubr.msk.f32.mxu1 %vm10999_vm5, %v10981_v3  ;;  %9921 = vmatpush3.bf16.msra.mxu1 %v9920_v36 }
 0x3d2   : > { %v4124_v10 = vsel %vm13509_vm12, %v10540_v30, %v10530_v13  ;;  %v4126_v17 = vsel %vm13509_vm12, %v10541_v0, %v10535_v29  ;;  %9396 = vmatmul.mubr.msk.f32.vlgmr.msra.gmra.mrb[6].mxu0 %vm2440_vm3, %v3884_v20  ;;  %9916 = vmatprep.subr.bf16.mxu0 %v9915_v16 }
 0x3d3   : > { %3998 = vmatprep.mubr.f32.mxu0 %v10981_v3  ;;  %v3888_v44 = vpop.permute.xlu1 %3887  ;;  %v4121_v19 = vpop.permute.xlu0 %4120  ;;  %v9917_v40 = vpack.c.bf16 %v4126_v17, %v4124_v10  ;;  %9846 = vmatprep.subr.mxu1 %v10981_v3 }
 0x3d4   : > { %9837 = vmatmul.mubr.msk.f32.gmra.mrb[104].mxu1 %vm2440_vm3, %v3886_v7 }
 0x3d5   : > { %9839 = vmatprep.mubr.msk.f32.mxu1 %vm10999_vm5, %v10981_v3  ;;  %9918 = vmatpush1.bf16.msra.mxu0 %v9917_v40 }
 0x3d6   : > { %9397 = vmatmul.mubr.msk.f32.gmra.mrb[8].mxu0 %vm2440_vm3, %v3886_v7 }
 0x3d7   : > { %4004 = vmatprep.mubr.f32.mxu0 %v10981_v3  ;;  %v4123_v35 = vpop.permute.xlu1 %4122  ;;  %v4119_v42 = vpop.permute.xlu0 %4118 }
 0x3d8   : > { %9840 = vmatmul.mubr.msk.f32.gmra.mrb[106].mxu1 %vm2440_vm3, %v3888_v44  ;;  %v4128_v6 = vsel %vm13509_vm12, %v4119_v42, %v4121_v19  ;;  %v4129_v34 = vsel %vm13509_vm12, %v4121_v19, %v4123_v35 }
 0x3d9   : > { %9847 = vmatpush3.msra.mxu1 %v4123_v35  ;;  %4149 = vmatprep.subr.mxu0 %v4129_v34 }
 0x3da   : > { %9398 = vmatmul.mubr.msk.f32.gmra.mrb[10].mxu0 %vm2440_vm3, %v3888_v44  ;;  %9848 = vmatprep.mubr.msk.f32.mxu1 %vm10999_vm5, %v10981_v3 }
 0x3db   : > { %4150 = vmatpush1.msra.mxu0 %v4128_v6  ;;  %v4101_v57 = vpop.permute.xlu1 %4100  ;;  %4209 = vmatprep.mubr.f32.mxu0 %v10981_v3  ;;  %v4103_v14 = vpop.permute.xlu0 %4102 }
 0x3dc   : > { %9849 = vmatmul.mubr.msk.f32.vlgmr.msra.gmra.mrb[108].mxu1 %vm2440_vm3, %v4101_v57 }
 0x3dd   : > { %9851 = vmatprep.mubr.msk.f32.mxu1 %vm10999_vm5, %v10981_v3 }
 0x3de   : > { %9402 = vmatmul.mubr.msk.f32.vlgmr.msra.gmra.mrb[6].mxu0 %vm2440_vm3, %v4101_v57 }
 0x3df   : > { %4215 = vmatprep.mubr.f32.mxu0 %v10981_v3  ;;  %v4105_v58 = vpop.permute.xlu1 %4104 }
 0x3e0   : > { %9852 = vmatmul.mubr.msk.f32.gmra.mrb[110].mxu1 %vm2440_vm3, %v4103_v14 }
 0x3e1   : > { %9854 = vmatprep.mubr.msk.f32.mxu1 %vm10999_vm5, %v10981_v3 }
 0x3e2   : > { %9403 = vmatmul.mubr.msk.f32.gmra.mrb[8].mxu0 %vm2440_vm3, %v4103_v14 }
 0x3e3   : > { %4221 = vmatprep.mubr.f32.mxu0 %v10981_v3 }
 0x3e4   : > { %9855 = vmatmul.mubr.msk.f32.gmra.mrb[112].mxu1 %vm2440_vm3, %v4105_v58 }
 0x3e5   : > { %5856 = vmatprep.mubr.f32.mxu1 %v10981_v3 }
 0x3e6   : > { %9404 = vmatmul.mubr.msk.f32.gmra.mrb[10].mxu0 %vm2440_vm3, %v4105_v58 }
 0x3e7   : > { %4585 = vmatprep.mubr.f32.mxu0 %v10981_v3 }
 0x3ec   : > { %v4319_v19 = vpop.permute.xlu0 %4318 }
 0x3f0   : > { %v12218_v6 = vpop.permute.xlu1 %4322  ;;  %v12220_v58 = vpop.permute.xlu0 %4326 }
 0x44d   : > { %v2596_v41 = vpop.f32.mrb[60].mxu1 }
 0x44e   : > { %v9730_v49 = vpop.f32.mrb[61].mxu1 }
 0x44f   : > { %v4366_v49 = vpop.permute.xlu1 %4365 }
 0x452   : > { %v2601_v62 = vpop.f32.mrb[62].mxu1 }
 0x453   : > { %v9733_v48 = vpop.f32.mrb[63].mxu1 }
 0x457   : > { %v2606_v33 = vpop.f32.mrb[64].mxu1 }
 0x458   : > { %v9736_v15 = vpop.f32.mrb[65].mxu1 }
 0x45b   : > { %v2771_v28 = vpop.f32.mrb[66].mxu1 }
 0x45c   : > { %v2772_v39 = vadd.f32 %v2771_v28, %v2596_v41  ;;  %v9745_v25 = vpop.f32.mrb[67].mxu1 }
 0x45d   : > { %v12222_v25 = vpop.permute.xlu1 %4369 }
 0x45f   : > { %v2776_v46 = vpop.f32.mrb[68].mxu1 }
 0x460   : > { %v2777_v53 = vadd.f32 %v2776_v46, %v2601_v62  ;;  %v9748_v54 = vpop.f32.mrb[69].mxu1 }
 0x463   : > { %v2781_v51 = vpop.f32.mrb[70].mxu1 }
 0x464   : > { %v2782_v31 = vadd.f32 %v2781_v51, %v2606_v33  ;;  %v9751_v26 = vpop.f32.mrb[71].mxu1  ;;  %v4368_v33 = vpop.permute.xlu0 %4367 }
 0x465   : > { %v4374_v26 = vpop.permute.xlu1 %4373 }
 0x467   : > { %v2979_v1 = vpop.f32.mrb[72].mxu1 }
 0x468   : > { %v2995_v45 = vadd.f32 %v2979_v1, %v2772_v39  ;;  %v9760_v47 = vpop.f32.mrb[73].mxu1  ;;  %v4372_v51 = vpop.permute.xlu0 %4371 }
 0x46b   : > { %v2984_v22 = vpop.f32.mrb[74].mxu1 }
 0x46c   : > { %v2998_v2 = vadd.f32 %v2984_v22, %v2777_v53  ;;  %v9763_v8 = vpop.f32.mrb[75].mxu1  ;;  %v12224_v47 = vpop.permute.xlu0 %4375 }
 0x46f   : > { %v2989_v9 = vpop.f32.mrb[76].mxu1 }
 0x470   : > { %v3001_v21 = vadd.f32 %v2989_v9, %v2782_v31  ;;  %v9766_v27 = vpop.f32.mrb[77].mxu1  ;;  %v4408_v9 = vpop.permute.xlu1 %4407 }
 0x473   : > { %v3196_v20 = vpop.f32.mrb[78].mxu1 }
 0x474   : > { %v3212_v18 = vadd.f32 %v3196_v20, %v2995_v45  ;;  %v9775_v55 = vpop.f32.mrb[79].mxu1 }
 0x477   : > { %v3201_v24 = vpop.f32.mrb[80].mxu1 }
 0x478   : > { %v3215_v38 = vadd.f32 %v3201_v24, %v2998_v2  ;;  %v9778_v4 = vpop.f32.mrb[81].mxu1 }
 0x47b   : > { %v3206_v63 = vpop.f32.mrb[82].mxu1 }
 0x47c   : > { %v3218_v5 = vadd.f32 %v3206_v63, %v3001_v21  ;;  %v9781_v52 = vpop.f32.mrb[83].mxu1  ;;  %v4383_v63 = vsel %vm1082_vm7, %v4366_v49, %v4368_v33 }
 0x47f   : > { %v3413_v23 = vpop.f32.mrb[84].mxu1 }
 0x480   : > { %v3429_v13 = vadd.f32 %v3413_v23, %v3212_v18  ;;  %v9790_v50 = vpop.f32.mrb[85].mxu1  ;;  %v4410_v18 = vpop.permute.xlu0 %4409 }
 0x481   : > { %v4386_v50 = vsel %vm1082_vm7, %v4374_v26, %v12224_v47 }
 0x483   : > { %v3418_v29 = vpop.f32.mrb[86].mxu1 }
 0x484   : > { %v3432_v36 = vadd.f32 %v3418_v29, %v3215_v38  ;;  %v9793_v56 = vpop.f32.mrb[87].mxu1  ;;  %v12232_v29 = vpop.permute.xlu1 %4411 }
 0x485   : > { %v12235_v56 = vsel %vm1082_vm7, %v4408_v9, %v4410_v18 }
 0x487   : > { %v3423_v37 = vpop.f32.mrb[88].mxu1 }
 0x488   : > { %v3435_v7 = vadd.f32 %v3423_v37, %v3218_v5  ;;  %v9796_v11 = vpop.f32.mrb[89].mxu1  ;;  %v4384_v5 = vsel %vm1082_vm7, %v4368_v33, %v12222_v25 }
 0x48b   : > { %v3643_v16 = vpop.f32.mrb[90].mxu1 }
 0x48c   : > { %v3659_v0 = vadd.f32 %v3643_v16, %v3429_v13  ;;  %v9805_v30 = vpop.f32.mrb[91].mxu1  ;;  %v4385_v13 = vsel %vm1082_vm7, %v4372_v51, %v4374_v26  ;;  %v4380_v26 = vpop.permute.xlu1 %4379 }
 0x48f   : > { %v3648_v10 = vpop.f32.mrb[92].mxu1 }
 0x490   : > { %v3662_v17 = vadd.f32 %v3648_v10, %v3432_v36  ;;  %v9808_v44 = vpop.f32.mrb[93].mxu1 }
 0x491   : > { %v4378_v44 = vpop.permute.xlu0 %4377 }
 0x493   : > { %v3653_v40 = vpop.f32.mrb[94].mxu1 }
 0x494   : > { %v3665_v35 = vadd.f32 %v3653_v40, %v3435_v7  ;;  %v9811_v42 = vpop.f32.mrb[95].mxu1 }
 0x497   : > { %v3860_v34 = vpop.f32.mrb[96].mxu1 }
 0x498   : > { %v3876_v57 = vadd.f32 %v3860_v34, %v3659_v0  ;;  %v9820_v14 = vpop.f32.mrb[97].mxu1  ;;  %v4414_v0 = vsel %vm1082_vm7, %v4410_v18, %v12232_v29 }
 0x49b   : > { %v3865_v41 = vpop.f32.mrb[98].mxu1 }
 0x49c   : > { %v3879_v62 = vadd.f32 %v3865_v41, %v3662_v17  ;;  %v9823_v48 = vpop.f32.mrb[99].mxu1 }
 0x49f   : > { %v3870_v15 = vpop.f32.mrb[100].mxu1 }
 0x4a0   : > { %v3882_v28 = vadd.f32 %v3870_v15, %v3665_v35  ;;  %v9826_v39 = vpop.f32.mrb[101].mxu1 }
 0x4a3   : > { %v4077_v46 = vpop.f32.mrb[102].mxu1 }
 0x4a4   : > { %v4093_v53 = vadd.f32 %v4077_v46, %v3876_v57  ;;  %v9835_v54 = vpop.f32.mrb[103].mxu1 }
 0x4a7   : > { %v4082_v31 = vpop.f32.mrb[104].mxu1 }
 0x4a8   : > { %v4096_v1 = vadd.f32 %v4082_v31, %v3879_v62  ;;  %v9838_v45 = vpop.f32.mrb[105].mxu1 }
 0x4ab   : > { %v4087_v22 = vpop.f32.mrb[106].mxu1 }
 0x4ac   : > { %v4099_v2 = vadd.f32 %v4087_v22, %v3882_v28  ;;  %v9841_v8 = vpop.f32.mrb[107].mxu1 }
 0x4ad   : > { %v4382_v8 = vpop.permute.xlu0 %4381 }
 0x4af   : > { %v4294_v21 = vpop.f32.mrb[108].mxu1 }
 0x4b0   : > { %v4310_v27 = vadd.f32 %v4294_v21, %v4093_v53  ;;  %v9850_v20 = vpop.f32.mrb[109].mxu1 }
 0x4b1   : > { %v4211_v55 = vpop.f32.mrb[6].mxu0 }
 0x4b2   : > { %v4329_v24 = vadd.f32 %v4319_v19, %v4211_v55  ;;  %v4331_v38 = vadd.f32 %v4319_v19, %v4310_v27  ;;  %v4213_v4 = vpop.f32.mrb[7].mxu0 }
 0x4b3   : > { %v4330_v52 = vadd.f32 %v4319_v19, %v4213_v4  ;;  %v4299_v23 = vpop.f32.mrb[110].mxu1  ;;  %v4388_v4 = vsel %vm1082_vm7, %v4380_v26, %v4382_v8 }
 0x4b4   : > { %vm4338_vm5 = vcmp.ge.f32.partialorder %v4329_v24, 0.0  ;;  %v4347_v36 = vmul.f32 0.2, %v4329_v24  ;;  %v4313_v11 = vadd.f32 %v4299_v23, %v4096_v1  ;;  %v9853_v16 = vpop.f32.mrb[111].mxu1  ;;  %vm4340_vm13 = vcmp.ge.f32.partialorder %v4331_v38, 0.0 }
 0x4b5   : > { %vm4339_vm1 = vcmp.ge.f32.partialorder %v4330_v52, 0.0  ;;  %v4348_v37 = vmul.f32 0.2, %v4330_v52  ;;  %v4217_v7 = vpop.f32.mrb[8].mxu0  ;;  %v4349_v40 = vmul.f32 0.2, %v4331_v38 }
 0x4b6   : > { %v4356_v30 = vsel %vm4338_vm5, %v4329_v24, %v4347_v36  ;;  %v4332_v10 = vadd.f32 %v12218_v6, %v4217_v7  ;;  %v4219_v17 = vpop.f32.mrb[9].mxu0  ;;  %v4334_v42 = vadd.f32 %v12218_v6, %v4313_v11  ;;  %v4387_v24 = vsel %vm1082_vm7, %v4378_v44, %v4380_v26  ;;  %v12290_v16 = vld [vmem:[%s13555_s5] sm:$0xff] }
 0x4b7   : > { %v4398_v19 = vadd.f32 %v4383_v63, %v4356_v30  ;;  %v4357_v35 = vsel %vm4339_vm1, %v4330_v52, %v4348_v37  ;;  %v4304_v34 = vpop.f32.mrb[112].mxu1  ;;  %v4333_v41 = vadd.f32 %v12218_v6, %v4219_v17  ;;  %v4358_v1 = vsel %vm4340_vm13, %v4331_v38, %v4349_v40 }
 0x4b8   : > { %v4399_v57 = vadd.f32 %v4384_v5, %v4357_v35  ;;  %vm4341_vm12 = vcmp.ge.f32.partialorder %v4332_v10, 0.0  ;;  %v4350_v14 = vmul.f32 0.2, %v4332_v10  ;;  %v9856_v49 = vpop.f32.mrb[113].mxu1  ;;  %vm4343_vm5 = vcmp.ge.f32.partialorder %v4334_v42, 0.0 }
 0x4b9   : > { %v12243_v62 = vmul.f32 %v12235_v56, %v4398_v19  ;;  %v4352_v48 = vmul.f32 0.2, %v4334_v42  ;;  %v4223_v33 = vpop.f32.mrb[10].mxu0  ;;  %v4316_v15 = vadd.f32 %v4304_v34, %v4099_v2  ;;  %vm4342_vm1 = vcmp.ge.f32.partialorder %v4333_v41, 0.0 }
 0x4ba   : > { %v12245_v28 = vmul.f32 %v4414_v0, %v4399_v57  ;;  %v4359_v39 = vsel %vm4341_vm12, %v4332_v10, %v4350_v14  ;;  %v4351_v46 = vmul.f32 0.2, %v4333_v41  ;;  %v4225_v53 = vpop.f32.mrb[11].mxu0  ;;  %v4335_v31 = vadd.f32 %v12220_v58, %v4223_v33 }
 0x4bb   : > { %v4401_v54 = vadd.f32 %v4385_v13, %v4359_v39  ;;  %v4361_v51 = vsel %vm4343_vm5, %v4334_v42, %v4352_v48  ;;  %v4337_v6 = vadd.f32 %v12220_v58, %v4316_v15  ;;  %v4336_v22 = vadd.f32 %v12220_v58, %v4225_v53 }
 0x4bc   : > { %v4360_v45 = vsel %vm4342_vm1, %v4333_v41, %v4351_v46  ;;  %v10542_v2 = vpack.i.bf16 %v12245_v28, %v12243_v62  ;;  %vm4344_vm12 = vcmp.ge.f32.partialorder %v4335_v31, 0.0  ;;  %v4353_v27 = vmul.f32 0.2, %v4335_v31 }
 0x4bd   : > { %v12254_v9 = vmul.f32 %v12235_v56, %v4401_v54  ;;  %v4402_v21 = vadd.f32 %v4386_v50, %v4360_v45  ;;  %v4403_v20 = vadd.f32 %v12224_v47, %v4361_v51  ;;  %v4355_v18 = vmul.f32 0.2, %v4337_v6 }
 0x4be   : > { %vm4345_vm5 = vcmp.ge.f32.partialorder %v4336_v22, 0.0  ;;  %v4354_v55 = vmul.f32 0.2, %v4336_v22  ;;  %10543 = vrot.lane.b32.xlu1 %v10542_v2, %s13530_s30  ;;  %v4362_v38 = vsel %vm4344_vm12, %v4335_v31, %v4353_v27  ;;  %vm4346_vm13 = vcmp.ge.f32.partialorder %v4337_v6, 0.0  ;;  %v4428_v27 = vld [vmem:[%s13555_s5 + $0x8] sm:$0xff] }
 0x4bf   : > { %v12259_v58 = vmul.f32 %v4414_v0, %v4402_v21  ;;  %v4400_v63 = vadd.f32 %v12222_v25, %v4358_v1  ;;  %v4404_v5 = vadd.f32 %v4387_v24, %v4362_v38  ;;  %v4364_v13 = vsel %vm4346_vm13, %v4337_v6, %v4355_v18  ;;  %v4430_v18 = vld [vmem:[%s13555_s5 + $0x18] sm:$0xff] }
 0x4c0   : > { %v4363_v52 = vsel %vm4345_vm5, %v4336_v22, %v4354_v55  ;;  %v12269_v36 = vmul.f32 %v12232_v29, %v4403_v20  ;;  %v4406_v37 = vadd.f32 %v4382_v8, %v4364_v13  ;;  %vm4478_vm1 = vcmask 269312   ;;  %v4432_v55 = vld [vmem:[%s13555_s5 + $0x28] sm:$0xff] }
 0x4c1   : > { %v4405_v23 = vadd.f32 %v4388_v4, %v4363_v52  ;;  %v10547_v47 = vpack.i.bf16 %v12259_v58, %v12254_v9  ;;  %v12266_v50 = vmul.f32 %v12235_v56, %v4404_v5  ;;  %v12275_v25 = vmul.f32 %v12232_v29, %v4400_v63 }
 0x4c2   : > { %v12285_v56 = vmul.f32 %v12232_v29, %v4406_v37  ;;  %v12304_v29 = vld [vmem:[%s13555_s5 + $0x20] sm:$0xff]  ;;  %vm13565_vm12 = vcmask 736256  }
 0x4c3   : > { %10548 = vrot.lane.b32.xlu0 %v10547_v47, %s13530_s30  ;;  %4454 = vrot.lane.b32.xlu1 %v12266_v50, %s13530_s30  ;;  %v12277_v7 = vmul.f32 %v4414_v0, %v4405_v23  ;;  %v10552_v11 = vpack.i.bf16 %v12269_v36, %v12275_v25  ;;  %v12297_v0 = vld [vmem:[%s13555_s5 + $0x10] sm:$0xff]  ;;  %vm13566_vm5 = vmmov %vm13565_vm12 }
 0x4c4   : > { %vm13567_vm13 = vmmov %vm13566_vm5 }
 0x4c7   : > { %4456 = vrot.lane.b32.xlu0 %v12277_v7, %s13530_s30  ;;  %10553 = vrot.lane.b32.xlu1 %v10552_v11, %s13530_s30 }
 0x4cb   : > { %4458 = vrot.lane.b32.xlu0 %v12285_v56, %s13530_s30  ;;  %4485 = vrot.lane.b32.xlu1 %v12290_v16, %s13528_s26  ;;  %s13563_s30 = smov 87  }
 0x4cf   : > { %4487 = vrot.lane.b32.xlu0 %v12297_v0, %s13528_s26  ;;  %4489 = vrot.lane.b32.xlu1 %v12304_v29, %s13528_s26  ;;  %s13564_s26 = smov 63  }
 0x4d3   : > { %4604 = vrot.lane.b32.xlu0 %v12290_v16, %s13526_s11  ;;  %4606 = vrot.lane.b32.xlu1 %v12297_v0, %s13526_s11 }
 0x4d7   : > { %4608 = vrot.lane.b32.xlu0 %v12304_v29, %s13526_s11  ;;  %4699 = vrot.lane.b32.xlu1 %v12290_v16, %s13524_s13 }
 0x4db   : > { %4701 = vrot.lane.b32.xlu0 %v12297_v0, %s13524_s13  ;;  %4823 = vrot.lane.b32.xlu1 %v12297_v0, %s13522_s28 }
 0x4df   : > { %4703 = vrot.lane.b32.xlu0 %v12304_v29, %s13524_s13  ;;  %s13571_s13 = smov 1  }
 0x4e3   : > { %4821 = vrot.lane.b32.xlu0 %v12290_v16, %s13522_s28 }
 0x530   : > { %v10544_v30 = vpop.permute.xlu1 %10543 }
 0x531   : > { %v10546_v10 = vunpack.i.h.bf16 %v10544_v30  ;;  %v12326_v17 = vunpack.i.l.bf16 %v10544_v30 }
 0x533   : > { %v12330_v44 = vsel %vm485_vm0, %v12326_v17, %v10546_v10  ;;  %v4475_v19 = vsel %vm485_vm0, 0.0, %v12326_v17 }
 0x534   : > { %v10557_v40 = vpack.i.bf16 %v12330_v44, %v4475_v19 }
 0x535   : > { %v10549_v35 = vpop.permute.xlu0 %10548  ;;  %v12337_v57 = vpop.permute.xlu1 %4454 }
 0x536   : > { %v10551_v42 = vunpack.i.h.bf16 %v10549_v35  ;;  %v12335_v34 = vunpack.i.l.bf16 %v10549_v35  ;;  %10558 = vrot.lane.b32.xlu1 %v10557_v40, %s13526_s11  ;;  %10563 = vrot.lane.b32.xlu0 %v10557_v40, %s13556_s29  ;;  %v12384_v2 = vsel %vm485_vm0, 0.0, %v12337_v57 }
 0x538   : > { %v12343_v14 = vsel %vm485_vm0, %v12335_v34, %v10551_v42  ;;  %v4476_v41 = vsel %vm485_vm0, 0.0, %v12335_v34  ;;  %v9928_v49 = vpack.c.bf16 %v12335_v34, %v12326_v17 }
 0x539   : > { %v10554_v48 = vpop.permute.xlu1 %10553  ;;  %v12349_v33 = vpack.i.bf16 %v4476_v41, %v4475_v19  ;;  %v9926_v46 = vpack.c.bf16 %v12343_v14, %v12330_v44  ;;  %v10582_v1 = vpack.i.bf16 %v12343_v14, %v4476_v41  ;;  %v4457_v45 = vpop.permute.xlu0 %4456 }
 0x53a   : > { %v10556_v15 = vunpack.i.h.bf16 %v10554_v48  ;;  %v10555_v39 = vunpack.i.l.bf16 %v10554_v48  ;;  %v12376_v22 = vsel %vm485_vm0, %v12337_v57, %v4457_v45 }
 0x53c   : > { %v4463_v53 = vsel %vm485_vm0, %v10551_v42, %v10556_v15  ;;  %v4461_v54 = vsel %vm485_vm0, %v10546_v10, %v10555_v39 }
 0x53d   : > { %v4479_v51 = vsel %vm4478_vm1, %v4461_v54, 0.0  ;;  %v4480_v31 = vsel %vm4478_vm1, %v4463_v53, 0.0  ;;  %v4459_v8 = vpop.permute.xlu0 %4458  ;;  %v4486_v38 = vpop.permute.xlu1 %4485 }
 0x53e   : > { %v12358_v6 = vpack.i.bf16 %v4479_v51, %v12330_v44  ;;  %v12365_v26 = vpack.i.bf16 %v4480_v31, %v12343_v14  ;;  %v4465_v21 = vsel %vm485_vm0, %v4457_v45, %v4459_v8 }
 0x53f   : > { %v4481_v20 = vsel %vm4478_vm1, %v4465_v21, 0.0  ;;  %vm13568_vm1 = vmmov %vm13566_vm5 }
 0x540   : > { %10573 = vrot.lane.b32.xlu1 %v12358_v6, %s13557_s14  ;;  %10568 = vrot.lane.b32.xlu0 %v12358_v6, %s13558_s21 }
 0x541   : > { %v12450_v24 = vpop.permute.xlu0 %4487  ;;  %v12465_v63 = vpop.permute.xlu1 %4489 }
 0x544   : > { %10578 = vrot.lane.b32.xlu1 %v12349_v33, %s13558_s21  ;;  %10583 = vrot.lane.b32.xlu0 %v10582_v1, %s13526_s11 }
 0x545   : > { %v12460_v4 = vpop.permute.xlu0 %4604  ;;  %v12472_v52 = vpop.permute.xlu1 %4606 }
 0x548   : > { %10588 = vrot.lane.b32.xlu1 %v10582_v1, %s13556_s29  ;;  %10598 = vrot.lane.b32.xlu0 %v12365_v26, %s13557_s14 }
 0x549   : > { %v12467_v5 = vpop.permute.xlu0 %4608  ;;  %v12482_v47 = vpop.permute.xlu1 %4699 }
 0x54c   : > { %10593 = vrot.lane.b32.xlu1 %v12365_v26, %s13558_s21  ;;  %4504 = vrot.lane.b32.xlu0 %v12376_v22, %s13526_s11 }
 0x54d   : > { %v12477_v23 = vpop.permute.xlu0 %4701  ;;  %v12488_v37 = vpop.permute.xlu1 %4823 }
 0x550   : > { %4502 = vrot.lane.b32.xlu1 %v12384_v2, %s13526_s11  ;;  %10603 = vrot.lane.b32.xlu0 %v12349_v33, %s13557_s14  ;;  %s13562_s11 = smov 92  }
 0x551   : > { %v12484_v13 = vpop.permute.xlu0 %4703 }
 0x554   : > { %4713 = vrot.lane.b32.xlu1 %v12384_v2, %s13556_s29  ;;  %4973 = vrot.lane.b32.xlu0 %v12384_v2, %s13557_s14 }
 0x555   : > { %v12490_v11 = vpop.permute.xlu0 %4821 }
 0x558   : > { %4842 = vrot.lane.b32.xlu1 %v12384_v2, %s13558_s21  ;;  %10608 = vrot.lane.b32.xlu0 %v12358_v6, %s13559_s25 }
 0x55c   : > { %4825 = vrot.lane.b32.xlu1 %v12304_v29, %s13522_s28  ;;  %4957 = vrot.lane.b32.xlu0 %v12297_v0, %s13560_s23 }
 0x560   : > { %4955 = vrot.lane.b32.xlu1 %v12290_v16, %s13560_s23  ;;  %4959 = vrot.lane.b32.xlu0 %v12304_v29, %s13560_s23 }
 0x564   : > { %10613 = vrot.lane.b32.xlu1 %v12365_v26, %s13559_s25  ;;  %4715 = vrot.lane.b32.xlu0 %v12376_v22, %s13556_s29 }
 0x568   : > { %10618 = vrot.lane.b32.xlu1 %v12349_v33, %s13559_s25  ;;  %5089 = vrot.lane.b32.xlu0 %v12290_v16, %s13561_s20 }
 0x56c   : > { %5116 = vrot.lane.b32.xlu1 %v12384_v2, %s13559_s25  ;;  %4975 = vrot.lane.b32.xlu0 %v12376_v22, %s13557_s14 }
 0x570   : > { %5091 = vrot.lane.b32.xlu1 %v4428_v27, %s13561_s20  ;;  %4846 = vrot.lane.b32.xlu0 %v4481_v20, %s13558_s21 }
 0x574   : > { %4844 = vrot.lane.b32.xlu1 %v12376_v22, %s13558_s21  ;;  %5093 = vrot.lane.b32.xlu0 %v12297_v0, %s13561_s20 }
 0x578   : > { %5118 = vrot.lane.b32.xlu1 %v12376_v22, %s13559_s25  ;;  %10623 = vrot.lane.b32.xlu0 %v12358_v6, %s13562_s11 }
 0x57c   : > { %5095 = vrot.lane.b32.xlu1 %v4430_v18, %s13561_s20  ;;  %10633 = vrot.lane.b32.xlu0 %v12349_v33, %s13562_s11 }
 0x580   : > { %4977 = vrot.lane.b32.xlu1 %v4481_v20, %s13557_s14  ;;  %5099 = vrot.lane.b32.xlu0 %v4432_v55, %s13561_s20 }
 0x584   : > { %10628 = vrot.lane.b32.xlu1 %v12365_v26, %s13562_s11  ;;  %5229 = vrot.lane.b32.xlu0 %v4428_v27, %s13547_s22 }
 0x588   : > { %5097 = vrot.lane.b32.xlu1 %v12304_v29, %s13561_s20  ;;  %5120 = vrot.lane.b32.xlu0 %v4481_v20, %s13559_s25 }
 0x58c   : > { %5249 = vrot.lane.b32.xlu1 %v12376_v22, %s13562_s11  ;;  %10643 = vrot.lane.b32.xlu0 %v12365_v26, %s13548_s12 }
 0x590   : > { %5247 = vrot.lane.b32.xlu1 %v12384_v2, %s13562_s11  ;;  %10648 = vrot.lane.b32.xlu0 %v12349_v33, %s13548_s12 }
 0x594   : > { %10638 = vrot.lane.b32.xlu1 %v12358_v6, %s13548_s12  ;;  %5251 = vrot.lane.b32.xlu0 %v4481_v20, %s13562_s11 }
 0x598   : > { %5231 = vrot.lane.b32.xlu1 %v4430_v18, %s13547_s22  ;;  %5380 = vrot.lane.b32.xlu0 %v12376_v22, %s13548_s12 }
 0x59c   : > { %5233 = vrot.lane.b32.xlu1 %v4432_v55, %s13547_s22  ;;  %5378 = vrot.lane.b32.xlu0 %v12384_v2, %s13548_s12 }
 0x5a0   : > { %5360 = vrot.lane.b32.xlu1 %v4428_v27, %s13563_s30  ;;  %10653 = vrot.lane.b32.xlu0 %v12358_v6, %s13549_s27 }
 0x5a4   : > { %5382 = vrot.lane.b32.xlu1 %v4481_v20, %s13548_s12  ;;  %5362 = vrot.lane.b32.xlu0 %v4430_v18, %s13563_s30 }
 0x5a8   : > { %10658 = vrot.lane.b32.xlu1 %v12365_v26, %s13549_s27  ;;  %5364 = vrot.lane.b32.xlu0 %v4432_v55, %s13563_s30  ;;  %v10559_v30 = vpop.permute.xlu1 %10558  ;;  %v12498_v10 = vpop.permute.xlu0 %10563 }
 0x5a9   : > { %v10561_v35 = vunpack.i.h.bf16 %v10559_v30  ;;  %v10560_v42 = vunpack.i.l.bf16 %v10559_v30 }
 0x5ab   : > { %v4506_v39 = vsel %vm510_vm2, %v10560_v42, %v10561_v35 }
 0x5ac   : > { %10663 = vrot.lane.b32.xlu1 %v12349_v33, %s13549_s27  ;;  %5513 = vrot.lane.b32.xlu0 %v4481_v20, %s13549_s27 }
 0x5b0   : > { %5511 = vrot.lane.b32.xlu1 %v12376_v22, %s13549_s27  ;;  %5491 = vrot.lane.b32.xlu0 %v4428_v27, %s13564_s26 }
 0x5b2   : > { %v12503_v19 = vpop.permute.xlu1 %10573  ;;  %v12505_v40 = vpop.permute.xlu0 %10568 }
 0x5b3   : > { %v10571_v8 = vunpack.i.h.bf16 %v12505_v40  ;;  %v10570_v21 = vunpack.i.l.bf16 %v12505_v40 }
 0x5b4   : > { %5509 = vrot.lane.b32.xlu1 %v12384_v2, %s13549_s27  ;;  %5495 = vrot.lane.b32.xlu0 %v4432_v55, %s13564_s26 }
 0x5b6   : > { %v12510_v41 = vpop.permute.xlu1 %10578  ;;  %v10584_v48 = vpop.permute.xlu0 %10583 }
 0x5b7   : > { %v10586_v33 = vunpack.i.h.bf16 %v10584_v48  ;;  %v10585_v15 = vunpack.i.l.bf16 %v10584_v48 }
 0x5b8   : > { %5493 = vrot.lane.b32.xlu1 %v4430_v18, %s13564_s26  ;;  %5627 = vperm.xlu0 %10405, %v12297_v0  }
 0x5b9   : > { %v4507_v53 = vsel %vm510_vm2, %v10585_v15, %v10586_v33  ;;  %v9922_v54 = vpack.c.bf16 %v10586_v33, %v10561_v35 }
 0x5ba   : > { %v10589_v51 = vpop.permute.xlu1 %10588  ;;  %v12516_v31 = vpop.permute.xlu0 %10598  ;;  %v9924_v6 = vpack.c.bf16 %v4507_v53, %v4506_v39  ;;  %v10576_v39 = vunpack.i.h.bf16 %v12503_v19  ;;  %v10575_v53 = vunpack.i.l.bf16 %v12503_v19 }
 0x5bb   : > { %9923 = vmatprep.subr.bf16.mxu0 %v9922_v54 }
 0x5bc   : > { %5623 = vperm.xlu1 %10406, %v12290_v16   ;;  %5658 = vrot.lane.b32.xlu0 %v12243_v62, %s13558_s21  ;;  %v10591_v62 = vunpack.i.h.bf16 %v10589_v51  ;;  %v4980_v19 = vsel %vm1281_vm8, %v10575_v53, %v10576_v39 }
 0x5bd   : > { %9925 = vmatpush1.bf16.msra.mxu0 %v9924_v6 }
 0x5be   : > { %v12521_v26 = vpop.permute.xlu1 %10593  ;;  %v4505_v1 = vpop.permute.xlu0 %4504 }
 0x5bf   : > { %4525 = vmatprep.subr.mxu0 %v4505_v1 }
 0x5c0   : > { %5631 = vperm.xlu1 %10406, %v12304_v29   ;;  %5662 = vrot.lane.b32.xlu0 %v12275_v25, %s13558_s21 }
 0x5c2   : > { %v4503_v0 = vpop.permute.xlu1 %4502  ;;  %v12526_v45 = vpop.permute.xlu0 %10603 }
 0x5c3   : > { %v4508_v2 = vsel %vm510_vm2, %v4503_v0, %v4505_v1  ;;  %v10606_v48 = vunpack.i.h.bf16 %v12526_v45  ;;  %v10605_v33 = vunpack.i.l.bf16 %v12526_v45 }
 0x5c4   : > { %5660 = vrot.lane.b32.xlu1 %v12245_v28, %s13558_s21  ;;  %5666 = vrot.lane.b32.xlu0 %v12259_v58, %s13558_s21  ;;  %v10566_v28 = vunpack.i.h.bf16 %v12498_v10  ;;  %v10590_v58 = vunpack.i.l.bf16 %v10589_v51 }
 0x5c5   : > { %4526 = vmatpush1.msra.mxu0 %v4508_v2  ;;  %v4979_v51 = vsel %vm1281_vm8, %v10605_v33, %v10575_v53 }
 0x5c6   : > { %9408 = vmatmul.mubr.msk.f32.vlgmr.msra.gmra.mrb[12].mxu0 %vm2440_vm3, %v4486_v38  ;;  %9927 = vmatprep.subr.bf16.mxu0 %v9926_v46  ;;  %v4714_v25 = vpop.permute.xlu1 %4713  ;;  %v12537_v16 = vpop.permute.xlu0 %4973  ;;  %v9931_v44 = vpack.c.bf16 %v10591_v62, %v10566_v28  ;;  %v4718_v34 = vsel %vm883_vm6, %v10590_v58, %v10591_v62  ;;  %v10596_v46 = vunpack.i.h.bf16 %v12521_v26 }
 0x5c7   : > { %9930 = vmatpush1.bf16.msk.msra.mxu0 %vm11867_vm14, %v9928_v49  ;;  %4591 = vmatprep.mubr.f32.mxu0 %v10981_v3 }
 0x5c8   : > { %4620 = vmatprep.subr.mxu0 %v12376_v22  ;;  %5664 = vrot.lane.b32.xlu1 %v12254_v9, %s13558_s21  ;;  %v10565_v9 = vunpack.i.l.bf16 %v12498_v10 }
 0x5c9   : > { %5694 = vrot.lane.b32.xlu0 %v11524_v12, %s13562_s11 }
 0x5ca   : > { %9409 = vmatmul.mubr.msk.f32.gmra.mrb[14].mxu0 %vm2440_vm3, %v12450_v24  ;;  %v12553_v29 = vpop.permute.xlu1 %4842  ;;  %v12555_v17 = vpop.permute.xlu0 %10608  ;;  %v4849_v24 = vsel %vm1082_vm7, %v10570_v21, %v10571_v8 }
 0x5cb   : > { %9416 = vmatpush1.msk.msra.mxu0 %vm11850_vm4, %v12337_v57  ;;  %4597 = vmatprep.mubr.f32.mxu0 %v10981_v3  ;;  %v4717_v57 = vsel %vm883_vm6, %v10565_v9, %v10566_v28  ;;  %v10611_v9 = vunpack.i.h.bf16 %v12555_v17 }
 0x5cc   : > { %9932 = vmatprep.subr.bf16.mxu0 %v9931_v44  ;;  %5668 = vrot.lane.b32.xlu1 %v12269_v36, %s13558_s21  ;;  %v10595_v36 = vunpack.i.l.bf16 %v12521_v26  ;;  %v9933_v22 = vpack.c.bf16 %v4718_v34, %v4717_v57  ;;  %v10610_v34 = vunpack.i.l.bf16 %v12555_v17 }
 0x5cd   : > { %5698 = vrot.lane.b32.xlu0 %v11522_v60, %s13562_s11 }
 0x5ce   : > { %9410 = vmatmul.mubr.msk.f32.gmra.mrb[16].mxu0 %vm2440_vm3, %v12465_v63  ;;  %v12569_v14 = vpop.permute.xlu1 %4825  ;;  %v12571_v49 = vpop.permute.xlu0 %4957  ;;  %v10581_v63 = vunpack.i.h.bf16 %v12510_v41 }
 0x5cf   : > { %4680 = vmatprep.mubr.f32.mxu0 %v10981_v3 }
 0x5d0   : > { %5696 = vrot.lane.b32.xlu1 %v11520_v59, %s13562_s11 }
 0x5d1   : > { %5672 = vrot.lane.b32.xlu0 %v12277_v7, %s13558_s21  ;;  %v4851_v7 = vsel %vm1082_vm7, %v10595_v36, %v10596_v46 }
 0x5d2   : > { %9417 = vmatmul.mubr.msk.f32.vlgmr.msra.gmra.mrb[12].mxu0 %vm2440_vm3, %v12460_v4  ;;  %v12585_v27 = vpop.permute.xlu1 %4955  ;;  %v12587_v20 = vpop.permute.xlu0 %4959  ;;  %v9935_v4 = vpack.c.bf16 %v4851_v7, %v4849_v24 }
 0x5d3   : > { %9934 = vmatpush1.bf16.msra.mxu0 %v9933_v22  ;;  %4686 = vmatprep.mubr.f32.mxu0 %v10981_v3 }
 0x5d4   : > { %5670 = vrot.lane.b32.xlu1 %v12266_v50, %s13558_s21  ;;  %v10580_v50 = vunpack.i.l.bf16 %v12510_v41  ;;  %v10601_v41 = vunpack.i.h.bf16 %v12516_v31 }
 0x5d6   : > { %9418 = vmatmul.mubr.msk.f32.gmra.mrb[14].mxu0 %vm2440_vm3, %v12472_v52  ;;  %v12595_v18 = vpop.permute.xlu1 %10613  ;;  %v4716_v55 = vpop.permute.xlu0 %4715  ;;  %v4850_v52 = vsel %vm1082_vm7, %v10581_v63, %v10595_v36  ;;  %v4848_v40 = vsel %vm1082_vm7, %v10580_v50, %v10570_v21 }
 0x5d7   : > { %4736 = vmatprep.subr.mxu0 %v4716_v55  ;;  %4692 = vmatprep.mubr.f32.mxu0 %v10981_v3  ;;  %v4719_v38 = vsel %vm883_vm6, %v4714_v25, %v4716_v55  ;;  %v9937_v35 = vpack.c.bf16 %v4850_v52, %v4848_v40  ;;  %v10615_v25 = vunpack.i.l.bf16 %v12595_v18 }
 0x5d8   : > { %5674 = vrot.lane.b32.xlu1 %v12285_v56, %s13558_s21  ;;  %4737 = vmatpush1.msra.mxu0 %v4719_v38 }
 0x5d9   : > { %9936 = vmatprep.subr.bf16.mxu0 %v9935_v4 }
 0x5da   : > { %9419 = vmatmul.mubr.msk.f32.gmra.mrb[16].mxu0 %vm2440_vm3, %v12467_v5  ;;  %v10619_v30 = vpop.permute.xlu1 %10618  ;;  %v12607_v10 = vpop.permute.xlu0 %5089  ;;  %v10600_v5 = vunpack.i.l.bf16 %v12516_v31 }
 0x5db   : > { %4796 = vmatprep.mubr.f32.mxu0 %v10981_v3  ;;  %v10621_v28 = vunpack.i.h.bf16 %v10619_v30  ;;  %v10620_v58 = vunpack.i.l.bf16 %v10619_v30 }
 0x5dc   : > { %v4982_v54 = vsel %vm1281_vm8, %v10600_v5, %v10601_v41  ;;  %v4981_v31 = vsel %vm1281_vm8, %v10606_v48, %v10600_v5 }
 0x5dd   : > { %v9939_v0 = vpack.c.bf16 %v4982_v54, %v4980_v19  ;;  %v9941_v45 = vpack.c.bf16 %v4981_v31, %v4979_v51  ;;  %v5122_v57 = vsel %vm1480_vm9, %v10620_v58, %v10610_v34  ;;  %v5124_v46 = vsel %vm1480_vm9, %v10621_v28, %v10615_v25 }
 0x5de   : > { %9420 = vmatmul.mubr.msk.f32.vlgmr.msra.gmra.mrb[12].mxu0 %vm2440_vm3, %v12482_v47  ;;  %v12613_v42 = vpop.permute.xlu1 %5116  ;;  %v4976_v56 = vpop.permute.xlu0 %4975  ;;  %v9945_v7 = vpack.c.bf16 %v5124_v46, %v5122_v57 }
 0x5df   : > { %9938 = vmatpush1.bf16.msra.mxu0 %v9937_v35  ;;  %4802 = vmatprep.mubr.f32.mxu0 %v10981_v3  ;;  %v4983_v17 = vsel %vm1281_vm8, %v12537_v16, %v4976_v56 }
 0x5e2   : > { %9421 = vmatmul.mubr.msk.f32.gmra.mrb[14].mxu0 %vm2440_vm3, %v12477_v23  ;;  %v12622_v15 = vpop.permute.xlu1 %5091  ;;  %v4847_v47 = vpop.permute.xlu0 %4846 }
 0x5e3   : > { %4808 = vmatprep.mubr.f32.mxu0 %v10981_v3  ;;  %v5101_v33 = vsel %vm3451_vm15, %v12607_v10, %v12622_v15 }
 0x5e6   : > { %9422 = vmatmul.mubr.msk.f32.gmra.mrb[16].mxu0 %vm2440_vm3, %v12484_v13  ;;  %v4845_v6 = vpop.permute.xlu1 %4844  ;;  %v12632_v23 = vpop.permute.xlu0 %5093  ;;  %v10616_v13 = vunpack.i.h.bf16 %v12595_v18 }
 0x5e7   : > { %v4853_v26 = vsel %vm1082_vm7, %v4845_v6, %v4847_v47  ;;  %v4852_v1 = vsel %vm1082_vm7, %v12553_v29, %v4845_v6  ;;  %4930 = vmatprep.mubr.f32.mxu0 %v10981_v3 }
 0x5e8   : > { %4870 = vmatprep.subr.mxu0 %v4853_v26 }
 0x5e9   : > { %4871 = vmatpush1.msra.mxu0 %v4852_v1 }
 0x5ea   : > { %v5119_v2 = vpop.permute.xlu1 %5118  ;;  %v10624_v62 = vpop.permute.xlu0 %10623  ;;  %9423 = vmatmul.mubr.msk.f32.vlgmr.msra.gmra.mrb[12].mxu0 %vm2440_vm3, %v12490_v11  ;;  %9940 = vmatprep.subr.bf16.mxu0 %v9939_v0  ;;  %v5125_v11 = vsel %vm1480_vm9, %v10615_v25, %v10616_v13 }
 0x5eb   : > { %9942 = vmatpush1.bf16.msra.mxu0 %v9941_v45  ;;  %4936 = vmatprep.mubr.f32.mxu0 %v10981_v3  ;;  %v10625_v24 = vunpack.i.l.bf16 %v10624_v62  ;;  %v5126_v35 = vsel %vm1480_vm9, %v12613_v42, %v5119_v2 }
 0x5ee   : > { %v5096_v29 = vpop.permute.xlu1 %5095  ;;  %v10634_v44 = vpop.permute.xlu0 %10633  ;;  %9424 = vmatmul.mubr.msk.f32.gmra.mrb[14].mxu0 %vm2440_vm3, %v12488_v37  ;;  %v5123_v37 = vsel %vm1480_vm9, %v10610_v34, %v10611_v9 }
 0x5ef   : > { %4942 = vmatprep.mubr.f32.mxu0 %v10981_v3  ;;  %v9943_v21 = vpack.c.bf16 %v5125_v11, %v5123_v37  ;;  %v10636_v30 = vunpack.i.h.bf16 %v10634_v44  ;;  %v10635_v40 = vunpack.i.l.bf16 %v10634_v44 }
 0x5f2   : > { %v4978_v36 = vpop.permute.xlu1 %4977  ;;  %v5100_v22 = vpop.permute.xlu0 %5099  ;;  %9425 = vmatmul.mubr.msk.f32.gmra.mrb[16].mxu0 %vm2440_vm3, %v12569_v14  ;;  %v10626_v14 = vunpack.i.h.bf16 %v10624_v62 }
 0x5f3   : > { %v4984_v8 = vsel %vm1281_vm8, %v4976_v56, %v4978_v36  ;;  %5061 = vmatprep.mubr.f32.mxu0 %v10981_v3 }
 0x5f4   : > { %5001 = vmatprep.subr.mxu0 %v4984_v8 }
 0x5f5   : > { %5002 = vmatpush1.msra.mxu0 %v4983_v17 }
 0x5f6   : > { %v10629_v18 = vpop.permute.xlu1 %10628  ;;  %v12659_v55 = vpop.permute.xlu0 %5229  ;;  %9426 = vmatmul.mubr.msk.f32.vlgmr.msra.gmra.mrb[12].mxu0 %vm2440_vm3, %v12585_v27  ;;  %9944 = vmatprep.subr.bf16.mxu0 %v9943_v21  ;;  %v5254_v27 = vsel %vm1679_vm10, %v10625_v24, %v10626_v14 }
 0x5f7   : > { %v10631_v38 = vunpack.i.h.bf16 %v10629_v18  ;;  %v10630_v4 = vunpack.i.l.bf16 %v10629_v18  ;;  %9946 = vmatpush1.bf16.msra.mxu0 %v9945_v7  ;;  %5067 = vmatprep.mubr.f32.mxu0 %v10981_v3 }
 0x5f9   : > { %v5256_v63 = vsel %vm1679_vm10, %v10630_v4, %v10631_v38  ;;  %v5255_v41 = vsel %vm1679_vm10, %v10636_v30, %v10630_v4 }
 0x5fa   : > { %v5098_v16 = vpop.permute.xlu1 %5097  ;;  %v5121_v50 = vpop.permute.xlu0 %5120  ;;  %9427 = vmatmul.mubr.msk.f32.gmra.mrb[14].mxu0 %vm2440_vm3, %v12571_v49  ;;  %v9947_v56 = vpack.c.bf16 %v5256_v63, %v5254_v27  ;;  %v5253_v49 = vsel %vm1679_vm10, %v10635_v40, %v10625_v24 }
 0x5fb   : > { %v5127_v52 = vsel %vm1480_vm9, %v5119_v2, %v5121_v50  ;;  %5073 = vmatprep.mubr.f32.mxu0 %v10981_v3  ;;  %v9949_v47 = vpack.c.bf16 %v5255_v41, %v5253_v49  ;;  %v5103_v0 = vsel %vm3451_vm15, %v5098_v16, %v5100_v22 }
 0x5fc   : > { %5144 = vmatprep.subr.mxu0 %v5127_v52 }
 0x5fd   : > { %5145 = vmatpush1.msra.mxu0 %v5126_v35 }
 0x5fe   : > { %v5250_v5 = vpop.permute.xlu1 %5249  ;;  %v10644_v48 = vpop.permute.xlu0 %10643  ;;  %9428 = vmatmul.mubr.msk.f32.gmra.mrb[16].mxu0 %vm2440_vm3, %v12587_v20  ;;  %9948 = vmatprep.subr.bf16.mxu0 %v9947_v56  ;;  %v5102_v20 = vsel %vm3451_vm15, %v12632_v23, %v5096_v29 }
 0x5ff   : > { %5204 = vmatprep.mubr.f32.mxu0 %v10981_v3  ;;  %v10646_v53 = vunpack.i.h.bf16 %v10644_v48  ;;  %v10645_v54 = vunpack.i.l.bf16 %v10644_v48 }
 0x601   : > { %v5387_v45 = vsel %vm13532_vm11, %v10645_v54, %v10646_v53 }
 0x602   : > { %v5248_v42 = vpop.permute.xlu1 %5247  ;;  %v10649_v39 = vpop.permute.xlu0 %10648  ;;  %9429 = vmatmul.mubr.msk.f32.vlgmr.msra.gmra.mrb[12].mxu0 %vm2440_vm3, %v5101_v33 }
 0x603   : > { %9950 = vmatpush1.bf16.msra.mxu0 %v9949_v47  ;;  %5210 = vmatprep.mubr.f32.mxu0 %v10981_v3  ;;  %v5257_v15 = vsel %vm1679_vm10, %v5248_v42, %v5250_v5  ;;  %v10651_v1 = vunpack.i.h.bf16 %v10649_v39  ;;  %v10650_v19 = vunpack.i.l.bf16 %v10649_v39 }
 0x605   : > { %v5386_v28 = vsel %vm13532_vm11, %v10651_v1, %v10645_v54 }
 0x606   : > { %v10639_v51 = vpop.permute.xlu1 %10638  ;;  %v5252_v31 = vpop.permute.xlu0 %5251  ;;  %9430 = vmatmul.mubr.msk.f32.gmra.mrb[14].mxu0 %vm2440_vm3, %v5102_v20 }
 0x607   : > { %v10641_v6 = vunpack.i.h.bf16 %v10639_v51  ;;  %v10640_v26 = vunpack.i.l.bf16 %v10639_v51  ;;  %v5258_v10 = vsel %vm1679_vm10, %v5250_v5, %v5252_v31  ;;  %5216 = vmatprep.mubr.f32.mxu0 %v10981_v3 }
 0x608   : > { %5275 = vmatprep.subr.mxu0 %v5258_v10 }
 0x609   : > { %5276 = vmatpush1.msra.mxu0 %v5257_v15  ;;  %v5385_v23 = vsel %vm13532_vm11, %v10640_v26, %v10641_v6  ;;  %v5384_v2 = vsel %vm13532_vm11, %v10650_v19, %v10640_v26 }
 0x60a   : > { %v5232_v62 = vpop.permute.xlu1 %5231  ;;  %v5381_v13 = vpop.permute.xlu0 %5380  ;;  %9431 = vmatmul.mubr.msk.f32.gmra.mrb[16].mxu0 %vm2440_vm3, %v5103_v0  ;;  %v9951_v25 = vpack.c.bf16 %v5387_v45, %v5385_v23  ;;  %v9953_v58 = vpack.c.bf16 %v5386_v28, %v5384_v2 }
 0x60b   : > { %5335 = vmatprep.mubr.f32.mxu0 %v10981_v3 }
 0x60c   : > { %9952 = vmatprep.subr.bf16.mxu0 %v9951_v25 }
 0x60e   : > { %v5234_v29 = vpop.permute.xlu1 %5233  ;;  %v5379_v44 = vpop.permute.xlu0 %5378  ;;  %9432 = vmatmul.mubr.msk.f32.vlgmr.msra.gmra.mrb[12].mxu0 %vm2440_vm3, %v12659_v55 }
 0x60f   : > { %9954 = vmatpush1.bf16.msra.mxu0 %v9953_v58  ;;  %5341 = vmatprep.mubr.f32.mxu0 %v10981_v3  ;;  %v5388_v36 = vsel %vm13532_vm11, %v5379_v44, %v5381_v13 }
 0x612   : > { %v5361_v9 = vpop.permute.xlu1 %5360  ;;  %v10654_v34 = vpop.permute.xlu0 %10653  ;;  %9433 = vmatmul.mubr.msk.f32.gmra.mrb[14].mxu0 %vm2440_vm3, %v5232_v62 }
 0x613   : > { %5347 = vmatprep.mubr.f32.mxu0 %v10981_v3  ;;  %v10656_v22 = vunpack.i.h.bf16 %v10654_v34  ;;  %v10655_v8 = vunpack.i.l.bf16 %v10654_v34 }
 0x615   : > { %v5516_v18 = vsel %vm13565_vm12, %v10655_v8, %v10656_v22  ;;  %vm13569_vm12 = vmmov %vm13568_vm1 }
 0x616   : > { %v5383_v11 = vpop.permute.xlu1 %5382  ;;  %v5363_v57 = vpop.permute.xlu0 %5362  ;;  %9434 = vmatmul.mubr.msk.f32.gmra.mrb[16].mxu0 %vm2440_vm3, %v5234_v29 }
 0x617   : > { %v5389_v46 = vsel %vm13532_vm11, %v5381_v13, %v5383_v11  ;;  %5466 = vmatprep.mubr.f32.mxu0 %v10981_v3 }
 0x618   : > { %5406 = vmatprep.subr.mxu0 %v5389_v46 }
 0x619   : > { %5407 = vmatpush1.msra.mxu0 %v5388_v36 }
 0x61a   : > { %v10659_v37 = vpop.permute.xlu1 %10658  ;;  %9435 = vmatmul.mubr.msk.f32.vlgmr.msra.gmra.mrb[12].mxu0 %vm2440_vm3, %v5361_v9  ;;  %v5365_v7 = vpop.permute.xlu0 %5364 }
 0x61b   : > { %v10661_v17 = vunpack.i.h.bf16 %v10659_v37  ;;  %v10660_v21 = vunpack.i.l.bf16 %v10659_v37  ;;  %5472 = vmatprep.mubr.f32.mxu0 %v10981_v3 }
 0x61d   : > { %v5518_v55 = vsel %vm13566_vm5, %v10660_v21, %v10661_v17  ;;  %vm13570_vm5 = vmmov %vm13568_vm1 }
 0x61e   : > { %v10664_v14 = vpop.permute.xlu1 %10663  ;;  %9436 = vmatmul.mubr.msk.f32.gmra.mrb[14].mxu0 %vm2440_vm3, %v5363_v57  ;;  %v9955_v24 = vpack.c.bf16 %v5518_v55, %v5516_v18  ;;  %v5514_v50 = vpop.permute.xlu0 %5513 }
 0x61f   : > { %v10666_v38 = vunpack.i.h.bf16 %v10664_v14  ;;  %v10665_v4 = vunpack.i.l.bf16 %v10664_v14  ;;  %5478 = vmatprep.mubr.f32.mxu0 %v10981_v3 }
 0x620   : > { %9956 = vmatprep.subr.bf16.mxu0 %v9955_v24 }
 0x621   : > { %v5515_v63 = vsel %vm13567_vm13, %v10665_v4, %v10655_v8  ;;  %v5517_v16 = vsel %vm13568_vm1, %v10666_v38, %v10660_v21 }
 0x622   : > { %v5512_v52 = vpop.permute.xlu1 %5511  ;;  %9437 = vmatmul.mubr.msk.f32.gmra.mrb[16].mxu0 %vm2440_vm3, %v5365_v7  ;;  %v9957_v27 = vpack.c.bf16 %v5517_v16, %v5515_v63  ;;  %v5492_v35 = vpop.permute.xlu0 %5491 }
 0x623   : > { %v5520_v30 = vsel %vm13569_vm12, %v5512_v52, %v5514_v50  ;;  %5597 = vmatprep.mubr.f32.mxu0 %v10981_v3 }
 0x624   : > { %9958 = vmatpush1.bf16.msra.mxu0 %v9957_v27 }
 0x625   : > { %5537 = vmatprep.subr.mxu0 %v5520_v30 }
 0x626   : > { %v5510_v40 = vpop.permute.xlu1 %5509  ;;  %v5496_v5 = vpop.permute.xlu0 %5495 }
 0x627   : > { %v5519_v56 = vsel %vm13570_vm5, %v5510_v40, %v5512_v52 }
 0x628   : > { %5538 = vmatpush1.msra.mxu0 %v5519_v56 }
 0x629   : > { %9438 = vmatmul.mubr.msk.f32.vlgmr.msra.gmra.mrb[12].mxu0 %vm2440_vm3, %v5492_v35 }
 0x62a   : > { %v5494_v41 = vpop.permute.xlu1 %5493  ;;  %5603 = vmatprep.mubr.f32.mxu0 %v10981_v3 }
 0x62d   : > { %9439 = vmatmul.mubr.msk.f32.gmra.mrb[14].mxu0 %vm2440_vm3, %v5494_v41 }
 0x62e   : > { %5609 = vmatprep.mubr.f32.mxu0 %v10981_v3 }
 0x631   : > { %9440 = vmatmul.mubr.msk.f32.gmra.mrb[16].mxu0 %vm2440_vm3, %v5496_v5 }
 0x632   : > { %7062 = vmatprep.mubr.f32.mxu0 %v10981_v3 }
 0x637   : > { %v5628_v49 = vpop.permute.xlu0 %5627 }
 0x63b   : > { %v5624_v48 = vpop.permute.xlu1 %5623  ;;  %v5659_v47 = vpop.permute.xlu0 %5658 }
 0x63f   : > { %v5632_v33 = vpop.permute.xlu1 %5631  ;;  %v5663_v39 = vpop.permute.xlu0 %5662 }
 0x643   : > { %v5661_v42 = vpop.permute.xlu1 %5660  ;;  %v5667_v53 = vpop.permute.xlu0 %5666 }
 0x644   : > { %v5676_v45 = vsel %vm1082_vm7, %v5659_v47, %v5661_v42  ;;  %v5677_v2 = vsel %vm1082_vm7, %v5661_v42, %v5663_v39  ;;  %v12753_v42 = vld [vmem:[%s13572_s6] sm:$0xff]  ;;  %v12762_v39 = vld [vmem:[%s13572_s6 + $0x10] sm:$0xff] }
 0x647   : > { %v5665_v20 = vpop.permute.xlu1 %5664  ;;  %v5695_v51 = vpop.permute.xlu0 %5694 }
 0x648   : > { %v5678_v8 = vsel %vm1082_vm7, %v5665_v20, %v5667_v53  ;;  %v12767_v20 = vld [vmem:[%s13572_s6 + $0x20] sm:$0xff] }
 0x64b   : > { %v5669_v54 = vpop.permute.xlu1 %5668  ;;  %v5699_v19 = vpop.permute.xlu0 %5698 }
 0x64c   : > { %v5679_v18 = vsel %vm1082_vm7, %v5667_v53, %v5669_v54 }
 0x64f   : > { %v5697_v31 = vpop.permute.xlu1 %5696  ;;  %v5673_v50 = vpop.permute.xlu0 %5672 }
 0x650   : > { %v5701_v58 = vsel %vm1679_vm10, %v5697_v31, %v5699_v19  ;;  %v5700_v34 = vsel %vm1679_vm10, %v5695_v51, %v5697_v31 }
 0x653   : > { %v5671_v62 = vpop.permute.xlu1 %5670 }
 0x654   : > { %v5680_v30 = vsel %vm1082_vm7, %v5671_v62, %v5673_v50 }
 0x657   : > { %v5675_v38 = vpop.permute.xlu1 %5674 }
 0x658   : > { %v5681_v56 = vsel %vm1082_vm7, %v5673_v50, %v5675_v38 }
 0x6fc   : > { %v5599_v6 = vpop.f32.mrb[12].mxu0 }
 0x6fd   : > { %v5634_v26 = vadd.f32 %v5624_v48, %v5599_v6  ;;  %v5601_v10 = vpop.f32.mrb[13].mxu0 }
 0x6fe   : > { %v5635_v15 = vadd.f32 %v5624_v48, %v5601_v10 }
 0x6ff   : > { %vm5640_vm13 = vcmp.ge.f32.partialorder %v5634_v26, 0.0  ;;  %v5646_v1 = vmul.f32 0.2, %v5634_v26 }
 0x700   : > { %vm5641_vm1 = vcmp.ge.f32.partialorder %v5635_v15, 0.0  ;;  %v5647_v0 = vmul.f32 0.2, %v5635_v15  ;;  %v5605_v23 = vpop.f32.mrb[14].mxu0 }
 0x701   : > { %v5652_v13 = vsel %vm5640_vm13, %v5634_v26, %v5646_v1  ;;  %v5636_v25 = vadd.f32 %v5628_v49, %v5605_v23  ;;  %v5607_v28 = vpop.f32.mrb[15].mxu0 }
 0x702   : > { %v5688_v29 = vadd.f32 %v5676_v45, %v5652_v13  ;;  %v5653_v44 = vsel %vm5641_vm1, %v5635_v15, %v5647_v0  ;;  %v5637_v9 = vadd.f32 %v5628_v49, %v5607_v28 }
 0x703   : > { %v5689_v11 = vadd.f32 %v5677_v2, %v5653_v44  ;;  %vm5642_vm12 = vcmp.ge.f32.partialorder %v5636_v25, 0.0  ;;  %v5648_v57 = vmul.f32 0.2, %v5636_v25 }
 0x704   : > { %v12726_v46 = vmul.f32 %v5700_v34, %v5688_v29  ;;  %vm5643_vm5 = vcmp.ge.f32.partialorder %v5637_v9, 0.0  ;;  %v5649_v36 = vmul.f32 0.2, %v5637_v9  ;;  %v5611_v22 = vpop.f32.mrb[16].mxu0 }
 0x705   : > { %v12729_v37 = vmul.f32 %v5701_v58, %v5689_v11  ;;  %v5654_v17 = vsel %vm5642_vm12, %v5636_v25, %v5648_v57  ;;  %v5638_v21 = vadd.f32 %v5632_v33, %v5611_v22  ;;  %v5613_v7 = vpop.f32.mrb[17].mxu0  ;;  %vm5746_vm12 = vcmask 1022976   ;;  %v5715_v11 = vld [vmem:[%s13572_s6 + $0x28] sm:$0xff] }
 0x706   : > { %v5690_v55 = vadd.f32 %v5678_v8, %v5654_v17  ;;  %v5655_v14 = vsel %vm5643_vm5, %v5637_v9, %v5649_v36  ;;  %v5639_v24 = vadd.f32 %v5632_v33, %v5613_v7  ;;  %v5711_v9 = vld [vmem:[%s13572_s6 + $0x8] sm:$0xff]  ;;  %vm9964_vm5 = vmpackc.low %vm5746_vm12, %vm5746_vm12 }
 0x707   : > { %v5691_v4 = vadd.f32 %v5679_v18, %v5655_v14  ;;  %vm5644_vm13 = vcmp.ge.f32.partialorder %v5638_v21, 0.0  ;;  %v5650_v63 = vmul.f32 0.2, %v5638_v21  ;;  %v10667_v16 = vpack.i.bf16 %v12729_v37, %v12726_v46 }
 0x708   : > { %v12734_v52 = vmul.f32 %v5700_v34, %v5690_v55  ;;  %vm5645_vm1 = vcmp.ge.f32.partialorder %v5639_v24, 0.0  ;;  %v5651_v27 = vmul.f32 0.2, %v5639_v24 }
 0x709   : > { %v12737_v40 = vmul.f32 %v5701_v58, %v5691_v4  ;;  %v5656_v35 = vsel %vm5644_vm13, %v5638_v21, %v5650_v63  ;;  %10668 = vrot.lane.b32.xlu0 %v10667_v16, %s13571_s13  ;;  %vm13577_vm13 = vcmask 736256  }
 0x70a   : > { %v5692_v41 = vadd.f32 %v5680_v30, %v5656_v35  ;;  %v5657_v5 = vsel %vm5645_vm1, %v5639_v24, %v5651_v27  ;;  %vm13578_vm1 = vmmov %vm13577_vm13 }
 0x70b   : > { %v5693_v48 = vadd.f32 %v5681_v56, %v5657_v5  ;;  %v10672_v49 = vpack.i.bf16 %v12737_v40, %v12734_v52 }
 0x70c   : > { %v12743_v33 = vmul.f32 %v5700_v34, %v5692_v41  ;;  %v5713_v34 = vld [vmem:[%s13572_s6 + $0x18] sm:$0xff]  ;;  %s11008_s6 = smov 56  }
 0x70d   : > { %10673 = vrot.lane.b32.xlu1 %v10672_v49, %s13571_s13  ;;  %v12748_v47 = vmul.f32 %v5701_v58, %v5693_v48 }
 0x70e   : > { %5730 = vrot.lane.b32.xlu0 %v12743_v33, %s13571_s13 }
 0x711   : > { %5732 = vrot.lane.b32.xlu1 %v12748_v47, %s13571_s13 }
 0x712   : > { %5753 = vrot.lane.b32.xlu0 %v12753_v42, %s13573_s2 }
 0x715   : > { %5755 = vrot.lane.b32.xlu1 %v12762_v39, %s13573_s2 }
 0x716   : > { %5757 = vrot.lane.b32.xlu0 %v12767_v20, %s13573_s2 }
 0x719   : > { %5875 = vrot.lane.b32.xlu1 %v12753_v42, %s13574_s0 }
 0x71a   : > { %5877 = vrot.lane.b32.xlu0 %v12762_v39, %s13574_s0 }
 0x77b   : > { %v10669_v53 = vpop.permute.xlu0 %10668 }
 0x77c   : > { %v10671_v54 = vunpack.i.h.bf16 %v10669_v53  ;;  %v12777_v51 = vunpack.i.l.bf16 %v10669_v53 }
 0x77e   : > { %v12781_v31 = vsel %vm485_vm0, %v12777_v51, %v10671_v54  ;;  %v5743_v6 = vsel %vm485_vm0, 0.0, %v12777_v51 }
 0x77f   : > { %v5747_v26 = vsel %vm5746_vm12, %v12781_v31, 0.0  ;;  %v10674_v10 = vpop.permute.xlu1 %10673 }
 0x780   : > { %v10676_v15 = vunpack.i.h.bf16 %v10674_v10  ;;  %v12787_v1 = vunpack.i.l.bf16 %v10674_v10  ;;  %v10677_v19 = vpack.i.bf16 %v5747_v26, %v5743_v6  ;;  %v12803_v28 = vpop.permute.xlu0 %5730 }
 0x781   : > { %v5745_v29 = vsel %vm485_vm0, 0.0, %v12803_v28 }
 0x782   : > { %v12791_v0 = vsel %vm485_vm0, %v12787_v1, %v10676_v15  ;;  %v5744_v23 = vsel %vm485_vm0, 0.0, %v12787_v1  ;;  %v9966_v45 = vpack.c.bf16 %v12787_v1, %v12777_v51  ;;  %10678 = vrot.lane.b32.xlu0 %v10677_v19, %s13574_s0  ;;  %10683 = vrot.lane.b32.xlu1 %v10677_v19, %s13556_s29 }
 0x783   : > { %v5748_v2 = vsel %vm5746_vm12, %v12791_v0, 0.0  ;;  %v5733_v62 = vpop.permute.xlu1 %5732  ;;  %v9963_v13 = vpack.c.bf16 %v12791_v0, %v12781_v31 }
 0x784   : > { %v10692_v25 = vpack.i.bf16 %v5748_v2, %v5744_v23  ;;  %v12807_v58 = vsel %vm485_vm0, %v12803_v28, %v5733_v62  ;;  %v5754_v57 = vpop.permute.xlu0 %5753 }
 0x785   : > { %v5749_v44 = vsel %vm5746_vm12, %v12807_v58, 0.0 }
 0x786   : > { %10693 = vrot.lane.b32.xlu0 %v10692_v25, %s13556_s29  ;;  %10688 = vrot.lane.b32.xlu1 %v10692_v25, %s13574_s0 }
 0x787   : > { %v5756_v22 = vpop.permute.xlu1 %5755 }
 0x788   : > { %v12885_v36 = vpop.permute.xlu0 %5757 }
 0x78a   : > { %5773 = vrot.lane.b32.xlu0 %v5745_v29, %s13574_s0  ;;  %5775 = vrot.lane.b32.xlu1 %v5749_v44, %s13574_s0 }
 0x78b   : > { %v5876_v17 = vpop.permute.xlu1 %5875 }
 0x78c   : > { %v12891_v8 = vpop.permute.xlu0 %5877 }
 0x78e   : > { %5984 = vrot.lane.b32.xlu0 %v5745_v29, %s13556_s29  ;;  %5879 = vrot.lane.b32.xlu1 %v12767_v20, %s13574_s0 }
 0x792   : > { %5970 = vrot.lane.b32.xlu0 %v12753_v42, %s13575_s3  ;;  %5972 = vrot.lane.b32.xlu1 %v12762_v39, %s13575_s3 }
 0x796   : > { %10698 = vrot.lane.b32.xlu0 %v10677_v19, %s13558_s21  ;;  %10703 = vrot.lane.b32.xlu1 %v10692_v25, %s13558_s21 }
 0x79a   : > { %5974 = vrot.lane.b32.xlu0 %v12767_v20, %s13575_s3  ;;  %6106 = vrot.lane.b32.xlu1 %v5745_v29, %s13558_s21 }
 0x79e   : > { %6094 = vrot.lane.b32.xlu0 %v12762_v39, %s13576_s4  ;;  %6092 = vrot.lane.b32.xlu1 %v12753_v42, %s13576_s4 }
 0x7a2   : > { %10713 = vrot.lane.b32.xlu0 %v10692_v25, %s13557_s14  ;;  %5986 = vrot.lane.b32.xlu1 %v5749_v44, %s13556_s29 }
 0x7a6   : > { %6228 = vrot.lane.b32.xlu0 %v5745_v29, %s13557_s14  ;;  %10708 = vrot.lane.b32.xlu1 %v10677_v19, %s13557_s14 }
 0x7aa   : > { %6214 = vrot.lane.b32.xlu0 %v12753_v42, %s13560_s23  ;;  %6096 = vrot.lane.b32.xlu1 %v12767_v20, %s13576_s4 }
 0x7ae   : > { %6108 = vrot.lane.b32.xlu0 %v5749_v44, %s13558_s21  ;;  %6216 = vrot.lane.b32.xlu1 %v12762_v39, %s13560_s23 }
 0x7b2   : > { %10718 = vrot.lane.b32.xlu0 %v10677_v19, %s13559_s25  ;;  %10723 = vrot.lane.b32.xlu1 %v10692_v25, %s13559_s25 }
 0x7b6   : > { %6218 = vrot.lane.b32.xlu0 %v12767_v20, %s13560_s23  ;;  %6362 = vrot.lane.b32.xlu1 %v5745_v29, %s13559_s25 }
 0x7ba   : > { %6341 = vrot.lane.b32.xlu0 %v5711_v9, %s13561_s20  ;;  %6230 = vrot.lane.b32.xlu1 %v5749_v44, %s13557_s14 }
 0x7be   : > { %6345 = vrot.lane.b32.xlu0 %v5713_v34, %s13561_s20  ;;  %6339 = vrot.lane.b32.xlu1 %v12753_v42, %s13561_s20 }
 0x7c2   : > { %10733 = vrot.lane.b32.xlu0 %v10692_v25, %s13562_s11  ;;  %6343 = vrot.lane.b32.xlu1 %v12762_v39, %s13561_s20 }
 0x7c6   : > { %6364 = vrot.lane.b32.xlu0 %v5749_v44, %s13559_s25  ;;  %10728 = vrot.lane.b32.xlu1 %v10677_v19, %s13562_s11 }
 0x7ca   : > { %6349 = vrot.lane.b32.xlu0 %v5715_v11, %s13561_s20  ;;  %6347 = vrot.lane.b32.xlu1 %v12767_v20, %s13561_s20 }
 0x7ce   : > { %6472 = vrot.lane.b32.xlu0 %v5713_v34, %s13547_s22  ;;  %6484 = vrot.lane.b32.xlu1 %v5745_v29, %s13562_s11 }
 0x7d2   : > { %6486 = vrot.lane.b32.xlu0 %v5749_v44, %s13562_s11  ;;  %6470 = vrot.lane.b32.xlu1 %v5711_v9, %s13547_s22 }
 0x7d6   : > { %10743 = vrot.lane.b32.xlu0 %v10692_v25, %s13548_s12  ;;  %10738 = vrot.lane.b32.xlu1 %v10677_v19, %s13548_s12 }
 0x7da   : > { %6606 = vrot.lane.b32.xlu0 %v5745_v29, %s13548_s12  ;;  %6474 = vrot.lane.b32.xlu1 %v5715_v11, %s13547_s22 }
 0x7de   : > { %6592 = vrot.lane.b32.xlu0 %v5711_v9, %s13563_s30  ;;  %6608 = vrot.lane.b32.xlu1 %v5749_v44, %s13548_s12 }
 0x7e2   : > { %10748 = vrot.lane.b32.xlu0 %v10677_v19, %s13549_s27  ;;  %6594 = vrot.lane.b32.xlu1 %v5713_v34, %s13563_s30 }
 0x7e6   : > { %6596 = vrot.lane.b32.xlu0 %v5715_v11, %s13563_s30  ;;  %10753 = vrot.lane.b32.xlu1 %v10692_v25, %s13549_s27 }
 0x7ea   : > { %6730 = vrot.lane.b32.xlu0 %v5749_v44, %s13549_s27  ;;  %6728 = vrot.lane.b32.xlu1 %v5745_v29, %s13549_s27 }
 0x7ee   : > { %6716 = vrot.lane.b32.xlu0 %v5713_v34, %s13564_s26  ;;  %6714 = vrot.lane.b32.xlu1 %v5711_v9, %s13564_s26 }
 0x7f2   : > { %6837 = vperm.xlu0 %10405, %v12753_v42   ;;  %6718 = vrot.lane.b32.xlu1 %v5715_v11, %s13564_s26 }
 0x7f4   : > { %v10679_v21 = vpop.permute.xlu0 %10678  ;;  %v10684_v7 = vpop.permute.xlu1 %10683 }
 0x7f5   : > { %v10681_v18 = vunpack.i.h.bf16 %v10679_v21  ;;  %v10680_v55 = vunpack.i.l.bf16 %v10679_v21  ;;  %v10686_v5 = vunpack.i.h.bf16 %v10684_v7 }
 0x7f6   : > { %6845 = vperm.xlu0 %10405, %v12767_v20   ;;  %6841 = vperm.xlu1 %10406, %v12762_v39   ;;  %v10685_v20 = vunpack.i.l.bf16 %v10684_v7 }
 0x7f7   : > { %v5777_v63 = vsel %vm510_vm2, %v10680_v55, %v10681_v18 }
 0x7f8   : > { %v10694_v14 = vpop.permute.xlu0 %10693  ;;  %v10689_v24 = vpop.permute.xlu1 %10688  ;;  %v5988_v54 = vsel %vm883_vm6, %v10685_v20, %v10686_v5 }
 0x7f9   : > { %v10691_v38 = vunpack.i.h.bf16 %v10689_v24  ;;  %v10690_v4 = vunpack.i.l.bf16 %v10689_v24  ;;  %v10696_v41 = vunpack.i.h.bf16 %v10694_v14  ;;  %v10695_v48 = vunpack.i.l.bf16 %v10694_v14 }
 0x7fa   : > { %6874 = vrot.lane.b32.xlu0 %v12729_v37, %s13558_s21  ;;  %6872 = vrot.lane.b32.xlu1 %v12726_v46, %s13558_s21 }
 0x7fb   : > { %v5778_v16 = vsel %vm510_vm2, %v10690_v4, %v10691_v38  ;;  %v9959_v50 = vpack.c.bf16 %v10691_v38, %v10681_v18  ;;  %v9969_v39 = vpack.c.bf16 %v10696_v41, %v10686_v5 }
 0x7fc   : > { %v5774_v27 = vpop.permute.xlu0 %5773  ;;  %v5776_v30 = vpop.permute.xlu1 %5775  ;;  %v9961_v35 = vpack.c.bf16 %v5778_v16, %v5777_v63 }
 0x7fd   : > { %9960 = vmatprep.subr.bf16.mxu1 %v9959_v50  ;;  %v5779_v46 = vsel %vm510_vm2, %v5774_v27, %v5776_v30 }
 0x7fe   : > { %6878 = vrot.lane.b32.xlu0 %v12737_v40, %s13558_s21  ;;  %6876 = vrot.lane.b32.xlu1 %v12734_v52, %s13558_s21 }
 0x7ff   : > { %9962 = vmatpush1.bf16.msra.mxu1 %v9961_v35 }
 0x800   : > { %5796 = vmatprep.subr.mxu1 %v5776_v30  ;;  %v5985_v37 = vpop.permute.xlu0 %5984  ;;  %v5880_v56 = vpop.permute.xlu1 %5879 }
 0x802   : > { %6901 = vrot.lane.b32.xlu0 %v11520_v59, %s11007_s18  ;;  %6899 = vrot.lane.b32.xlu1 %v11524_v12, %s11007_s18 }
 0x803   : > { %5797 = vmatpush1.msra.mxu1 %v5779_v46 }
 0x804   : > { %9441 = vmatmul.mubr.msk.f32.vlgmr.msra.gmra.mrb[114].mxu1 %vm2440_vm3, %v5754_v57  ;;  %9965 = vmatprep.subr.msk.bf16.mxu1 %vm9964_vm5, %v9963_v13  ;;  %v5971_v52 = vpop.permute.xlu0 %5970  ;;  %v5973_v40 = vpop.permute.xlu1 %5972 }
 0x805   : > { %9968 = vmatpush1.bf16.msk.msra.mxu1 %vm11867_vm14, %v9966_v45  ;;  %5862 = vmatprep.mubr.f32.mxu1 %v10981_v3 }
 0x806   : > { %9450 = vmatprep.subr.msk.mxu1 %vm5746_vm12, %v12807_v58  ;;  %6880 = vrot.lane.b32.xlu0 %v12743_v33, %s13558_s21  ;;  %v5989_v33 = vsel %vm883_vm6, %v10695_v48, %v10696_v41  ;;  %vm13579_vm12 = vmmov %vm13578_vm1 }
 0x807   : > { %6903 = vrot.lane.b32.xlu1 %v11522_v60, %s11007_s18  ;;  %v9971_v51 = vpack.c.bf16 %v5989_v33, %v5988_v54 }
 0x808   : > { %9442 = vmatmul.mubr.msk.f32.gmra.mrb[116].mxu1 %vm2440_vm3, %v5756_v22  ;;  %v10699_v49 = vpop.permute.xlu0 %10698  ;;  %v10704_v42 = vpop.permute.xlu1 %10703 }
 0x809   : > { %9452 = vmatpush1.msk.msra.mxu1 %vm11850_vm4, %v12803_v28  ;;  %5868 = vmatprep.mubr.f32.mxu1 %v10981_v3  ;;  %v10701_v26 = vunpack.i.h.bf16 %v10699_v49  ;;  %v10706_v10 = vunpack.i.h.bf16 %v10704_v42  ;;  %v10705_v15 = vunpack.i.l.bf16 %v10704_v42 }
 0x80a   : > { %9970 = vmatprep.subr.bf16.mxu1 %v9969_v39 }
 0x80b   : > { %6882 = vrot.lane.b32.xlu1 %v12748_v47, %s13558_s21  ;;  %v10700_v47 = vunpack.i.l.bf16 %v10699_v49  ;;  %v9973_v23 = vpack.c.bf16 %v10706_v10, %v10701_v26  ;;  %v6111_v2 = vsel %vm1082_vm7, %v10705_v15, %v10706_v10 }
 0x80c   : > { %9443 = vmatmul.mubr.msk.f32.gmra.mrb[118].mxu1 %vm2440_vm3, %v12885_v36  ;;  %v5975_v60 = vpop.permute.xlu0 %5974  ;;  %v6107_v53 = vpop.permute.xlu1 %6106 }
 0x80d   : > { %5951 = vmatprep.mubr.f32.mxu1 %v10981_v3  ;;  %v6110_v45 = vsel %vm1082_vm7, %v10700_v47, %v10701_v26 }
 0x80e   : > { %v9975_v25 = vpack.c.bf16 %v6111_v2, %v6110_v45 }
 0x810   : > { %9453 = vmatmul.mubr.msk.f32.vlgmr.msra.gmra.mrb[114].mxu1 %vm2440_vm3, %v5876_v17  ;;  %v6095_v31 = vpop.permute.xlu0 %6094  ;;  %v6093_v6 = vpop.permute.xlu1 %6092 }
 0x811   : > { %9972 = vmatpush1.bf16.msra.mxu1 %v9971_v51  ;;  %5957 = vmatprep.mubr.f32.mxu1 %v10981_v3 }
 0x814   : > { %9454 = vmatmul.mubr.msk.f32.gmra.mrb[116].mxu1 %vm2440_vm3, %v12891_v8  ;;  %v10714_v1 = vpop.permute.xlu0 %10713  ;;  %v5987_v19 = vpop.permute.xlu1 %5986 }
 0x815   : > { %6007 = vmatprep.subr.mxu1 %v5987_v19  ;;  %5963 = vmatprep.mubr.f32.mxu1 %v10981_v3  ;;  %v5990_v0 = vsel %vm883_vm6, %v5985_v37, %v5987_v19  ;;  %v10716_v44 = vunpack.i.h.bf16 %v10714_v1  ;;  %v10715_v22 = vunpack.i.l.bf16 %v10714_v1 }
 0x816   : > { %6008 = vmatpush1.msra.mxu1 %v5990_v0 }
 0x817   : > { %9974 = vmatprep.subr.bf16.mxu1 %v9973_v23  ;;  %v6233_v7 = vsel %vm1281_vm8, %v10715_v22, %v10716_v44 }
 0x818   : > { %9455 = vmatmul.mubr.msk.f32.gmra.mrb[118].mxu1 %vm2440_vm3, %v5880_v56  ;;  %v6229_v62 = vpop.permute.xlu0 %6228  ;;  %v10709_v13 = vpop.permute.xlu1 %10708 }
 0x819   : > { %6067 = vmatprep.mubr.f32.mxu1 %v10981_v3  ;;  %v10711_v29 = vunpack.i.h.bf16 %v10709_v13  ;;  %v10710_v9 = vunpack.i.l.bf16 %v10709_v13 }
 0x81b   : > { %v9977_v36 = vpack.c.bf16 %v10716_v44, %v10711_v29  ;;  %v6232_v8 = vsel %vm1281_vm8, %v10710_v9, %v10711_v29 }
 0x81c   : > { %9456 = vmatmul.mubr.msk.f32.vlgmr.msra.gmra.mrb[114].mxu1 %vm2440_vm3, %v5971_v52  ;;  %v6215_v28 = vpop.permute.xlu0 %6214  ;;  %v6097_v58 = vpop.permute.xlu1 %6096  ;;  %v9979_v18 = vpack.c.bf16 %v6233_v7, %v6232_v8 }
 0x81d   : > { %9976 = vmatpush1.bf16.msra.mxu1 %v9975_v25  ;;  %6073 = vmatprep.mubr.f32.mxu1 %v10981_v3 }
 0x820   : > { %9457 = vmatmul.mubr.msk.f32.gmra.mrb[116].mxu1 %vm2440_vm3, %v5973_v40  ;;  %v6109_v34 = vpop.permute.xlu0 %6108  ;;  %v6217_v11 = vpop.permute.xlu1 %6216 }
 0x821   : > { %6129 = vmatprep.subr.mxu1 %v6109_v34  ;;  %6079 = vmatprep.mubr.f32.mxu1 %v10981_v3  ;;  %v6112_v57 = vsel %vm1082_vm7, %v6107_v53, %v6109_v34 }
 0x822   : > { %6130 = vmatpush1.msra.mxu1 %v6112_v57 }
 0x823   : > { %9978 = vmatprep.subr.bf16.mxu1 %v9977_v36 }
 0x824   : > { %9458 = vmatmul.mubr.msk.f32.gmra.mrb[118].mxu1 %vm2440_vm3, %v5975_v60  ;;  %v10719_v17 = vpop.permute.xlu0 %10718  ;;  %v10724_v21 = vpop.permute.xlu1 %10723 }
 0x825   : > { %6189 = vmatprep.mubr.f32.mxu1 %v10981_v3  ;;  %v10721_v24 = vunpack.i.h.bf16 %v10719_v17  ;;  %v10726_v38 = vunpack.i.h.bf16 %v10724_v21  ;;  %v10720_v4 = vunpack.i.l.bf16 %v10719_v17  ;;  %v10725_v63 = vunpack.i.l.bf16 %v10724_v21 }
 0x827   : > { %v9981_v30 = vpack.c.bf16 %v10726_v38, %v10721_v24  ;;  %v6366_v35 = vsel %vm1480_vm9, %v10720_v4, %v10721_v24  ;;  %v6367_v37 = vsel %vm1480_vm9, %v10725_v63, %v10726_v38 }
 0x828   : > { %9459 = vmatmul.mubr.msk.f32.vlgmr.msra.gmra.mrb[114].mxu1 %vm2440_vm3, %v6093_v6  ;;  %v6219_v55 = vpop.permute.xlu0 %6218  ;;  %v6363_v14 = vpop.permute.xlu1 %6362  ;;  %v9983_v41 = vpack.c.bf16 %v6367_v37, %v6366_v35 }
 0x829   : > { %9980 = vmatpush1.bf16.msra.mxu1 %v9979_v18  ;;  %6195 = vmatprep.mubr.f32.mxu1 %v10981_v3 }
 0x82c   : > { %9460 = vmatmul.mubr.msk.f32.gmra.mrb[116].mxu1 %vm2440_vm3, %v6095_v31  ;;  %v6342_v16 = vpop.permute.xlu0 %6341  ;;  %v6231_v50 = vpop.permute.xlu1 %6230 }
 0x82d   : > { %6251 = vmatprep.subr.mxu1 %v6231_v50  ;;  %6201 = vmatprep.mubr.f32.mxu1 %v10981_v3  ;;  %v6234_v27 = vsel %vm1281_vm8, %v6229_v62, %v6231_v50 }
 0x82e   : > { %6252 = vmatpush1.msra.mxu1 %v6234_v27 }
 0x82f   : > { %9982 = vmatprep.subr.bf16.mxu1 %v9981_v30 }
 0x830   : > { %9461 = vmatmul.mubr.msk.f32.gmra.mrb[118].mxu1 %vm2440_vm3, %v6097_v58  ;;  %v6346_v56 = vpop.permute.xlu0 %6345  ;;  %v6340_v46 = vpop.permute.xlu1 %6339 }
 0x831   : > { %6311 = vmatprep.mubr.f32.mxu1 %v10981_v3  ;;  %v6351_v26 = vsel %vm3451_vm15, %v6340_v46, %v6342_v16 }
 0x834   : > { %9462 = vmatmul.mubr.msk.f32.vlgmr.msra.gmra.mrb[114].mxu1 %vm2440_vm3, %v6215_v28  ;;  %v10734_v52 = vpop.permute.xlu0 %10733  ;;  %v6344_v40 = vpop.permute.xlu1 %6343 }
 0x835   : > { %9984 = vmatpush1.bf16.msra.mxu1 %v9983_v41  ;;  %6317 = vmatprep.mubr.f32.mxu1 %v10981_v3  ;;  %v10736_v5 = vunpack.i.h.bf16 %v10734_v52  ;;  %v10735_v48 = vunpack.i.l.bf16 %v10734_v52  ;;  %v6352_v15 = vsel %vm3451_vm15, %v6344_v40, %v6346_v56 }
 0x837   : > { %v6489_v54 = vsel %vm1679_vm10, %v10735_v48, %v10736_v5 }
 0x838   : > { %9463 = vmatmul.mubr.msk.f32.gmra.mrb[116].mxu1 %vm2440_vm3, %v6217_v11  ;;  %v6365_v49 = vpop.permute.xlu0 %6364  ;;  %v10729_v42 = vpop.permute.xlu1 %10728 }
 0x839   : > { %v10731_v39 = vunpack.i.h.bf16 %v10729_v42  ;;  %v10730_v20 = vunpack.i.l.bf16 %v10729_v42  ;;  %6385 = vmatprep.subr.mxu1 %v6365_v49  ;;  %6323 = vmatprep.mubr.f32.mxu1 %v10981_v3  ;;  %v6368_v33 = vsel %vm1480_vm9, %v6363_v14, %v6365_v49 }
 0x83a   : > { %6386 = vmatpush1.msra.mxu1 %v6368_v33 }
 0x83b   : > { %v6488_v60 = vsel %vm1679_vm10, %v10730_v20, %v10731_v39  ;;  %v9985_v53 = vpack.c.bf16 %v10736_v5, %v10731_v39 }
 0x83c   : > { %9464 = vmatmul.mubr.msk.f32.gmra.mrb[118].mxu1 %vm2440_vm3, %v6219_v55  ;;  %v6350_v51 = vpop.permute.xlu0 %6349  ;;  %v6348_v31 = vpop.permute.xlu1 %6347  ;;  %v9987_v6 = vpack.c.bf16 %v6489_v54, %v6488_v60 }
 0x83d   : > { %9986 = vmatprep.subr.bf16.mxu1 %v9985_v53  ;;  %6445 = vmatprep.mubr.f32.mxu1 %v10981_v3  ;;  %v6353_v23 = vsel %vm3451_vm15, %v6348_v31, %v6350_v51 }
 0x840   : > { %9465 = vmatmul.mubr.msk.f32.vlgmr.msra.gmra.mrb[114].mxu1 %vm2440_vm3, %v6351_v26  ;;  %v6473_v10 = vpop.permute.xlu0 %6472  ;;  %v6485_v47 = vpop.permute.xlu1 %6484 }
 0x841   : > { %9988 = vmatpush1.bf16.msra.mxu1 %v9987_v6  ;;  %6451 = vmatprep.mubr.f32.mxu1 %v10981_v3 }
 0x844   : > { %9466 = vmatmul.mubr.msk.f32.gmra.mrb[116].mxu1 %vm2440_vm3, %v6352_v15  ;;  %v6487_v1 = vpop.permute.xlu0 %6486  ;;  %v6471_v19 = vpop.permute.xlu1 %6470 }
 0x845   : > { %6507 = vmatprep.subr.mxu1 %v6487_v1  ;;  %6457 = vmatprep.mubr.f32.mxu1 %v10981_v3  ;;  %v6490_v0 = vsel %vm1679_vm10, %v6485_v47, %v6487_v1 }
 0x846   : > { %6508 = vmatpush1.msra.mxu1 %v6490_v0 }
 0x848   : > { %9467 = vmatmul.mubr.msk.f32.gmra.mrb[118].mxu1 %vm2440_vm3, %v6353_v23  ;;  %v10744_v45 = vpop.permute.xlu0 %10743  ;;  %v10739_v2 = vpop.permute.xlu1 %10738 }
 0x849   : > { %v10746_v62 = vunpack.i.h.bf16 %v10744_v45  ;;  %v10745_v13 = vunpack.i.l.bf16 %v10744_v45  ;;  %v10741_v25 = vunpack.i.h.bf16 %v10739_v2  ;;  %v10740_v28 = vunpack.i.l.bf16 %v10739_v2  ;;  %6567 = vmatprep.mubr.f32.mxu1 %v10981_v3 }
 0x84b   : > { %v6611_v58 = vsel %vm13532_vm11, %v10745_v13, %v10746_v62  ;;  %v6610_v29 = vsel %vm13532_vm11, %v10740_v28, %v10741_v25  ;;  %v9989_v44 = vpack.c.bf16 %v10746_v62, %v10741_v25 }
 0x84c   : > { %9468 = vmatmul.mubr.msk.f32.vlgmr.msra.gmra.mrb[114].mxu1 %vm2440_vm3, %v6471_v19  ;;  %v6607_v9 = vpop.permute.xlu0 %6606  ;;  %v6475_v34 = vpop.permute.xlu1 %6474  ;;  %v9991_v11 = vpack.c.bf16 %v6611_v58, %v6610_v29 }
 0x84d   : > { %9990 = vmatprep.subr.bf16.mxu1 %v9989_v44  ;;  %6573 = vmatprep.mubr.f32.mxu1 %v10981_v3 }
 0x84e   : > { %9992 = vmatpush1.bf16.msra.mxu1 %v9991_v11 }
 0x850   : > { %9469 = vmatmul.mubr.msk.f32.gmra.mrb[116].mxu1 %vm2440_vm3, %v6473_v10  ;;  %v6593_v57 = vpop.permute.xlu0 %6592  ;;  %v6609_v36 = vpop.permute.xlu1 %6608 }
 0x851   : > { %6629 = vmatprep.subr.mxu1 %v6609_v36  ;;  %6579 = vmatprep.mubr.f32.mxu1 %v10981_v3  ;;  %v6612_v22 = vsel %vm13532_vm11, %v6607_v9, %v6609_v36 }
 0x852   : > { %6630 = vmatpush1.msra.mxu1 %v6612_v22 }
 0x854   : > { %9470 = vmatmul.mubr.msk.f32.gmra.mrb[118].mxu1 %vm2440_vm3, %v6475_v34  ;;  %v10749_v8 = vpop.permute.xlu0 %10748  ;;  %v6595_v17 = vpop.permute.xlu1 %6594 }
 0x855   : > { %6689 = vmatprep.mubr.f32.mxu1 %v10981_v3  ;;  %v10751_v21 = vunpack.i.h.bf16 %v10749_v8  ;;  %v10750_v7 = vunpack.i.l.bf16 %v10749_v8 }
 0x857   : > { %v6732_v38 = vsel %vm13577_vm13, %v10750_v7, %v10751_v21  ;;  %vm6905_vm13 = vcmask 605184  }
 0x858   : > { %9471 = vmatmul.mubr.msk.f32.vlgmr.msra.gmra.mrb[114].mxu1 %vm2440_vm3, %v6593_v57  ;;  %v6597_v18 = vpop.permute.xlu0 %6596  ;;  %v10754_v55 = vpop.permute.xlu1 %10753 }
 0x859   : > { %v10756_v14 = vunpack.i.h.bf16 %v10754_v55  ;;  %v10755_v24 = vunpack.i.l.bf16 %v10754_v55  ;;  %6695 = vmatprep.mubr.f32.mxu1 %v10981_v3 }
 0x85b   : > { %v6733_v4 = vsel %vm13578_vm1, %v10755_v24, %v10756_v14  ;;  %v9993_v63 = vpack.c.bf16 %v10756_v14, %v10751_v21 }
 0x85c   : > { %9472 = vmatmul.mubr.msk.f32.gmra.mrb[116].mxu1 %vm2440_vm3, %v6595_v17  ;;  %v9995_v16 = vpack.c.bf16 %v6733_v4, %v6732_v38  ;;  %v6729_v50 = vpop.permute.xlu1 %6728  ;;  %v6731_v27 = vpop.permute.xlu0 %6730 }
 0x85d   : > { %9994 = vmatprep.subr.bf16.mxu1 %v9993_v63  ;;  %6701 = vmatprep.mubr.f32.mxu1 %v10981_v3  ;;  %v6734_v30 = vsel %vm13579_vm12, %v6729_v50, %v6731_v27 }
 0x85e   : > { %9996 = vmatpush1.bf16.msra.mxu1 %v9995_v16 }
 0x85f   : > { %6751 = vmatprep.subr.mxu1 %v6731_v27 }
 0x860   : > { %9473 = vmatmul.mubr.msk.f32.gmra.mrb[118].mxu1 %vm2440_vm3, %v6597_v18  ;;  %v6715_v35 = vpop.permute.xlu1 %6714  ;;  %v6717_v37 = vpop.permute.xlu0 %6716 }
 0x861   : > { %6811 = vmatprep.mubr.f32.mxu1 %v10981_v3 }
 0x862   : > { %6752 = vmatpush1.msra.mxu1 %v6734_v30 }
 0x864   : > { %9474 = vmatmul.mubr.msk.f32.vlgmr.msra.gmra.mrb[114].mxu1 %vm2440_vm3, %v6715_v35  ;;  %v6719_v56 = vpop.permute.xlu1 %6718  ;;  %v13036_v35 = vld [vmem:[%s13493_s7] sm:$0xff] }
 0x865   : > { %6817 = vmatprep.mubr.f32.mxu1 %v10981_v3 }
 0x868   : > { %9475 = vmatmul.mubr.msk.f32.gmra.mrb[116].mxu1 %vm2440_vm3, %v6717_v37  ;;  %v13045_v37 = vld [vmem:[%s13493_s7 + $0x10] sm:$0xff] }
 0x869   : > { %6823 = vmatprep.mubr.f32.mxu1 %v10981_v3 }
 0x86c   : > { %9476 = vmatmul.mubr.msk.f32.gmra.mrb[118].mxu1 %vm2440_vm3, %v6719_v56  ;;  %v13050_v56 = vld [vmem:[%s13493_s7 + $0x20] sm:$0xff] }
 0x86d   : > { %8250 = vmatprep.mubr.f32.mxu1 %v10981_v3 }
 0x871   : > { %v6838_v41 = vpop.permute.xlu0 %6837 }
 0x875   : > { %v6842_v46 = vpop.permute.xlu1 %6841  ;;  %v6846_v40 = vpop.permute.xlu0 %6845 }
 0x879   : > { %v6873_v52 = vpop.permute.xlu1 %6872  ;;  %v6875_v48 = vpop.permute.xlu0 %6874 }
 0x87a   : > { %v6884_v6 = vsel %vm1082_vm7, %v6873_v52, %v6875_v48 }
 0x87d   : > { %v6877_v5 = vpop.permute.xlu1 %6876  ;;  %v6879_v42 = vpop.permute.xlu0 %6878 }
 0x87e   : > { %v6885_v58 = vsel %vm1082_vm7, %v6877_v5, %v6879_v42 }
 0x881   : > { %v6900_v49 = vpop.permute.xlu1 %6899  ;;  %v6902_v26 = vpop.permute.xlu0 %6901 }
 0x882   : > { %v6906_v45 = vsel %vm6905_vm13, %v6900_v49, %v6902_v26 }
 0x885   : > { %v6904_v54 = vpop.permute.xlu1 %6903  ;;  %v6881_v7 = vpop.permute.xlu0 %6880 }
 0x886   : > { %v6907_v1 = vsel %vm6905_vm13, %v6902_v26, %v6904_v54 }
 0x889   : > { %v6883_v11 = vpop.permute.xlu1 %6882 }
 0x88a   : > { %v6886_v14 = vsel %vm1082_vm7, %v6881_v7, %v6883_v11 }
 0x937   : > { %v6813_v39 = vpop.f32.mrb[114].mxu1 }
 0x938   : > { %v6848_v20 = vadd.f32 %v6838_v41, %v6813_v39  ;;  %v6815_v33 = vpop.f32.mrb[115].mxu1 }
 0x939   : > { %v6849_v60 = vadd.f32 %v6838_v41, %v6815_v33 }
 0x93a   : > { %vm6854_vm5 = vcmp.ge.f32.partialorder %v6848_v20, 0.0  ;;  %v6860_v53 = vmul.f32 0.2, %v6848_v20 }
 0x93b   : > { %vm6855_vm1 = vcmp.ge.f32.partialorder %v6849_v60, 0.0  ;;  %v6861_v51 = vmul.f32 0.2, %v6849_v60  ;;  %v6819_v31 = vpop.f32.mrb[116].mxu1 }
 0x93c   : > { %v6866_v10 = vsel %vm6854_vm5, %v6848_v20, %v6860_v53  ;;  %v6850_v47 = vadd.f32 %v6842_v46, %v6819_v31  ;;  %v6821_v15 = vpop.f32.mrb[117].mxu1 }
 0x93d   : > { %v6893_v19 = vadd.f32 %v6884_v6, %v6866_v10  ;;  %v6867_v0 = vsel %vm6855_vm1, %v6849_v60, %v6861_v51  ;;  %v6851_v23 = vadd.f32 %v6842_v46, %v6821_v15 }
 0x93e   : > { %v6894_v2 = vadd.f32 %v6875_v48, %v6867_v0  ;;  %vm6856_vm12 = vcmp.ge.f32.partialorder %v6850_v47, 0.0  ;;  %v6862_v62 = vmul.f32 0.2, %v6850_v47  ;;  %v6921_v0 = vld [vmem:[%s13493_s7 + $0x28] sm:$0xff] }
 0x93f   : > { %v13011_v13 = vmul.f32 %v6906_v45, %v6893_v19  ;;  %vm6857_vm11 = vcmp.ge.f32.partialorder %v6851_v23, 0.0  ;;  %v6863_v25 = vmul.f32 0.2, %v6851_v23  ;;  %v6825_v28 = vpop.f32.mrb[118].mxu1  ;;  %v6919_v19 = vld [vmem:[%s13493_s7 + $0x18] sm:$0xff] }
 0x940   : > { %v13014_v29 = vmul.f32 %v6907_v1, %v6894_v2  ;;  %v6868_v44 = vsel %vm6856_vm12, %v6850_v47, %v6862_v62  ;;  %v6852_v9 = vadd.f32 %v6846_v40, %v6825_v28  ;;  %v6827_v34 = vpop.f32.mrb[119].mxu1  ;;  %vm13580_vm12 = vcmask 744448  }
 0x941   : > { %v6895_v57 = vadd.f32 %v6885_v58, %v6868_v44  ;;  %v6869_v36 = vsel %vm6857_vm11, %v6851_v23, %v6863_v25  ;;  %v6853_v22 = vadd.f32 %v6846_v40, %v6827_v34  ;;  %vm6952_vm11 = vcmask 728064  }
 0x942   : > { %v6896_v8 = vadd.f32 %v6879_v42, %v6869_v36  ;;  %vm6858_vm5 = vcmp.ge.f32.partialorder %v6852_v9, 0.0  ;;  %v6864_v17 = vmul.f32 0.2, %v6852_v9  ;;  %v10757_v21 = vpack.i.bf16 %v13014_v29, %v13011_v13  ;;  %vm10002_vm1 = vmpackc.low %vm6952_vm11, %vm6952_vm11 }
 0x943   : > { %v13018_v18 = vmul.f32 %v6906_v45, %v6895_v57  ;;  %vm6859_vm13 = vcmp.ge.f32.partialorder %v6853_v22, 0.0  ;;  %v6865_v55 = vmul.f32 0.2, %v6853_v22 }
 0x944   : > { %v13021_v24 = vmul.f32 %v6907_v1, %v6896_v8  ;;  %v6870_v38 = vsel %vm6858_vm5, %v6852_v9, %v6864_v17  ;;  %10758 = vrot.lane.b32.xlu0 %v10757_v21, %s13571_s13  ;;  %vm13581_vm5 = vmmov %vm13580_vm12 }
 0x945   : > { %v6897_v4 = vadd.f32 %v6886_v14, %v6870_v38  ;;  %v6871_v63 = vsel %vm6859_vm13, %v6853_v22, %v6865_v55  ;;  %vm13582_vm13 = vmmov %vm13581_vm5 }
 0x946   : > { %v6898_v16 = vadd.f32 %v6883_v11, %v6871_v63  ;;  %v10762_v50 = vpack.i.bf16 %v13021_v24, %v13018_v18 }
 0x947   : > { %v13026_v27 = vmul.f32 %v6906_v45, %v6897_v4 }
 0x948   : > { %10763 = vrot.lane.b32.xlu1 %v10762_v50, %s13571_s13  ;;  %v13031_v30 = vmul.f32 %v6907_v1, %v6898_v16  ;;  %v6917_v1 = vld [vmem:[%s13493_s7 + $0x8] sm:$0xff] }
 0x949   : > { %6936 = vrot.lane.b32.xlu0 %v13026_v27, %s13571_s13 }
 0x94c   : > { %6938 = vrot.lane.b32.xlu1 %v13031_v30, %s13571_s13 }
 0x94d   : > { %6959 = vrot.lane.b32.xlu0 %v13036_v35, %s13573_s2 }
 0x950   : > { %6961 = vrot.lane.b32.xlu1 %v13045_v37, %s13573_s2 }
 0x951   : > { %6963 = vrot.lane.b32.xlu0 %v13050_v56, %s13573_s2 }
 0x954   : > { %7081 = vrot.lane.b32.xlu1 %v13036_v35, %s13574_s0 }
 0x955   : > { %7083 = vrot.lane.b32.xlu0 %v13045_v37, %s13574_s0 }
 0x9b6   : > { %v10759_v46 = vpop.permute.xlu0 %10758 }
 0x9b7   : > { %v10761_v41 = vunpack.i.h.bf16 %v10759_v46  ;;  %v13060_v52 = vunpack.i.l.bf16 %v10759_v46 }
 0x9b9   : > { %v13064_v40 = vsel %vm485_vm0, %v13060_v52, %v10761_v41  ;;  %v6949_v5 = vsel %vm485_vm0, 0.0, %v13060_v52 }
 0x9ba   : > { %v6953_v48 = vsel %vm6952_vm11, %v13064_v40, 0.0  ;;  %v10764_v49 = vpop.permute.xlu1 %10763 }
 0x9bb   : > { %v10766_v42 = vunpack.i.h.bf16 %v10764_v49  ;;  %v13070_v39 = vunpack.i.l.bf16 %v10764_v49  ;;  %v10767_v20 = vpack.i.bf16 %v6953_v48, %v6949_v5  ;;  %v13086_v26 = vpop.permute.xlu0 %6936 }
 0x9bc   : > { %v6951_v47 = vsel %vm485_vm0, 0.0, %v13086_v26 }
 0x9bd   : > { %v13074_v33 = vsel %vm485_vm0, %v13070_v39, %v10766_v42  ;;  %v6950_v60 = vsel %vm485_vm0, 0.0, %v13070_v39  ;;  %v10004_v53 = vpack.c.bf16 %v13070_v39, %v13060_v52  ;;  %10768 = vrot.lane.b32.xlu0 %v10767_v20, %s13574_s0  ;;  %10773 = vrot.lane.b32.xlu1 %v10767_v20, %s13556_s29 }
 0x9be   : > { %v6954_v54 = vsel %vm6952_vm11, %v13074_v33, 0.0  ;;  %v6939_v51 = vpop.permute.xlu1 %6938  ;;  %v10001_v31 = vpack.c.bf16 %v13074_v33, %v13064_v40 }
 0x9bf   : > { %v10782_v6 = vpack.i.bf16 %v6954_v54, %v6950_v60  ;;  %v13090_v10 = vsel %vm485_vm0, %v13086_v26, %v6939_v51  ;;  %v6960_v23 = vpop.permute.xlu0 %6959 }
 0x9c0   : > { %v6955_v15 = vsel %vm6952_vm11, %v13090_v10, 0.0 }
 0x9c1   : > { %10783 = vrot.lane.b32.xlu0 %v10782_v6, %s13556_s29  ;;  %10778 = vrot.lane.b32.xlu1 %v10782_v6, %s13574_s0 }
 0x9c2   : > { %v6962_v2 = vpop.permute.xlu1 %6961 }
 0x9c3   : > { %v13168_v45 = vpop.permute.xlu0 %6963 }
 0x9c5   : > { %6979 = vrot.lane.b32.xlu0 %v6951_v47, %s13574_s0  ;;  %6981 = vrot.lane.b32.xlu1 %v6955_v15, %s13574_s0 }
 0x9c6   : > { %v7082_v25 = vpop.permute.xlu1 %7081 }
 0x9c7   : > { %v13174_v62 = vpop.permute.xlu0 %7083 }
 0x9c9   : > { %7190 = vrot.lane.b32.xlu0 %v6951_v47, %s13556_s29  ;;  %7085 = vrot.lane.b32.xlu1 %v13050_v56, %s13574_s0 }
 0x9cd   : > { %7176 = vrot.lane.b32.xlu0 %v13036_v35, %s13575_s3  ;;  %7178 = vrot.lane.b32.xlu1 %v13045_v37, %s13575_s3 }
 0x9d1   : > { %10788 = vrot.lane.b32.xlu0 %v10767_v20, %s13558_s21  ;;  %10793 = vrot.lane.b32.xlu1 %v10782_v6, %s13558_s21 }
 0x9d5   : > { %7180 = vrot.lane.b32.xlu0 %v13050_v56, %s13575_s3  ;;  %7312 = vrot.lane.b32.xlu1 %v6951_v47, %s13558_s21 }
 0x9d9   : > { %7300 = vrot.lane.b32.xlu0 %v13045_v37, %s13576_s4  ;;  %7298 = vrot.lane.b32.xlu1 %v13036_v35, %s13576_s4 }
 0x9dd   : > { %10803 = vrot.lane.b32.xlu0 %v10782_v6, %s13557_s14  ;;  %7192 = vrot.lane.b32.xlu1 %v6955_v15, %s13556_s29 }
 0x9e1   : > { %7434 = vrot.lane.b32.xlu0 %v6951_v47, %s13557_s14  ;;  %10798 = vrot.lane.b32.xlu1 %v10767_v20, %s13557_s14 }
 0x9e5   : > { %7420 = vrot.lane.b32.xlu0 %v13036_v35, %s13560_s23  ;;  %7302 = vrot.lane.b32.xlu1 %v13050_v56, %s13576_s4 }
 0x9e9   : > { %7314 = vrot.lane.b32.xlu0 %v6955_v15, %s13558_s21  ;;  %7422 = vrot.lane.b32.xlu1 %v13045_v37, %s13560_s23 }
 0x9ed   : > { %10808 = vrot.lane.b32.xlu0 %v10767_v20, %s13559_s25  ;;  %10813 = vrot.lane.b32.xlu1 %v10782_v6, %s13559_s25 }
 0x9f1   : > { %7424 = vrot.lane.b32.xlu0 %v13050_v56, %s13560_s23  ;;  %7568 = vrot.lane.b32.xlu1 %v6951_v47, %s13559_s25 }
 0x9f5   : > { %7547 = vrot.lane.b32.xlu0 %v6917_v1, %s13561_s20  ;;  %7436 = vrot.lane.b32.xlu1 %v6955_v15, %s13557_s14 }
 0x9f9   : > { %7551 = vrot.lane.b32.xlu0 %v6919_v19, %s13561_s20  ;;  %7545 = vrot.lane.b32.xlu1 %v13036_v35, %s13561_s20 }
 0x9fd   : > { %10823 = vrot.lane.b32.xlu0 %v10782_v6, %s13562_s11  ;;  %7549 = vrot.lane.b32.xlu1 %v13045_v37, %s13561_s20 }
 0xa01   : > { %7570 = vrot.lane.b32.xlu0 %v6955_v15, %s13559_s25  ;;  %10818 = vrot.lane.b32.xlu1 %v10767_v20, %s13562_s11 }
 0xa05   : > { %7555 = vrot.lane.b32.xlu0 %v6921_v0, %s13561_s20  ;;  %7553 = vrot.lane.b32.xlu1 %v13050_v56, %s13561_s20 }
 0xa09   : > { %7678 = vrot.lane.b32.xlu0 %v6919_v19, %s13547_s22  ;;  %7690 = vrot.lane.b32.xlu1 %v6951_v47, %s13562_s11 }
 0xa0d   : > { %7692 = vrot.lane.b32.xlu0 %v6955_v15, %s13562_s11  ;;  %7676 = vrot.lane.b32.xlu1 %v6917_v1, %s13547_s22 }
 0xa11   : > { %10833 = vrot.lane.b32.xlu0 %v10782_v6, %s13548_s12  ;;  %10828 = vrot.lane.b32.xlu1 %v10767_v20, %s13548_s12 }
 0xa15   : > { %7812 = vrot.lane.b32.xlu0 %v6951_v47, %s13548_s12  ;;  %7680 = vrot.lane.b32.xlu1 %v6921_v0, %s13547_s22 }
 0xa19   : > { %7798 = vrot.lane.b32.xlu0 %v6917_v1, %s13563_s30  ;;  %7814 = vrot.lane.b32.xlu1 %v6955_v15, %s13548_s12 }
 0xa1d   : > { %10838 = vrot.lane.b32.xlu0 %v10767_v20, %s13549_s27  ;;  %7800 = vrot.lane.b32.xlu1 %v6919_v19, %s13563_s30 }
 0xa21   : > { %7802 = vrot.lane.b32.xlu0 %v6921_v0, %s13563_s30  ;;  %10843 = vrot.lane.b32.xlu1 %v10782_v6, %s13549_s27 }
 0xa25   : > { %7936 = vrot.lane.b32.xlu0 %v6955_v15, %s13549_s27  ;;  %7934 = vrot.lane.b32.xlu1 %v6951_v47, %s13549_s27 }
 0xa29   : > { %7922 = vrot.lane.b32.xlu0 %v6919_v19, %s13564_s26  ;;  %7920 = vrot.lane.b32.xlu1 %v6917_v1, %s13564_s26 }
 0xa2d   : > { %8043 = vperm.xlu0 %10405, %v13036_v35   ;;  %7924 = vrot.lane.b32.xlu1 %v6921_v0, %s13564_s26 }
 0xa2f   : > { %v10769_v28 = vpop.permute.xlu0 %10768  ;;  %v10774_v58 = vpop.permute.xlu1 %10773 }
 0xa30   : > { %v10771_v44 = vunpack.i.h.bf16 %v10769_v28  ;;  %v10770_v9 = vunpack.i.l.bf16 %v10769_v28  ;;  %v10776_v4 = vunpack.i.h.bf16 %v10774_v58 }
 0xa31   : > { %8051 = vperm.xlu0 %10405, %v13050_v56   ;;  %8047 = vperm.xlu1 %10406, %v13045_v37   ;;  %v10775_v37 = vunpack.i.l.bf16 %v10774_v58 }
 0xa32   : > { %v6983_v22 = vsel %vm510_vm2, %v10770_v9, %v10771_v44 }
 0xa33   : > { %v10784_v34 = vpop.permute.xlu0 %10783  ;;  %v10779_v11 = vpop.permute.xlu1 %10778  ;;  %v7194_v46 = vsel %vm883_vm6, %v10775_v37, %v10776_v4 }
 0xa34   : > { %v10781_v57 = vunpack.i.h.bf16 %v10779_v11  ;;  %v10780_v36 = vunpack.i.l.bf16 %v10779_v11  ;;  %v10786_v38 = vunpack.i.h.bf16 %v10784_v34  ;;  %v10785_v63 = vunpack.i.l.bf16 %v10784_v34 }
 0xa35   : > { %8080 = vrot.lane.b32.xlu0 %v13014_v29, %s13558_s21  ;;  %8078 = vrot.lane.b32.xlu1 %v13011_v13, %s13558_s21 }
 0xa36   : > { %v6984_v8 = vsel %vm510_vm2, %v10780_v36, %v10781_v57  ;;  %v9997_v17 = vpack.c.bf16 %v10781_v57, %v10771_v44  ;;  %v10007_v35 = vpack.c.bf16 %v10786_v38, %v10776_v4  ;;  %v7195_v56 = vsel %vm883_vm6, %v10785_v63, %v10786_v38 }
 0xa37   : > { %v6980_v21 = vpop.permute.xlu0 %6979  ;;  %v6982_v7 = vpop.permute.xlu1 %6981  ;;  %v9999_v55 = vpack.c.bf16 %v6984_v8, %v6983_v22  ;;  %v10009_v41 = vpack.c.bf16 %v7195_v56, %v7194_v46 }
 0xa38   : > { %9998 = vmatprep.subr.bf16.mxu0 %v9997_v17  ;;  %v6985_v13 = vsel %vm510_vm2, %v6980_v21, %v6982_v7 }
 0xa39   : > { %8084 = vrot.lane.b32.xlu0 %v13021_v24, %s13558_s21  ;;  %8082 = vrot.lane.b32.xlu1 %v13018_v18, %s13558_s21 }
 0xa3a   : > { %10000 = vmatpush1.bf16.msra.mxu0 %v9999_v55 }
 0xa3b   : > { %7002 = vmatprep.subr.mxu0 %v6982_v7  ;;  %v7191_v29 = vpop.permute.xlu0 %7190  ;;  %v7086_v14 = vpop.permute.xlu1 %7085 }
 0xa3d   : > { %8107 = vrot.lane.b32.xlu0 %v11520_v59, %s11008_s6  ;;  %8105 = vrot.lane.b32.xlu1 %v11524_v12, %s11008_s6 }
 0xa3e   : > { %7003 = vmatpush1.msra.mxu0 %v6985_v13 }
 0xa3f   : > { %9477 = vmatmul.mubr.msk.f32.vlgmr.msra.gmra.mrb[18].mxu0 %vm2440_vm3, %v6960_v23  ;;  %10003 = vmatprep.subr.msk.bf16.mxu0 %vm10002_vm1, %v10001_v31  ;;  %v7177_v18 = vpop.permute.xlu0 %7176  ;;  %v7179_v24 = vpop.permute.xlu1 %7178 }
 0xa40   : > { %10006 = vmatpush1.bf16.msk.msra.mxu0 %vm11867_vm14, %v10004_v53  ;;  %7068 = vmatprep.mubr.f32.mxu0 %v10981_v3 }
 0xa41   : > { %9486 = vmatprep.subr.msk.mxu0 %vm6952_vm11, %v13090_v10  ;;  %8088 = vrot.lane.b32.xlu0 %v13031_v30, %s13558_s21  ;;  %vm13583_vm11 = vcmask 736256  }
 0xa42   : > { %8086 = vrot.lane.b32.xlu1 %v13026_v27, %s13558_s21  ;;  %vm13584_vm1 = vmmov %vm13583_vm11 }
 0xa43   : > { %9478 = vmatmul.mubr.msk.f32.gmra.mrb[20].mxu0 %vm2440_vm3, %v6962_v2  ;;  %v10789_v16 = vpop.permute.xlu0 %10788  ;;  %v10794_v50 = vpop.permute.xlu1 %10793 }
 0xa44   : > { %9488 = vmatpush1.msk.msra.mxu0 %vm11850_vm4, %v13086_v26  ;;  %7074 = vmatprep.mubr.f32.mxu0 %v10981_v3  ;;  %v10791_v5 = vunpack.i.h.bf16 %v10789_v16  ;;  %v10796_v48 = vunpack.i.h.bf16 %v10794_v50  ;;  %v10790_v49 = vunpack.i.l.bf16 %v10789_v16  ;;  %v10795_v42 = vunpack.i.l.bf16 %v10794_v50 }
 0xa45   : > { %10008 = vmatprep.subr.bf16.mxu0 %v10007_v35 }
 0xa46   : > { %v10011_v60 = vpack.c.bf16 %v10796_v48, %v10791_v5  ;;  %v7316_v53 = vsel %vm1082_vm7, %v10790_v49, %v10791_v5  ;;  %v7317_v54 = vsel %vm1082_vm7, %v10795_v42, %v10796_v48 }
 0xa47   : > { %9479 = vmatmul.mubr.msk.f32.gmra.mrb[22].mxu0 %vm2440_vm3, %v13168_v45  ;;  %v7181_v27 = vpop.permute.xlu0 %7180  ;;  %v7313_v30 = vpop.permute.xlu1 %7312  ;;  %v10013_v6 = vpack.c.bf16 %v7317_v54, %v7316_v53 }
 0xa48   : > { %7157 = vmatprep.mubr.f32.mxu0 %v10981_v3 }
 0xa4b   : > { %9489 = vmatmul.mubr.msk.f32.vlgmr.msra.gmra.mrb[18].mxu0 %vm2440_vm3, %v7082_v25  ;;  %v7301_v52 = vpop.permute.xlu0 %7300  ;;  %v7299_v40 = vpop.permute.xlu1 %7298 }
 0xa4c   : > { %10010 = vmatpush1.bf16.msra.mxu0 %v10009_v41  ;;  %7163 = vmatprep.mubr.f32.mxu0 %v10981_v3 }
 0xa4f   : > { %9490 = vmatmul.mubr.msk.f32.gmra.mrb[20].mxu0 %vm2440_vm3, %v13174_v62  ;;  %v10804_v39 = vpop.permute.xlu0 %10803  ;;  %v7193_v20 = vpop.permute.xlu1 %7192 }
 0xa50   : > { %7213 = vmatprep.subr.mxu0 %v7193_v20  ;;  %7169 = vmatprep.mubr.f32.mxu0 %v10981_v3  ;;  %v7196_v33 = vsel %vm883_vm6, %v7191_v29, %v7193_v20  ;;  %v10806_v15 = vunpack.i.h.bf16 %v10804_v39  ;;  %v10805_v2 = vunpack.i.l.bf16 %v10804_v39 }
 0xa51   : > { %7214 = vmatpush1.msra.mxu0 %v7196_v33 }
 0xa52   : > { %10012 = vmatprep.subr.bf16.mxu0 %v10011_v60  ;;  %v7439_v58 = vsel %vm1281_vm8, %v10805_v2, %v10806_v15 }
 0xa53   : > { %9491 = vmatmul.mubr.msk.f32.gmra.mrb[22].mxu0 %vm2440_vm3, %v7086_v14  ;;  %v7435_v51 = vpop.permute.xlu0 %7434  ;;  %v10799_v31 = vpop.permute.xlu1 %10798 }
 0xa54   : > { %7273 = vmatprep.mubr.f32.mxu0 %v10981_v3  ;;  %v10801_v47 = vunpack.i.h.bf16 %v10799_v31  ;;  %v10800_v1 = vunpack.i.l.bf16 %v10799_v31 }
 0xa56   : > { %v10015_v45 = vpack.c.bf16 %v10806_v15, %v10801_v47  ;;  %v7438_v62 = vsel %vm1281_vm8, %v10800_v1, %v10801_v47 }
 0xa57   : > { %9492 = vmatmul.mubr.msk.f32.vlgmr.msra.gmra.mrb[18].mxu0 %vm2440_vm3, %v7177_v18  ;;  %v7421_v26 = vpop.permute.xlu0 %7420  ;;  %v7303_v10 = vpop.permute.xlu1 %7302  ;;  %v10017_v44 = vpack.c.bf16 %v7439_v58, %v7438_v62 }
 0xa58   : > { %10014 = vmatpush1.bf16.msra.mxu0 %v10013_v6  ;;  %7279 = vmatprep.mubr.f32.mxu0 %v10981_v3 }
 0xa5b   : > { %9493 = vmatmul.mubr.msk.f32.gmra.mrb[20].mxu0 %vm2440_vm3, %v7179_v24  ;;  %v7315_v19 = vpop.permute.xlu0 %7314  ;;  %v7423_v0 = vpop.permute.xlu1 %7422 }
 0xa5c   : > { %v7318_v23 = vsel %vm1082_vm7, %v7313_v30, %v7315_v19  ;;  %7335 = vmatprep.subr.mxu0 %v7315_v19  ;;  %7285 = vmatprep.mubr.f32.mxu0 %v10981_v3 }
 0xa5d   : > { %7336 = vmatpush1.msra.mxu0 %v7318_v23 }
 0xa5e   : > { %10016 = vmatprep.subr.bf16.mxu0 %v10015_v45 }
 0xa5f   : > { %9494 = vmatmul.mubr.msk.f32.gmra.mrb[22].mxu0 %vm2440_vm3, %v7181_v27  ;;  %v10809_v25 = vpop.permute.xlu0 %10808  ;;  %v10814_v28 = vpop.permute.xlu1 %10813 }
 0xa60   : > { %7395 = vmatprep.mubr.f32.mxu0 %v10981_v3  ;;  %v10811_v11 = vunpack.i.h.bf16 %v10809_v25  ;;  %v10816_v57 = vunpack.i.h.bf16 %v10814_v28  ;;  %v10810_v36 = vunpack.i.l.bf16 %v10809_v25  ;;  %v10815_v22 = vunpack.i.l.bf16 %v10814_v28 }
 0xa62   : > { %v10019_v21 = vpack.c.bf16 %v10816_v57, %v10811_v11  ;;  %v7572_v55 = vsel %vm1480_vm9, %v10810_v36, %v10811_v11  ;;  %v7573_v29 = vsel %vm1480_vm9, %v10815_v22, %v10816_v57 }
 0xa63   : > { %9495 = vmatmul.mubr.msk.f32.vlgmr.msra.gmra.mrb[18].mxu0 %vm2440_vm3, %v7299_v40  ;;  %v7425_v9 = vpop.permute.xlu0 %7424  ;;  %v7569_v34 = vpop.permute.xlu1 %7568  ;;  %v10021_v38 = vpack.c.bf16 %v7573_v29, %v7572_v55 }
 0xa64   : > { %10018 = vmatpush1.bf16.msra.mxu0 %v10017_v44  ;;  %7401 = vmatprep.mubr.f32.mxu0 %v10981_v3 }
 0xa67   : > { %9496 = vmatmul.mubr.msk.f32.gmra.mrb[20].mxu0 %vm2440_vm3, %v7301_v52  ;;  %v7548_v8 = vpop.permute.xlu0 %7547  ;;  %v7437_v17 = vpop.permute.xlu1 %7436 }
 0xa68   : > { %v7440_v7 = vsel %vm1281_vm8, %v7435_v51, %v7437_v17  ;;  %7457 = vmatprep.subr.mxu0 %v7437_v17  ;;  %7407 = vmatprep.mubr.f32.mxu0 %v10981_v3 }
 0xa69   : > { %7458 = vmatpush1.msra.mxu0 %v7440_v7 }
 0xa6a   : > { %10020 = vmatprep.subr.bf16.mxu0 %v10019_v21 }
 0xa6b   : > { %9497 = vmatmul.mubr.msk.f32.gmra.mrb[22].mxu0 %vm2440_vm3, %v7303_v10  ;;  %v7552_v14 = vpop.permute.xlu0 %7551  ;;  %v7546_v13 = vpop.permute.xlu1 %7545 }
 0xa6c   : > { %7517 = vmatprep.mubr.f32.mxu0 %v10981_v3  ;;  %v7557_v5 = vsel %vm3451_vm15, %v7546_v13, %v7548_v8 }
 0xa6f   : > { %9498 = vmatmul.mubr.msk.f32.vlgmr.msra.gmra.mrb[18].mxu0 %vm2440_vm3, %v7421_v26  ;;  %v10824_v18 = vpop.permute.xlu0 %10823  ;;  %v7550_v24 = vpop.permute.xlu1 %7549 }
 0xa70   : > { %10022 = vmatpush1.bf16.msra.mxu0 %v10021_v38  ;;  %7523 = vmatprep.mubr.f32.mxu0 %v10981_v3  ;;  %v10826_v4 = vunpack.i.h.bf16 %v10824_v18  ;;  %v10825_v63 = vunpack.i.l.bf16 %v10824_v18  ;;  %v7558_v42 = vsel %vm3451_vm15, %v7550_v24, %v7552_v14 }
 0xa72   : > { %v7695_v46 = vsel %vm1679_vm10, %v10825_v63, %v10826_v4 }
 0xa73   : > { %9499 = vmatmul.mubr.msk.f32.gmra.mrb[20].mxu0 %vm2440_vm3, %v7423_v0  ;;  %v7571_v16 = vpop.permute.xlu0 %7570  ;;  %v10819_v50 = vpop.permute.xlu1 %10818 }
 0xa74   : > { %v7574_v35 = vsel %vm1480_vm9, %v7569_v34, %v7571_v16  ;;  %v10821_v37 = vunpack.i.h.bf16 %v10819_v50  ;;  %v10820_v56 = vunpack.i.l.bf16 %v10819_v50  ;;  %7591 = vmatprep.subr.mxu0 %v7571_v16  ;;  %7529 = vmatprep.mubr.f32.mxu0 %v10981_v3 }
 0xa75   : > { %7592 = vmatpush1.msra.mxu0 %v7574_v35 }
 0xa76   : > { %v10023_v27 = vpack.c.bf16 %v10826_v4, %v10821_v37  ;;  %v7694_v30 = vsel %vm1679_vm10, %v10820_v56, %v10821_v37 }
 0xa77   : > { %9500 = vmatmul.mubr.msk.f32.gmra.mrb[22].mxu0 %vm2440_vm3, %v7425_v9  ;;  %v7556_v41 = vpop.permute.xlu0 %7555  ;;  %v7554_v52 = vpop.permute.xlu1 %7553  ;;  %v10025_v40 = vpack.c.bf16 %v7695_v46, %v7694_v30 }
 0xa78   : > { %10024 = vmatprep.subr.bf16.mxu0 %v10023_v27  ;;  %7651 = vmatprep.mubr.f32.mxu0 %v10981_v3  ;;  %v7559_v60 = vsel %vm3451_vm15, %v7554_v52, %v7556_v41 }
 0xa7b   : > { %9501 = vmatmul.mubr.msk.f32.vlgmr.msra.gmra.mrb[18].mxu0 %vm2440_vm3, %v7557_v5  ;;  %v7679_v48 = vpop.permute.xlu0 %7678  ;;  %v7691_v49 = vpop.permute.xlu1 %7690 }
 0xa7c   : > { %10026 = vmatpush1.bf16.msra.mxu0 %v10025_v40  ;;  %7657 = vmatprep.mubr.f32.mxu0 %v10981_v3 }
 0xa7f   : > { %9502 = vmatmul.mubr.msk.f32.gmra.mrb[20].mxu0 %vm2440_vm3, %v7558_v42  ;;  %v7693_v39 = vpop.permute.xlu0 %7692  ;;  %v7677_v20 = vpop.permute.xlu1 %7676 }
 0xa80   : > { %v7696_v33 = vsel %vm1679_vm10, %v7691_v49, %v7693_v39  ;;  %7713 = vmatprep.subr.mxu0 %v7693_v39  ;;  %7663 = vmatprep.mubr.f32.mxu0 %v10981_v3 }
 0xa81   : > { %7714 = vmatpush1.msra.mxu0 %v7696_v33 }
 0xa83   : > { %9503 = vmatmul.mubr.msk.f32.gmra.mrb[22].mxu0 %vm2440_vm3, %v7559_v60  ;;  %v10834_v53 = vpop.permute.xlu0 %10833  ;;  %v10829_v54 = vpop.permute.xlu1 %10828 }
 0xa84   : > { %v10836_v51 = vunpack.i.h.bf16 %v10834_v53  ;;  %v10835_v31 = vunpack.i.l.bf16 %v10834_v53  ;;  %v10831_v6 = vunpack.i.h.bf16 %v10829_v54  ;;  %v10830_v26 = vunpack.i.l.bf16 %v10829_v54  ;;  %7773 = vmatprep.mubr.f32.mxu0 %v10981_v3 }
 0xa86   : > { %v7817_v10 = vsel %vm13580_vm12, %v10835_v31, %v10836_v51  ;;  %v10027_v47 = vpack.c.bf16 %v10836_v51, %v10831_v6  ;;  %v7816_v15 = vsel %vm13581_vm5, %v10830_v26, %v10831_v6  ;;  %vm13585_vm12 = vmmov %vm13584_vm1  ;;  %vm8109_vm5 = vcmask 457728  }
 0xa87   : > { %v10029_v1 = vpack.c.bf16 %v7817_v10, %v7816_v15  ;;  %9504 = vmatmul.mubr.msk.f32.vlgmr.msra.gmra.mrb[18].mxu0 %vm2440_vm3, %v7677_v20  ;;  %v7813_v19 = vpop.permute.xlu0 %7812  ;;  %v7681_v0 = vpop.permute.xlu1 %7680 }
 0xa88   : > { %10028 = vmatprep.subr.bf16.mxu0 %v10027_v47  ;;  %7779 = vmatprep.mubr.f32.mxu0 %v10981_v3 }
 0xa89   : > { %10030 = vmatpush1.bf16.msra.mxu0 %v10029_v1 }
 0xa8b   : > { %9505 = vmatmul.mubr.msk.f32.gmra.mrb[20].mxu0 %vm2440_vm3, %v7679_v48  ;;  %v7799_v23 = vpop.permute.xlu0 %7798  ;;  %v7815_v45 = vpop.permute.xlu1 %7814 }
 0xa8c   : > { %v7818_v2 = vsel %vm13582_vm13, %v7813_v19, %v7815_v45  ;;  %7835 = vmatprep.subr.mxu0 %v7815_v45  ;;  %7785 = vmatprep.mubr.f32.mxu0 %v10981_v3 }
 0xa8d   : > { %7836 = vmatpush1.msra.mxu0 %v7818_v2 }
 0xa8f   : > { %9506 = vmatmul.mubr.msk.f32.gmra.mrb[22].mxu0 %vm2440_vm3, %v7681_v0  ;;  %v10839_v62 = vpop.permute.xlu0 %10838  ;;  %v7801_v25 = vpop.permute.xlu1 %7800 }
 0xa90   : > { %7895 = vmatprep.mubr.f32.mxu0 %v10981_v3  ;;  %v10841_v28 = vunpack.i.h.bf16 %v10839_v62  ;;  %v10840_v58 = vunpack.i.l.bf16 %v10839_v62 }
 0xa92   : > { %v7938_v57 = vsel %vm13583_vm11, %v10840_v58, %v10841_v28 }
 0xa93   : > { %9507 = vmatmul.mubr.msk.f32.vlgmr.msra.gmra.mrb[18].mxu0 %vm2440_vm3, %v7799_v23  ;;  %v7803_v44 = vpop.permute.xlu0 %7802  ;;  %v10844_v9 = vpop.permute.xlu1 %10843 }
 0xa94   : > { %v10846_v34 = vunpack.i.h.bf16 %v10844_v9  ;;  %v10845_v11 = vunpack.i.l.bf16 %v10844_v9  ;;  %7901 = vmatprep.mubr.f32.mxu0 %v10981_v3 }
 0xa96   : > { %v10031_v36 = vpack.c.bf16 %v10846_v34, %v10841_v28  ;;  %v7939_v22 = vsel %vm13584_vm1, %v10845_v11, %v10846_v34 }
 0xa97   : > { %v10033_v8 = vpack.c.bf16 %v7939_v22, %v7938_v57  ;;  %9508 = vmatmul.mubr.msk.f32.gmra.mrb[20].mxu0 %vm2440_vm3, %v7801_v25  ;;  %v7935_v17 = vpop.permute.xlu1 %7934  ;;  %v7937_v21 = vpop.permute.xlu0 %7936 }
 0xa98   : > { %10032 = vmatprep.subr.bf16.mxu0 %v10031_v36  ;;  %7907 = vmatprep.mubr.f32.mxu0 %v10981_v3  ;;  %v7940_v7 = vsel %vm13585_vm12, %v7935_v17, %v7937_v21 }
 0xa99   : > { %10034 = vmatpush1.bf16.msra.mxu0 %v10033_v8 }
 0xa9a   : > { %7957 = vmatprep.subr.mxu0 %v7937_v21  ;;  %v13300_v21 = vld [vmem:[%s13494_s8] sm:$0x77] }
 0xa9b   : > { %9509 = vmatmul.mubr.msk.f32.gmra.mrb[22].mxu0 %vm2440_vm3, %v7803_v44  ;;  %v7921_v55 = vpop.permute.xlu1 %7920  ;;  %v7923_v29 = vpop.permute.xlu0 %7922 }
 0xa9c   : > { %8017 = vmatprep.mubr.f32.mxu0 %v10981_v3 }
 0xa9d   : > { %7958 = vmatpush1.msra.mxu0 %v7940_v7 }
 0xa9f   : > { %9510 = vmatmul.mubr.msk.f32.vlgmr.msra.gmra.mrb[18].mxu0 %vm2440_vm3, %v7921_v55  ;;  %v7925_v14 = vpop.permute.xlu1 %7924 }
 0xaa0   : > { %8023 = vmatprep.mubr.f32.mxu0 %v10981_v3 }
 0xaa3   : > { %9511 = vmatmul.mubr.msk.f32.gmra.mrb[20].mxu0 %vm2440_vm3, %v7923_v29 }
 0xaa4   : > { %8029 = vmatprep.mubr.f32.mxu0 %v10981_v3 }
 0xaa7   : > { %9512 = vmatmul.mubr.msk.f32.gmra.mrb[22].mxu0 %vm2440_vm3, %v7925_v14 }
 0xaac   : > { %v8044_v13 = vpop.permute.xlu0 %8043 }
 0xab0   : > { %v8052_v38 = vpop.permute.xlu0 %8051  ;;  %v8048_v18 = vpop.permute.xlu1 %8047 }
 0xab4   : > { %v8081_v24 = vpop.permute.xlu0 %8080  ;;  %v8079_v4 = vpop.permute.xlu1 %8078 }
 0xab5   : > { %v8090_v40 = vsel %vm1082_vm7, %v8079_v4, %v8081_v24 }
 0xab8   : > { %v8085_v63 = vpop.permute.xlu0 %8084  ;;  %v8083_v16 = vpop.permute.xlu1 %8082 }
 0xab9   : > { %v8091_v6 = vsel %vm1082_vm7, %v8083_v16, %v8085_v63 }
 0xabc   : > { %v8108_v27 = vpop.permute.xlu0 %8107  ;;  %v8106_v46 = vpop.permute.xlu1 %8105 }
 0xabd   : > { %v8110_v5 = vsel %vm8109_vm5, %v8106_v46, %v8108_v27 }
 0xac0   : > { %v8089_v1 = vpop.permute.xlu0 %8088  ;;  %v8087_v19 = vpop.permute.xlu1 %8086 }
 0xac1   : > { %v8092_v44 = vsel %vm1082_vm7, %v8087_v19, %v8089_v1 }
 0xb72   : > { %v8019_v50 = vpop.f32.mrb[18].mxu0 }
 0xb73   : > { %v8054_v35 = vadd.f32 %v8044_v13, %v8019_v50  ;;  %v8021_v37 = vpop.f32.mrb[19].mxu0 }
 0xb74   : > { %v8055_v56 = vadd.f32 %v8044_v13, %v8021_v37 }
 0xb75   : > { %vm8060_vm13 = vcmp.ge.f32.partialorder %v8054_v35, 0.0  ;;  %v8066_v30 = vmul.f32 0.2, %v8054_v35 }
 0xb76   : > { %vm8061_vm11 = vcmp.ge.f32.partialorder %v8055_v56, 0.0  ;;  %v8067_v41 = vmul.f32 0.2, %v8055_v56  ;;  %v8025_v52 = vpop.f32.mrb[20].mxu0 }
 0xb77   : > { %v8072_v48 = vsel %vm8060_vm13, %v8054_v35, %v8066_v30  ;;  %v8056_v49 = vadd.f32 %v8048_v18, %v8025_v52  ;;  %v8027_v42 = vpop.f32.mrb[21].mxu0 }
 0xb78   : > { %v8099_v39 = vadd.f32 %v8090_v40, %v8072_v48  ;;  %v8073_v20 = vsel %vm8061_vm11, %v8055_v56, %v8067_v41  ;;  %v8057_v33 = vadd.f32 %v8048_v18, %v8027_v42  ;;  %vm8150_vm11 = vcmask 433152  }
 0xb79   : > { %v8100_v60 = vadd.f32 %v8081_v24, %v8073_v20  ;;  %vm8062_vm1 = vcmp.ge.f32.partialorder %v8056_v49, 0.0  ;;  %v8068_v53 = vmul.f32 0.2, %v8056_v49 }
 0xb7a   : > { %v8113_v54 = vmul.f32 %v8110_v5, %v8099_v39  ;;  %vm8063_vm12 = vcmp.ge.f32.partialorder %v8057_v33, 0.0  ;;  %v8069_v51 = vmul.f32 0.2, %v8057_v33  ;;  %v8031_v31 = vpop.f32.mrb[22].mxu0 }
 0xb7b   : > { %v8114_v26 = vmul.f32 %v8108_v27, %v8100_v60  ;;  %v8074_v10 = vsel %vm8062_vm1, %v8056_v49, %v8068_v53  ;;  %v8058_v47 = vadd.f32 %v8052_v38, %v8031_v31  ;;  %v8033_v15 = vpop.f32.mrb[23].mxu0 }
 0xb7c   : > { %v8101_v0 = vadd.f32 %v8091_v6, %v8074_v10  ;;  %v8075_v23 = vsel %vm8063_vm12, %v8057_v33, %v8069_v51  ;;  %v8059_v45 = vadd.f32 %v8052_v38, %v8033_v15 }
 0xb7d   : > { %v8102_v2 = vadd.f32 %v8085_v63, %v8075_v23  ;;  %vm8064_vm5 = vcmp.ge.f32.partialorder %v8058_v47, 0.0  ;;  %v8070_v62 = vmul.f32 0.2, %v8058_v47  ;;  %v10847_v25 = vpack.i.bf16 %v8114_v26, %v8113_v54 }
 0xb7e   : > { %v8115_v28 = vmul.f32 %v8110_v5, %v8101_v0  ;;  %vm8065_vm13 = vcmp.ge.f32.partialorder %v8059_v45, 0.0  ;;  %v8071_v58 = vmul.f32 0.2, %v8059_v45 }
 0xb7f   : > { %v8116_v9 = vmul.f32 %v8108_v27, %v8102_v2  ;;  %v8076_v34 = vsel %vm8064_vm5, %v8058_v47, %v8070_v62  ;;  %10848 = vrot.lane.b32.xlu1 %v10847_v25, %s13571_s13 }
 0xb80   : > { %v8103_v11 = vadd.f32 %v8092_v44, %v8076_v34  ;;  %v8077_v57 = vsel %vm8065_vm13, %v8059_v45, %v8071_v58 }
 0xb81   : > { %v8104_v36 = vadd.f32 %v8089_v1, %v8077_v57  ;;  %v10852_v22 = vpack.i.bf16 %v8116_v9, %v8115_v28 }
 0xb82   : > { %v8117_v8 = vmul.f32 %v8110_v5, %v8103_v11  ;;  %v8626_v5 = vcombine.high %v13300_v21, %v13300_v21 }
 0xb83   : > { %10853 = vrot.lane.b32.xlu0 %v10852_v22, %s13571_s13  ;;  %v8118_v17 = vmul.f32 %v8108_v27, %v8104_v36 }
 0xb84   : > { %8134 = vrot.lane.b32.xlu1 %v8117_v8, %s13571_s13 }
 0xb87   : > { %8136 = vrot.lane.b32.xlu0 %v8118_v17, %s13571_s13 }
 0xb88   : > { %8155 = vrot.lane.b32.xlu1 %v13300_v21, %s13573_s2  ;;  %s11009_s2 = smov 38  }
 0xb8b   : > { %8257 = vrot.lane.b32.xlu0 %v13300_v21, %s13574_s0 }
 0xb8c   : > { %8332 = vrot.lane.b32.xlu1 %v13300_v21, %s13575_s3 }
 0xbf1   : > { %v10849_v7 = vpop.permute.xlu1 %10848 }
 0xbf2   : > { %v10851_v55 = vunpack.i.h.bf16 %v10849_v7  ;;  %v13309_v29 = vunpack.i.l.bf16 %v10849_v7 }
 0xbf4   : > { %v13313_v14 = vsel %vm485_vm0, %v13309_v29, %v10851_v55  ;;  %v8147_v13 = vsel %vm485_vm0, 0.0, %v13309_v29 }
 0xbf5   : > { %v8151_v38 = vsel %vm8150_vm11, %v13313_v14, 0.0  ;;  %v10854_v18 = vpop.permute.xlu0 %10853 }
 0xbf6   : > { %v10856_v24 = vunpack.i.h.bf16 %v10854_v18  ;;  %v13319_v4 = vunpack.i.l.bf16 %v10854_v18  ;;  %v10857_v63 = vpack.i.bf16 %v8151_v38, %v8147_v13  ;;  %v13334_v30 = vpop.permute.xlu1 %8134 }
 0xbf7   : > { %v8149_v41 = vsel %vm485_vm0, 0.0, %v13334_v30 }
 0xbf8   : > { %v13323_v16 = vsel %vm485_vm0, %v13319_v4, %v10856_v24  ;;  %v8148_v50 = vsel %vm485_vm0, 0.0, %v13319_v4  ;;  %v10042_v35 = vpack.c.bf16 %v13319_v4, %v13309_v29  ;;  %10858 = vrot.lane.b32.xlu1 %v10857_v63, %s13574_s0 }
 0xbf9   : > { %v8152_v37 = vsel %vm8150_vm11, %v13323_v16, 0.0  ;;  %v10039_v56 = vpack.c.bf16 %v13323_v16, %v13313_v14  ;;  %v8137_v46 = vpop.permute.xlu0 %8136 }
 0xbfa   : > { %v10867_v27 = vpack.i.bf16 %v8152_v37, %v8148_v50  ;;  %v13342_v52 = vsel %vm485_vm0, %v13334_v30, %v8137_v46  ;;  %v8156_v48 = vpop.permute.xlu1 %8155  ;;  %vm10040_vm0 = vmpackc.low %vm8150_vm11, %vm8150_vm11 }
 0xbfb   : > { %v8153_v40 = vsel %vm8150_vm11, %v13342_v52, 0.0 }
 0xbfc   : > { %10863 = vrot.lane.b32.xlu1 %v10857_v63, %s13556_s29  ;;  %10868 = vrot.lane.b32.xlu0 %v10867_v27, %s13574_s0 }
 0xbfd   : > { %v8258_v42 = vpop.permute.xlu0 %8257 }
 0xbfe   : > { %v8333_v49 = vpop.permute.xlu1 %8332 }
 0xc00   : > { %8171 = vrot.lane.b32.xlu1 %v8149_v41, %s13574_s0  ;;  %10873 = vrot.lane.b32.xlu0 %v10867_v27, %s13556_s29 }
 0xc04   : > { %8342 = vrot.lane.b32.xlu1 %v8149_v41, %s13556_s29  ;;  %8173 = vrot.lane.b32.xlu0 %v8153_v40, %s13574_s0 }
 0xc08   : > { %10883 = vrot.lane.b32.xlu1 %v10867_v27, %s13558_s21  ;;  %10878 = vrot.lane.b32.xlu0 %v10857_v63, %s13558_s21 }
 0xc0c   : > { %10888 = vrot.lane.b32.xlu1 %v10857_v63, %s13557_s14  ;;  %8440 = vrot.lane.b32.xlu0 %v8149_v41, %s13558_s21 }
 0xc10   : > { %8538 = vrot.lane.b32.xlu1 %v8149_v41, %s13557_s14  ;;  %8430 = vrot.lane.b32.xlu0 %v13300_v21, %s13576_s4 }
 0xc14   : > { %8528 = vrot.lane.b32.xlu1 %v13300_v21, %s13560_s23  ;;  %8344 = vrot.lane.b32.xlu0 %v8153_v40, %s13556_s29 }
 0xc18   : > { %8442 = vrot.lane.b32.xlu1 %v8153_v40, %s13558_s21  ;;  %10893 = vrot.lane.b32.xlu0 %v10867_v27, %s13557_s14 }
 0xc1c   : > { %10903 = vrot.lane.b32.xlu1 %v10867_v27, %s13559_s25  ;;  %10898 = vrot.lane.b32.xlu0 %v10857_v63, %s13559_s25 }
 0xc20   : > { %8629 = vrot.lane.b32.xlu1 %v8626_v5, %s13561_s20  ;;  %8640 = vrot.lane.b32.xlu0 %v8149_v41, %s13559_s25 }
 0xc24   : > { %10913 = vrot.lane.b32.xlu1 %v10867_v27, %s13562_s11  ;;  %8540 = vrot.lane.b32.xlu0 %v8153_v40, %s13557_s14 }
 0xc28   : > { %8642 = vrot.lane.b32.xlu1 %v8153_v40, %s13559_s25  ;;  %8627 = vrot.lane.b32.xlu0 %v13300_v21, %s13561_s20 }
 0xc2c   : > { %10918 = vrot.lane.b32.xlu1 %v10857_v63, %s13548_s12  ;;  %10908 = vrot.lane.b32.xlu0 %v10857_v63, %s13562_s11 }
 0xc30   : > { %8740 = vrot.lane.b32.xlu1 %v8153_v40, %s13562_s11  ;;  %8738 = vrot.lane.b32.xlu0 %v8149_v41, %s13562_s11  ;;  %s13448_s11 = sshll.u32 %s11100_s24, 2 }
 0xc31   : > { %s469_s21 = scalar_lea.vmem %s13496_s10, %s13448_s11  ;;  %s460_s23 = scalar_lea.vmem %s13495_s9, %s13448_s11 }
 0xc34   : > { %8836 = vrot.lane.b32.xlu1 %v8149_v41, %s13548_s12  ;;  %8728 = vrot.lane.b32.xlu0 %v8626_v5, %s13547_s22 }
 0xc38   : > { %8826 = vrot.lane.b32.xlu1 %v8626_v5, %s13563_s30  ;;  %10923 = vrot.lane.b32.xlu0 %v10867_v27, %s13548_s12 }
 0xc3c   : > { %10933 = vrot.lane.b32.xlu1 %v10867_v27, %s13549_s27  ;;  %8838 = vrot.lane.b32.xlu0 %v8153_v40, %s13548_s12 }
 0xc40   : > { %8936 = vrot.lane.b32.xlu1 %v8153_v40, %s13549_s27  ;;  %10928 = vrot.lane.b32.xlu0 %v10857_v63, %s13549_s27 }
 0xc44   : > { %9023 = vperm.xlu1 %10406, %v13300_v21   ;;  %8934 = vrot.lane.b32.xlu0 %v8149_v41, %s13549_s27  ;;  %s447_s27 = scalar_lea.vmem %s13487_s1, %s13448_s11 }
 0xc48   : > { %8924 = vrot.lane.b32.xlu0 %v8626_v5, %s13564_s26  ;;  %9040 = vrot.lane.b32.xlu1 %v11520_v59, %s11009_s2 }
 0xc4c   : > { %9038 = vrot.lane.b32.xlu0 %v11524_v12, %s11009_s2 }
 0xc6a   : > { %v10859_v39 = vpop.permute.xlu1 %10858 }
 0xc6b   : > { %v10861_v20 = vunpack.i.h.bf16 %v10859_v39  ;;  %v10860_v33 = vunpack.i.l.bf16 %v10859_v39 }
 0xc6d   : > { %v8175_v31 = vsel %vm510_vm2, %v10860_v33, %v10861_v20 }
 0xc6e   : > { %v10864_v60 = vpop.permute.xlu1 %10863  ;;  %v10869_v53 = vpop.permute.xlu0 %10868 }
 0xc6f   : > { %v10871_v54 = vunpack.i.h.bf16 %v10869_v53  ;;  %v10870_v51 = vunpack.i.l.bf16 %v10869_v53  ;;  %v10866_v2 = vunpack.i.h.bf16 %v10864_v60  ;;  %v10865_v62 = vunpack.i.l.bf16 %v10864_v60 }
 0xc71   : > { %v10035_v6 = vpack.c.bf16 %v10871_v54, %v10861_v20  ;;  %v8176_v26 = vsel %vm510_vm2, %v10870_v51, %v10871_v54  ;;  %v8346_v9 = vsel %vm883_vm6, %v10865_v62, %v10866_v2 }
 0xc72   : > { %v10037_v10 = vpack.c.bf16 %v8176_v26, %v8175_v31  ;;  %v8172_v47 = vpop.permute.xlu1 %8171  ;;  %v10874_v59 = vpop.permute.xlu0 %10873 }
 0xc73   : > { %10036 = vmatprep.subr.bf16.mxu1 %v10035_v6  ;;  %v10876_v19 = vunpack.i.h.bf16 %v10874_v59  ;;  %v10875_v0 = vunpack.i.l.bf16 %v10874_v59 }
 0xc74   : > { %10038 = vmatpush1.bf16.msra.mxu1 %v10037_v10 }
 0xc75   : > { %v10045_v25 = vpack.c.bf16 %v10876_v19, %v10866_v2  ;;  %v8347_v28 = vsel %vm883_vm6, %v10875_v0, %v10876_v19 }
 0xc76   : > { %v8343_v12 = vpop.permute.xlu1 %8342  ;;  %v8174_v15 = vpop.permute.xlu0 %8173  ;;  %v10047_v32 = vpack.c.bf16 %v8347_v28, %v8346_v9 }
 0xc77   : > { %v8177_v1 = vsel %vm510_vm2, %v8172_v47, %v8174_v15  ;;  %8190 = vmatprep.subr.mxu1 %v8174_v15  ;;  %vm13586_vm2 = vcmask 744448  }
 0xc78   : > { %8191 = vmatpush1.msra.mxu1 %v8177_v1 }
 0xc79   : > { %9513 = vmatmul.mubr.msk.f32.vlgmr.msra.gmra.mrb[120].mxu1 %vm2440_vm3, %v8156_v48  ;;  %10041 = vmatprep.subr.msk.bf16.mxu1 %vm10040_vm0, %v10039_v56 }
 0xc7a   : > { %v10884_v23 = vpop.permute.xlu1 %10883  ;;  %v10879_v45 = vpop.permute.xlu0 %10878  ;;  %10044 = vmatpush1.bf16.msk.msra.mxu1 %vm11867_vm14, %v10042_v35  ;;  %8325 = vmatprep.mubr.f32.mxu1 %v10981_v3  ;;  %vm9059_vm14 = vcmask 129028  }
 0xc7b   : > { %9520 = vmatprep.subr.msk.mxu1 %vm8150_vm11, %v13342_v52  ;;  %v10886_v34 = vunpack.i.h.bf16 %v10884_v23  ;;  %v10885_v11 = vunpack.i.l.bf16 %v10884_v23  ;;  %v10881_v57 = vunpack.i.h.bf16 %v10879_v45  ;;  %v10880_v36 = vunpack.i.l.bf16 %v10879_v45 }
 0xc7d   : > { %v8445_v17 = vsel %vm1082_vm7, %v10885_v11, %v10886_v34  ;;  %v8444_v61 = vsel %vm1082_vm7, %v10880_v36, %v10881_v57  ;;  %v10049_v55 = vpack.c.bf16 %v10886_v34, %v10881_v57 }
 0xc7e   : > { %v10889_v58 = vpop.permute.xlu1 %10888  ;;  %v8441_v44 = vpop.permute.xlu0 %8440  ;;  %9522 = vmatpush1.msk.msra.mxu1 %vm11850_vm4, %v13334_v30  ;;  %v10051_v14 = vpack.c.bf16 %v8445_v17, %v8444_v61  ;;  %vm9058_vm4 = vcmask 1042432  }
 0xc7f   : > { %10046 = vmatprep.subr.bf16.mxu1 %v10045_v25  ;;  %v10891_v13 = vunpack.i.h.bf16 %v10889_v58  ;;  %v10890_v38 = vunpack.i.l.bf16 %v10889_v58 }
 0xc81   : > { %9523 = vmatmul.mubr.msk.f32.vlgmr.msra.gmra.mrb[120].mxu1 %vm2440_vm3, %v8258_v42  ;;  %v8542_v16 = vsel %vm1281_vm8, %v10890_v38, %v10891_v13 }
 0xc82   : > { %10048 = vmatpush1.bf16.msra.mxu1 %v10047_v32  ;;  %v8539_v22 = vpop.permute.xlu1 %8538  ;;  %v8431_v8 = vpop.permute.xlu0 %8430  ;;  %8421 = vmatprep.mubr.f32.mxu1 %v10981_v3 }
 0xc86   : > { %v8529_v21 = vpop.permute.xlu1 %8528  ;;  %v8345_v7 = vpop.permute.xlu0 %8344 }
 0xc87   : > { %v8348_v29 = vsel %vm883_vm6, %v8343_v12, %v8345_v7  ;;  %8361 = vmatprep.subr.mxu1 %v8345_v7  ;;  %vm13587_vm6 = vmmov %vm13586_vm2 }
 0xc88   : > { %8362 = vmatpush1.msra.mxu1 %v8348_v29 }
 0xc89   : > { %9524 = vmatmul.mubr.msk.f32.vlgmr.msra.gmra.mrb[120].mxu1 %vm2440_vm3, %v8333_v49  ;;  %10050 = vmatprep.subr.bf16.mxu1 %v10049_v55 }
 0xc8a   : > { %v8443_v18 = vpop.permute.xlu1 %8442  ;;  %v10894_v24 = vpop.permute.xlu0 %10893  ;;  %10052 = vmatpush1.bf16.msra.mxu1 %v10051_v14  ;;  %8519 = vmatprep.mubr.f32.mxu1 %v10981_v3 }
 0xc8b   : > { %v10896_v4 = vunpack.i.h.bf16 %v10894_v24  ;;  %v10895_v63 = vunpack.i.l.bf16 %v10894_v24  ;;  %8459 = vmatprep.subr.mxu1 %v8443_v18  ;;  %v8446_v50 = vsel %vm1082_vm7, %v8441_v44, %v8443_v18  ;;  %vm13588_vm7 = vmmov %vm13586_vm2 }
 0xc8d   : > { %v10053_v35 = vpack.c.bf16 %v10896_v4, %v10891_v13  ;;  %v8543_v37 = vsel %vm1281_vm8, %v10895_v63, %v10896_v4 }
 0xc8e   : > { %v10055_v56 = vpack.c.bf16 %v8543_v37, %v8542_v16  ;;  %v10904_v27 = vpop.permute.xlu1 %10903  ;;  %v10899_v30 = vpop.permute.xlu0 %10898  ;;  %8460 = vmatpush1.msra.mxu1 %v8446_v50  ;;  %v9048_v37 = vld [vmem:[%s447_s27] sm:$0x77] }
 0xc8f   : > { %10054 = vmatprep.subr.bf16.mxu1 %v10053_v35  ;;  %v10906_v46 = vunpack.i.h.bf16 %v10904_v27  ;;  %v10905_v41 = vunpack.i.l.bf16 %v10904_v27  ;;  %v10901_v52 = vunpack.i.h.bf16 %v10899_v30  ;;  %v10900_v40 = vunpack.i.l.bf16 %v10899_v30 }
 0xc91   : > { %9525 = vmatmul.mubr.msk.f32.vlgmr.msra.gmra.mrb[120].mxu1 %vm2440_vm3, %v8431_v8  ;;  %v8645_v49 = vsel %vm1480_vm9, %v10905_v41, %v10906_v46  ;;  %v8644_v42 = vsel %vm1480_vm9, %v10900_v40, %v10901_v52  ;;  %v10057_v33 = vpack.c.bf16 %v10906_v46, %v10901_v52  ;;  %v11010_v52 = vmov 839922192  }
 0xc92   : > { %10056 = vmatpush1.bf16.msra.mxu1 %v10055_v56  ;;  %v8630_v5 = vpop.permute.xlu1 %8629  ;;  %v8641_v48 = vpop.permute.xlu0 %8640  ;;  %8617 = vmatprep.mubr.f32.mxu1 %v10981_v3  ;;  %v10059_v53 = vpack.c.bf16 %v8645_v49, %v8644_v42  ;;  %v9027_v40 = vunpack.c.l.s4 %v11010_v52 }
 0xc96   : > { %v10914_v39 = vpop.permute.xlu1 %10913  ;;  %v8541_v20 = vpop.permute.xlu0 %8540 }
 0xc97   : > { %v8544_v60 = vsel %vm1281_vm8, %v8539_v22, %v8541_v20  ;;  %8557 = vmatprep.subr.mxu1 %v8541_v20  ;;  %v10916_v31 = vunpack.i.h.bf16 %v10914_v39  ;;  %v10915_v6 = vunpack.i.l.bf16 %v10914_v39  ;;  %vm13589_vm8 = vcmask 736256  }
 0xc98   : > { %8558 = vmatpush1.msra.mxu1 %v8544_v60 }
 0xc99   : > { %9526 = vmatmul.mubr.msk.f32.vlgmr.msra.gmra.mrb[120].mxu1 %vm2440_vm3, %v8529_v21  ;;  %10058 = vmatprep.subr.bf16.mxu1 %v10057_v33  ;;  %v8743_v1 = vsel %vm1679_vm10, %v10915_v6, %v10916_v31  ;;  %v9050_v6 = vcombine.high %v9048_v37, %v9048_v37 }
 0xc9a   : > { %v8643_v54 = vpop.permute.xlu1 %8642  ;;  %v8628_v51 = vpop.permute.xlu0 %8627  ;;  %10060 = vmatpush1.bf16.msra.mxu1 %v10059_v53  ;;  %8719 = vmatprep.mubr.f32.mxu1 %v10981_v3 }
 0xc9b   : > { %8659 = vmatprep.subr.mxu1 %v8643_v54  ;;  %v8646_v26 = vsel %vm1480_vm9, %v8641_v48, %v8643_v54  ;;  %v8631_v15 = vsel %vm3451_vm15, %v8628_v51, %v8630_v5  ;;  %vm13590_vm9 = vmmov %vm13589_vm8  ;;  %v9028_v5 = vunpack.c.0.s8 %v9027_v40  ;;  %vm9042_vm15 = vcmask 310272  }
 0xc9d   : > { %v9031_v48 = vsub.s32 %v9028_v5, %v11510_v43 }
 0xc9e   : > { %v10919_v10 = vpop.permute.xlu1 %10918  ;;  %v10909_v47 = vpop.permute.xlu0 %10908  ;;  %8660 = vmatpush1.msra.mxu1 %v8646_v26 }
 0xc9f   : > { %v10911_v59 = vunpack.i.h.bf16 %v10909_v47  ;;  %v10910_v12 = vunpack.i.l.bf16 %v10909_v47  ;;  %v10921_v58 = vunpack.i.h.bf16 %v10919_v10  ;;  %v10920_v44 = vunpack.i.l.bf16 %v10919_v10 }
 0xca1   : > { %v10061_v19 = vpack.c.bf16 %v10916_v31, %v10911_v59  ;;  %v8742_v0 = vsel %vm1679_vm10, %v10910_v12, %v10911_v59  ;;  %9527 = vmatmul.mubr.msk.f32.vlgmr.msra.gmra.mrb[120].mxu1 %vm2440_vm3, %v8631_v15  ;;  %v8840_v57 = vsel %vm13586_vm2, %v10920_v44, %v10921_v58 }
 0xca2   : > { %v10063_v23 = vpack.c.bf16 %v8743_v1, %v8742_v0  ;;  %v8741_v45 = vpop.permute.xlu1 %8740  ;;  %v8739_v2 = vpop.permute.xlu0 %8738  ;;  %8817 = vmatprep.mubr.f32.mxu1 %v10981_v3 }
 0xca3   : > { %10062 = vmatprep.subr.bf16.mxu1 %v10061_v19  ;;  %v8744_v28 = vsel %vm1679_vm10, %v8739_v2, %v8741_v45  ;;  %vm13591_vm10 = vmmov %vm13589_vm8 }
 0xca4   : > { %10064 = vmatpush1.bf16.msra.mxu1 %v10063_v23 }
 0xca5   : > { %8757 = vmatprep.subr.mxu1 %v8741_v45 }
 0xca6   : > { %v8837_v62 = vpop.permute.xlu1 %8836  ;;  %v8729_v25 = vpop.permute.xlu0 %8728 }
 0xca8   : > { %8758 = vmatpush1.msra.mxu1 %v8744_v28 }
 0xca9   : > { %9528 = vmatmul.mubr.msk.f32.vlgmr.msra.gmra.mrb[120].mxu1 %vm2440_vm3, %v8729_v25 }
 0xcaa   : > { %v8827_v9 = vpop.permute.xlu1 %8826  ;;  %v10924_v32 = vpop.permute.xlu0 %10923  ;;  %8915 = vmatprep.mubr.f32.mxu1 %v10981_v3 }
 0xcab   : > { %v10926_v34 = vunpack.i.h.bf16 %v10924_v32  ;;  %v10925_v11 = vunpack.i.l.bf16 %v10924_v32 }
 0xcad   : > { %v10065_v36 = vpack.c.bf16 %v10926_v34, %v10921_v58  ;;  %v8841_v22 = vsel %vm13587_vm6, %v10925_v11, %v10926_v34 }
 0xcae   : > { %v10067_v8 = vpack.c.bf16 %v8841_v22, %v8840_v57  ;;  %v10934_v17 = vpop.permute.xlu1 %10933  ;;  %v8839_v61 = vpop.permute.xlu0 %8838 }
 0xcaf   : > { %10066 = vmatprep.subr.bf16.mxu1 %v10065_v36  ;;  %v10936_v21 = vunpack.i.h.bf16 %v10934_v17  ;;  %v10935_v7 = vunpack.i.l.bf16 %v10934_v17  ;;  %v8842_v29 = vsel %vm13588_vm7, %v8837_v62, %v8839_v61 }
 0xcb0   : > { %10068 = vmatpush1.bf16.msra.mxu1 %v10067_v8 }
 0xcb1   : > { %8855 = vmatprep.subr.mxu1 %v8839_v61  ;;  %v8939_v38 = vsel %vm13589_vm8, %v10935_v7, %v10936_v21 }
 0xcb2   : > { %v10929_v55 = vpop.permute.xlu0 %10928  ;;  %v8937_v16 = vpop.permute.xlu1 %8936 }
 0xcb3   : > { %v10931_v14 = vunpack.i.h.bf16 %v10929_v55  ;;  %v10930_v13 = vunpack.i.l.bf16 %v10929_v55 }
 0xcb4   : > { %8856 = vmatpush1.msra.mxu1 %v8842_v29 }
 0xcb5   : > { %v10069_v18 = vpack.c.bf16 %v10936_v21, %v10931_v14  ;;  %v8938_v24 = vsel %vm13590_vm9, %v10930_v13, %v10931_v14  ;;  %9529 = vmatmul.mubr.msk.f32.vlgmr.msra.gmra.mrb[120].mxu1 %vm2440_vm3, %v8827_v9 }
 0xcb6   : > { %v10071_v4 = vpack.c.bf16 %v8939_v38, %v8938_v24  ;;  %v8935_v63 = vpop.permute.xlu0 %8934  ;;  %9013 = vmatprep.mubr.f32.mxu1 %v10981_v3  ;;  %v9062_v3 = vmax.f32 %v9048_v37, 0.0 }
 0xcb7   : > { %10070 = vmatprep.subr.bf16.mxu1 %v10069_v18  ;;  %v8940_v35 = vsel %vm13591_vm10, %v8935_v63, %v8937_v16 }
 0xcb8   : > { %10072 = vmatpush1.bf16.msra.mxu1 %v10071_v4  ;;  %v9063_v56 = vmin.f32 %v9062_v3, 1.0 }
 0xcb9   : > { %8953 = vmatprep.subr.mxu1 %v8937_v16 }
 0xcba   : > { %v8925_v50 = vpop.permute.xlu0 %8924  ;;  %v9064_v27 = vmul.f32 255.0, %v9063_v56 }
 0xcbc   : > { %8954 = vmatpush1.msra.mxu1 %v8940_v35  ;;  %v10333_v30 = vround.rtne.f32 %v9064_v27 }
 0xcbd   : > { %9530 = vmatmul.mubr.msk.f32.vlgmr.msra.gmra.mrb[120].mxu1 %vm2440_vm3, %v8925_v50  ;;  %vm13458_vm3 = vmor %vm9059_vm14, %vm9058_vm4 }
 0xcbe   : > { %v9066_v41 = vmul.f32 0.003921569, %v10333_v30  ;;  %v9039_v20 = vpop.permute.xlu0 %9038 }
 0xcc0   : > { %9067 = vst.msk [vmem:[%s469_s21] sm:$0x77] %vm13458_vm3, %v9066_v41 }
 0xcc3   : > { %v9024_v49 = vpop.permute.xlu1 %9023 }
 0xcc4   : > { %v9032_v42 = vrot.slane %v9024_v49, %v9031_v48 }
 0xcc6   : > { %v9034_v53 = vcombine.high %v9032_v42, %v9032_v42 }
 0xcc7   : > { %v9041_v39 = vpop.permute.xlu1 %9040 }
 0xcc8   : > { %v9043_v60 = vsel %vm9042_vm15, %v9039_v20, %v9041_v39 }
 0xd90   : > { %v9015_v33 = vpop.f32.mrb[120].mxu1 }
 0xd91   : > { %v9036_v54 = vadd.f32 %v9032_v42, %v9015_v33  ;;  %v9017_v51 = vpop.f32.mrb[121].mxu1 }
 0xd92   : > { %v9037_v31 = vadd.f32 %v9034_v53, %v9017_v51 }
 0xd93   : > { %v9046_v26 = vmul.f32 %v9043_v60, %v9036_v54 }
 0xd94   : > { %v9047_v10 = vmul.f32 %v9041_v39, %v9037_v31 }
 0xd95   : > { %v9052_v47 = vadd.f32 %v9048_v37, %v9046_v26 }
 0xd96   : > { %v9053_v59 = vadd.f32 %v9050_v6, %v9047_v10 }
 0xd98   : > { %v9056_v43 = vcombine.low %v9052_v47, %v9053_v59 }
 0xd9a   : > { %9061 = vst.msk [vmem:[%s460_s23] sm:$0x77] %vm13458_vm3, %v9056_v43 }
 0xd9b PF: > { %s21_s17 = sadd.s32 1, %s10978_s17   ;;  %s13594_s14 = sld [smem:[#allocation2_spill]] }
 0xd9c   : > { %p18_p7 = scmp.ge.s32.totalorder %s21_s17, 22   ;;  %s13595_s20 = sld [smem:[#allocation3_spill]] }
 0xd9d   : > { %s13596_s16 = sld [smem:[#allocation4_spill]]  ;;  %s13597_s13 = smov %s10970_s15 }
 0xd9e   :  { %20 = sbr.rel (!%p18_p7) target bundleno = 7 (0x7), region = 104 }
 0xda2   : > { %s13598_s15 = smov %s13595_s20 }

</bundles_post_ra>
